<compile_context>
chip_gen: v6e
topology: v6e:2x2x1
jax: 0.10.0
libtpu: 0.0.40
codegen_flags: <defaults>
</compile_context>

<pallas_src>
import jax
import jax.numpy as jnp
from jax.experimental import pallas as pl
from jax.experimental.pallas import tpu as pltpu

# ---------------- config (small synthetic CLIP) ----------------
B = 2
VOCAB = 64
SEQ = 8
T_H = 32          # text hidden
T_HEADS = 4
T_DH = T_H // T_HEADS
T_FFN = 64
T_LAYERS = 2

IMG = 16
PATCH = 8
C_IN = 3
V_H = 32          # vision hidden
V_HEADS = 4
V_DH = V_H // V_HEADS
V_FFN = 64
V_LAYERS = 2
GRID_P = IMG // PATCH
N_PATCH = GRID_P * GRID_P
V_SEQ = N_PATCH + 1        # 5 real tokens (cls + patches)
V_SEQ_PAD = 8              # padded per-image sequence (sublane aligned)

PROJ = 32                  # projection_dim
NUM_LABELS = 2
OUT_DIM = 1 if NUM_LABELS == 2 else NUM_LABELS
LN_EPS = 1e-5
NEG_INF = -1e9

assert B * SEQ == B * V_SEQ_PAD and T_H == V_H   # towers share the scratch shapes


# ---------------- in-kernel helpers ----------------
def _ln(x, g, b):
    mu = jnp.mean(x, axis=-1, keepdims=True)
    var = jnp.mean(jnp.square(x - mu), axis=-1, keepdims=True)
    return (x - mu) * jax.lax.rsqrt(var + LN_EPS) * g + b


def _encoder_layer(x, attn_bias, bsz, seq, heads, dh, qkv_ref, ctx_ref,
                   ln1g, ln1b, wqkv, bqkv, wo, bo,
                   ln2g, ln2b, w1, b1, w2, b2):
    """One CLIP encoder layer on flat activations x: (bsz*seq, heads*dh)."""
    hid = heads * dh
    resid = x
    xn = _ln(x, ln1g, ln1b)
    # fused QKV projection (query scale pre-folded into wq / bq at init)
    qkv_ref[...] = jnp.dot(xn, wqkv, preferred_element_type=jnp.float32) + bqkv
    # per-(batch, head) attention with fully static slicing on VMEM scratch
    for bi in range(bsz):
        r0 = bi * seq
        for h in range(heads):
            c0 = h * dh
            qh = qkv_ref[r0:r0 + seq, c0:c0 + dh]
            kh = qkv_ref[r0:r0 + seq, hid + c0:hid + c0 + dh]
            vh = qkv_ref[r0:r0 + seq, 2 * hid + c0:2 * hid + c0 + dh]
            s = jnp.dot(qh, kh.T, preferred_element_type=jnp.float32) + attn_bias
            s = s - jnp.max(s, axis=-1, keepdims=True)
            p = jnp.exp(s)
            p = p / jnp.sum(p, axis=-1, keepdims=True)
            ctx_ref[r0:r0 + seq, c0:c0 + dh] = jnp.dot(
                p, vh, preferred_element_type=jnp.float32)
    o = jnp.dot(ctx_ref[...], wo, preferred_element_type=jnp.float32) + bo
    x = resid + o

    resid = x
    xn = _ln(x, ln2g, ln2b)
    hmid = jnp.dot(xn, w1, preferred_element_type=jnp.float32) + b1
    hmid = hmid * jax.nn.sigmoid(1.702 * hmid)   # CLIP quick_gelu
    ff = jnp.dot(hmid, w2, preferred_element_type=jnp.float32) + b2
    return resid + ff


# ---------------- single fused kernel (text + vision + head) ----------------
def _clip_fused_kernel(
        # ---- text tower ----
        x0_ref, sel_ref,
        t_ln1g_ref, t_ln1b_ref, t_wqkv_ref, t_bqkv_ref, t_wo_ref, t_bo_ref,
        t_ln2g_ref, t_ln2b_ref, t_w1_ref, t_b1_ref, t_w2_ref, t_b2_ref,
        t_lnfg_ref, t_lnfb_ref, t_proj_ref,
        # ---- vision tower ----
        patch_ref, pw_ref, clspos_ref,
        v_lnpre_g_ref, v_lnpre_b_ref,
        v_ln1g_ref, v_ln1b_ref, v_wqkv_ref, v_bqkv_ref, v_wo_ref, v_bo_ref,
        v_ln2g_ref, v_ln2b_ref, v_w1_ref, v_b1_ref, v_w2_ref, v_b2_ref,
        v_lnpost_g_ref, v_lnpost_b_ref, v_proj_ref,
        # ---- fusion head ----
        w1t_ref, w1v_ref, b1_ref, w2_ref, b2_ref, w3_ref, b3_ref,
        # ---- output + scratch ----
        o_ref, qkv_scr, ctx_scr):

    # ===================== text tower =====================
    # causal additive bias built in-kernel (no HBM mask buffer / DMA)
    row = jax.lax.broadcasted_iota(jnp.int32, (SEQ, SEQ), 0)
    col = jax.lax.broadcasted_iota(jnp.int32, (SEQ, SEQ), 1)
    causal_bias = jnp.where(col <= row, 0.0, NEG_INF).astype(jnp.float32)

    x = x0_ref[...]                                   # (B*SEQ, T_H)
    for l in range(T_LAYERS):
        x = _encoder_layer(
            x, causal_bias, B, SEQ, T_HEADS, T_DH, qkv_scr, ctx_scr,
            t_ln1g_ref[l], t_ln1b_ref[l], t_wqkv_ref[l], t_bqkv_ref[l],
            t_wo_ref[l], t_bo_ref[l], t_ln2g_ref[l], t_ln2b_ref[l],
            t_w1_ref[l], t_b1_ref[l], t_w2_ref[l], t_b2_ref[l])
    xf = _ln(x, t_lnfg_ref[...], t_lnfb_ref[...])
    # EOS pooling (CLIP pools at the max-id token) via one-hot selector matmul
    t_pooled = jnp.dot(sel_ref[...], xf, preferred_element_type=jnp.float32)
    tfeat = jnp.dot(t_pooled, t_proj_ref[...], preferred_element_type=jnp.float32)

    # ===================== vision tower =====================
    # conv patch-embed (stride = patch, no bias) as a single matmul; cls/pad
    # rows of the pre-unfolded input are zero and contribute nothing.
    emb = jnp.dot(patch_ref[...], pw_ref[...], preferred_element_type=jnp.float32)
    xv = emb + clspos_ref[...]                        # cls token + position embeddings
    xv = _ln(xv, v_lnpre_g_ref[...], v_lnpre_b_ref[...])

    # pad tokens (cols >= V_SEQ) are masked out as keys; their own query rows
    # produce values that are never read (only the CLS row is pooled).
    vcol = jax.lax.broadcasted_iota(jnp.int32, (V_SEQ_PAD, V_SEQ_PAD), 1)
    pad_bias = jnp.where(vcol < V_SEQ, 0.0, NEG_INF).astype(jnp.float32)

    for l in range(V_LAYERS):
        xv = _encoder_layer(
            xv, pad_bias, B, V_SEQ_PAD, V_HEADS, V_DH, qkv_scr, ctx_scr,
            v_ln1g_ref[l], v_ln1b_ref[l], v_wqkv_ref[l], v_bqkv_ref[l],
            v_wo_ref[l], v_bo_ref[l], v_ln2g_ref[l], v_ln2b_ref[l],
            v_w1_ref[l], v_b1_ref[l], v_w2_ref[l], v_b2_ref[l])

    # pool the CLS row of each image with an in-kernel one-hot selector
    bsel = jax.lax.broadcasted_iota(jnp.int32, (B, B * V_SEQ_PAD), 0)
    csel = jax.lax.broadcasted_iota(jnp.int32, (B, B * V_SEQ_PAD), 1)
    cls_sel = (csel == bsel * V_SEQ_PAD).astype(jnp.float32)
    v_pooled = jnp.dot(cls_sel, xv, preferred_element_type=jnp.float32)   # (B, V_H)
    v_pooled = _ln(v_pooled, v_lnpost_g_ref[...], v_lnpost_b_ref[...])
    ifeat = jnp.dot(v_pooled, v_proj_ref[...], preferred_element_type=jnp.float32)

    # ===================== fusion head =====================
    # Linear(2*proj, 512) with the feature concat folded into a split matmul
    h = (jnp.dot(tfeat, w1t_ref[...], preferred_element_type=jnp.float32)
         + jnp.dot(ifeat, w1v_ref[...], preferred_element_type=jnp.float32)
         + b1_ref[...])
    h = jnp.maximum(h, 0.0)
    h = jnp.maximum(
        jnp.dot(h, w2_ref[...], preferred_element_type=jnp.float32) + b2_ref[...], 0.0)
    o_ref[...] = jnp.dot(h, w3_ref[...], preferred_element_type=jnp.float32) + b3_ref[...]


# ---------------- wrapper ----------------
def clip_fused(params, x0, sel, patches_padded, clspos):
    mlp = params["mlp"]
    return pl.pallas_call(
        _clip_fused_kernel,
        out_shape=jax.ShapeDtypeStruct((B, OUT_DIM), jnp.float32),
        scratch_shapes=[pltpu.VMEM((B * SEQ, 3 * T_H), jnp.float32),
                        pltpu.VMEM((B * SEQ, T_H), jnp.float32)],
        compiler_params=pltpu.CompilerParams(vmem_limit_bytes=32 * 1024 * 1024),
    )(
        # text tower
        x0, sel,
        params["t_ln1_g"], params["t_ln1_b"], params["t_wqkv"], params["t_bqkv"],
        params["t_wo"], params["t_bo"], params["t_ln2_g"], params["t_ln2_b"],
        params["t_w1"], params["t_b1"], params["t_w2"], params["t_b2"],
        params["t_lnf_g"], params["t_lnf_b"], params["text_proj"],
        # vision tower
        patches_padded, params["patch_w"], clspos,
        params["v_lnpre_g"], params["v_lnpre_b"],
        params["v_ln1_g"], params["v_ln1_b"], params["v_wqkv"], params["v_bqkv"],
        params["v_wo"], params["v_bo"], params["v_ln2_g"], params["v_ln2_b"],
        params["v_w1"], params["v_b1"], params["v_w2"], params["v_b2"],
        params["v_lnpost_g"], params["v_lnpost_b"], params["vis_proj"],
        # fusion head
        mlp["w1t"], mlp["w1v"], mlp["b1"], mlp["w2"], mlp["b2"], mlp["w3"], mlp["b3"],
    )


# ---------------- model (glue around the single kernel) ----------------
def forward(params, input_ids, pixel_values):
    Bx, Sx = input_ids.shape

    # ---- text glue: embedding gather + positions, EOS one-hot selector ----
    x0 = (jnp.take(params["tok_emb"], input_ids, axis=0)
          + params["t_pos_emb"][None]).reshape(Bx * Sx, T_H)
    eos_idx = jnp.argmax(input_ids, axis=-1)          # CLIP pools at max-id (EOS) token
    sel = jax.nn.one_hot(jnp.arange(Bx) * Sx + eos_idx, Bx * Sx, dtype=jnp.float32)

    # ---- vision glue: unfold conv patches into padded sequence rows ----
    patches = (pixel_values
               .reshape(Bx, C_IN, GRID_P, PATCH, GRID_P, PATCH)
               .transpose(0, 2, 4, 1, 3, 5)
               .reshape(Bx, N_PATCH, C_IN * PATCH * PATCH))
    patches_padded = jnp.zeros((Bx, V_SEQ_PAD, C_IN * PATCH * PATCH), jnp.float32)
    patches_padded = patches_padded.at[:, 1:V_SEQ, :].set(patches)
    patches_padded = patches_padded.reshape(Bx * V_SEQ_PAD, C_IN * PATCH * PATCH)

    clspos = jnp.zeros((Bx, V_SEQ_PAD, V_H), jnp.float32)
    clspos = clspos.at[:, 0, :].set(params["cls_emb"][0] + params["v_pos_emb"][0])
    clspos = clspos.at[:, 1:V_SEQ, :].set(params["v_pos_emb"][1:V_SEQ])
    clspos = clspos.reshape(Bx * V_SEQ_PAD, V_H)

    logits = clip_fused(params, x0, sel, patches_padded, clspos)   # (B, 1)
    # TODO(synk): optional BCEWithLogits / CrossEntropy loss branch (labels) not implemented.
    return jnp.squeeze(logits)                        # matches torch .squeeze()


# ---------------- deterministic parameter init ----------------
def _linear(key, din, dout):
    return (0.02 * jax.random.normal(key, (din, dout), jnp.float32),
            jnp.zeros((dout,), jnp.float32))


def _init_tower_layers(key, n_layers, h, ffn_dim, dh):
    scale = dh ** -0.5
    wqkv, bqkv, wo, bo, w1, b1, w2, b2 = [], [], [], [], [], [], [], []
    for lk in jax.random.split(key, n_layers):
        ks = jax.random.split(lk, 6)
        wq, bq = _linear(ks[0], h, h)
        wk, bk = _linear(ks[1], h, h)
        wv, bv = _linear(ks[2], h, h)
        wo_l, bo_l = _linear(ks[3], h, h)
        w1_l, b1_l = _linear(ks[4], h, ffn_dim)
        w2_l, b2_l = _linear(ks[5], ffn_dim, h)
        # fused QKV with the 1/sqrt(dh) query scale folded into wq / bq
        wqkv.append(jnp.concatenate([wq * scale, wk, wv], axis=1))
        bqkv.append(jnp.concatenate([bq * scale, bk, bv], axis=0))
        wo.append(wo_l); bo.append(bo_l)
        w1.append(w1_l); b1.append(b1_l)
        w2.append(w2_l); b2.append(b2_l)
    ones = jnp.ones((n_layers, 1, h), jnp.float32)
    zeros = jnp.zeros((n_layers, 1, h), jnp.float32)
    return dict(
        ln1_g=ones, ln1_b=zeros, ln2_g=ones, ln2_b=zeros,
        wqkv=jnp.stack(wqkv), bqkv=jnp.stack(bqkv)[:, None, :],
        wo=jnp.stack(wo), bo=jnp.stack(bo)[:, None, :],
        w1=jnp.stack(w1), b1=jnp.stack(b1)[:, None, :],
        w2=jnp.stack(w2), b2=jnp.stack(b2)[:, None, :])


def init_params(key):
    ks = jax.random.split(key, 12)
    p = {}
    p["tok_emb"] = 0.02 * jax.random.normal(ks[0], (VOCAB, T_H), jnp.float32)
    p["t_pos_emb"] = 0.02 * jax.random.normal(ks[1], (SEQ, T_H), jnp.float32)
    for name, v in _init_tower_layers(ks[2], T_LAYERS, T_H, T_FFN, T_DH).items():
        p["t_" + name] = v
    p["t_lnf_g"] = jnp.ones((1, T_H), jnp.float32)
    p["t_lnf_b"] = jnp.zeros((1, T_H), jnp.float32)
    p["text_proj"] = 0.02 * jax.random.normal(ks[3], (T_H, PROJ), jnp.float32)

    p["patch_w"] = 0.02 * jax.random.normal(ks[4], (C_IN * PATCH * PATCH, V_H), jnp.float32)
    p["cls_emb"] = 0.02 * jax.random.normal(ks[5], (1, V_H), jnp.float32)
    p["v_pos_emb"] = 0.02 * jax.random.normal(ks[6], (V_SEQ, V_H), jnp.float32)
    p["v_lnpre_g"] = jnp.ones((1, V_H), jnp.float32)
    p["v_lnpre_b"] = jnp.zeros((1, V_H), jnp.float32)
    for name, v in _init_tower_layers(ks[7], V_LAYERS, V_H, V_FFN, V_DH).items():
        p["v_" + name] = v
    p["v_lnpost_g"] = jnp.ones((1, V_H), jnp.float32)
    p["v_lnpost_b"] = jnp.zeros((1, V_H), jnp.float32)
    p["vis_proj"] = 0.02 * jax.random.normal(ks[8], (V_H, PROJ), jnp.float32)

    w1, b1 = _linear(ks[9], 2 * PROJ, 512)
    w2, b2 = _linear(ks[10], 512, 128)
    w3, b3 = _linear(ks[11], 128, OUT_DIM)
    p["mlp"] = dict(w1t=w1[:PROJ], w1v=w1[PROJ:], b1=b1.reshape(1, -1),
                    w2=w2, b2=b2.reshape(1, -1),
                    w3=w3, b3=b3.reshape(1, -1))
    return p


if __name__ == "__main__":
    root = jax.random.PRNGKey(0)
    k_param, k_ids, k_pix = jax.random.split(root, 3)

    params = init_params(k_param)
    input_ids = jax.random.randint(k_ids, (B, SEQ), 1, VOCAB, dtype=jnp.int32)
    pixel_values = jax.random.normal(k_pix, (B, C_IN, IMG, IMG), jnp.float32)

    fwd = jax.jit(forward)
    logits = fwd(params, input_ids, pixel_values)
    jax.block_until_ready(logits)
    assert logits.shape == (B,), logits.shape
    print("KERNEL_OK")
</pallas_src>

<mosaic_0001>
module attributes {stable_mosaic.version = 11 : i64} {
  func.func @_clip_fused_kernel(%arg0: memref<16x32xf32, #tpu.memory_space<vmem>>, %arg1: memref<2x16xf32, #tpu.memory_space<vmem>>, %arg2: memref<2x1x32xf32, #tpu.memory_space<vmem>>, %arg3: memref<2x1x32xf32, #tpu.memory_space<vmem>>, %arg4: memref<2x32x96xf32, #tpu.memory_space<vmem>>, %arg5: memref<2x1x96xf32, #tpu.memory_space<vmem>>, %arg6: memref<2x32x32xf32, #tpu.memory_space<vmem>>, %arg7: memref<2x1x32xf32, #tpu.memory_space<vmem>>, %arg8: memref<2x1x32xf32, #tpu.memory_space<vmem>>, %arg9: memref<2x1x32xf32, #tpu.memory_space<vmem>>, %arg10: memref<2x32x64xf32, #tpu.memory_space<vmem>>, %arg11: memref<2x1x64xf32, #tpu.memory_space<vmem>>, %arg12: memref<2x64x32xf32, #tpu.memory_space<vmem>>, %arg13: memref<2x1x32xf32, #tpu.memory_space<vmem>>, %arg14: memref<1x32xf32, #tpu.memory_space<vmem>>, %arg15: memref<1x32xf32, #tpu.memory_space<vmem>>, %arg16: memref<32x32xf32, #tpu.memory_space<vmem>>, %arg17: memref<16x192xf32, #tpu.memory_space<vmem>>, %arg18: memref<192x32xf32, #tpu.memory_space<vmem>>, %arg19: memref<16x32xf32, #tpu.memory_space<vmem>>, %arg20: memref<1x32xf32, #tpu.memory_space<vmem>>, %arg21: memref<1x32xf32, #tpu.memory_space<vmem>>, %arg22: memref<2x1x32xf32, #tpu.memory_space<vmem>>, %arg23: memref<2x1x32xf32, #tpu.memory_space<vmem>>, %arg24: memref<2x32x96xf32, #tpu.memory_space<vmem>>, %arg25: memref<2x1x96xf32, #tpu.memory_space<vmem>>, %arg26: memref<2x32x32xf32, #tpu.memory_space<vmem>>, %arg27: memref<2x1x32xf32, #tpu.memory_space<vmem>>, %arg28: memref<2x1x32xf32, #tpu.memory_space<vmem>>, %arg29: memref<2x1x32xf32, #tpu.memory_space<vmem>>, %arg30: memref<2x32x64xf32, #tpu.memory_space<vmem>>, %arg31: memref<2x1x64xf32, #tpu.memory_space<vmem>>, %arg32: memref<2x64x32xf32, #tpu.memory_space<vmem>>, %arg33: memref<2x1x32xf32, #tpu.memory_space<vmem>>, %arg34: memref<1x32xf32, #tpu.memory_space<vmem>>, %arg35: memref<1x32xf32, #tpu.memory_space<vmem>>, %arg36: memref<32x32xf32, #tpu.memory_space<vmem>>, %arg37: memref<32x512xf32, #tpu.memory_space<vmem>>, %arg38: memref<32x512xf32, #tpu.memory_space<vmem>>, %arg39: memref<1x512xf32, #tpu.memory_space<vmem>>, %arg40: memref<512x128xf32, #tpu.memory_space<vmem>>, %arg41: memref<1x128xf32, #tpu.memory_space<vmem>>, %arg42: memref<128x1xf32, #tpu.memory_space<vmem>>, %arg43: memref<1x1xf32, #tpu.memory_space<vmem>>, %arg44: memref<2x1xf32, #tpu.memory_space<vmem>>, %arg45: memref<16x96xf32, #tpu.memory_space<vmem>>, %arg46: memref<16x32xf32, #tpu.memory_space<vmem>>) attributes {dimension_semantics = [], scalar_prefetch = 0 : i64, scratch_operands = 2 : i64, tpu.core_type = #tpu.core_type<tc>} {
    %0 = tpu.iota {dimensions = array<i32: 0>} : vector<8x8xi32>
    %1 = tpu.iota {dimensions = array<i32: 1>} : vector<8x8xi32>
    %2 = arith.cmpi sle, %1, %0 : vector<8x8xi32>
    %cst = arith.constant 0.000000e+00 : f32
    %cst_0 = arith.constant -1.000000e+09 : f32
    %3 = vector.broadcast %cst : f32 to vector<8x8xf32>
    %4 = vector.broadcast %cst_0 : f32 to vector<8x8xf32>
    %5 = arith.select %2, %3, %4 : vector<8x8xi1>, vector<8x8xf32>
    %c0 = arith.constant 0 : index
    %c0_1 = arith.constant 0 : index
    %6 = vector.load %arg0[%c0, %c0_1] : memref<16x32xf32, #tpu.memory_space<vmem>>, vector<16x32xf32>
    %c0_2 = arith.constant 0 : index
    %c0_3 = arith.constant 0 : index
    %c0_4 = arith.constant 0 : index
    %7 = vector.load %arg2[%c0_2, %c0_3, %c0_4] : memref<2x1x32xf32, #tpu.memory_space<vmem>>, vector<1x1x32xf32>
    %8 = vector.shape_cast %7 : vector<1x1x32xf32> to vector<1x32xf32>
    %c0_5 = arith.constant 0 : index
    %c0_6 = arith.constant 0 : index
    %c0_7 = arith.constant 0 : index
    %9 = vector.load %arg3[%c0_5, %c0_6, %c0_7] : memref<2x1x32xf32, #tpu.memory_space<vmem>>, vector<1x1x32xf32>
    %10 = vector.shape_cast %9 : vector<1x1x32xf32> to vector<1x32xf32>
    %c0_8 = arith.constant 0 : index
    %c0_9 = arith.constant 0 : index
    %c0_10 = arith.constant 0 : index
    %11 = vector.load %arg4[%c0_8, %c0_9, %c0_10] : memref<2x32x96xf32, #tpu.memory_space<vmem>>, vector<1x32x96xf32>
    %12 = vector.shape_cast %11 : vector<1x32x96xf32> to vector<32x96xf32>
    %c0_11 = arith.constant 0 : index
    %c0_12 = arith.constant 0 : index
    %c0_13 = arith.constant 0 : index
    %13 = vector.load %arg5[%c0_11, %c0_12, %c0_13] : memref<2x1x96xf32, #tpu.memory_space<vmem>>, vector<1x1x96xf32>
    %14 = vector.shape_cast %13 : vector<1x1x96xf32> to vector<1x96xf32>
    %c0_14 = arith.constant 0 : index
    %c0_15 = arith.constant 0 : index
    %c0_16 = arith.constant 0 : index
    %15 = vector.load %arg6[%c0_14, %c0_15, %c0_16] : memref<2x32x32xf32, #tpu.memory_space<vmem>>, vector<1x32x32xf32>
    %16 = vector.shape_cast %15 : vector<1x32x32xf32> to vector<32x32xf32>
    %c0_17 = arith.constant 0 : index
    %c0_18 = arith.constant 0 : index
    %c0_19 = arith.constant 0 : index
    %17 = vector.load %arg7[%c0_17, %c0_18, %c0_19] : memref<2x1x32xf32, #tpu.memory_space<vmem>>, vector<1x1x32xf32>
    %18 = vector.shape_cast %17 : vector<1x1x32xf32> to vector<1x32xf32>
    %c0_20 = arith.constant 0 : index
    %c0_21 = arith.constant 0 : index
    %c0_22 = arith.constant 0 : index
    %19 = vector.load %arg8[%c0_20, %c0_21, %c0_22] : memref<2x1x32xf32, #tpu.memory_space<vmem>>, vector<1x1x32xf32>
    %20 = vector.shape_cast %19 : vector<1x1x32xf32> to vector<1x32xf32>
    %c0_23 = arith.constant 0 : index
    %c0_24 = arith.constant 0 : index
    %c0_25 = arith.constant 0 : index
    %21 = vector.load %arg9[%c0_23, %c0_24, %c0_25] : memref<2x1x32xf32, #tpu.memory_space<vmem>>, vector<1x1x32xf32>
    %22 = vector.shape_cast %21 : vector<1x1x32xf32> to vector<1x32xf32>
    %c0_26 = arith.constant 0 : index
    %c0_27 = arith.constant 0 : index
    %c0_28 = arith.constant 0 : index
    %23 = vector.load %arg10[%c0_26, %c0_27, %c0_28] : memref<2x32x64xf32, #tpu.memory_space<vmem>>, vector<1x32x64xf32>
    %24 = vector.shape_cast %23 : vector<1x32x64xf32> to vector<32x64xf32>
    %c0_29 = arith.constant 0 : index
    %c0_30 = arith.constant 0 : index
    %c0_31 = arith.constant 0 : index
    %25 = vector.load %arg11[%c0_29, %c0_30, %c0_31] : memref<2x1x64xf32, #tpu.memory_space<vmem>>, vector<1x1x64xf32>
    %26 = vector.shape_cast %25 : vector<1x1x64xf32> to vector<1x64xf32>
    %c0_32 = arith.constant 0 : index
    %c0_33 = arith.constant 0 : index
    %c0_34 = arith.constant 0 : index
    %27 = vector.load %arg12[%c0_32, %c0_33, %c0_34] : memref<2x64x32xf32, #tpu.memory_space<vmem>>, vector<1x64x32xf32>
    %28 = vector.shape_cast %27 : vector<1x64x32xf32> to vector<64x32xf32>
    %c0_35 = arith.constant 0 : index
    %c0_36 = arith.constant 0 : index
    %c0_37 = arith.constant 0 : index
    %29 = vector.load %arg13[%c0_35, %c0_36, %c0_37] : memref<2x1x32xf32, #tpu.memory_space<vmem>>, vector<1x1x32xf32>
    %30 = vector.shape_cast %29 : vector<1x1x32xf32> to vector<1x32xf32>
    %cst_38 = arith.constant dense<0.000000e+00> : vector<16xf32>
    %31 = vector.multi_reduction <add>, %6, %cst_38 [1] : vector<16x32xf32> to vector<16xf32>
    %32 = vector.shape_cast %31 : vector<16xf32> to vector<16x1xf32>
    %cst_39 = arith.constant 3.200000e+01 : f32
    %33 = vector.broadcast %cst_39 : f32 to vector<16x1xf32>
    %34 = arith.divf %32, %33 : vector<16x1xf32>
    %35 = vector.broadcast %34 : vector<16x1xf32> to vector<16x32xf32>
    %36 = arith.subf %6, %35 : vector<16x32xf32>
    %37 = arith.mulf %36, %36 : vector<16x32xf32>
    %cst_40 = arith.constant dense<0.000000e+00> : vector<16xf32>
    %38 = vector.multi_reduction <add>, %37, %cst_40 [1] : vector<16x32xf32> to vector<16xf32>
    %39 = vector.shape_cast %38 : vector<16xf32> to vector<16x1xf32>
    %cst_41 = arith.constant 3.200000e+01 : f32
    %40 = vector.broadcast %cst_41 : f32 to vector<16x1xf32>
    %41 = arith.divf %39, %40 : vector<16x1xf32>
    %42 = vector.broadcast %34 : vector<16x1xf32> to vector<16x32xf32>
    %43 = arith.subf %6, %42 : vector<16x32xf32>
    %cst_42 = arith.constant 9.99999974E-6 : f32
    %44 = vector.broadcast %cst_42 : f32 to vector<16x1xf32>
    %45 = arith.addf %41, %44 : vector<16x1xf32>
    %46 = math.rsqrt %45 : vector<16x1xf32>
    %47 = vector.broadcast %46 : vector<16x1xf32> to vector<16x32xf32>
    %48 = arith.mulf %43, %47 : vector<16x32xf32>
    %49 = vector.broadcast %8 : vector<1x32xf32> to vector<16x32xf32>
    %50 = arith.mulf %48, %49 : vector<16x32xf32>
    %51 = vector.broadcast %10 : vector<1x32xf32> to vector<16x32xf32>
    %52 = arith.addf %50, %51 : vector<16x32xf32>
    %cst_43 = arith.constant dense<0.000000e+00> : vector<16x96xf32>
    %53 = tpu.matmul %52, %12, %cst_43 {dimension_numbers = #tpu.dot_dimension_numbers<[1], [0], [0], [1], [0, 0, 1, 1], [], []>} : vector<16x32xf32>, vector<32x96xf32>, vector<16x96xf32> -> vector<16x96xf32>
    %54 = vector.broadcast %14 : vector<1x96xf32> to vector<16x96xf32>
    %55 = arith.addf %53, %54 : vector<16x96xf32>
    %c0_44 = arith.constant 0 : index
    %c0_45 = arith.constant 0 : index
    %56 = vector.load %arg45[%c0_44, %c0_45] : memref<16x96xf32, #tpu.memory_space<vmem>>, vector<16x96xf32>
    tpu.vector_store %arg45[%c0_44, %c0_45], %55 {strides = array<i32>} : memref<16x96xf32, #tpu.memory_space<vmem>>, vector<16x96xf32>,
    %c0_46 = arith.constant 0 : index
    %c0_47 = arith.constant 0 : index
    %57 = vector.load %arg45[%c0_46, %c0_47] : memref<16x96xf32, #tpu.memory_space<vmem>>, vector<8x8xf32>
    %c0_48 = arith.constant 0 : index
    %c32 = arith.constant 32 : index
    %58 = vector.load %arg45[%c0_48, %c32] : memref<16x96xf32, #tpu.memory_space<vmem>>, vector<8x8xf32>
    %c0_49 = arith.constant 0 : index
    %c64 = arith.constant 64 : index
    %59 = vector.load %arg45[%c0_49, %c64] : memref<16x96xf32, #tpu.memory_space<vmem>>, vector<8x8xf32>
    %60 = tpu.transpose %58, [1, 0] : vector<8x8xf32> -> vector<8x8xf32>
    %cst_50 = arith.constant dense<0.000000e+00> : vector<8x8xf32>
    %61 = tpu.matmul %57, %60, %cst_50 {dimension_numbers = #tpu.dot_dimension_numbers<[1], [0], [0], [1], [0, 0, 1, 1], [], []>} : vector<8x8xf32>, vector<8x8xf32>, vector<8x8xf32> -> vector<8x8xf32>
    %62 = arith.addf %61, %5 : vector<8x8xf32>
    %cst_51 = arith.constant dense<0xFF800000> : vector<8xf32>
    %63 = vector.multi_reduction <maximumf>, %62, %cst_51 [1] : vector<8x8xf32> to vector<8xf32>
    %64 = vector.shape_cast %63 : vector<8xf32> to vector<8x1xf32>
    %65 = vector.broadcast %64 : vector<8x1xf32> to vector<8x8xf32>
    %66 = arith.subf %62, %65 : vector<8x8xf32>
    %67 = math.exp %66 : vector<8x8xf32>
    %cst_52 = arith.constant dense<0.000000e+00> : vector<8xf32>
    %68 = vector.multi_reduction <add>, %67, %cst_52 [1] : vector<8x8xf32> to vector<8xf32>
    %69 = vector.shape_cast %68 : vector<8xf32> to vector<8x1xf32>
    %70 = vector.broadcast %69 : vector<8x1xf32> to vector<8x8xf32>
    %71 = arith.divf %67, %70 : vector<8x8xf32>
    %cst_53 = arith.constant dense<0.000000e+00> : vector<8x8xf32>
    %72 = tpu.matmul %71, %59, %cst_53 {dimension_numbers = #tpu.dot_dimension_numbers<[1], [0], [0], [1], [0, 0, 1, 1], [], []>} : vector<8x8xf32>, vector<8x8xf32>, vector<8x8xf32> -> vector<8x8xf32>
    %c0_54 = arith.constant 0 : index
    %c0_55 = arith.constant 0 : index
    %73 = vector.load %arg46[%c0_54, %c0_55] : memref<16x32xf32, #tpu.memory_space<vmem>>, vector<8x8xf32>
    tpu.vector_store %arg46[%c0_54, %c0_55], %72 {strides = array<i32>} : memref<16x32xf32, #tpu.memory_space<vmem>>, vector<8x8xf32>,
    %c0_56 = arith.constant 0 : index
    %c8 = arith.constant 8 : index
    %74 = vector.load %arg45[%c0_56, %c8] : memref<16x96xf32, #tpu.memory_space<vmem>>, vector<8x8xf32>
    %c0_57 = arith.constant 0 : index
    %c40 = arith.constant 40 : index
    %75 = vector.load %arg45[%c0_57, %c40] : memref<16x96xf32, #tpu.memory_space<vmem>>, vector<8x8xf32>
    %c0_58 = arith.constant 0 : index
    %c72 = arith.constant 72 : index
    %76 = vector.load %arg45[%c0_58, %c72] : memref<16x96xf32, #tpu.memory_space<vmem>>, vector<8x8xf32>
    %77 = tpu.transpose %75, [1, 0] : vector<8x8xf32> -> vector<8x8xf32>
    %cst_59 = arith.constant dense<0.000000e+00> : vector<8x8xf32>
    %78 = tpu.matmul %74, %77, %cst_59 {dimension_numbers = #tpu.dot_dimension_numbers<[1], [0], [0], [1], [0, 0, 1, 1], [], []>} : vector<8x8xf32>, vector<8x8xf32>, vector<8x8xf32> -> vector<8x8xf32>
    %79 = arith.addf %78, %5 : vector<8x8xf32>
    %cst_60 = arith.constant dense<0xFF800000> : vector<8xf32>
    %80 = vector.multi_reduction <maximumf>, %79, %cst_60 [1] : vector<8x8xf32> to vector<8xf32>
    %81 = vector.shape_cast %80 : vector<8xf32> to vector<8x1xf32>
    %82 = vector.broadcast %81 : vector<8x1xf32> to vector<8x8xf32>
    %83 = arith.subf %79, %82 : vector<8x8xf32>
    %84 = math.exp %83 : vector<8x8xf32>
    %cst_61 = arith.constant dense<0.000000e+00> : vector<8xf32>
    %85 = vector.multi_reduction <add>, %84, %cst_61 [1] : vector<8x8xf32> to vector<8xf32>
    %86 = vector.shape_cast %85 : vector<8xf32> to vector<8x1xf32>
    %87 = vector.broadcast %86 : vector<8x1xf32> to vector<8x8xf32>
    %88 = arith.divf %84, %87 : vector<8x8xf32>
    %cst_62 = arith.constant dense<0.000000e+00> : vector<8x8xf32>
    %89 = tpu.matmul %88, %76, %cst_62 {dimension_numbers = #tpu.dot_dimension_numbers<[1], [0], [0], [1], [0, 0, 1, 1], [], []>} : vector<8x8xf32>, vector<8x8xf32>, vector<8x8xf32> -> vector<8x8xf32>
    %c0_63 = arith.constant 0 : index
    %c8_64 = arith.constant 8 : index
    %90 = vector.load %arg46[%c0_63, %c8_64] : memref<16x32xf32, #tpu.memory_space<vmem>>, vector<8x8xf32>
    tpu.vector_store %arg46[%c0_63, %c8_64], %89 {strides = array<i32>} : memref<16x32xf32, #tpu.memory_space<vmem>>, vector<8x8xf32>,
    %c0_65 = arith.constant 0 : index
    %c16 = arith.constant 16 : index
    %91 = vector.load %arg45[%c0_65, %c16] : memref<16x96xf32, #tpu.memory_space<vmem>>, vector<8x8xf32>
    %c0_66 = arith.constant 0 : index
    %c48 = arith.constant 48 : index
    %92 = vector.load %arg45[%c0_66, %c48] : memref<16x96xf32, #tpu.memory_space<vmem>>, vector<8x8xf32>
    %c0_67 = arith.constant 0 : index
    %c80 = arith.constant 80 : index
    %93 = vector.load %arg45[%c0_67, %c80] : memref<16x96xf32, #tpu.memory_space<vmem>>, vector<8x8xf32>
    %94 = tpu.transpose %92, [1, 0] : vector<8x8xf32> -> vector<8x8xf32>
    %cst_68 = arith.constant dense<0.000000e+00> : vector<8x8xf32>
    %95 = tpu.matmul %91, %94, %cst_68 {dimension_numbers = #tpu.dot_dimension_numbers<[1], [0], [0], [1], [0, 0, 1, 1], [], []>} : vector<8x8xf32>, vector<8x8xf32>, vector<8x8xf32> -> vector<8x8xf32>
    %96 = arith.addf %95, %5 : vector<8x8xf32>
    %cst_69 = arith.constant dense<0xFF800000> : vector<8xf32>
    %97 = vector.multi_reduction <maximumf>, %96, %cst_69 [1] : vector<8x8xf32> to vector<8xf32>
    %98 = vector.shape_cast %97 : vector<8xf32> to vector<8x1xf32>
    %99 = vector.broadcast %98 : vector<8x1xf32> to vector<8x8xf32>
    %100 = arith.subf %96, %99 : vector<8x8xf32>
    %101 = math.exp %100 : vector<8x8xf32>
    %cst_70 = arith.constant dense<0.000000e+00> : vector<8xf32>
    %102 = vector.multi_reduction <add>, %101, %cst_70 [1] : vector<8x8xf32> to vector<8xf32>
    %103 = vector.shape_cast %102 : vector<8xf32> to vector<8x1xf32>
    %104 = vector.broadcast %103 : vector<8x1xf32> to vector<8x8xf32>
    %105 = arith.divf %101, %104 : vector<8x8xf32>
    %cst_71 = arith.constant dense<0.000000e+00> : vector<8x8xf32>
    %106 = tpu.matmul %105, %93, %cst_71 {dimension_numbers = #tpu.dot_dimension_numbers<[1], [0], [0], [1], [0, 0, 1, 1], [], []>} : vector<8x8xf32>, vector<8x8xf32>, vector<8x8xf32> -> vector<8x8xf32>
    %c0_72 = arith.constant 0 : index
    %c16_73 = arith.constant 16 : index
    %107 = vector.load %arg46[%c0_72, %c16_73] : memref<16x32xf32, #tpu.memory_space<vmem>>, vector<8x8xf32>
    tpu.vector_store %arg46[%c0_72, %c16_73], %106 {strides = array<i32>} : memref<16x32xf32, #tpu.memory_space<vmem>>, vector<8x8xf32>,
    %c0_74 = arith.constant 0 : index
    %c24 = arith.constant 24 : index
    %108 = vector.load %arg45[%c0_74, %c24] : memref<16x96xf32, #tpu.memory_space<vmem>>, vector<8x8xf32>
    %c0_75 = arith.constant 0 : index
    %c56 = arith.constant 56 : index
    %109 = vector.load %arg45[%c0_75, %c56] : memref<16x96xf32, #tpu.memory_space<vmem>>, vector<8x8xf32>
    %c0_76 = arith.constant 0 : index
    %c88 = arith.constant 88 : index
    %110 = vector.load %arg45[%c0_76, %c88] : memref<16x96xf32, #tpu.memory_space<vmem>>, vector<8x8xf32>
    %111 = tpu.transpose %109, [1, 0] : vector<8x8xf32> -> vector<8x8xf32>
    %cst_77 = arith.constant dense<0.000000e+00> : vector<8x8xf32>
    %112 = tpu.matmul %108, %111, %cst_77 {dimension_numbers = #tpu.dot_dimension_numbers<[1], [0], [0], [1], [0, 0, 1, 1], [], []>} : vector<8x8xf32>, vector<8x8xf32>, vector<8x8xf32> -> vector<8x8xf32>
    %113 = arith.addf %112, %5 : vector<8x8xf32>
    %cst_78 = arith.constant dense<0xFF800000> : vector<8xf32>
    %114 = vector.multi_reduction <maximumf>, %113, %cst_78 [1] : vector<8x8xf32> to vector<8xf32>
    %115 = vector.shape_cast %114 : vector<8xf32> to vector<8x1xf32>
    %116 = vector.broadcast %115 : vector<8x1xf32> to vector<8x8xf32>
    %117 = arith.subf %113, %116 : vector<8x8xf32>
    %118 = math.exp %117 : vector<8x8xf32>
    %cst_79 = arith.constant dense<0.000000e+00> : vector<8xf32>
    %119 = vector.multi_reduction <add>, %118, %cst_79 [1] : vector<8x8xf32> to vector<8xf32>
    %120 = vector.shape_cast %119 : vector<8xf32> to vector<8x1xf32>
    %121 = vector.broadcast %120 : vector<8x1xf32> to vector<8x8xf32>
    %122 = arith.divf %118, %121 : vector<8x8xf32>
    %cst_80 = arith.constant dense<0.000000e+00> : vector<8x8xf32>
    %123 = tpu.matmul %122, %110, %cst_80 {dimension_numbers = #tpu.dot_dimension_numbers<[1], [0], [0], [1], [0, 0, 1, 1], [], []>} : vector<8x8xf32>, vector<8x8xf32>, vector<8x8xf32> -> vector<8x8xf32>
    %c0_81 = arith.constant 0 : index
    %c24_82 = arith.constant 24 : index
    %124 = vector.load %arg46[%c0_81, %c24_82] : memref<16x32xf32, #tpu.memory_space<vmem>>, vector<8x8xf32>
    tpu.vector_store %arg46[%c0_81, %c24_82], %123 {strides = array<i32>} : memref<16x32xf32, #tpu.memory_space<vmem>>, vector<8x8xf32>,
    %c8_83 = arith.constant 8 : index
    %c0_84 = arith.constant 0 : index
    %125 = vector.load %arg45[%c8_83, %c0_84] : memref<16x96xf32, #tpu.memory_space<vmem>>, vector<8x8xf32>
    %c8_85 = arith.constant 8 : index
    %c32_86 = arith.constant 32 : index
    %126 = vector.load %arg45[%c8_85, %c32_86] : memref<16x96xf32, #tpu.memory_space<vmem>>, vector<8x8xf32>
    %c8_87 = arith.constant 8 : index
    %c64_88 = arith.constant 64 : index
    %127 = vector.load %arg45[%c8_87, %c64_88] : memref<16x96xf32, #tpu.memory_space<vmem>>, vector<8x8xf32>
    %128 = tpu.transpose %126, [1, 0] : vector<8x8xf32> -> vector<8x8xf32>
    %cst_89 = arith.constant dense<0.000000e+00> : vector<8x8xf32>
    %129 = tpu.matmul %125, %128, %cst_89 {dimension_numbers = #tpu.dot_dimension_numbers<[1], [0], [0], [1], [0, 0, 1, 1], [], []>} : vector<8x8xf32>, vector<8x8xf32>, vector<8x8xf32> -> vector<8x8xf32>
    %130 = arith.addf %129, %5 : vector<8x8xf32>
    %cst_90 = arith.constant dense<0xFF800000> : vector<8xf32>
    %131 = vector.multi_reduction <maximumf>, %130, %cst_90 [1] : vector<8x8xf32> to vector<8xf32>
    %132 = vector.shape_cast %131 : vector<8xf32> to vector<8x1xf32>
    %133 = vector.broadcast %132 : vector<8x1xf32> to vector<8x8xf32>
    %134 = arith.subf %130, %133 : vector<8x8xf32>
    %135 = math.exp %134 : vector<8x8xf32>
    %cst_91 = arith.constant dense<0.000000e+00> : vector<8xf32>
    %136 = vector.multi_reduction <add>, %135, %cst_91 [1] : vector<8x8xf32> to vector<8xf32>
    %137 = vector.shape_cast %136 : vector<8xf32> to vector<8x1xf32>
    %138 = vector.broadcast %137 : vector<8x1xf32> to vector<8x8xf32>
    %139 = arith.divf %135, %138 : vector<8x8xf32>
    %cst_92 = arith.constant dense<0.000000e+00> : vector<8x8xf32>
    %140 = tpu.matmul %139, %127, %cst_92 {dimension_numbers = #tpu.dot_dimension_numbers<[1], [0], [0], [1], [0, 0, 1, 1], [], []>} : vector<8x8xf32>, vector<8x8xf32>, vector<8x8xf32> -> vector<8x8xf32>
    %c8_93 = arith.constant 8 : index
    %c0_94 = arith.constant 0 : index
    %141 = vector.load %arg46[%c8_93, %c0_94] : memref<16x32xf32, #tpu.memory_space<vmem>>, vector<8x8xf32>
    tpu.vector_store %arg46[%c8_93, %c0_94], %140 {strides = array<i32>} : memref<16x32xf32, #tpu.memory_space<vmem>>, vector<8x8xf32>,
    %c8_95 = arith.constant 8 : index
    %c8_96 = arith.constant 8 : index
    %142 = vector.load %arg45[%c8_95, %c8_96] : memref<16x96xf32, #tpu.memory_space<vmem>>, vector<8x8xf32>
    %c8_97 = arith.constant 8 : index
    %c40_98 = arith.constant 40 : index
    %143 = vector.load %arg45[%c8_97, %c40_98] : memref<16x96xf32, #tpu.memory_space<vmem>>, vector<8x8xf32>
    %c8_99 = arith.constant 8 : index
    %c72_100 = arith.constant 72 : index
    %144 = vector.load %arg45[%c8_99, %c72_100] : memref<16x96xf32, #tpu.memory_space<vmem>>, vector<8x8xf32>
    %145 = tpu.transpose %143, [1, 0] : vector<8x8xf32> -> vector<8x8xf32>
    %cst_101 = arith.constant dense<0.000000e+00> : vector<8x8xf32>
    %146 = tpu.matmul %142, %145, %cst_101 {dimension_numbers = #tpu.dot_dimension_numbers<[1], [0], [0], [1], [0, 0, 1, 1], [], []>} : vector<8x8xf32>, vector<8x8xf32>, vector<8x8xf32> -> vector<8x8xf32>
    %147 = arith.addf %146, %5 : vector<8x8xf32>
    %cst_102 = arith.constant dense<0xFF800000> : vector<8xf32>
    %148 = vector.multi_reduction <maximumf>, %147, %cst_102 [1] : vector<8x8xf32> to vector<8xf32>
    %149 = vector.shape_cast %148 : vector<8xf32> to vector<8x1xf32>
    %150 = vector.broadcast %149 : vector<8x1xf32> to vector<8x8xf32>
    %151 = arith.subf %147, %150 : vector<8x8xf32>
    %152 = math.exp %151 : vector<8x8xf32>
    %cst_103 = arith.constant dense<0.000000e+00> : vector<8xf32>
    %153 = vector.multi_reduction <add>, %152, %cst_103 [1] : vector<8x8xf32> to vector<8xf32>
    %154 = vector.shape_cast %153 : vector<8xf32> to vector<8x1xf32>
    %155 = vector.broadcast %154 : vector<8x1xf32> to vector<8x8xf32>
    %156 = arith.divf %152, %155 : vector<8x8xf32>
    %cst_104 = arith.constant dense<0.000000e+00> : vector<8x8xf32>
    %157 = tpu.matmul %156, %144, %cst_104 {dimension_numbers = #tpu.dot_dimension_numbers<[1], [0], [0], [1], [0, 0, 1, 1], [], []>} : vector<8x8xf32>, vector<8x8xf32>, vector<8x8xf32> -> vector<8x8xf32>
    %c8_105 = arith.constant 8 : index
    %c8_106 = arith.constant 8 : index
    %158 = vector.load %arg46[%c8_105, %c8_106] : memref<16x32xf32, #tpu.memory_space<vmem>>, vector<8x8xf32>
    tpu.vector_store %arg46[%c8_105, %c8_106], %157 {strides = array<i32>} : memref<16x32xf32, #tpu.memory_space<vmem>>, vector<8x8xf32>,
    %c8_107 = arith.constant 8 : index
    %c16_108 = arith.constant 16 : index
    %159 = vector.load %arg45[%c8_107, %c16_108] : memref<16x96xf32, #tpu.memory_space<vmem>>, vector<8x8xf32>
    %c8_109 = arith.constant 8 : index
    %c48_110 = arith.constant 48 : index
    %160 = vector.load %arg45[%c8_109, %c48_110] : memref<16x96xf32, #tpu.memory_space<vmem>>, vector<8x8xf32>
    %c8_111 = arith.constant 8 : index
    %c80_112 = arith.constant 80 : index
    %161 = vector.load %arg45[%c8_111, %c80_112] : memref<16x96xf32, #tpu.memory_space<vmem>>, vector<8x8xf32>
    %162 = tpu.transpose %160, [1, 0] : vector<8x8xf32> -> vector<8x8xf32>
    %cst_113 = arith.constant dense<0.000000e+00> : vector<8x8xf32>
    %163 = tpu.matmul %159, %162, %cst_113 {dimension_numbers = #tpu.dot_dimension_numbers<[1], [0], [0], [1], [0, 0, 1, 1], [], []>} : vector<8x8xf32>, vector<8x8xf32>, vector<8x8xf32> -> vector<8x8xf32>
    %164 = arith.addf %163, %5 : vector<8x8xf32>
    %cst_114 = arith.constant dense<0xFF800000> : vector<8xf32>
    %165 = vector.multi_reduction <maximumf>, %164, %cst_114 [1] : vector<8x8xf32> to vector<8xf32>
    %166 = vector.shape_cast %165 : vector<8xf32> to vector<8x1xf32>
    %167 = vector.broadcast %166 : vector<8x1xf32> to vector<8x8xf32>
    %168 = arith.subf %164, %167 : vector<8x8xf32>
    %169 = math.exp %168 : vector<8x8xf32>
    %cst_115 = arith.constant dense<0.000000e+00> : vector<8xf32>
    %170 = vector.multi_reduction <add>, %169, %cst_115 [1] : vector<8x8xf32> to vector<8xf32>
    %171 = vector.shape_cast %170 : vector<8xf32> to vector<8x1xf32>
    %172 = vector.broadcast %171 : vector<8x1xf32> to vector<8x8xf32>
    %173 = arith.divf %169, %172 : vector<8x8xf32>
    %cst_116 = arith.constant dense<0.000000e+00> : vector<8x8xf32>
    %174 = tpu.matmul %173, %161, %cst_116 {dimension_numbers = #tpu.dot_dimension_numbers<[1], [0], [0], [1], [0, 0, 1, 1], [], []>} : vector<8x8xf32>, vector<8x8xf32>, vector<8x8xf32> -> vector<8x8xf32>
    %c8_117 = arith.constant 8 : index
    %c16_118 = arith.constant 16 : index
    %175 = vector.load %arg46[%c8_117, %c16_118] : memref<16x32xf32, #tpu.memory_space<vmem>>, vector<8x8xf32>
    tpu.vector_store %arg46[%c8_117, %c16_118], %174 {strides = array<i32>} : memref<16x32xf32, #tpu.memory_space<vmem>>, vector<8x8xf32>,
    %c8_119 = arith.constant 8 : index
    %c24_120 = arith.constant 24 : index
    %176 = vector.load %arg45[%c8_119, %c24_120] : memref<16x96xf32, #tpu.memory_space<vmem>>, vector<8x8xf32>
    %c8_121 = arith.constant 8 : index
    %c56_122 = arith.constant 56 : index
    %177 = vector.load %arg45[%c8_121, %c56_122] : memref<16x96xf32, #tpu.memory_space<vmem>>, vector<8x8xf32>
    %c8_123 = arith.constant 8 : index
    %c88_124 = arith.constant 88 : index
    %178 = vector.load %arg45[%c8_123, %c88_124] : memref<16x96xf32, #tpu.memory_space<vmem>>, vector<8x8xf32>
    %179 = tpu.transpose %177, [1, 0] : vector<8x8xf32> -> vector<8x8xf32>
    %cst_125 = arith.constant dense<0.000000e+00> : vector<8x8xf32>
    %180 = tpu.matmul %176, %179, %cst_125 {dimension_numbers = #tpu.dot_dimension_numbers<[1], [0], [0], [1], [0, 0, 1, 1], [], []>} : vector<8x8xf32>, vector<8x8xf32>, vector<8x8xf32> -> vector<8x8xf32>
    %181 = arith.addf %180, %5 : vector<8x8xf32>
    %cst_126 = arith.constant dense<0xFF800000> : vector<8xf32>
    %182 = vector.multi_reduction <maximumf>, %181, %cst_126 [1] : vector<8x8xf32> to vector<8xf32>
    %183 = vector.shape_cast %182 : vector<8xf32> to vector<8x1xf32>
    %184 = vector.broadcast %183 : vector<8x1xf32> to vector<8x8xf32>
    %185 = arith.subf %181, %184 : vector<8x8xf32>
    %186 = math.exp %185 : vector<8x8xf32>
    %cst_127 = arith.constant dense<0.000000e+00> : vector<8xf32>
    %187 = vector.multi_reduction <add>, %186, %cst_127 [1] : vector<8x8xf32> to vector<8xf32>
    %188 = vector.shape_cast %187 : vector<8xf32> to vector<8x1xf32>
    %189 = vector.broadcast %188 : vector<8x1xf32> to vector<8x8xf32>
    %190 = arith.divf %186, %189 : vector<8x8xf32>
    %cst_128 = arith.constant dense<0.000000e+00> : vector<8x8xf32>
    %191 = tpu.matmul %190, %178, %cst_128 {dimension_numbers = #tpu.dot_dimension_numbers<[1], [0], [0], [1], [0, 0, 1, 1], [], []>} : vector<8x8xf32>, vector<8x8xf32>, vector<8x8xf32> -> vector<8x8xf32>
    %c8_129 = arith.constant 8 : index
    %c24_130 = arith.constant 24 : index
    %192 = vector.load %arg46[%c8_129, %c24_130] : memref<16x32xf32, #tpu.memory_space<vmem>>, vector<8x8xf32>
    tpu.vector_store %arg46[%c8_129, %c24_130], %191 {strides = array<i32>} : memref<16x32xf32, #tpu.memory_space<vmem>>, vector<8x8xf32>,
    %c0_131 = arith.constant 0 : index
    %c0_132 = arith.constant 0 : index
    %193 = vector.load %arg46[%c0_131, %c0_132] : memref<16x32xf32, #tpu.memory_space<vmem>>, vector<16x32xf32>
    %cst_133 = arith.constant dense<0.000000e+00> : vector<16x32xf32>
    %194 = tpu.matmul %193, %16, %cst_133 {dimension_numbers = #tpu.dot_dimension_numbers<[1], [0], [0], [1], [0, 0, 1, 1], [], []>} : vector<16x32xf32>, vector<32x32xf32>, vector<16x32xf32> -> vector<16x32xf32>
    %195 = vector.broadcast %18 : vector<1x32xf32> to vector<16x32xf32>
    %196 = arith.addf %194, %195 : vector<16x32xf32>
    %197 = arith.addf %6, %196 : vector<16x32xf32>
    %cst_134 = arith.constant dense<0.000000e+00> : vector<16xf32>
    %198 = vector.multi_reduction <add>, %197, %cst_134 [1] : vector<16x32xf32> to vector<16xf32>
    %199 = vector.shape_cast %198 : vector<16xf32> to vector<16x1xf32>
    %cst_135 = arith.constant 3.200000e+01 : f32
    %200 = vector.broadcast %cst_135 : f32 to vector<16x1xf32>
    %201 = arith.divf %199, %200 : vector<16x1xf32>
    %202 = vector.broadcast %201 : vector<16x1xf32> to vector<16x32xf32>
    %203 = arith.subf %197, %202 : vector<16x32xf32>
    %204 = arith.mulf %203, %203 : vector<16x32xf32>
    %cst_136 = arith.constant dense<0.000000e+00> : vector<16xf32>
    %205 = vector.multi_reduction <add>, %204, %cst_136 [1] : vector<16x32xf32> to vector<16xf32>
    %206 = vector.shape_cast %205 : vector<16xf32> to vector<16x1xf32>
    %cst_137 = arith.constant 3.200000e+01 : f32
    %207 = vector.broadcast %cst_137 : f32 to vector<16x1xf32>
    %208 = arith.divf %206, %207 : vector<16x1xf32>
    %209 = vector.broadcast %201 : vector<16x1xf32> to vector<16x32xf32>
    %210 = arith.subf %197, %209 : vector<16x32xf32>
    %cst_138 = arith.constant 9.99999974E-6 : f32
    %211 = vector.broadcast %cst_138 : f32 to vector<16x1xf32>
    %212 = arith.addf %208, %211 : vector<16x1xf32>
    %213 = math.rsqrt %212 : vector<16x1xf32>
    %214 = vector.broadcast %213 : vector<16x1xf32> to vector<16x32xf32>
    %215 = arith.mulf %210, %214 : vector<16x32xf32>
    %216 = vector.broadcast %20 : vector<1x32xf32> to vector<16x32xf32>
    %217 = arith.mulf %215, %216 : vector<16x32xf32>
    %218 = vector.broadcast %22 : vector<1x32xf32> to vector<16x32xf32>
    %219 = arith.addf %217, %218 : vector<16x32xf32>
    %cst_139 = arith.constant dense<0.000000e+00> : vector<16x64xf32>
    %220 = tpu.matmul %219, %24, %cst_139 {dimension_numbers = #tpu.dot_dimension_numbers<[1], [0], [0], [1], [0, 0, 1, 1], [], []>} : vector<16x32xf32>, vector<32x64xf32>, vector<16x64xf32> -> vector<16x64xf32>
    %221 = vector.broadcast %26 : vector<1x64xf32> to vector<16x64xf32>
    %222 = arith.addf %220, %221 : vector<16x64xf32>
    %cst_140 = arith.constant 1.702000e+00 : f32
    %223 = vector.broadcast %cst_140 : f32 to vector<16x64xf32>
    %224 = arith.mulf %223, %222 : vector<16x64xf32>
    %225 = arith.negf %224 : vector<16x64xf32>
    %226 = math.exp %225 : vector<16x64xf32>
    %cst_141 = arith.constant 1.000000e+00 : f32
    %227 = vector.broadcast %cst_141 : f32 to vector<16x64xf32>
    %228 = arith.addf %227, %226 : vector<16x64xf32>
    %229 = arith.divf %227, %228 : vector<16x64xf32>
    %230 = arith.mulf %222, %229 : vector<16x64xf32>
    %cst_142 = arith.constant dense<0.000000e+00> : vector<16x32xf32>
    %231 = tpu.matmul %230, %28, %cst_142 {dimension_numbers = #tpu.dot_dimension_numbers<[1], [0], [0], [1], [0, 0, 1, 1], [], []>} : vector<16x64xf32>, vector<64x32xf32>, vector<16x32xf32> -> vector<16x32xf32>
    %232 = vector.broadcast %30 : vector<1x32xf32> to vector<16x32xf32>
    %233 = arith.addf %231, %232 : vector<16x32xf32>
    %234 = arith.addf %197, %233 : vector<16x32xf32>
    %c1 = arith.constant 1 : index
    %c0_143 = arith.constant 0 : index
    %c0_144 = arith.constant 0 : index
    %235 = vector.load %arg2[%c1, %c0_143, %c0_144] : memref<2x1x32xf32, #tpu.memory_space<vmem>>, vector<1x1x32xf32>
    %236 = vector.shape_cast %235 : vector<1x1x32xf32> to vector<1x32xf32>
    %c1_145 = arith.constant 1 : index
    %c0_146 = arith.constant 0 : index
    %c0_147 = arith.constant 0 : index
    %237 = vector.load %arg3[%c1_145, %c0_146, %c0_147] : memref<2x1x32xf32, #tpu.memory_space<vmem>>, vector<1x1x32xf32>
    %238 = vector.shape_cast %237 : vector<1x1x32xf32> to vector<1x32xf32>
    %c1_148 = arith.constant 1 : index
    %c0_149 = arith.constant 0 : index
    %c0_150 = arith.constant 0 : index
    %239 = vector.load %arg4[%c1_148, %c0_149, %c0_150] : memref<2x32x96xf32, #tpu.memory_space<vmem>>, vector<1x32x96xf32>
    %240 = vector.shape_cast %239 : vector<1x32x96xf32> to vector<32x96xf32>
    %c1_151 = arith.constant 1 : index
    %c0_152 = arith.constant 0 : index
    %c0_153 = arith.constant 0 : index
    %241 = vector.load %arg5[%c1_151, %c0_152, %c0_153] : memref<2x1x96xf32, #tpu.memory_space<vmem>>, vector<1x1x96xf32>
    %242 = vector.shape_cast %241 : vector<1x1x96xf32> to vector<1x96xf32>
    %c1_154 = arith.constant 1 : index
    %c0_155 = arith.constant 0 : index
    %c0_156 = arith.constant 0 : index
    %243 = vector.load %arg6[%c1_154, %c0_155, %c0_156] : memref<2x32x32xf32, #tpu.memory_space<vmem>>, vector<1x32x32xf32>
    %244 = vector.shape_cast %243 : vector<1x32x32xf32> to vector<32x32xf32>
    %c1_157 = arith.constant 1 : index
    %c0_158 = arith.constant 0 : index
    %c0_159 = arith.constant 0 : index
    %245 = vector.load %arg7[%c1_157, %c0_158, %c0_159] : memref<2x1x32xf32, #tpu.memory_space<vmem>>, vector<1x1x32xf32>
    %246 = vector.shape_cast %245 : vector<1x1x32xf32> to vector<1x32xf32>
    %c1_160 = arith.constant 1 : index
    %c0_161 = arith.constant 0 : index
    %c0_162 = arith.constant 0 : index
    %247 = vector.load %arg8[%c1_160, %c0_161, %c0_162] : memref<2x1x32xf32, #tpu.memory_space<vmem>>, vector<1x1x32xf32>
    %248 = vector.shape_cast %247 : vector<1x1x32xf32> to vector<1x32xf32>
    %c1_163 = arith.constant 1 : index
    %c0_164 = arith.constant 0 : index
    %c0_165 = arith.constant 0 : index
    %249 = vector.load %arg9[%c1_163, %c0_164, %c0_165] : memref<2x1x32xf32, #tpu.memory_space<vmem>>, vector<1x1x32xf32>
    %250 = vector.shape_cast %249 : vector<1x1x32xf32> to vector<1x32xf32>
    %c1_166 = arith.constant 1 : index
    %c0_167 = arith.constant 0 : index
    %c0_168 = arith.constant 0 : index
    %251 = vector.load %arg10[%c1_166, %c0_167, %c0_168] : memref<2x32x64xf32, #tpu.memory_space<vmem>>, vector<1x32x64xf32>
    %252 = vector.shape_cast %251 : vector<1x32x64xf32> to vector<32x64xf32>
    %c1_169 = arith.constant 1 : index
    %c0_170 = arith.constant 0 : index
    %c0_171 = arith.constant 0 : index
    %253 = vector.load %arg11[%c1_169, %c0_170, %c0_171] : memref<2x1x64xf32, #tpu.memory_space<vmem>>, vector<1x1x64xf32>
    %254 = vector.shape_cast %253 : vector<1x1x64xf32> to vector<1x64xf32>
    %c1_172 = arith.constant 1 : index
    %c0_173 = arith.constant 0 : index
    %c0_174 = arith.constant 0 : index
    %255 = vector.load %arg12[%c1_172, %c0_173, %c0_174] : memref<2x64x32xf32, #tpu.memory_space<vmem>>, vector<1x64x32xf32>
    %256 = vector.shape_cast %255 : vector<1x64x32xf32> to vector<64x32xf32>
    %c1_175 = arith.constant 1 : index
    %c0_176 = arith.constant 0 : index
    %c0_177 = arith.constant 0 : index
    %257 = vector.load %arg13[%c1_175, %c0_176, %c0_177] : memref<2x1x32xf32, #tpu.memory_space<vmem>>, vector<1x1x32xf32>
    %258 = vector.shape_cast %257 : vector<1x1x32xf32> to vector<1x32xf32>
    %cst_178 = arith.constant dense<0.000000e+00> : vector<16xf32>
    %259 = vector.multi_reduction <add>, %234, %cst_178 [1] : vector<16x32xf32> to vector<16xf32>
    %260 = vector.shape_cast %259 : vector<16xf32> to vector<16x1xf32>
    %cst_179 = arith.constant 3.200000e+01 : f32
    %261 = vector.broadcast %cst_179 : f32 to vector<16x1xf32>
    %262 = arith.divf %260, %261 : vector<16x1xf32>
    %263 = vector.broadcast %262 : vector<16x1xf32> to vector<16x32xf32>
    %264 = arith.subf %234, %263 : vector<16x32xf32>
    %265 = arith.mulf %264, %264 : vector<16x32xf32>
    %cst_180 = arith.constant dense<0.000000e+00> : vector<16xf32>
    %266 = vector.multi_reduction <add>, %265, %cst_180 [1] : vector<16x32xf32> to vector<16xf32>
    %267 = vector.shape_cast %266 : vector<16xf32> to vector<16x1xf32>
    %cst_181 = arith.constant 3.200000e+01 : f32
    %268 = vector.broadcast %cst_181 : f32 to vector<16x1xf32>
    %269 = arith.divf %267, %268 : vector<16x1xf32>
    %270 = vector.broadcast %262 : vector<16x1xf32> to vector<16x32xf32>
    %271 = arith.subf %234, %270 : vector<16x32xf32>
    %cst_182 = arith.constant 9.99999974E-6 : f32
    %272 = vector.broadcast %cst_182 : f32 to vector<16x1xf32>
    %273 = arith.addf %269, %272 : vector<16x1xf32>
    %274 = math.rsqrt %273 : vector<16x1xf32>
    %275 = vector.broadcast %274 : vector<16x1xf32> to vector<16x32xf32>
    %276 = arith.mulf %271, %275 : vector<16x32xf32>
    %277 = vector.broadcast %236 : vector<1x32xf32> to vector<16x32xf32>
    %278 = arith.mulf %276, %277 : vector<16x32xf32>
    %279 = vector.broadcast %238 : vector<1x32xf32> to vector<16x32xf32>
    %280 = arith.addf %278, %279 : vector<16x32xf32>
    %cst_183 = arith.constant dense<0.000000e+00> : vector<16x96xf32>
    %281 = tpu.matmul %280, %240, %cst_183 {dimension_numbers = #tpu.dot_dimension_numbers<[1], [0], [0], [1], [0, 0, 1, 1], [], []>} : vector<16x32xf32>, vector<32x96xf32>, vector<16x96xf32> -> vector<16x96xf32>
    %282 = vector.broadcast %242 : vector<1x96xf32> to vector<16x96xf32>
    %283 = arith.addf %281, %282 : vector<16x96xf32>
    %c0_184 = arith.constant 0 : index
    %c0_185 = arith.constant 0 : index
    %284 = vector.load %arg45[%c0_184, %c0_185] : memref<16x96xf32, #tpu.memory_space<vmem>>, vector<16x96xf32>
    tpu.vector_store %arg45[%c0_184, %c0_185], %283 {strides = array<i32>} : memref<16x96xf32, #tpu.memory_space<vmem>>, vector<16x96xf32>,
    %c0_186 = arith.constant 0 : index
    %c0_187 = arith.constant 0 : index
    %285 = vector.load %arg45[%c0_186, %c0_187] : memref<16x96xf32, #tpu.memory_space<vmem>>, vector<8x8xf32>
    %c0_188 = arith.constant 0 : index
    %c32_189 = arith.constant 32 : index
    %286 = vector.load %arg45[%c0_188, %c32_189] : memref<16x96xf32, #tpu.memory_space<vmem>>, vector<8x8xf32>
    %c0_190 = arith.constant 0 : index
    %c64_191 = arith.constant 64 : index
    %287 = vector.load %arg45[%c0_190, %c64_191] : memref<16x96xf32, #tpu.memory_space<vmem>>, vector<8x8xf32>
    %288 = tpu.transpose %286, [1, 0] : vector<8x8xf32> -> vector<8x8xf32>
    %cst_192 = arith.constant dense<0.000000e+00> : vector<8x8xf32>
    %289 = tpu.matmul %285, %288, %cst_192 {dimension_numbers = #tpu.dot_dimension_numbers<[1], [0], [0], [1], [0, 0, 1, 1], [], []>} : vector<8x8xf32>, vector<8x8xf32>, vector<8x8xf32> -> vector<8x8xf32>
    %290 = arith.addf %289, %5 : vector<8x8xf32>
    %cst_193 = arith.constant dense<0xFF800000> : vector<8xf32>
    %291 = vector.multi_reduction <maximumf>, %290, %cst_193 [1] : vector<8x8xf32> to vector<8xf32>
    %292 = vector.shape_cast %291 : vector<8xf32> to vector<8x1xf32>
    %293 = vector.broadcast %292 : vector<8x1xf32> to vector<8x8xf32>
    %294 = arith.subf %290, %293 : vector<8x8xf32>
    %295 = math.exp %294 : vector<8x8xf32>
    %cst_194 = arith.constant dense<0.000000e+00> : vector<8xf32>
    %296 = vector.multi_reduction <add>, %295, %cst_194 [1] : vector<8x8xf32> to vector<8xf32>
    %297 = vector.shape_cast %296 : vector<8xf32> to vector<8x1xf32>
    %298 = vector.broadcast %297 : vector<8x1xf32> to vector<8x8xf32>
    %299 = arith.divf %295, %298 : vector<8x8xf32>
    %cst_195 = arith.constant dense<0.000000e+00> : vector<8x8xf32>
    %300 = tpu.matmul %299, %287, %cst_195 {dimension_numbers = #tpu.dot_dimension_numbers<[1], [0], [0], [1], [0, 0, 1, 1], [], []>} : vector<8x8xf32>, vector<8x8xf32>, vector<8x8xf32> -> vector<8x8xf32>
    %c0_196 = arith.constant 0 : index
    %c0_197 = arith.constant 0 : index
    %301 = vector.load %arg46[%c0_196, %c0_197] : memref<16x32xf32, #tpu.memory_space<vmem>>, vector<8x8xf32>
    tpu.vector_store %arg46[%c0_196, %c0_197], %300 {strides = array<i32>} : memref<16x32xf32, #tpu.memory_space<vmem>>, vector<8x8xf32>,
    %c0_198 = arith.constant 0 : index
    %c8_199 = arith.constant 8 : index
    %302 = vector.load %arg45[%c0_198, %c8_199] : memref<16x96xf32, #tpu.memory_space<vmem>>, vector<8x8xf32>
    %c0_200 = arith.constant 0 : index
    %c40_201 = arith.constant 40 : index
    %303 = vector.load %arg45[%c0_200, %c40_201] : memref<16x96xf32, #tpu.memory_space<vmem>>, vector<8x8xf32>
    %c0_202 = arith.constant 0 : index
    %c72_203 = arith.constant 72 : index
    %304 = vector.load %arg45[%c0_202, %c72_203] : memref<16x96xf32, #tpu.memory_space<vmem>>, vector<8x8xf32>
    %305 = tpu.transpose %303, [1, 0] : vector<8x8xf32> -> vector<8x8xf32>
    %cst_204 = arith.constant dense<0.000000e+00> : vector<8x8xf32>
    %306 = tpu.matmul %302, %305, %cst_204 {dimension_numbers = #tpu.dot_dimension_numbers<[1], [0], [0], [1], [0, 0, 1, 1], [], []>} : vector<8x8xf32>, vector<8x8xf32>, vector<8x8xf32> -> vector<8x8xf32>
    %307 = arith.addf %306, %5 : vector<8x8xf32>
    %cst_205 = arith.constant dense<0xFF800000> : vector<8xf32>
    %308 = vector.multi_reduction <maximumf>, %307, %cst_205 [1] : vector<8x8xf32> to vector<8xf32>
    %309 = vector.shape_cast %308 : vector<8xf32> to vector<8x1xf32>
    %310 = vector.broadcast %309 : vector<8x1xf32> to vector<8x8xf32>
    %311 = arith.subf %307, %310 : vector<8x8xf32>
    %312 = math.exp %311 : vector<8x8xf32>
    %cst_206 = arith.constant dense<0.000000e+00> : vector<8xf32>
    %313 = vector.multi_reduction <add>, %312, %cst_206 [1] : vector<8x8xf32> to vector<8xf32>
    %314 = vector.shape_cast %313 : vector<8xf32> to vector<8x1xf32>
    %315 = vector.broadcast %314 : vector<8x1xf32> to vector<8x8xf32>
    %316 = arith.divf %312, %315 : vector<8x8xf32>
    %cst_207 = arith.constant dense<0.000000e+00> : vector<8x8xf32>
    %317 = tpu.matmul %316, %304, %cst_207 {dimension_numbers = #tpu.dot_dimension_numbers<[1], [0], [0], [1], [0, 0, 1, 1], [], []>} : vector<8x8xf32>, vector<8x8xf32>, vector<8x8xf32> -> vector<8x8xf32>
    %c0_208 = arith.constant 0 : index
    %c8_209 = arith.constant 8 : index
    %318 = vector.load %arg46[%c0_208, %c8_209] : memref<16x32xf32, #tpu.memory_space<vmem>>, vector<8x8xf32>
    tpu.vector_store %arg46[%c0_208, %c8_209], %317 {strides = array<i32>} : memref<16x32xf32, #tpu.memory_space<vmem>>, vector<8x8xf32>,
    %c0_210 = arith.constant 0 : index
    %c16_211 = arith.constant 16 : index
    %319 = vector.load %arg45[%c0_210, %c16_211] : memref<16x96xf32, #tpu.memory_space<vmem>>, vector<8x8xf32>
    %c0_212 = arith.constant 0 : index
    %c48_213 = arith.constant 48 : index
    %320 = vector.load %arg45[%c0_212, %c48_213] : memref<16x96xf32, #tpu.memory_space<vmem>>, vector<8x8xf32>
    %c0_214 = arith.constant 0 : index
    %c80_215 = arith.constant 80 : index
    %321 = vector.load %arg45[%c0_214, %c80_215] : memref<16x96xf32, #tpu.memory_space<vmem>>, vector<8x8xf32>
    %322 = tpu.transpose %320, [1, 0] : vector<8x8xf32> -> vector<8x8xf32>
    %cst_216 = arith.constant dense<0.000000e+00> : vector<8x8xf32>
    %323 = tpu.matmul %319, %322, %cst_216 {dimension_numbers = #tpu.dot_dimension_numbers<[1], [0], [0], [1], [0, 0, 1, 1], [], []>} : vector<8x8xf32>, vector<8x8xf32>, vector<8x8xf32> -> vector<8x8xf32>
    %324 = arith.addf %323, %5 : vector<8x8xf32>
    %cst_217 = arith.constant dense<0xFF800000> : vector<8xf32>
    %325 = vector.multi_reduction <maximumf>, %324, %cst_217 [1] : vector<8x8xf32> to vector<8xf32>
    %326 = vector.shape_cast %325 : vector<8xf32> to vector<8x1xf32>
    %327 = vector.broadcast %326 : vector<8x1xf32> to vector<8x8xf32>
    %328 = arith.subf %324, %327 : vector<8x8xf32>
    %329 = math.exp %328 : vector<8x8xf32>
    %cst_218 = arith.constant dense<0.000000e+00> : vector<8xf32>
    %330 = vector.multi_reduction <add>, %329, %cst_218 [1] : vector<8x8xf32> to vector<8xf32>
    %331 = vector.shape_cast %330 : vector<8xf32> to vector<8x1xf32>
    %332 = vector.broadcast %331 : vector<8x1xf32> to vector<8x8xf32>
    %333 = arith.divf %329, %332 : vector<8x8xf32>
    %cst_219 = arith.constant dense<0.000000e+00> : vector<8x8xf32>
    %334 = tpu.matmul %333, %321, %cst_219 {dimension_numbers = #tpu.dot_dimension_numbers<[1], [0], [0], [1], [0, 0, 1, 1], [], []>} : vector<8x8xf32>, vector<8x8xf32>, vector<8x8xf32> -> vector<8x8xf32>
    %c0_220 = arith.constant 0 : index
    %c16_221 = arith.constant 16 : index
    %335 = vector.load %arg46[%c0_220, %c16_221] : memref<16x32xf32, #tpu.memory_space<vmem>>, vector<8x8xf32>
    tpu.vector_store %arg46[%c0_220, %c16_221], %334 {strides = array<i32>} : memref<16x32xf32, #tpu.memory_space<vmem>>, vector<8x8xf32>,
    %c0_222 = arith.constant 0 : index
    %c24_223 = arith.constant 24 : index
    %336 = vector.load %arg45[%c0_222, %c24_223] : memref<16x96xf32, #tpu.memory_space<vmem>>, vector<8x8xf32>
    %c0_224 = arith.constant 0 : index
    %c56_225 = arith.constant 56 : index
    %337 = vector.load %arg45[%c0_224, %c56_225] : memref<16x96xf32, #tpu.memory_space<vmem>>, vector<8x8xf32>
    %c0_226 = arith.constant 0 : index
    %c88_227 = arith.constant 88 : index
    %338 = vector.load %arg45[%c0_226, %c88_227] : memref<16x96xf32, #tpu.memory_space<vmem>>, vector<8x8xf32>
    %339 = tpu.transpose %337, [1, 0] : vector<8x8xf32> -> vector<8x8xf32>
    %cst_228 = arith.constant dense<0.000000e+00> : vector<8x8xf32>
    %340 = tpu.matmul %336, %339, %cst_228 {dimension_numbers = #tpu.dot_dimension_numbers<[1], [0], [0], [1], [0, 0, 1, 1], [], []>} : vector<8x8xf32>, vector<8x8xf32>, vector<8x8xf32> -> vector<8x8xf32>
    %341 = arith.addf %340, %5 : vector<8x8xf32>
    %cst_229 = arith.constant dense<0xFF800000> : vector<8xf32>
    %342 = vector.multi_reduction <maximumf>, %341, %cst_229 [1] : vector<8x8xf32> to vector<8xf32>
    %343 = vector.shape_cast %342 : vector<8xf32> to vector<8x1xf32>
    %344 = vector.broadcast %343 : vector<8x1xf32> to vector<8x8xf32>
    %345 = arith.subf %341, %344 : vector<8x8xf32>
    %346 = math.exp %345 : vector<8x8xf32>
    %cst_230 = arith.constant dense<0.000000e+00> : vector<8xf32>
    %347 = vector.multi_reduction <add>, %346, %cst_230 [1] : vector<8x8xf32> to vector<8xf32>
    %348 = vector.shape_cast %347 : vector<8xf32> to vector<8x1xf32>
    %349 = vector.broadcast %348 : vector<8x1xf32> to vector<8x8xf32>
    %350 = arith.divf %346, %349 : vector<8x8xf32>
    %cst_231 = arith.constant dense<0.000000e+00> : vector<8x8xf32>
    %351 = tpu.matmul %350, %338, %cst_231 {dimension_numbers = #tpu.dot_dimension_numbers<[1], [0], [0], [1], [0, 0, 1, 1], [], []>} : vector<8x8xf32>, vector<8x8xf32>, vector<8x8xf32> -> vector<8x8xf32>
    %c0_232 = arith.constant 0 : index
    %c24_233 = arith.constant 24 : index
    %352 = vector.load %arg46[%c0_232, %c24_233] : memref<16x32xf32, #tpu.memory_space<vmem>>, vector<8x8xf32>
    tpu.vector_store %arg46[%c0_232, %c24_233], %351 {strides = array<i32>} : memref<16x32xf32, #tpu.memory_space<vmem>>, vector<8x8xf32>,
    %c8_234 = arith.constant 8 : index
    %c0_235 = arith.constant 0 : index
    %353 = vector.load %arg45[%c8_234, %c0_235] : memref<16x96xf32, #tpu.memory_space<vmem>>, vector<8x8xf32>
    %c8_236 = arith.constant 8 : index
    %c32_237 = arith.constant 32 : index
    %354 = vector.load %arg45[%c8_236, %c32_237] : memref<16x96xf32, #tpu.memory_space<vmem>>, vector<8x8xf32>
    %c8_238 = arith.constant 8 : index
    %c64_239 = arith.constant 64 : index
    %355 = vector.load %arg45[%c8_238, %c64_239] : memref<16x96xf32, #tpu.memory_space<vmem>>, vector<8x8xf32>
    %356 = tpu.transpose %354, [1, 0] : vector<8x8xf32> -> vector<8x8xf32>
    %cst_240 = arith.constant dense<0.000000e+00> : vector<8x8xf32>
    %357 = tpu.matmul %353, %356, %cst_240 {dimension_numbers = #tpu.dot_dimension_numbers<[1], [0], [0], [1], [0, 0, 1, 1], [], []>} : vector<8x8xf32>, vector<8x8xf32>, vector<8x8xf32> -> vector<8x8xf32>
    %358 = arith.addf %357, %5 : vector<8x8xf32>
    %cst_241 = arith.constant dense<0xFF800000> : vector<8xf32>
    %359 = vector.multi_reduction <maximumf>, %358, %cst_241 [1] : vector<8x8xf32> to vector<8xf32>
    %360 = vector.shape_cast %359 : vector<8xf32> to vector<8x1xf32>
    %361 = vector.broadcast %360 : vector<8x1xf32> to vector<8x8xf32>
    %362 = arith.subf %358, %361 : vector<8x8xf32>
    %363 = math.exp %362 : vector<8x8xf32>
    %cst_242 = arith.constant dense<0.000000e+00> : vector<8xf32>
    %364 = vector.multi_reduction <add>, %363, %cst_242 [1] : vector<8x8xf32> to vector<8xf32>
    %365 = vector.shape_cast %364 : vector<8xf32> to vector<8x1xf32>
    %366 = vector.broadcast %365 : vector<8x1xf32> to vector<8x8xf32>
    %367 = arith.divf %363, %366 : vector<8x8xf32>
    %cst_243 = arith.constant dense<0.000000e+00> : vector<8x8xf32>
    %368 = tpu.matmul %367, %355, %cst_243 {dimension_numbers = #tpu.dot_dimension_numbers<[1], [0], [0], [1], [0, 0, 1, 1], [], []>} : vector<8x8xf32>, vector<8x8xf32>, vector<8x8xf32> -> vector<8x8xf32>
    %c8_244 = arith.constant 8 : index
    %c0_245 = arith.constant 0 : index
    %369 = vector.load %arg46[%c8_244, %c0_245] : memref<16x32xf32, #tpu.memory_space<vmem>>, vector<8x8xf32>
    tpu.vector_store %arg46[%c8_244, %c0_245], %368 {strides = array<i32>} : memref<16x32xf32, #tpu.memory_space<vmem>>, vector<8x8xf32>,
    %c8_246 = arith.constant 8 : index
    %c8_247 = arith.constant 8 : index
    %370 = vector.load %arg45[%c8_246, %c8_247] : memref<16x96xf32, #tpu.memory_space<vmem>>, vector<8x8xf32>
    %c8_248 = arith.constant 8 : index
    %c40_249 = arith.constant 40 : index
    %371 = vector.load %arg45[%c8_248, %c40_249] : memref<16x96xf32, #tpu.memory_space<vmem>>, vector<8x8xf32>
    %c8_250 = arith.constant 8 : index
    %c72_251 = arith.constant 72 : index
    %372 = vector.load %arg45[%c8_250, %c72_251] : memref<16x96xf32, #tpu.memory_space<vmem>>, vector<8x8xf32>
    %373 = tpu.transpose %371, [1, 0] : vector<8x8xf32> -> vector<8x8xf32>
    %cst_252 = arith.constant dense<0.000000e+00> : vector<8x8xf32>
    %374 = tpu.matmul %370, %373, %cst_252 {dimension_numbers = #tpu.dot_dimension_numbers<[1], [0], [0], [1], [0, 0, 1, 1], [], []>} : vector<8x8xf32>, vector<8x8xf32>, vector<8x8xf32> -> vector<8x8xf32>
    %375 = arith.addf %374, %5 : vector<8x8xf32>
    %cst_253 = arith.constant dense<0xFF800000> : vector<8xf32>
    %376 = vector.multi_reduction <maximumf>, %375, %cst_253 [1] : vector<8x8xf32> to vector<8xf32>
    %377 = vector.shape_cast %376 : vector<8xf32> to vector<8x1xf32>
    %378 = vector.broadcast %377 : vector<8x1xf32> to vector<8x8xf32>
    %379 = arith.subf %375, %378 : vector<8x8xf32>
    %380 = math.exp %379 : vector<8x8xf32>
    %cst_254 = arith.constant dense<0.000000e+00> : vector<8xf32>
    %381 = vector.multi_reduction <add>, %380, %cst_254 [1] : vector<8x8xf32> to vector<8xf32>
    %382 = vector.shape_cast %381 : vector<8xf32> to vector<8x1xf32>
    %383 = vector.broadcast %382 : vector<8x1xf32> to vector<8x8xf32>
    %384 = arith.divf %380, %383 : vector<8x8xf32>
    %cst_255 = arith.constant dense<0.000000e+00> : vector<8x8xf32>
    %385 = tpu.matmul %384, %372, %cst_255 {dimension_numbers = #tpu.dot_dimension_numbers<[1], [0], [0], [1], [0, 0, 1, 1], [], []>} : vector<8x8xf32>, vector<8x8xf32>, vector<8x8xf32> -> vector<8x8xf32>
    %c8_256 = arith.constant 8 : index
    %c8_257 = arith.constant 8 : index
    %386 = vector.load %arg46[%c8_256, %c8_257] : memref<16x32xf32, #tpu.memory_space<vmem>>, vector<8x8xf32>
    tpu.vector_store %arg46[%c8_256, %c8_257], %385 {strides = array<i32>} : memref<16x32xf32, #tpu.memory_space<vmem>>, vector<8x8xf32>,
    %c8_258 = arith.constant 8 : index
    %c16_259 = arith.constant 16 : index
    %387 = vector.load %arg45[%c8_258, %c16_259] : memref<16x96xf32, #tpu.memory_space<vmem>>, vector<8x8xf32>
    %c8_260 = arith.constant 8 : index
    %c48_261 = arith.constant 48 : index
    %388 = vector.load %arg45[%c8_260, %c48_261] : memref<16x96xf32, #tpu.memory_space<vmem>>, vector<8x8xf32>
    %c8_262 = arith.constant 8 : index
    %c80_263 = arith.constant 80 : index
    %389 = vector.load %arg45[%c8_262, %c80_263] : memref<16x96xf32, #tpu.memory_space<vmem>>, vector<8x8xf32>
    %390 = tpu.transpose %388, [1, 0] : vector<8x8xf32> -> vector<8x8xf32>
    %cst_264 = arith.constant dense<0.000000e+00> : vector<8x8xf32>
    %391 = tpu.matmul %387, %390, %cst_264 {dimension_numbers = #tpu.dot_dimension_numbers<[1], [0], [0], [1], [0, 0, 1, 1], [], []>} : vector<8x8xf32>, vector<8x8xf32>, vector<8x8xf32> -> vector<8x8xf32>
    %392 = arith.addf %391, %5 : vector<8x8xf32>
    %cst_265 = arith.constant dense<0xFF800000> : vector<8xf32>
    %393 = vector.multi_reduction <maximumf>, %392, %cst_265 [1] : vector<8x8xf32> to vector<8xf32>
    %394 = vector.shape_cast %393 : vector<8xf32> to vector<8x1xf32>
    %395 = vector.broadcast %394 : vector<8x1xf32> to vector<8x8xf32>
    %396 = arith.subf %392, %395 : vector<8x8xf32>
    %397 = math.exp %396 : vector<8x8xf32>
    %cst_266 = arith.constant dense<0.000000e+00> : vector<8xf32>
    %398 = vector.multi_reduction <add>, %397, %cst_266 [1] : vector<8x8xf32> to vector<8xf32>
    %399 = vector.shape_cast %398 : vector<8xf32> to vector<8x1xf32>
    %400 = vector.broadcast %399 : vector<8x1xf32> to vector<8x8xf32>
    %401 = arith.divf %397, %400 : vector<8x8xf32>
    %cst_267 = arith.constant dense<0.000000e+00> : vector<8x8xf32>
    %402 = tpu.matmul %401, %389, %cst_267 {dimension_numbers = #tpu.dot_dimension_numbers<[1], [0], [0], [1], [0, 0, 1, 1], [], []>} : vector<8x8xf32>, vector<8x8xf32>, vector<8x8xf32> -> vector<8x8xf32>
    %c8_268 = arith.constant 8 : index
    %c16_269 = arith.constant 16 : index
    %403 = vector.load %arg46[%c8_268, %c16_269] : memref<16x32xf32, #tpu.memory_space<vmem>>, vector<8x8xf32>
    tpu.vector_store %arg46[%c8_268, %c16_269], %402 {strides = array<i32>} : memref<16x32xf32, #tpu.memory_space<vmem>>, vector<8x8xf32>,
    %c8_270 = arith.constant 8 : index
    %c24_271 = arith.constant 24 : index
    %404 = vector.load %arg45[%c8_270, %c24_271] : memref<16x96xf32, #tpu.memory_space<vmem>>, vector<8x8xf32>
    %c8_272 = arith.constant 8 : index
    %c56_273 = arith.constant 56 : index
    %405 = vector.load %arg45[%c8_272, %c56_273] : memref<16x96xf32, #tpu.memory_space<vmem>>, vector<8x8xf32>
    %c8_274 = arith.constant 8 : index
    %c88_275 = arith.constant 88 : index
    %406 = vector.load %arg45[%c8_274, %c88_275] : memref<16x96xf32, #tpu.memory_space<vmem>>, vector<8x8xf32>
    %407 = tpu.transpose %405, [1, 0] : vector<8x8xf32> -> vector<8x8xf32>
    %cst_276 = arith.constant dense<0.000000e+00> : vector<8x8xf32>
    %408 = tpu.matmul %404, %407, %cst_276 {dimension_numbers = #tpu.dot_dimension_numbers<[1], [0], [0], [1], [0, 0, 1, 1], [], []>} : vector<8x8xf32>, vector<8x8xf32>, vector<8x8xf32> -> vector<8x8xf32>
    %409 = arith.addf %408, %5 : vector<8x8xf32>
    %cst_277 = arith.constant dense<0xFF800000> : vector<8xf32>
    %410 = vector.multi_reduction <maximumf>, %409, %cst_277 [1] : vector<8x8xf32> to vector<8xf32>
    %411 = vector.shape_cast %410 : vector<8xf32> to vector<8x1xf32>
    %412 = vector.broadcast %411 : vector<8x1xf32> to vector<8x8xf32>
    %413 = arith.subf %409, %412 : vector<8x8xf32>
    %414 = math.exp %413 : vector<8x8xf32>
    %cst_278 = arith.constant dense<0.000000e+00> : vector<8xf32>
    %415 = vector.multi_reduction <add>, %414, %cst_278 [1] : vector<8x8xf32> to vector<8xf32>
    %416 = vector.shape_cast %415 : vector<8xf32> to vector<8x1xf32>
    %417 = vector.broadcast %416 : vector<8x1xf32> to vector<8x8xf32>
    %418 = arith.divf %414, %417 : vector<8x8xf32>
    %cst_279 = arith.constant dense<0.000000e+00> : vector<8x8xf32>
    %419 = tpu.matmul %418, %406, %cst_279 {dimension_numbers = #tpu.dot_dimension_numbers<[1], [0], [0], [1], [0, 0, 1, 1], [], []>} : vector<8x8xf32>, vector<8x8xf32>, vector<8x8xf32> -> vector<8x8xf32>
    %c8_280 = arith.constant 8 : index
    %c24_281 = arith.constant 24 : index
    %420 = vector.load %arg46[%c8_280, %c24_281] : memref<16x32xf32, #tpu.memory_space<vmem>>, vector<8x8xf32>
    tpu.vector_store %arg46[%c8_280, %c24_281], %419 {strides = array<i32>} : memref<16x32xf32, #tpu.memory_space<vmem>>, vector<8x8xf32>,
    %c0_282 = arith.constant 0 : index
    %c0_283 = arith.constant 0 : index
    %421 = vector.load %arg46[%c0_282, %c0_283] : memref<16x32xf32, #tpu.memory_space<vmem>>, vector<16x32xf32>
    %cst_284 = arith.constant dense<0.000000e+00> : vector<16x32xf32>
    %422 = tpu.matmul %421, %244, %cst_284 {dimension_numbers = #tpu.dot_dimension_numbers<[1], [0], [0], [1], [0, 0, 1, 1], [], []>} : vector<16x32xf32>, vector<32x32xf32>, vector<16x32xf32> -> vector<16x32xf32>
    %423 = vector.broadcast %246 : vector<1x32xf32> to vector<16x32xf32>
    %424 = arith.addf %422, %423 : vector<16x32xf32>
    %425 = arith.addf %234, %424 : vector<16x32xf32>
    %cst_285 = arith.constant dense<0.000000e+00> : vector<16xf32>
    %426 = vector.multi_reduction <add>, %425, %cst_285 [1] : vector<16x32xf32> to vector<16xf32>
    %427 = vector.shape_cast %426 : vector<16xf32> to vector<16x1xf32>
    %cst_286 = arith.constant 3.200000e+01 : f32
    %428 = vector.broadcast %cst_286 : f32 to vector<16x1xf32>
    %429 = arith.divf %427, %428 : vector<16x1xf32>
    %430 = vector.broadcast %429 : vector<16x1xf32> to vector<16x32xf32>
    %431 = arith.subf %425, %430 : vector<16x32xf32>
    %432 = arith.mulf %431, %431 : vector<16x32xf32>
    %cst_287 = arith.constant dense<0.000000e+00> : vector<16xf32>
    %433 = vector.multi_reduction <add>, %432, %cst_287 [1] : vector<16x32xf32> to vector<16xf32>
    %434 = vector.shape_cast %433 : vector<16xf32> to vector<16x1xf32>
    %cst_288 = arith.constant 3.200000e+01 : f32
    %435 = vector.broadcast %cst_288 : f32 to vector<16x1xf32>
    %436 = arith.divf %434, %435 : vector<16x1xf32>
    %437 = vector.broadcast %429 : vector<16x1xf32> to vector<16x32xf32>
    %438 = arith.subf %425, %437 : vector<16x32xf32>
    %cst_289 = arith.constant 9.99999974E-6 : f32
    %439 = vector.broadcast %cst_289 : f32 to vector<16x1xf32>
    %440 = arith.addf %436, %439 : vector<16x1xf32>
    %441 = math.rsqrt %440 : vector<16x1xf32>
    %442 = vector.broadcast %441 : vector<16x1xf32> to vector<16x32xf32>
    %443 = arith.mulf %438, %442 : vector<16x32xf32>
    %444 = vector.broadcast %248 : vector<1x32xf32> to vector<16x32xf32>
    %445 = arith.mulf %443, %444 : vector<16x32xf32>
    %446 = vector.broadcast %250 : vector<1x32xf32> to vector<16x32xf32>
    %447 = arith.addf %445, %446 : vector<16x32xf32>
    %cst_290 = arith.constant dense<0.000000e+00> : vector<16x64xf32>
    %448 = tpu.matmul %447, %252, %cst_290 {dimension_numbers = #tpu.dot_dimension_numbers<[1], [0], [0], [1], [0, 0, 1, 1], [], []>} : vector<16x32xf32>, vector<32x64xf32>, vector<16x64xf32> -> vector<16x64xf32>
    %449 = vector.broadcast %254 : vector<1x64xf32> to vector<16x64xf32>
    %450 = arith.addf %448, %449 : vector<16x64xf32>
    %cst_291 = arith.constant 1.702000e+00 : f32
    %451 = vector.broadcast %cst_291 : f32 to vector<16x64xf32>
    %452 = arith.mulf %451, %450 : vector<16x64xf32>
    %453 = arith.negf %452 : vector<16x64xf32>
    %454 = math.exp %453 : vector<16x64xf32>
    %cst_292 = arith.constant 1.000000e+00 : f32
    %455 = vector.broadcast %cst_292 : f32 to vector<16x64xf32>
    %456 = arith.addf %455, %454 : vector<16x64xf32>
    %457 = arith.divf %455, %456 : vector<16x64xf32>
    %458 = arith.mulf %450, %457 : vector<16x64xf32>
    %cst_293 = arith.constant dense<0.000000e+00> : vector<16x32xf32>
    %459 = tpu.matmul %458, %256, %cst_293 {dimension_numbers = #tpu.dot_dimension_numbers<[1], [0], [0], [1], [0, 0, 1, 1], [], []>} : vector<16x64xf32>, vector<64x32xf32>, vector<16x32xf32> -> vector<16x32xf32>
    %460 = vector.broadcast %258 : vector<1x32xf32> to vector<16x32xf32>
    %461 = arith.addf %459, %460 : vector<16x32xf32>
    %462 = arith.addf %425, %461 : vector<16x32xf32>
    %c0_294 = arith.constant 0 : index
    %c0_295 = arith.constant 0 : index
    %463 = vector.load %arg14[%c0_294, %c0_295] : memref<1x32xf32, #tpu.memory_space<vmem>>, vector<1x32xf32>
    %c0_296 = arith.constant 0 : index
    %c0_297 = arith.constant 0 : index
    %464 = vector.load %arg15[%c0_296, %c0_297] : memref<1x32xf32, #tpu.memory_space<vmem>>, vector<1x32xf32>
    %cst_298 = arith.constant dense<0.000000e+00> : vector<16xf32>
    %465 = vector.multi_reduction <add>, %462, %cst_298 [1] : vector<16x32xf32> to vector<16xf32>
    %466 = vector.shape_cast %465 : vector<16xf32> to vector<16x1xf32>
    %cst_299 = arith.constant 3.200000e+01 : f32
    %467 = vector.broadcast %cst_299 : f32 to vector<16x1xf32>
    %468 = arith.divf %466, %467 : vector<16x1xf32>
    %469 = vector.broadcast %468 : vector<16x1xf32> to vector<16x32xf32>
    %470 = arith.subf %462, %469 : vector<16x32xf32>
    %471 = arith.mulf %470, %470 : vector<16x32xf32>
    %cst_300 = arith.constant dense<0.000000e+00> : vector<16xf32>
    %472 = vector.multi_reduction <add>, %471, %cst_300 [1] : vector<16x32xf32> to vector<16xf32>
    %473 = vector.shape_cast %472 : vector<16xf32> to vector<16x1xf32>
    %cst_301 = arith.constant 3.200000e+01 : f32
    %474 = vector.broadcast %cst_301 : f32 to vector<16x1xf32>
    %475 = arith.divf %473, %474 : vector<16x1xf32>
    %476 = vector.broadcast %468 : vector<16x1xf32> to vector<16x32xf32>
    %477 = arith.subf %462, %476 : vector<16x32xf32>
    %cst_302 = arith.constant 9.99999974E-6 : f32
    %478 = vector.broadcast %cst_302 : f32 to vector<16x1xf32>
    %479 = arith.addf %475, %478 : vector<16x1xf32>
    %480 = math.rsqrt %479 : vector<16x1xf32>
    %481 = vector.broadcast %480 : vector<16x1xf32> to vector<16x32xf32>
    %482 = arith.mulf %477, %481 : vector<16x32xf32>
    %483 = vector.broadcast %463 : vector<1x32xf32> to vector<16x32xf32>
    %484 = arith.mulf %482, %483 : vector<16x32xf32>
    %485 = vector.broadcast %464 : vector<1x32xf32> to vector<16x32xf32>
    %486 = arith.addf %484, %485 : vector<16x32xf32>
    %c0_303 = arith.constant 0 : index
    %c0_304 = arith.constant 0 : index
    %487 = vector.load %arg1[%c0_303, %c0_304] : memref<2x16xf32, #tpu.memory_space<vmem>>, vector<2x16xf32>
    %cst_305 = arith.constant dense<0.000000e+00> : vector<2x32xf32>
    %488 = tpu.matmul %487, %486, %cst_305 {dimension_numbers = #tpu.dot_dimension_numbers<[1], [0], [0], [1], [0, 0, 1, 1], [], []>} : vector<2x16xf32>, vector<16x32xf32>, vector<2x32xf32> -> vector<2x32xf32>
    %c0_306 = arith.constant 0 : index
    %c0_307 = arith.constant 0 : index
    %489 = vector.load %arg16[%c0_306, %c0_307] : memref<32x32xf32, #tpu.memory_space<vmem>>, vector<32x32xf32>
    %cst_308 = arith.constant dense<0.000000e+00> : vector<2x32xf32>
    %490 = tpu.matmul %488, %489, %cst_308 {dimension_numbers = #tpu.dot_dimension_numbers<[1], [0], [0], [1], [0, 0, 1, 1], [], []>} : vector<2x32xf32>, vector<32x32xf32>, vector<2x32xf32> -> vector<2x32xf32>
    %c0_309 = arith.constant 0 : index
    %c0_310 = arith.constant 0 : index
    %491 = vector.load %arg17[%c0_309, %c0_310] : memref<16x192xf32, #tpu.memory_space<vmem>>, vector<16x192xf32>
    %c0_311 = arith.constant 0 : index
    %c0_312 = arith.constant 0 : index
    %492 = vector.load %arg18[%c0_311, %c0_312] : memref<192x32xf32, #tpu.memory_space<vmem>>, vector<192x32xf32>
    %cst_313 = arith.constant dense<0.000000e+00> : vector<16x32xf32>
    %493 = tpu.matmul %491, %492, %cst_313 {dimension_numbers = #tpu.dot_dimension_numbers<[1], [0], [0], [1], [0, 0, 1, 1], [], []>} : vector<16x192xf32>, vector<192x32xf32>, vector<16x32xf32> -> vector<16x32xf32>
    %c0_314 = arith.constant 0 : index
    %c0_315 = arith.constant 0 : index
    %494 = vector.load %arg19[%c0_314, %c0_315] : memref<16x32xf32, #tpu.memory_space<vmem>>, vector<16x32xf32>
    %495 = arith.addf %493, %494 : vector<16x32xf32>
    %c0_316 = arith.constant 0 : index
    %c0_317 = arith.constant 0 : index
    %496 = vector.load %arg20[%c0_316, %c0_317] : memref<1x32xf32, #tpu.memory_space<vmem>>, vector<1x32xf32>
    %c0_318 = arith.constant 0 : index
    %c0_319 = arith.constant 0 : index
    %497 = vector.load %arg21[%c0_318, %c0_319] : memref<1x32xf32, #tpu.memory_space<vmem>>, vector<1x32xf32>
    %cst_320 = arith.constant dense<0.000000e+00> : vector<16xf32>
    %498 = vector.multi_reduction <add>, %495, %cst_320 [1] : vector<16x32xf32> to vector<16xf32>
    %499 = vector.shape_cast %498 : vector<16xf32> to vector<16x1xf32>
    %cst_321 = arith.constant 3.200000e+01 : f32
    %500 = vector.broadcast %cst_321 : f32 to vector<16x1xf32>
    %501 = arith.divf %499, %500 : vector<16x1xf32>
    %502 = vector.broadcast %501 : vector<16x1xf32> to vector<16x32xf32>
    %503 = arith.subf %495, %502 : vector<16x32xf32>
    %504 = arith.mulf %503, %503 : vector<16x32xf32>
    %cst_322 = arith.constant dense<0.000000e+00> : vector<16xf32>
    %505 = vector.multi_reduction <add>, %504, %cst_322 [1] : vector<16x32xf32> to vector<16xf32>
    %506 = vector.shape_cast %505 : vector<16xf32> to vector<16x1xf32>
    %cst_323 = arith.constant 3.200000e+01 : f32
    %507 = vector.broadcast %cst_323 : f32 to vector<16x1xf32>
    %508 = arith.divf %506, %507 : vector<16x1xf32>
    %509 = vector.broadcast %501 : vector<16x1xf32> to vector<16x32xf32>
    %510 = arith.subf %495, %509 : vector<16x32xf32>
    %cst_324 = arith.constant 9.99999974E-6 : f32
    %511 = vector.broadcast %cst_324 : f32 to vector<16x1xf32>
    %512 = arith.addf %508, %511 : vector<16x1xf32>
    %513 = math.rsqrt %512 : vector<16x1xf32>
    %514 = vector.broadcast %513 : vector<16x1xf32> to vector<16x32xf32>
    %515 = arith.mulf %510, %514 : vector<16x32xf32>
    %516 = vector.broadcast %496 : vector<1x32xf32> to vector<16x32xf32>
    %517 = arith.mulf %515, %516 : vector<16x32xf32>
    %518 = vector.broadcast %497 : vector<1x32xf32> to vector<16x32xf32>
    %519 = arith.addf %517, %518 : vector<16x32xf32>
    %520 = tpu.iota {dimensions = array<i32: 1>} : vector<8x8xi32>
    %c5_i32 = arith.constant 5 : i32
    %521 = vector.broadcast %c5_i32 : i32 to vector<8x8xi32>
    %522 = arith.cmpi slt, %520, %521 : vector<8x8xi32>
    %cst_325 = arith.constant 0.000000e+00 : f32
    %cst_326 = arith.constant -1.000000e+09 : f32
    %523 = vector.broadcast %cst_325 : f32 to vector<8x8xf32>
    %524 = vector.broadcast %cst_326 : f32 to vector<8x8xf32>
    %525 = arith.select %522, %523, %524 : vector<8x8xi1>, vector<8x8xf32>
    %c0_327 = arith.constant 0 : index
    %c0_328 = arith.constant 0 : index
    %c0_329 = arith.constant 0 : index
    %526 = vector.load %arg22[%c0_327, %c0_328, %c0_329] : memref<2x1x32xf32, #tpu.memory_space<vmem>>, vector<1x1x32xf32>
    %527 = vector.shape_cast %526 : vector<1x1x32xf32> to vector<1x32xf32>
    %c0_330 = arith.constant 0 : index
    %c0_331 = arith.constant 0 : index
    %c0_332 = arith.constant 0 : index
    %528 = vector.load %arg23[%c0_330, %c0_331, %c0_332] : memref<2x1x32xf32, #tpu.memory_space<vmem>>, vector<1x1x32xf32>
    %529 = vector.shape_cast %528 : vector<1x1x32xf32> to vector<1x32xf32>
    %c0_333 = arith.constant 0 : index
    %c0_334 = arith.constant 0 : index
    %c0_335 = arith.constant 0 : index
    %530 = vector.load %arg24[%c0_333, %c0_334, %c0_335] : memref<2x32x96xf32, #tpu.memory_space<vmem>>, vector<1x32x96xf32>
    %531 = vector.shape_cast %530 : vector<1x32x96xf32> to vector<32x96xf32>
    %c0_336 = arith.constant 0 : index
    %c0_337 = arith.constant 0 : index
    %c0_338 = arith.constant 0 : index
    %532 = vector.load %arg25[%c0_336, %c0_337, %c0_338] : memref<2x1x96xf32, #tpu.memory_space<vmem>>, vector<1x1x96xf32>
    %533 = vector.shape_cast %532 : vector<1x1x96xf32> to vector<1x96xf32>
    %c0_339 = arith.constant 0 : index
    %c0_340 = arith.constant 0 : index
    %c0_341 = arith.constant 0 : index
    %534 = vector.load %arg26[%c0_339, %c0_340, %c0_341] : memref<2x32x32xf32, #tpu.memory_space<vmem>>, vector<1x32x32xf32>
    %535 = vector.shape_cast %534 : vector<1x32x32xf32> to vector<32x32xf32>
    %c0_342 = arith.constant 0 : index
    %c0_343 = arith.constant 0 : index
    %c0_344 = arith.constant 0 : index
    %536 = vector.load %arg27[%c0_342, %c0_343, %c0_344] : memref<2x1x32xf32, #tpu.memory_space<vmem>>, vector<1x1x32xf32>
    %537 = vector.shape_cast %536 : vector<1x1x32xf32> to vector<1x32xf32>
    %c0_345 = arith.constant 0 : index
    %c0_346 = arith.constant 0 : index
    %c0_347 = arith.constant 0 : index
    %538 = vector.load %arg28[%c0_345, %c0_346, %c0_347] : memref<2x1x32xf32, #tpu.memory_space<vmem>>, vector<1x1x32xf32>
    %539 = vector.shape_cast %538 : vector<1x1x32xf32> to vector<1x32xf32>
    %c0_348 = arith.constant 0 : index
    %c0_349 = arith.constant 0 : index
    %c0_350 = arith.constant 0 : index
    %540 = vector.load %arg29[%c0_348, %c0_349, %c0_350] : memref<2x1x32xf32, #tpu.memory_space<vmem>>, vector<1x1x32xf32>
    %541 = vector.shape_cast %540 : vector<1x1x32xf32> to vector<1x32xf32>
    %c0_351 = arith.constant 0 : index
    %c0_352 = arith.constant 0 : index
    %c0_353 = arith.constant 0 : index
    %542 = vector.load %arg30[%c0_351, %c0_352, %c0_353] : memref<2x32x64xf32, #tpu.memory_space<vmem>>, vector<1x32x64xf32>
    %543 = vector.shape_cast %542 : vector<1x32x64xf32> to vector<32x64xf32>
    %c0_354 = arith.constant 0 : index
    %c0_355 = arith.constant 0 : index
    %c0_356 = arith.constant 0 : index
    %544 = vector.load %arg31[%c0_354, %c0_355, %c0_356] : memref<2x1x64xf32, #tpu.memory_space<vmem>>, vector<1x1x64xf32>
    %545 = vector.shape_cast %544 : vector<1x1x64xf32> to vector<1x64xf32>
    %c0_357 = arith.constant 0 : index
    %c0_358 = arith.constant 0 : index
    %c0_359 = arith.constant 0 : index
    %546 = vector.load %arg32[%c0_357, %c0_358, %c0_359] : memref<2x64x32xf32, #tpu.memory_space<vmem>>, vector<1x64x32xf32>
    %547 = vector.shape_cast %546 : vector<1x64x32xf32> to vector<64x32xf32>
    %c0_360 = arith.constant 0 : index
    %c0_361 = arith.constant 0 : index
    %c0_362 = arith.constant 0 : index
    %548 = vector.load %arg33[%c0_360, %c0_361, %c0_362] : memref<2x1x32xf32, #tpu.memory_space<vmem>>, vector<1x1x32xf32>
    %549 = vector.shape_cast %548 : vector<1x1x32xf32> to vector<1x32xf32>
    %cst_363 = arith.constant dense<0.000000e+00> : vector<16xf32>
    %550 = vector.multi_reduction <add>, %519, %cst_363 [1] : vector<16x32xf32> to vector<16xf32>
    %551 = vector.shape_cast %550 : vector<16xf32> to vector<16x1xf32>
    %cst_364 = arith.constant 3.200000e+01 : f32
    %552 = vector.broadcast %cst_364 : f32 to vector<16x1xf32>
    %553 = arith.divf %551, %552 : vector<16x1xf32>
    %554 = vector.broadcast %553 : vector<16x1xf32> to vector<16x32xf32>
    %555 = arith.subf %519, %554 : vector<16x32xf32>
    %556 = arith.mulf %555, %555 : vector<16x32xf32>
    %cst_365 = arith.constant dense<0.000000e+00> : vector<16xf32>
    %557 = vector.multi_reduction <add>, %556, %cst_365 [1] : vector<16x32xf32> to vector<16xf32>
    %558 = vector.shape_cast %557 : vector<16xf32> to vector<16x1xf32>
    %cst_366 = arith.constant 3.200000e+01 : f32
    %559 = vector.broadcast %cst_366 : f32 to vector<16x1xf32>
    %560 = arith.divf %558, %559 : vector<16x1xf32>
    %561 = vector.broadcast %553 : vector<16x1xf32> to vector<16x32xf32>
    %562 = arith.subf %519, %561 : vector<16x32xf32>
    %cst_367 = arith.constant 9.99999974E-6 : f32
    %563 = vector.broadcast %cst_367 : f32 to vector<16x1xf32>
    %564 = arith.addf %560, %563 : vector<16x1xf32>
    %565 = math.rsqrt %564 : vector<16x1xf32>
    %566 = vector.broadcast %565 : vector<16x1xf32> to vector<16x32xf32>
    %567 = arith.mulf %562, %566 : vector<16x32xf32>
    %568 = vector.broadcast %527 : vector<1x32xf32> to vector<16x32xf32>
    %569 = arith.mulf %567, %568 : vector<16x32xf32>
    %570 = vector.broadcast %529 : vector<1x32xf32> to vector<16x32xf32>
    %571 = arith.addf %569, %570 : vector<16x32xf32>
    %cst_368 = arith.constant dense<0.000000e+00> : vector<16x96xf32>
    %572 = tpu.matmul %571, %531, %cst_368 {dimension_numbers = #tpu.dot_dimension_numbers<[1], [0], [0], [1], [0, 0, 1, 1], [], []>} : vector<16x32xf32>, vector<32x96xf32>, vector<16x96xf32> -> vector<16x96xf32>
    %573 = vector.broadcast %533 : vector<1x96xf32> to vector<16x96xf32>
    %574 = arith.addf %572, %573 : vector<16x96xf32>
    %c0_369 = arith.constant 0 : index
    %c0_370 = arith.constant 0 : index
    %575 = vector.load %arg45[%c0_369, %c0_370] : memref<16x96xf32, #tpu.memory_space<vmem>>, vector<16x96xf32>
    tpu.vector_store %arg45[%c0_369, %c0_370], %574 {strides = array<i32>} : memref<16x96xf32, #tpu.memory_space<vmem>>, vector<16x96xf32>,
    %c0_371 = arith.constant 0 : index
    %c0_372 = arith.constant 0 : index
    %576 = vector.load %arg45[%c0_371, %c0_372] : memref<16x96xf32, #tpu.memory_space<vmem>>, vector<8x8xf32>
    %c0_373 = arith.constant 0 : index
    %c32_374 = arith.constant 32 : index
    %577 = vector.load %arg45[%c0_373, %c32_374] : memref<16x96xf32, #tpu.memory_space<vmem>>, vector<8x8xf32>
    %c0_375 = arith.constant 0 : index
    %c64_376 = arith.constant 64 : index
    %578 = vector.load %arg45[%c0_375, %c64_376] : memref<16x96xf32, #tpu.memory_space<vmem>>, vector<8x8xf32>
    %579 = tpu.transpose %577, [1, 0] : vector<8x8xf32> -> vector<8x8xf32>
    %cst_377 = arith.constant dense<0.000000e+00> : vector<8x8xf32>
    %580 = tpu.matmul %576, %579, %cst_377 {dimension_numbers = #tpu.dot_dimension_numbers<[1], [0], [0], [1], [0, 0, 1, 1], [], []>} : vector<8x8xf32>, vector<8x8xf32>, vector<8x8xf32> -> vector<8x8xf32>
    %581 = arith.addf %580, %525 : vector<8x8xf32>
    %cst_378 = arith.constant dense<0xFF800000> : vector<8xf32>
    %582 = vector.multi_reduction <maximumf>, %581, %cst_378 [1] : vector<8x8xf32> to vector<8xf32>
    %583 = vector.shape_cast %582 : vector<8xf32> to vector<8x1xf32>
    %584 = vector.broadcast %583 : vector<8x1xf32> to vector<8x8xf32>
    %585 = arith.subf %581, %584 : vector<8x8xf32>
    %586 = math.exp %585 : vector<8x8xf32>
    %cst_379 = arith.constant dense<0.000000e+00> : vector<8xf32>
    %587 = vector.multi_reduction <add>, %586, %cst_379 [1] : vector<8x8xf32> to vector<8xf32>
    %588 = vector.shape_cast %587 : vector<8xf32> to vector<8x1xf32>
    %589 = vector.broadcast %588 : vector<8x1xf32> to vector<8x8xf32>
    %590 = arith.divf %586, %589 : vector<8x8xf32>
    %cst_380 = arith.constant dense<0.000000e+00> : vector<8x8xf32>
    %591 = tpu.matmul %590, %578, %cst_380 {dimension_numbers = #tpu.dot_dimension_numbers<[1], [0], [0], [1], [0, 0, 1, 1], [], []>} : vector<8x8xf32>, vector<8x8xf32>, vector<8x8xf32> -> vector<8x8xf32>
    %c0_381 = arith.constant 0 : index
    %c0_382 = arith.constant 0 : index
    %592 = vector.load %arg46[%c0_381, %c0_382] : memref<16x32xf32, #tpu.memory_space<vmem>>, vector<8x8xf32>
    tpu.vector_store %arg46[%c0_381, %c0_382], %591 {strides = array<i32>} : memref<16x32xf32, #tpu.memory_space<vmem>>, vector<8x8xf32>,
    %c0_383 = arith.constant 0 : index
    %c8_384 = arith.constant 8 : index
    %593 = vector.load %arg45[%c0_383, %c8_384] : memref<16x96xf32, #tpu.memory_space<vmem>>, vector<8x8xf32>
    %c0_385 = arith.constant 0 : index
    %c40_386 = arith.constant 40 : index
    %594 = vector.load %arg45[%c0_385, %c40_386] : memref<16x96xf32, #tpu.memory_space<vmem>>, vector<8x8xf32>
    %c0_387 = arith.constant 0 : index
    %c72_388 = arith.constant 72 : index
    %595 = vector.load %arg45[%c0_387, %c72_388] : memref<16x96xf32, #tpu.memory_space<vmem>>, vector<8x8xf32>
    %596 = tpu.transpose %594, [1, 0] : vector<8x8xf32> -> vector<8x8xf32>
    %cst_389 = arith.constant dense<0.000000e+00> : vector<8x8xf32>
    %597 = tpu.matmul %593, %596, %cst_389 {dimension_numbers = #tpu.dot_dimension_numbers<[1], [0], [0], [1], [0, 0, 1, 1], [], []>} : vector<8x8xf32>, vector<8x8xf32>, vector<8x8xf32> -> vector<8x8xf32>
    %598 = arith.addf %597, %525 : vector<8x8xf32>
    %cst_390 = arith.constant dense<0xFF800000> : vector<8xf32>
    %599 = vector.multi_reduction <maximumf>, %598, %cst_390 [1] : vector<8x8xf32> to vector<8xf32>
    %600 = vector.shape_cast %599 : vector<8xf32> to vector<8x1xf32>
    %601 = vector.broadcast %600 : vector<8x1xf32> to vector<8x8xf32>
    %602 = arith.subf %598, %601 : vector<8x8xf32>
    %603 = math.exp %602 : vector<8x8xf32>
    %cst_391 = arith.constant dense<0.000000e+00> : vector<8xf32>
    %604 = vector.multi_reduction <add>, %603, %cst_391 [1] : vector<8x8xf32> to vector<8xf32>
    %605 = vector.shape_cast %604 : vector<8xf32> to vector<8x1xf32>
    %606 = vector.broadcast %605 : vector<8x1xf32> to vector<8x8xf32>
    %607 = arith.divf %603, %606 : vector<8x8xf32>
    %cst_392 = arith.constant dense<0.000000e+00> : vector<8x8xf32>
    %608 = tpu.matmul %607, %595, %cst_392 {dimension_numbers = #tpu.dot_dimension_numbers<[1], [0], [0], [1], [0, 0, 1, 1], [], []>} : vector<8x8xf32>, vector<8x8xf32>, vector<8x8xf32> -> vector<8x8xf32>
    %c0_393 = arith.constant 0 : index
    %c8_394 = arith.constant 8 : index
    %609 = vector.load %arg46[%c0_393, %c8_394] : memref<16x32xf32, #tpu.memory_space<vmem>>, vector<8x8xf32>
    tpu.vector_store %arg46[%c0_393, %c8_394], %608 {strides = array<i32>} : memref<16x32xf32, #tpu.memory_space<vmem>>, vector<8x8xf32>,
    %c0_395 = arith.constant 0 : index
    %c16_396 = arith.constant 16 : index
    %610 = vector.load %arg45[%c0_395, %c16_396] : memref<16x96xf32, #tpu.memory_space<vmem>>, vector<8x8xf32>
    %c0_397 = arith.constant 0 : index
    %c48_398 = arith.constant 48 : index
    %611 = vector.load %arg45[%c0_397, %c48_398] : memref<16x96xf32, #tpu.memory_space<vmem>>, vector<8x8xf32>
    %c0_399 = arith.constant 0 : index
    %c80_400 = arith.constant 80 : index
    %612 = vector.load %arg45[%c0_399, %c80_400] : memref<16x96xf32, #tpu.memory_space<vmem>>, vector<8x8xf32>
    %613 = tpu.transpose %611, [1, 0] : vector<8x8xf32> -> vector<8x8xf32>
    %cst_401 = arith.constant dense<0.000000e+00> : vector<8x8xf32>
    %614 = tpu.matmul %610, %613, %cst_401 {dimension_numbers = #tpu.dot_dimension_numbers<[1], [0], [0], [1], [0, 0, 1, 1], [], []>} : vector<8x8xf32>, vector<8x8xf32>, vector<8x8xf32> -> vector<8x8xf32>
    %615 = arith.addf %614, %525 : vector<8x8xf32>
    %cst_402 = arith.constant dense<0xFF800000> : vector<8xf32>
    %616 = vector.multi_reduction <maximumf>, %615, %cst_402 [1] : vector<8x8xf32> to vector<8xf32>
    %617 = vector.shape_cast %616 : vector<8xf32> to vector<8x1xf32>
    %618 = vector.broadcast %617 : vector<8x1xf32> to vector<8x8xf32>
    %619 = arith.subf %615, %618 : vector<8x8xf32>
    %620 = math.exp %619 : vector<8x8xf32>
    %cst_403 = arith.constant dense<0.000000e+00> : vector<8xf32>
    %621 = vector.multi_reduction <add>, %620, %cst_403 [1] : vector<8x8xf32> to vector<8xf32>
    %622 = vector.shape_cast %621 : vector<8xf32> to vector<8x1xf32>
    %623 = vector.broadcast %622 : vector<8x1xf32> to vector<8x8xf32>
    %624 = arith.divf %620, %623 : vector<8x8xf32>
    %cst_404 = arith.constant dense<0.000000e+00> : vector<8x8xf32>
    %625 = tpu.matmul %624, %612, %cst_404 {dimension_numbers = #tpu.dot_dimension_numbers<[1], [0], [0], [1], [0, 0, 1, 1], [], []>} : vector<8x8xf32>, vector<8x8xf32>, vector<8x8xf32> -> vector<8x8xf32>
    %c0_405 = arith.constant 0 : index
    %c16_406 = arith.constant 16 : index
    %626 = vector.load %arg46[%c0_405, %c16_406] : memref<16x32xf32, #tpu.memory_space<vmem>>, vector<8x8xf32>
    tpu.vector_store %arg46[%c0_405, %c16_406], %625 {strides = array<i32>} : memref<16x32xf32, #tpu.memory_space<vmem>>, vector<8x8xf32>,
    %c0_407 = arith.constant 0 : index
    %c24_408 = arith.constant 24 : index
    %627 = vector.load %arg45[%c0_407, %c24_408] : memref<16x96xf32, #tpu.memory_space<vmem>>, vector<8x8xf32>
    %c0_409 = arith.constant 0 : index
    %c56_410 = arith.constant 56 : index
    %628 = vector.load %arg45[%c0_409, %c56_410] : memref<16x96xf32, #tpu.memory_space<vmem>>, vector<8x8xf32>
    %c0_411 = arith.constant 0 : index
    %c88_412 = arith.constant 88 : index
    %629 = vector.load %arg45[%c0_411, %c88_412] : memref<16x96xf32, #tpu.memory_space<vmem>>, vector<8x8xf32>
    %630 = tpu.transpose %628, [1, 0] : vector<8x8xf32> -> vector<8x8xf32>
    %cst_413 = arith.constant dense<0.000000e+00> : vector<8x8xf32>
    %631 = tpu.matmul %627, %630, %cst_413 {dimension_numbers = #tpu.dot_dimension_numbers<[1], [0], [0], [1], [0, 0, 1, 1], [], []>} : vector<8x8xf32>, vector<8x8xf32>, vector<8x8xf32> -> vector<8x8xf32>
    %632 = arith.addf %631, %525 : vector<8x8xf32>
    %cst_414 = arith.constant dense<0xFF800000> : vector<8xf32>
    %633 = vector.multi_reduction <maximumf>, %632, %cst_414 [1] : vector<8x8xf32> to vector<8xf32>
    %634 = vector.shape_cast %633 : vector<8xf32> to vector<8x1xf32>
    %635 = vector.broadcast %634 : vector<8x1xf32> to vector<8x8xf32>
    %636 = arith.subf %632, %635 : vector<8x8xf32>
    %637 = math.exp %636 : vector<8x8xf32>
    %cst_415 = arith.constant dense<0.000000e+00> : vector<8xf32>
    %638 = vector.multi_reduction <add>, %637, %cst_415 [1] : vector<8x8xf32> to vector<8xf32>
    %639 = vector.shape_cast %638 : vector<8xf32> to vector<8x1xf32>
    %640 = vector.broadcast %639 : vector<8x1xf32> to vector<8x8xf32>
    %641 = arith.divf %637, %640 : vector<8x8xf32>
    %cst_416 = arith.constant dense<0.000000e+00> : vector<8x8xf32>
    %642 = tpu.matmul %641, %629, %cst_416 {dimension_numbers = #tpu.dot_dimension_numbers<[1], [0], [0], [1], [0, 0, 1, 1], [], []>} : vector<8x8xf32>, vector<8x8xf32>, vector<8x8xf32> -> vector<8x8xf32>
    %c0_417 = arith.constant 0 : index
    %c24_418 = arith.constant 24 : index
    %643 = vector.load %arg46[%c0_417, %c24_418] : memref<16x32xf32, #tpu.memory_space<vmem>>, vector<8x8xf32>
    tpu.vector_store %arg46[%c0_417, %c24_418], %642 {strides = array<i32>} : memref<16x32xf32, #tpu.memory_space<vmem>>, vector<8x8xf32>,
    %c8_419 = arith.constant 8 : index
    %c0_420 = arith.constant 0 : index
    %644 = vector.load %arg45[%c8_419, %c0_420] : memref<16x96xf32, #tpu.memory_space<vmem>>, vector<8x8xf32>
    %c8_421 = arith.constant 8 : index
    %c32_422 = arith.constant 32 : index
    %645 = vector.load %arg45[%c8_421, %c32_422] : memref<16x96xf32, #tpu.memory_space<vmem>>, vector<8x8xf32>
    %c8_423 = arith.constant 8 : index
    %c64_424 = arith.constant 64 : index
    %646 = vector.load %arg45[%c8_423, %c64_424] : memref<16x96xf32, #tpu.memory_space<vmem>>, vector<8x8xf32>
    %647 = tpu.transpose %645, [1, 0] : vector<8x8xf32> -> vector<8x8xf32>
    %cst_425 = arith.constant dense<0.000000e+00> : vector<8x8xf32>
    %648 = tpu.matmul %644, %647, %cst_425 {dimension_numbers = #tpu.dot_dimension_numbers<[1], [0], [0], [1], [0, 0, 1, 1], [], []>} : vector<8x8xf32>, vector<8x8xf32>, vector<8x8xf32> -> vector<8x8xf32>
    %649 = arith.addf %648, %525 : vector<8x8xf32>
    %cst_426 = arith.constant dense<0xFF800000> : vector<8xf32>
    %650 = vector.multi_reduction <maximumf>, %649, %cst_426 [1] : vector<8x8xf32> to vector<8xf32>
    %651 = vector.shape_cast %650 : vector<8xf32> to vector<8x1xf32>
    %652 = vector.broadcast %651 : vector<8x1xf32> to vector<8x8xf32>
    %653 = arith.subf %649, %652 : vector<8x8xf32>
    %654 = math.exp %653 : vector<8x8xf32>
    %cst_427 = arith.constant dense<0.000000e+00> : vector<8xf32>
    %655 = vector.multi_reduction <add>, %654, %cst_427 [1] : vector<8x8xf32> to vector<8xf32>
    %656 = vector.shape_cast %655 : vector<8xf32> to vector<8x1xf32>
    %657 = vector.broadcast %656 : vector<8x1xf32> to vector<8x8xf32>
    %658 = arith.divf %654, %657 : vector<8x8xf32>
    %cst_428 = arith.constant dense<0.000000e+00> : vector<8x8xf32>
    %659 = tpu.matmul %658, %646, %cst_428 {dimension_numbers = #tpu.dot_dimension_numbers<[1], [0], [0], [1], [0, 0, 1, 1], [], []>} : vector<8x8xf32>, vector<8x8xf32>, vector<8x8xf32> -> vector<8x8xf32>
    %c8_429 = arith.constant 8 : index
    %c0_430 = arith.constant 0 : index
    %660 = vector.load %arg46[%c8_429, %c0_430] : memref<16x32xf32, #tpu.memory_space<vmem>>, vector<8x8xf32>
    tpu.vector_store %arg46[%c8_429, %c0_430], %659 {strides = array<i32>} : memref<16x32xf32, #tpu.memory_space<vmem>>, vector<8x8xf32>,
    %c8_431 = arith.constant 8 : index
    %c8_432 = arith.constant 8 : index
    %661 = vector.load %arg45[%c8_431, %c8_432] : memref<16x96xf32, #tpu.memory_space<vmem>>, vector<8x8xf32>
    %c8_433 = arith.constant 8 : index
    %c40_434 = arith.constant 40 : index
    %662 = vector.load %arg45[%c8_433, %c40_434] : memref<16x96xf32, #tpu.memory_space<vmem>>, vector<8x8xf32>
    %c8_435 = arith.constant 8 : index
    %c72_436 = arith.constant 72 : index
    %663 = vector.load %arg45[%c8_435, %c72_436] : memref<16x96xf32, #tpu.memory_space<vmem>>, vector<8x8xf32>
    %664 = tpu.transpose %662, [1, 0] : vector<8x8xf32> -> vector<8x8xf32>
    %cst_437 = arith.constant dense<0.000000e+00> : vector<8x8xf32>
    %665 = tpu.matmul %661, %664, %cst_437 {dimension_numbers = #tpu.dot_dimension_numbers<[1], [0], [0], [1], [0, 0, 1, 1], [], []>} : vector<8x8xf32>, vector<8x8xf32>, vector<8x8xf32> -> vector<8x8xf32>
    %666 = arith.addf %665, %525 : vector<8x8xf32>
    %cst_438 = arith.constant dense<0xFF800000> : vector<8xf32>
    %667 = vector.multi_reduction <maximumf>, %666, %cst_438 [1] : vector<8x8xf32> to vector<8xf32>
    %668 = vector.shape_cast %667 : vector<8xf32> to vector<8x1xf32>
    %669 = vector.broadcast %668 : vector<8x1xf32> to vector<8x8xf32>
    %670 = arith.subf %666, %669 : vector<8x8xf32>
    %671 = math.exp %670 : vector<8x8xf32>
    %cst_439 = arith.constant dense<0.000000e+00> : vector<8xf32>
    %672 = vector.multi_reduction <add>, %671, %cst_439 [1] : vector<8x8xf32> to vector<8xf32>
    %673 = vector.shape_cast %672 : vector<8xf32> to vector<8x1xf32>
    %674 = vector.broadcast %673 : vector<8x1xf32> to vector<8x8xf32>
    %675 = arith.divf %671, %674 : vector<8x8xf32>
    %cst_440 = arith.constant dense<0.000000e+00> : vector<8x8xf32>
    %676 = tpu.matmul %675, %663, %cst_440 {dimension_numbers = #tpu.dot_dimension_numbers<[1], [0], [0], [1], [0, 0, 1, 1], [], []>} : vector<8x8xf32>, vector<8x8xf32>, vector<8x8xf32> -> vector<8x8xf32>
    %c8_441 = arith.constant 8 : index
    %c8_442 = arith.constant 8 : index
    %677 = vector.load %arg46[%c8_441, %c8_442] : memref<16x32xf32, #tpu.memory_space<vmem>>, vector<8x8xf32>
    tpu.vector_store %arg46[%c8_441, %c8_442], %676 {strides = array<i32>} : memref<16x32xf32, #tpu.memory_space<vmem>>, vector<8x8xf32>,
    %c8_443 = arith.constant 8 : index
    %c16_444 = arith.constant 16 : index
    %678 = vector.load %arg45[%c8_443, %c16_444] : memref<16x96xf32, #tpu.memory_space<vmem>>, vector<8x8xf32>
    %c8_445 = arith.constant 8 : index
    %c48_446 = arith.constant 48 : index
    %679 = vector.load %arg45[%c8_445, %c48_446] : memref<16x96xf32, #tpu.memory_space<vmem>>, vector<8x8xf32>
    %c8_447 = arith.constant 8 : index
    %c80_448 = arith.constant 80 : index
    %680 = vector.load %arg45[%c8_447, %c80_448] : memref<16x96xf32, #tpu.memory_space<vmem>>, vector<8x8xf32>
    %681 = tpu.transpose %679, [1, 0] : vector<8x8xf32> -> vector<8x8xf32>
    %cst_449 = arith.constant dense<0.000000e+00> : vector<8x8xf32>
    %682 = tpu.matmul %678, %681, %cst_449 {dimension_numbers = #tpu.dot_dimension_numbers<[1], [0], [0], [1], [0, 0, 1, 1], [], []>} : vector<8x8xf32>, vector<8x8xf32>, vector<8x8xf32> -> vector<8x8xf32>
    %683 = arith.addf %682, %525 : vector<8x8xf32>
    %cst_450 = arith.constant dense<0xFF800000> : vector<8xf32>
    %684 = vector.multi_reduction <maximumf>, %683, %cst_450 [1] : vector<8x8xf32> to vector<8xf32>
    %685 = vector.shape_cast %684 : vector<8xf32> to vector<8x1xf32>
    %686 = vector.broadcast %685 : vector<8x1xf32> to vector<8x8xf32>
    %687 = arith.subf %683, %686 : vector<8x8xf32>
    %688 = math.exp %687 : vector<8x8xf32>
    %cst_451 = arith.constant dense<0.000000e+00> : vector<8xf32>
    %689 = vector.multi_reduction <add>, %688, %cst_451 [1] : vector<8x8xf32> to vector<8xf32>
    %690 = vector.shape_cast %689 : vector<8xf32> to vector<8x1xf32>
    %691 = vector.broadcast %690 : vector<8x1xf32> to vector<8x8xf32>
    %692 = arith.divf %688, %691 : vector<8x8xf32>
    %cst_452 = arith.constant dense<0.000000e+00> : vector<8x8xf32>
    %693 = tpu.matmul %692, %680, %cst_452 {dimension_numbers = #tpu.dot_dimension_numbers<[1], [0], [0], [1], [0, 0, 1, 1], [], []>} : vector<8x8xf32>, vector<8x8xf32>, vector<8x8xf32> -> vector<8x8xf32>
    %c8_453 = arith.constant 8 : index
    %c16_454 = arith.constant 16 : index
    %694 = vector.load %arg46[%c8_453, %c16_454] : memref<16x32xf32, #tpu.memory_space<vmem>>, vector<8x8xf32>
    tpu.vector_store %arg46[%c8_453, %c16_454], %693 {strides = array<i32>} : memref<16x32xf32, #tpu.memory_space<vmem>>, vector<8x8xf32>,
    %c8_455 = arith.constant 8 : index
    %c24_456 = arith.constant 24 : index
    %695 = vector.load %arg45[%c8_455, %c24_456] : memref<16x96xf32, #tpu.memory_space<vmem>>, vector<8x8xf32>
    %c8_457 = arith.constant 8 : index
    %c56_458 = arith.constant 56 : index
    %696 = vector.load %arg45[%c8_457, %c56_458] : memref<16x96xf32, #tpu.memory_space<vmem>>, vector<8x8xf32>
    %c8_459 = arith.constant 8 : index
    %c88_460 = arith.constant 88 : index
    %697 = vector.load %arg45[%c8_459, %c88_460] : memref<16x96xf32, #tpu.memory_space<vmem>>, vector<8x8xf32>
    %698 = tpu.transpose %696, [1, 0] : vector<8x8xf32> -> vector<8x8xf32>
    %cst_461 = arith.constant dense<0.000000e+00> : vector<8x8xf32>
    %699 = tpu.matmul %695, %698, %cst_461 {dimension_numbers = #tpu.dot_dimension_numbers<[1], [0], [0], [1], [0, 0, 1, 1], [], []>} : vector<8x8xf32>, vector<8x8xf32>, vector<8x8xf32> -> vector<8x8xf32>
    %700 = arith.addf %699, %525 : vector<8x8xf32>
    %cst_462 = arith.constant dense<0xFF800000> : vector<8xf32>
    %701 = vector.multi_reduction <maximumf>, %700, %cst_462 [1] : vector<8x8xf32> to vector<8xf32>
    %702 = vector.shape_cast %701 : vector<8xf32> to vector<8x1xf32>
    %703 = vector.broadcast %702 : vector<8x1xf32> to vector<8x8xf32>
    %704 = arith.subf %700, %703 : vector<8x8xf32>
    %705 = math.exp %704 : vector<8x8xf32>
    %cst_463 = arith.constant dense<0.000000e+00> : vector<8xf32>
    %706 = vector.multi_reduction <add>, %705, %cst_463 [1] : vector<8x8xf32> to vector<8xf32>
    %707 = vector.shape_cast %706 : vector<8xf32> to vector<8x1xf32>
    %708 = vector.broadcast %707 : vector<8x1xf32> to vector<8x8xf32>
    %709 = arith.divf %705, %708 : vector<8x8xf32>
    %cst_464 = arith.constant dense<0.000000e+00> : vector<8x8xf32>
    %710 = tpu.matmul %709, %697, %cst_464 {dimension_numbers = #tpu.dot_dimension_numbers<[1], [0], [0], [1], [0, 0, 1, 1], [], []>} : vector<8x8xf32>, vector<8x8xf32>, vector<8x8xf32> -> vector<8x8xf32>
    %c8_465 = arith.constant 8 : index
    %c24_466 = arith.constant 24 : index
    %711 = vector.load %arg46[%c8_465, %c24_466] : memref<16x32xf32, #tpu.memory_space<vmem>>, vector<8x8xf32>
    tpu.vector_store %arg46[%c8_465, %c24_466], %710 {strides = array<i32>} : memref<16x32xf32, #tpu.memory_space<vmem>>, vector<8x8xf32>,
    %c0_467 = arith.constant 0 : index
    %c0_468 = arith.constant 0 : index
    %712 = vector.load %arg46[%c0_467, %c0_468] : memref<16x32xf32, #tpu.memory_space<vmem>>, vector<16x32xf32>
    %cst_469 = arith.constant dense<0.000000e+00> : vector<16x32xf32>
    %713 = tpu.matmul %712, %535, %cst_469 {dimension_numbers = #tpu.dot_dimension_numbers<[1], [0], [0], [1], [0, 0, 1, 1], [], []>} : vector<16x32xf32>, vector<32x32xf32>, vector<16x32xf32> -> vector<16x32xf32>
    %714 = vector.broadcast %537 : vector<1x32xf32> to vector<16x32xf32>
    %715 = arith.addf %713, %714 : vector<16x32xf32>
    %716 = arith.addf %519, %715 : vector<16x32xf32>
    %cst_470 = arith.constant dense<0.000000e+00> : vector<16xf32>
    %717 = vector.multi_reduction <add>, %716, %cst_470 [1] : vector<16x32xf32> to vector<16xf32>
    %718 = vector.shape_cast %717 : vector<16xf32> to vector<16x1xf32>
    %cst_471 = arith.constant 3.200000e+01 : f32
    %719 = vector.broadcast %cst_471 : f32 to vector<16x1xf32>
    %720 = arith.divf %718, %719 : vector<16x1xf32>
    %721 = vector.broadcast %720 : vector<16x1xf32> to vector<16x32xf32>
    %722 = arith.subf %716, %721 : vector<16x32xf32>
    %723 = arith.mulf %722, %722 : vector<16x32xf32>
    %cst_472 = arith.constant dense<0.000000e+00> : vector<16xf32>
    %724 = vector.multi_reduction <add>, %723, %cst_472 [1] : vector<16x32xf32> to vector<16xf32>
    %725 = vector.shape_cast %724 : vector<16xf32> to vector<16x1xf32>
    %cst_473 = arith.constant 3.200000e+01 : f32
    %726 = vector.broadcast %cst_473 : f32 to vector<16x1xf32>
    %727 = arith.divf %725, %726 : vector<16x1xf32>
    %728 = vector.broadcast %720 : vector<16x1xf32> to vector<16x32xf32>
    %729 = arith.subf %716, %728 : vector<16x32xf32>
    %cst_474 = arith.constant 9.99999974E-6 : f32
    %730 = vector.broadcast %cst_474 : f32 to vector<16x1xf32>
    %731 = arith.addf %727, %730 : vector<16x1xf32>
    %732 = math.rsqrt %731 : vector<16x1xf32>
    %733 = vector.broadcast %732 : vector<16x1xf32> to vector<16x32xf32>
    %734 = arith.mulf %729, %733 : vector<16x32xf32>
    %735 = vector.broadcast %539 : vector<1x32xf32> to vector<16x32xf32>
    %736 = arith.mulf %734, %735 : vector<16x32xf32>
    %737 = vector.broadcast %541 : vector<1x32xf32> to vector<16x32xf32>
    %738 = arith.addf %736, %737 : vector<16x32xf32>
    %cst_475 = arith.constant dense<0.000000e+00> : vector<16x64xf32>
    %739 = tpu.matmul %738, %543, %cst_475 {dimension_numbers = #tpu.dot_dimension_numbers<[1], [0], [0], [1], [0, 0, 1, 1], [], []>} : vector<16x32xf32>, vector<32x64xf32>, vector<16x64xf32> -> vector<16x64xf32>
    %740 = vector.broadcast %545 : vector<1x64xf32> to vector<16x64xf32>
    %741 = arith.addf %739, %740 : vector<16x64xf32>
    %cst_476 = arith.constant 1.702000e+00 : f32
    %742 = vector.broadcast %cst_476 : f32 to vector<16x64xf32>
    %743 = arith.mulf %742, %741 : vector<16x64xf32>
    %744 = arith.negf %743 : vector<16x64xf32>
    %745 = math.exp %744 : vector<16x64xf32>
    %cst_477 = arith.constant 1.000000e+00 : f32
    %746 = vector.broadcast %cst_477 : f32 to vector<16x64xf32>
    %747 = arith.addf %746, %745 : vector<16x64xf32>
    %748 = arith.divf %746, %747 : vector<16x64xf32>
    %749 = arith.mulf %741, %748 : vector<16x64xf32>
    %cst_478 = arith.constant dense<0.000000e+00> : vector<16x32xf32>
    %750 = tpu.matmul %749, %547, %cst_478 {dimension_numbers = #tpu.dot_dimension_numbers<[1], [0], [0], [1], [0, 0, 1, 1], [], []>} : vector<16x64xf32>, vector<64x32xf32>, vector<16x32xf32> -> vector<16x32xf32>
    %751 = vector.broadcast %549 : vector<1x32xf32> to vector<16x32xf32>
    %752 = arith.addf %750, %751 : vector<16x32xf32>
    %753 = arith.addf %716, %752 : vector<16x32xf32>
    %c1_479 = arith.constant 1 : index
    %c0_480 = arith.constant 0 : index
    %c0_481 = arith.constant 0 : index
    %754 = vector.load %arg22[%c1_479, %c0_480, %c0_481] : memref<2x1x32xf32, #tpu.memory_space<vmem>>, vector<1x1x32xf32>
    %755 = vector.shape_cast %754 : vector<1x1x32xf32> to vector<1x32xf32>
    %c1_482 = arith.constant 1 : index
    %c0_483 = arith.constant 0 : index
    %c0_484 = arith.constant 0 : index
    %756 = vector.load %arg23[%c1_482, %c0_483, %c0_484] : memref<2x1x32xf32, #tpu.memory_space<vmem>>, vector<1x1x32xf32>
    %757 = vector.shape_cast %756 : vector<1x1x32xf32> to vector<1x32xf32>
    %c1_485 = arith.constant 1 : index
    %c0_486 = arith.constant 0 : index
    %c0_487 = arith.constant 0 : index
    %758 = vector.load %arg24[%c1_485, %c0_486, %c0_487] : memref<2x32x96xf32, #tpu.memory_space<vmem>>, vector<1x32x96xf32>
    %759 = vector.shape_cast %758 : vector<1x32x96xf32> to vector<32x96xf32>
    %c1_488 = arith.constant 1 : index
    %c0_489 = arith.constant 0 : index
    %c0_490 = arith.constant 0 : index
    %760 = vector.load %arg25[%c1_488, %c0_489, %c0_490] : memref<2x1x96xf32, #tpu.memory_space<vmem>>, vector<1x1x96xf32>
    %761 = vector.shape_cast %760 : vector<1x1x96xf32> to vector<1x96xf32>
    %c1_491 = arith.constant 1 : index
    %c0_492 = arith.constant 0 : index
    %c0_493 = arith.constant 0 : index
    %762 = vector.load %arg26[%c1_491, %c0_492, %c0_493] : memref<2x32x32xf32, #tpu.memory_space<vmem>>, vector<1x32x32xf32>
    %763 = vector.shape_cast %762 : vector<1x32x32xf32> to vector<32x32xf32>
    %c1_494 = arith.constant 1 : index
    %c0_495 = arith.constant 0 : index
    %c0_496 = arith.constant 0 : index
    %764 = vector.load %arg27[%c1_494, %c0_495, %c0_496] : memref<2x1x32xf32, #tpu.memory_space<vmem>>, vector<1x1x32xf32>
    %765 = vector.shape_cast %764 : vector<1x1x32xf32> to vector<1x32xf32>
    %c1_497 = arith.constant 1 : index
    %c0_498 = arith.constant 0 : index
    %c0_499 = arith.constant 0 : index
    %766 = vector.load %arg28[%c1_497, %c0_498, %c0_499] : memref<2x1x32xf32, #tpu.memory_space<vmem>>, vector<1x1x32xf32>
    %767 = vector.shape_cast %766 : vector<1x1x32xf32> to vector<1x32xf32>
    %c1_500 = arith.constant 1 : index
    %c0_501 = arith.constant 0 : index
    %c0_502 = arith.constant 0 : index
    %768 = vector.load %arg29[%c1_500, %c0_501, %c0_502] : memref<2x1x32xf32, #tpu.memory_space<vmem>>, vector<1x1x32xf32>
    %769 = vector.shape_cast %768 : vector<1x1x32xf32> to vector<1x32xf32>
    %c1_503 = arith.constant 1 : index
    %c0_504 = arith.constant 0 : index
    %c0_505 = arith.constant 0 : index
    %770 = vector.load %arg30[%c1_503, %c0_504, %c0_505] : memref<2x32x64xf32, #tpu.memory_space<vmem>>, vector<1x32x64xf32>
    %771 = vector.shape_cast %770 : vector<1x32x64xf32> to vector<32x64xf32>
    %c1_506 = arith.constant 1 : index
    %c0_507 = arith.constant 0 : index
    %c0_508 = arith.constant 0 : index
    %772 = vector.load %arg31[%c1_506, %c0_507, %c0_508] : memref<2x1x64xf32, #tpu.memory_space<vmem>>, vector<1x1x64xf32>
    %773 = vector.shape_cast %772 : vector<1x1x64xf32> to vector<1x64xf32>
    %c1_509 = arith.constant 1 : index
    %c0_510 = arith.constant 0 : index
    %c0_511 = arith.constant 0 : index
    %774 = vector.load %arg32[%c1_509, %c0_510, %c0_511] : memref<2x64x32xf32, #tpu.memory_space<vmem>>, vector<1x64x32xf32>
    %775 = vector.shape_cast %774 : vector<1x64x32xf32> to vector<64x32xf32>
    %c1_512 = arith.constant 1 : index
    %c0_513 = arith.constant 0 : index
    %c0_514 = arith.constant 0 : index
    %776 = vector.load %arg33[%c1_512, %c0_513, %c0_514] : memref<2x1x32xf32, #tpu.memory_space<vmem>>, vector<1x1x32xf32>
    %777 = vector.shape_cast %776 : vector<1x1x32xf32> to vector<1x32xf32>
    %cst_515 = arith.constant dense<0.000000e+00> : vector<16xf32>
    %778 = vector.multi_reduction <add>, %753, %cst_515 [1] : vector<16x32xf32> to vector<16xf32>
    %779 = vector.shape_cast %778 : vector<16xf32> to vector<16x1xf32>
    %cst_516 = arith.constant 3.200000e+01 : f32
    %780 = vector.broadcast %cst_516 : f32 to vector<16x1xf32>
    %781 = arith.divf %779, %780 : vector<16x1xf32>
    %782 = vector.broadcast %781 : vector<16x1xf32> to vector<16x32xf32>
    %783 = arith.subf %753, %782 : vector<16x32xf32>
    %784 = arith.mulf %783, %783 : vector<16x32xf32>
    %cst_517 = arith.constant dense<0.000000e+00> : vector<16xf32>
    %785 = vector.multi_reduction <add>, %784, %cst_517 [1] : vector<16x32xf32> to vector<16xf32>
    %786 = vector.shape_cast %785 : vector<16xf32> to vector<16x1xf32>
    %cst_518 = arith.constant 3.200000e+01 : f32
    %787 = vector.broadcast %cst_518 : f32 to vector<16x1xf32>
    %788 = arith.divf %786, %787 : vector<16x1xf32>
    %789 = vector.broadcast %781 : vector<16x1xf32> to vector<16x32xf32>
    %790 = arith.subf %753, %789 : vector<16x32xf32>
    %cst_519 = arith.constant 9.99999974E-6 : f32
    %791 = vector.broadcast %cst_519 : f32 to vector<16x1xf32>
    %792 = arith.addf %788, %791 : vector<16x1xf32>
    %793 = math.rsqrt %792 : vector<16x1xf32>
    %794 = vector.broadcast %793 : vector<16x1xf32> to vector<16x32xf32>
    %795 = arith.mulf %790, %794 : vector<16x32xf32>
    %796 = vector.broadcast %755 : vector<1x32xf32> to vector<16x32xf32>
    %797 = arith.mulf %795, %796 : vector<16x32xf32>
    %798 = vector.broadcast %757 : vector<1x32xf32> to vector<16x32xf32>
    %799 = arith.addf %797, %798 : vector<16x32xf32>
    %cst_520 = arith.constant dense<0.000000e+00> : vector<16x96xf32>
    %800 = tpu.matmul %799, %759, %cst_520 {dimension_numbers = #tpu.dot_dimension_numbers<[1], [0], [0], [1], [0, 0, 1, 1], [], []>} : vector<16x32xf32>, vector<32x96xf32>, vector<16x96xf32> -> vector<16x96xf32>
    %801 = vector.broadcast %761 : vector<1x96xf32> to vector<16x96xf32>
    %802 = arith.addf %800, %801 : vector<16x96xf32>
    %c0_521 = arith.constant 0 : index
    %c0_522 = arith.constant 0 : index
    %803 = vector.load %arg45[%c0_521, %c0_522] : memref<16x96xf32, #tpu.memory_space<vmem>>, vector<16x96xf32>
    tpu.vector_store %arg45[%c0_521, %c0_522], %802 {strides = array<i32>} : memref<16x96xf32, #tpu.memory_space<vmem>>, vector<16x96xf32>,
    %c0_523 = arith.constant 0 : index
    %c0_524 = arith.constant 0 : index
    %804 = vector.load %arg45[%c0_523, %c0_524] : memref<16x96xf32, #tpu.memory_space<vmem>>, vector<8x8xf32>
    %c0_525 = arith.constant 0 : index
    %c32_526 = arith.constant 32 : index
    %805 = vector.load %arg45[%c0_525, %c32_526] : memref<16x96xf32, #tpu.memory_space<vmem>>, vector<8x8xf32>
    %c0_527 = arith.constant 0 : index
    %c64_528 = arith.constant 64 : index
    %806 = vector.load %arg45[%c0_527, %c64_528] : memref<16x96xf32, #tpu.memory_space<vmem>>, vector<8x8xf32>
    %807 = tpu.transpose %805, [1, 0] : vector<8x8xf32> -> vector<8x8xf32>
    %cst_529 = arith.constant dense<0.000000e+00> : vector<8x8xf32>
    %808 = tpu.matmul %804, %807, %cst_529 {dimension_numbers = #tpu.dot_dimension_numbers<[1], [0], [0], [1], [0, 0, 1, 1], [], []>} : vector<8x8xf32>, vector<8x8xf32>, vector<8x8xf32> -> vector<8x8xf32>
    %809 = arith.addf %808, %525 : vector<8x8xf32>
    %cst_530 = arith.constant dense<0xFF800000> : vector<8xf32>
    %810 = vector.multi_reduction <maximumf>, %809, %cst_530 [1] : vector<8x8xf32> to vector<8xf32>
    %811 = vector.shape_cast %810 : vector<8xf32> to vector<8x1xf32>
    %812 = vector.broadcast %811 : vector<8x1xf32> to vector<8x8xf32>
    %813 = arith.subf %809, %812 : vector<8x8xf32>
    %814 = math.exp %813 : vector<8x8xf32>
    %cst_531 = arith.constant dense<0.000000e+00> : vector<8xf32>
    %815 = vector.multi_reduction <add>, %814, %cst_531 [1] : vector<8x8xf32> to vector<8xf32>
    %816 = vector.shape_cast %815 : vector<8xf32> to vector<8x1xf32>
    %817 = vector.broadcast %816 : vector<8x1xf32> to vector<8x8xf32>
    %818 = arith.divf %814, %817 : vector<8x8xf32>
    %cst_532 = arith.constant dense<0.000000e+00> : vector<8x8xf32>
    %819 = tpu.matmul %818, %806, %cst_532 {dimension_numbers = #tpu.dot_dimension_numbers<[1], [0], [0], [1], [0, 0, 1, 1], [], []>} : vector<8x8xf32>, vector<8x8xf32>, vector<8x8xf32> -> vector<8x8xf32>
    %c0_533 = arith.constant 0 : index
    %c0_534 = arith.constant 0 : index
    %820 = vector.load %arg46[%c0_533, %c0_534] : memref<16x32xf32, #tpu.memory_space<vmem>>, vector<8x8xf32>
    tpu.vector_store %arg46[%c0_533, %c0_534], %819 {strides = array<i32>} : memref<16x32xf32, #tpu.memory_space<vmem>>, vector<8x8xf32>,
    %c0_535 = arith.constant 0 : index
    %c8_536 = arith.constant 8 : index
    %821 = vector.load %arg45[%c0_535, %c8_536] : memref<16x96xf32, #tpu.memory_space<vmem>>, vector<8x8xf32>
    %c0_537 = arith.constant 0 : index
    %c40_538 = arith.constant 40 : index
    %822 = vector.load %arg45[%c0_537, %c40_538] : memref<16x96xf32, #tpu.memory_space<vmem>>, vector<8x8xf32>
    %c0_539 = arith.constant 0 : index
    %c72_540 = arith.constant 72 : index
    %823 = vector.load %arg45[%c0_539, %c72_540] : memref<16x96xf32, #tpu.memory_space<vmem>>, vector<8x8xf32>
    %824 = tpu.transpose %822, [1, 0] : vector<8x8xf32> -> vector<8x8xf32>
    %cst_541 = arith.constant dense<0.000000e+00> : vector<8x8xf32>
    %825 = tpu.matmul %821, %824, %cst_541 {dimension_numbers = #tpu.dot_dimension_numbers<[1], [0], [0], [1], [0, 0, 1, 1], [], []>} : vector<8x8xf32>, vector<8x8xf32>, vector<8x8xf32> -> vector<8x8xf32>
    %826 = arith.addf %825, %525 : vector<8x8xf32>
    %cst_542 = arith.constant dense<0xFF800000> : vector<8xf32>
    %827 = vector.multi_reduction <maximumf>, %826, %cst_542 [1] : vector<8x8xf32> to vector<8xf32>
    %828 = vector.shape_cast %827 : vector<8xf32> to vector<8x1xf32>
    %829 = vector.broadcast %828 : vector<8x1xf32> to vector<8x8xf32>
    %830 = arith.subf %826, %829 : vector<8x8xf32>
    %831 = math.exp %830 : vector<8x8xf32>
    %cst_543 = arith.constant dense<0.000000e+00> : vector<8xf32>
    %832 = vector.multi_reduction <add>, %831, %cst_543 [1] : vector<8x8xf32> to vector<8xf32>
    %833 = vector.shape_cast %832 : vector<8xf32> to vector<8x1xf32>
    %834 = vector.broadcast %833 : vector<8x1xf32> to vector<8x8xf32>
    %835 = arith.divf %831, %834 : vector<8x8xf32>
    %cst_544 = arith.constant dense<0.000000e+00> : vector<8x8xf32>
    %836 = tpu.matmul %835, %823, %cst_544 {dimension_numbers = #tpu.dot_dimension_numbers<[1], [0], [0], [1], [0, 0, 1, 1], [], []>} : vector<8x8xf32>, vector<8x8xf32>, vector<8x8xf32> -> vector<8x8xf32>
    %c0_545 = arith.constant 0 : index
    %c8_546 = arith.constant 8 : index
    %837 = vector.load %arg46[%c0_545, %c8_546] : memref<16x32xf32, #tpu.memory_space<vmem>>, vector<8x8xf32>
    tpu.vector_store %arg46[%c0_545, %c8_546], %836 {strides = array<i32>} : memref<16x32xf32, #tpu.memory_space<vmem>>, vector<8x8xf32>,
    %c0_547 = arith.constant 0 : index
    %c16_548 = arith.constant 16 : index
    %838 = vector.load %arg45[%c0_547, %c16_548] : memref<16x96xf32, #tpu.memory_space<vmem>>, vector<8x8xf32>
    %c0_549 = arith.constant 0 : index
    %c48_550 = arith.constant 48 : index
    %839 = vector.load %arg45[%c0_549, %c48_550] : memref<16x96xf32, #tpu.memory_space<vmem>>, vector<8x8xf32>
    %c0_551 = arith.constant 0 : index
    %c80_552 = arith.constant 80 : index
    %840 = vector.load %arg45[%c0_551, %c80_552] : memref<16x96xf32, #tpu.memory_space<vmem>>, vector<8x8xf32>
    %841 = tpu.transpose %839, [1, 0] : vector<8x8xf32> -> vector<8x8xf32>
    %cst_553 = arith.constant dense<0.000000e+00> : vector<8x8xf32>
    %842 = tpu.matmul %838, %841, %cst_553 {dimension_numbers = #tpu.dot_dimension_numbers<[1], [0], [0], [1], [0, 0, 1, 1], [], []>} : vector<8x8xf32>, vector<8x8xf32>, vector<8x8xf32> -> vector<8x8xf32>
    %843 = arith.addf %842, %525 : vector<8x8xf32>
    %cst_554 = arith.constant dense<0xFF800000> : vector<8xf32>
    %844 = vector.multi_reduction <maximumf>, %843, %cst_554 [1] : vector<8x8xf32> to vector<8xf32>
    %845 = vector.shape_cast %844 : vector<8xf32> to vector<8x1xf32>
    %846 = vector.broadcast %845 : vector<8x1xf32> to vector<8x8xf32>
    %847 = arith.subf %843, %846 : vector<8x8xf32>
    %848 = math.exp %847 : vector<8x8xf32>
    %cst_555 = arith.constant dense<0.000000e+00> : vector<8xf32>
    %849 = vector.multi_reduction <add>, %848, %cst_555 [1] : vector<8x8xf32> to vector<8xf32>
    %850 = vector.shape_cast %849 : vector<8xf32> to vector<8x1xf32>
    %851 = vector.broadcast %850 : vector<8x1xf32> to vector<8x8xf32>
    %852 = arith.divf %848, %851 : vector<8x8xf32>
    %cst_556 = arith.constant dense<0.000000e+00> : vector<8x8xf32>
    %853 = tpu.matmul %852, %840, %cst_556 {dimension_numbers = #tpu.dot_dimension_numbers<[1], [0], [0], [1], [0, 0, 1, 1], [], []>} : vector<8x8xf32>, vector<8x8xf32>, vector<8x8xf32> -> vector<8x8xf32>
    %c0_557 = arith.constant 0 : index
    %c16_558 = arith.constant 16 : index
    %854 = vector.load %arg46[%c0_557, %c16_558] : memref<16x32xf32, #tpu.memory_space<vmem>>, vector<8x8xf32>
    tpu.vector_store %arg46[%c0_557, %c16_558], %853 {strides = array<i32>} : memref<16x32xf32, #tpu.memory_space<vmem>>, vector<8x8xf32>,
    %c0_559 = arith.constant 0 : index
    %c24_560 = arith.constant 24 : index
    %855 = vector.load %arg45[%c0_559, %c24_560] : memref<16x96xf32, #tpu.memory_space<vmem>>, vector<8x8xf32>
    %c0_561 = arith.constant 0 : index
    %c56_562 = arith.constant 56 : index
    %856 = vector.load %arg45[%c0_561, %c56_562] : memref<16x96xf32, #tpu.memory_space<vmem>>, vector<8x8xf32>
    %c0_563 = arith.constant 0 : index
    %c88_564 = arith.constant 88 : index
    %857 = vector.load %arg45[%c0_563, %c88_564] : memref<16x96xf32, #tpu.memory_space<vmem>>, vector<8x8xf32>
    %858 = tpu.transpose %856, [1, 0] : vector<8x8xf32> -> vector<8x8xf32>
    %cst_565 = arith.constant dense<0.000000e+00> : vector<8x8xf32>
    %859 = tpu.matmul %855, %858, %cst_565 {dimension_numbers = #tpu.dot_dimension_numbers<[1], [0], [0], [1], [0, 0, 1, 1], [], []>} : vector<8x8xf32>, vector<8x8xf32>, vector<8x8xf32> -> vector<8x8xf32>
    %860 = arith.addf %859, %525 : vector<8x8xf32>
    %cst_566 = arith.constant dense<0xFF800000> : vector<8xf32>
    %861 = vector.multi_reduction <maximumf>, %860, %cst_566 [1] : vector<8x8xf32> to vector<8xf32>
    %862 = vector.shape_cast %861 : vector<8xf32> to vector<8x1xf32>
    %863 = vector.broadcast %862 : vector<8x1xf32> to vector<8x8xf32>
    %864 = arith.subf %860, %863 : vector<8x8xf32>
    %865 = math.exp %864 : vector<8x8xf32>
    %cst_567 = arith.constant dense<0.000000e+00> : vector<8xf32>
    %866 = vector.multi_reduction <add>, %865, %cst_567 [1] : vector<8x8xf32> to vector<8xf32>
    %867 = vector.shape_cast %866 : vector<8xf32> to vector<8x1xf32>
    %868 = vector.broadcast %867 : vector<8x1xf32> to vector<8x8xf32>
    %869 = arith.divf %865, %868 : vector<8x8xf32>
    %cst_568 = arith.constant dense<0.000000e+00> : vector<8x8xf32>
    %870 = tpu.matmul %869, %857, %cst_568 {dimension_numbers = #tpu.dot_dimension_numbers<[1], [0], [0], [1], [0, 0, 1, 1], [], []>} : vector<8x8xf32>, vector<8x8xf32>, vector<8x8xf32> -> vector<8x8xf32>
    %c0_569 = arith.constant 0 : index
    %c24_570 = arith.constant 24 : index
    %871 = vector.load %arg46[%c0_569, %c24_570] : memref<16x32xf32, #tpu.memory_space<vmem>>, vector<8x8xf32>
    tpu.vector_store %arg46[%c0_569, %c24_570], %870 {strides = array<i32>} : memref<16x32xf32, #tpu.memory_space<vmem>>, vector<8x8xf32>,
    %c8_571 = arith.constant 8 : index
    %c0_572 = arith.constant 0 : index
    %872 = vector.load %arg45[%c8_571, %c0_572] : memref<16x96xf32, #tpu.memory_space<vmem>>, vector<8x8xf32>
    %c8_573 = arith.constant 8 : index
    %c32_574 = arith.constant 32 : index
    %873 = vector.load %arg45[%c8_573, %c32_574] : memref<16x96xf32, #tpu.memory_space<vmem>>, vector<8x8xf32>
    %c8_575 = arith.constant 8 : index
    %c64_576 = arith.constant 64 : index
    %874 = vector.load %arg45[%c8_575, %c64_576] : memref<16x96xf32, #tpu.memory_space<vmem>>, vector<8x8xf32>
    %875 = tpu.transpose %873, [1, 0] : vector<8x8xf32> -> vector<8x8xf32>
    %cst_577 = arith.constant dense<0.000000e+00> : vector<8x8xf32>
    %876 = tpu.matmul %872, %875, %cst_577 {dimension_numbers = #tpu.dot_dimension_numbers<[1], [0], [0], [1], [0, 0, 1, 1], [], []>} : vector<8x8xf32>, vector<8x8xf32>, vector<8x8xf32> -> vector<8x8xf32>
    %877 = arith.addf %876, %525 : vector<8x8xf32>
    %cst_578 = arith.constant dense<0xFF800000> : vector<8xf32>
    %878 = vector.multi_reduction <maximumf>, %877, %cst_578 [1] : vector<8x8xf32> to vector<8xf32>
    %879 = vector.shape_cast %878 : vector<8xf32> to vector<8x1xf32>
    %880 = vector.broadcast %879 : vector<8x1xf32> to vector<8x8xf32>
    %881 = arith.subf %877, %880 : vector<8x8xf32>
    %882 = math.exp %881 : vector<8x8xf32>
    %cst_579 = arith.constant dense<0.000000e+00> : vector<8xf32>
    %883 = vector.multi_reduction <add>, %882, %cst_579 [1] : vector<8x8xf32> to vector<8xf32>
    %884 = vector.shape_cast %883 : vector<8xf32> to vector<8x1xf32>
    %885 = vector.broadcast %884 : vector<8x1xf32> to vector<8x8xf32>
    %886 = arith.divf %882, %885 : vector<8x8xf32>
    %cst_580 = arith.constant dense<0.000000e+00> : vector<8x8xf32>
    %887 = tpu.matmul %886, %874, %cst_580 {dimension_numbers = #tpu.dot_dimension_numbers<[1], [0], [0], [1], [0, 0, 1, 1], [], []>} : vector<8x8xf32>, vector<8x8xf32>, vector<8x8xf32> -> vector<8x8xf32>
    %c8_581 = arith.constant 8 : index
    %c0_582 = arith.constant 0 : index
    %888 = vector.load %arg46[%c8_581, %c0_582] : memref<16x32xf32, #tpu.memory_space<vmem>>, vector<8x8xf32>
    tpu.vector_store %arg46[%c8_581, %c0_582], %887 {strides = array<i32>} : memref<16x32xf32, #tpu.memory_space<vmem>>, vector<8x8xf32>,
    %c8_583 = arith.constant 8 : index
    %c8_584 = arith.constant 8 : index
    %889 = vector.load %arg45[%c8_583, %c8_584] : memref<16x96xf32, #tpu.memory_space<vmem>>, vector<8x8xf32>
    %c8_585 = arith.constant 8 : index
    %c40_586 = arith.constant 40 : index
    %890 = vector.load %arg45[%c8_585, %c40_586] : memref<16x96xf32, #tpu.memory_space<vmem>>, vector<8x8xf32>
    %c8_587 = arith.constant 8 : index
    %c72_588 = arith.constant 72 : index
    %891 = vector.load %arg45[%c8_587, %c72_588] : memref<16x96xf32, #tpu.memory_space<vmem>>, vector<8x8xf32>
    %892 = tpu.transpose %890, [1, 0] : vector<8x8xf32> -> vector<8x8xf32>
    %cst_589 = arith.constant dense<0.000000e+00> : vector<8x8xf32>
    %893 = tpu.matmul %889, %892, %cst_589 {dimension_numbers = #tpu.dot_dimension_numbers<[1], [0], [0], [1], [0, 0, 1, 1], [], []>} : vector<8x8xf32>, vector<8x8xf32>, vector<8x8xf32> -> vector<8x8xf32>
    %894 = arith.addf %893, %525 : vector<8x8xf32>
    %cst_590 = arith.constant dense<0xFF800000> : vector<8xf32>
    %895 = vector.multi_reduction <maximumf>, %894, %cst_590 [1] : vector<8x8xf32> to vector<8xf32>
    %896 = vector.shape_cast %895 : vector<8xf32> to vector<8x1xf32>
    %897 = vector.broadcast %896 : vector<8x1xf32> to vector<8x8xf32>
    %898 = arith.subf %894, %897 : vector<8x8xf32>
    %899 = math.exp %898 : vector<8x8xf32>
    %cst_591 = arith.constant dense<0.000000e+00> : vector<8xf32>
    %900 = vector.multi_reduction <add>, %899, %cst_591 [1] : vector<8x8xf32> to vector<8xf32>
    %901 = vector.shape_cast %900 : vector<8xf32> to vector<8x1xf32>
    %902 = vector.broadcast %901 : vector<8x1xf32> to vector<8x8xf32>
    %903 = arith.divf %899, %902 : vector<8x8xf32>
    %cst_592 = arith.constant dense<0.000000e+00> : vector<8x8xf32>
    %904 = tpu.matmul %903, %891, %cst_592 {dimension_numbers = #tpu.dot_dimension_numbers<[1], [0], [0], [1], [0, 0, 1, 1], [], []>} : vector<8x8xf32>, vector<8x8xf32>, vector<8x8xf32> -> vector<8x8xf32>
    %c8_593 = arith.constant 8 : index
    %c8_594 = arith.constant 8 : index
    %905 = vector.load %arg46[%c8_593, %c8_594] : memref<16x32xf32, #tpu.memory_space<vmem>>, vector<8x8xf32>
    tpu.vector_store %arg46[%c8_593, %c8_594], %904 {strides = array<i32>} : memref<16x32xf32, #tpu.memory_space<vmem>>, vector<8x8xf32>,
    %c8_595 = arith.constant 8 : index
    %c16_596 = arith.constant 16 : index
    %906 = vector.load %arg45[%c8_595, %c16_596] : memref<16x96xf32, #tpu.memory_space<vmem>>, vector<8x8xf32>
    %c8_597 = arith.constant 8 : index
    %c48_598 = arith.constant 48 : index
    %907 = vector.load %arg45[%c8_597, %c48_598] : memref<16x96xf32, #tpu.memory_space<vmem>>, vector<8x8xf32>
    %c8_599 = arith.constant 8 : index
    %c80_600 = arith.constant 80 : index
    %908 = vector.load %arg45[%c8_599, %c80_600] : memref<16x96xf32, #tpu.memory_space<vmem>>, vector<8x8xf32>
    %909 = tpu.transpose %907, [1, 0] : vector<8x8xf32> -> vector<8x8xf32>
    %cst_601 = arith.constant dense<0.000000e+00> : vector<8x8xf32>
    %910 = tpu.matmul %906, %909, %cst_601 {dimension_numbers = #tpu.dot_dimension_numbers<[1], [0], [0], [1], [0, 0, 1, 1], [], []>} : vector<8x8xf32>, vector<8x8xf32>, vector<8x8xf32> -> vector<8x8xf32>
    %911 = arith.addf %910, %525 : vector<8x8xf32>
    %cst_602 = arith.constant dense<0xFF800000> : vector<8xf32>
    %912 = vector.multi_reduction <maximumf>, %911, %cst_602 [1] : vector<8x8xf32> to vector<8xf32>
    %913 = vector.shape_cast %912 : vector<8xf32> to vector<8x1xf32>
    %914 = vector.broadcast %913 : vector<8x1xf32> to vector<8x8xf32>
    %915 = arith.subf %911, %914 : vector<8x8xf32>
    %916 = math.exp %915 : vector<8x8xf32>
    %cst_603 = arith.constant dense<0.000000e+00> : vector<8xf32>
    %917 = vector.multi_reduction <add>, %916, %cst_603 [1] : vector<8x8xf32> to vector<8xf32>
    %918 = vector.shape_cast %917 : vector<8xf32> to vector<8x1xf32>
    %919 = vector.broadcast %918 : vector<8x1xf32> to vector<8x8xf32>
    %920 = arith.divf %916, %919 : vector<8x8xf32>
    %cst_604 = arith.constant dense<0.000000e+00> : vector<8x8xf32>
    %921 = tpu.matmul %920, %908, %cst_604 {dimension_numbers = #tpu.dot_dimension_numbers<[1], [0], [0], [1], [0, 0, 1, 1], [], []>} : vector<8x8xf32>, vector<8x8xf32>, vector<8x8xf32> -> vector<8x8xf32>
    %c8_605 = arith.constant 8 : index
    %c16_606 = arith.constant 16 : index
    %922 = vector.load %arg46[%c8_605, %c16_606] : memref<16x32xf32, #tpu.memory_space<vmem>>, vector<8x8xf32>
    tpu.vector_store %arg46[%c8_605, %c16_606], %921 {strides = array<i32>} : memref<16x32xf32, #tpu.memory_space<vmem>>, vector<8x8xf32>,
    %c8_607 = arith.constant 8 : index
    %c24_608 = arith.constant 24 : index
    %923 = vector.load %arg45[%c8_607, %c24_608] : memref<16x96xf32, #tpu.memory_space<vmem>>, vector<8x8xf32>
    %c8_609 = arith.constant 8 : index
    %c56_610 = arith.constant 56 : index
    %924 = vector.load %arg45[%c8_609, %c56_610] : memref<16x96xf32, #tpu.memory_space<vmem>>, vector<8x8xf32>
    %c8_611 = arith.constant 8 : index
    %c88_612 = arith.constant 88 : index
    %925 = vector.load %arg45[%c8_611, %c88_612] : memref<16x96xf32, #tpu.memory_space<vmem>>, vector<8x8xf32>
    %926 = tpu.transpose %924, [1, 0] : vector<8x8xf32> -> vector<8x8xf32>
    %cst_613 = arith.constant dense<0.000000e+00> : vector<8x8xf32>
    %927 = tpu.matmul %923, %926, %cst_613 {dimension_numbers = #tpu.dot_dimension_numbers<[1], [0], [0], [1], [0, 0, 1, 1], [], []>} : vector<8x8xf32>, vector<8x8xf32>, vector<8x8xf32> -> vector<8x8xf32>
    %928 = arith.addf %927, %525 : vector<8x8xf32>
    %cst_614 = arith.constant dense<0xFF800000> : vector<8xf32>
    %929 = vector.multi_reduction <maximumf>, %928, %cst_614 [1] : vector<8x8xf32> to vector<8xf32>
    %930 = vector.shape_cast %929 : vector<8xf32> to vector<8x1xf32>
    %931 = vector.broadcast %930 : vector<8x1xf32> to vector<8x8xf32>
    %932 = arith.subf %928, %931 : vector<8x8xf32>
    %933 = math.exp %932 : vector<8x8xf32>
    %cst_615 = arith.constant dense<0.000000e+00> : vector<8xf32>
    %934 = vector.multi_reduction <add>, %933, %cst_615 [1] : vector<8x8xf32> to vector<8xf32>
    %935 = vector.shape_cast %934 : vector<8xf32> to vector<8x1xf32>
    %936 = vector.broadcast %935 : vector<8x1xf32> to vector<8x8xf32>
    %937 = arith.divf %933, %936 : vector<8x8xf32>
    %cst_616 = arith.constant dense<0.000000e+00> : vector<8x8xf32>
    %938 = tpu.matmul %937, %925, %cst_616 {dimension_numbers = #tpu.dot_dimension_numbers<[1], [0], [0], [1], [0, 0, 1, 1], [], []>} : vector<8x8xf32>, vector<8x8xf32>, vector<8x8xf32> -> vector<8x8xf32>
    %c8_617 = arith.constant 8 : index
    %c24_618 = arith.constant 24 : index
    %939 = vector.load %arg46[%c8_617, %c24_618] : memref<16x32xf32, #tpu.memory_space<vmem>>, vector<8x8xf32>
    tpu.vector_store %arg46[%c8_617, %c24_618], %938 {strides = array<i32>} : memref<16x32xf32, #tpu.memory_space<vmem>>, vector<8x8xf32>,
    %c0_619 = arith.constant 0 : index
    %c0_620 = arith.constant 0 : index
    %940 = vector.load %arg46[%c0_619, %c0_620] : memref<16x32xf32, #tpu.memory_space<vmem>>, vector<16x32xf32>
    %cst_621 = arith.constant dense<0.000000e+00> : vector<16x32xf32>
    %941 = tpu.matmul %940, %763, %cst_621 {dimension_numbers = #tpu.dot_dimension_numbers<[1], [0], [0], [1], [0, 0, 1, 1], [], []>} : vector<16x32xf32>, vector<32x32xf32>, vector<16x32xf32> -> vector<16x32xf32>
    %942 = vector.broadcast %765 : vector<1x32xf32> to vector<16x32xf32>
    %943 = arith.addf %941, %942 : vector<16x32xf32>
    %944 = arith.addf %753, %943 : vector<16x32xf32>
    %cst_622 = arith.constant dense<0.000000e+00> : vector<16xf32>
    %945 = vector.multi_reduction <add>, %944, %cst_622 [1] : vector<16x32xf32> to vector<16xf32>
    %946 = vector.shape_cast %945 : vector<16xf32> to vector<16x1xf32>
    %cst_623 = arith.constant 3.200000e+01 : f32
    %947 = vector.broadcast %cst_623 : f32 to vector<16x1xf32>
    %948 = arith.divf %946, %947 : vector<16x1xf32>
    %949 = vector.broadcast %948 : vector<16x1xf32> to vector<16x32xf32>
    %950 = arith.subf %944, %949 : vector<16x32xf32>
    %951 = arith.mulf %950, %950 : vector<16x32xf32>
    %cst_624 = arith.constant dense<0.000000e+00> : vector<16xf32>
    %952 = vector.multi_reduction <add>, %951, %cst_624 [1] : vector<16x32xf32> to vector<16xf32>
    %953 = vector.shape_cast %952 : vector<16xf32> to vector<16x1xf32>
    %cst_625 = arith.constant 3.200000e+01 : f32
    %954 = vector.broadcast %cst_625 : f32 to vector<16x1xf32>
    %955 = arith.divf %953, %954 : vector<16x1xf32>
    %956 = vector.broadcast %948 : vector<16x1xf32> to vector<16x32xf32>
    %957 = arith.subf %944, %956 : vector<16x32xf32>
    %cst_626 = arith.constant 9.99999974E-6 : f32
    %958 = vector.broadcast %cst_626 : f32 to vector<16x1xf32>
    %959 = arith.addf %955, %958 : vector<16x1xf32>
    %960 = math.rsqrt %959 : vector<16x1xf32>
    %961 = vector.broadcast %960 : vector<16x1xf32> to vector<16x32xf32>
    %962 = arith.mulf %957, %961 : vector<16x32xf32>
    %963 = vector.broadcast %767 : vector<1x32xf32> to vector<16x32xf32>
    %964 = arith.mulf %962, %963 : vector<16x32xf32>
    %965 = vector.broadcast %769 : vector<1x32xf32> to vector<16x32xf32>
    %966 = arith.addf %964, %965 : vector<16x32xf32>
    %cst_627 = arith.constant dense<0.000000e+00> : vector<16x64xf32>
    %967 = tpu.matmul %966, %771, %cst_627 {dimension_numbers = #tpu.dot_dimension_numbers<[1], [0], [0], [1], [0, 0, 1, 1], [], []>} : vector<16x32xf32>, vector<32x64xf32>, vector<16x64xf32> -> vector<16x64xf32>
    %968 = vector.broadcast %773 : vector<1x64xf32> to vector<16x64xf32>
    %969 = arith.addf %967, %968 : vector<16x64xf32>
    %cst_628 = arith.constant 1.702000e+00 : f32
    %970 = vector.broadcast %cst_628 : f32 to vector<16x64xf32>
    %971 = arith.mulf %970, %969 : vector<16x64xf32>
    %972 = arith.negf %971 : vector<16x64xf32>
    %973 = math.exp %972 : vector<16x64xf32>
    %cst_629 = arith.constant 1.000000e+00 : f32
    %974 = vector.broadcast %cst_629 : f32 to vector<16x64xf32>
    %975 = arith.addf %974, %973 : vector<16x64xf32>
    %976 = arith.divf %974, %975 : vector<16x64xf32>
    %977 = arith.mulf %969, %976 : vector<16x64xf32>
    %cst_630 = arith.constant dense<0.000000e+00> : vector<16x32xf32>
    %978 = tpu.matmul %977, %775, %cst_630 {dimension_numbers = #tpu.dot_dimension_numbers<[1], [0], [0], [1], [0, 0, 1, 1], [], []>} : vector<16x64xf32>, vector<64x32xf32>, vector<16x32xf32> -> vector<16x32xf32>
    %979 = vector.broadcast %777 : vector<1x32xf32> to vector<16x32xf32>
    %980 = arith.addf %978, %979 : vector<16x32xf32>
    %981 = arith.addf %944, %980 : vector<16x32xf32>
    %982 = tpu.iota {dimensions = array<i32: 0>} : vector<2x16xi32>
    %983 = tpu.iota {dimensions = array<i32: 1>} : vector<2x16xi32>
    %c8_i32 = arith.constant 8 : i32
    %984 = vector.broadcast %c8_i32 : i32 to vector<2x16xi32>
    %985 = arith.muli %982, %984 : vector<2x16xi32>
    %986 = arith.cmpi eq, %983, %985 : vector<2x16xi32>
    %987 = arith.extui %986 : vector<2x16xi1> to vector<2x16xi32>
    %988 = arith.sitofp %987 : vector<2x16xi32> to vector<2x16xf32>
    %cst_631 = arith.constant dense<0.000000e+00> : vector<2x32xf32>
    %989 = tpu.matmul %988, %981, %cst_631 {dimension_numbers = #tpu.dot_dimension_numbers<[1], [0], [0], [1], [0, 0, 1, 1], [], []>} : vector<2x16xf32>, vector<16x32xf32>, vector<2x32xf32> -> vector<2x32xf32>
    %c0_632 = arith.constant 0 : index
    %c0_633 = arith.constant 0 : index
    %990 = vector.load %arg34[%c0_632, %c0_633] : memref<1x32xf32, #tpu.memory_space<vmem>>, vector<1x32xf32>
    %c0_634 = arith.constant 0 : index
    %c0_635 = arith.constant 0 : index
    %991 = vector.load %arg35[%c0_634, %c0_635] : memref<1x32xf32, #tpu.memory_space<vmem>>, vector<1x32xf32>
    %cst_636 = arith.constant dense<0.000000e+00> : vector<2xf32>
    %992 = vector.multi_reduction <add>, %989, %cst_636 [1] : vector<2x32xf32> to vector<2xf32>
    %993 = vector.shape_cast %992 : vector<2xf32> to vector<2x1xf32>
    %cst_637 = arith.constant 3.200000e+01 : f32
    %994 = vector.broadcast %cst_637 : f32 to vector<2x1xf32>
    %995 = arith.divf %993, %994 : vector<2x1xf32>
    %996 = vector.broadcast %995 : vector<2x1xf32> to vector<2x32xf32>
    %997 = arith.subf %989, %996 : vector<2x32xf32>
    %998 = arith.mulf %997, %997 : vector<2x32xf32>
    %cst_638 = arith.constant dense<0.000000e+00> : vector<2xf32>
    %999 = vector.multi_reduction <add>, %998, %cst_638 [1] : vector<2x32xf32> to vector<2xf32>
    %1000 = vector.shape_cast %999 : vector<2xf32> to vector<2x1xf32>
    %cst_639 = arith.constant 3.200000e+01 : f32
    %1001 = vector.broadcast %cst_639 : f32 to vector<2x1xf32>
    %1002 = arith.divf %1000, %1001 : vector<2x1xf32>
    %1003 = vector.broadcast %995 : vector<2x1xf32> to vector<2x32xf32>
    %1004 = arith.subf %989, %1003 : vector<2x32xf32>
    %cst_640 = arith.constant 9.99999974E-6 : f32
    %1005 = vector.broadcast %cst_640 : f32 to vector<2x1xf32>
    %1006 = arith.addf %1002, %1005 : vector<2x1xf32>
    %1007 = math.rsqrt %1006 : vector<2x1xf32>
    %1008 = vector.broadcast %1007 : vector<2x1xf32> to vector<2x32xf32>
    %1009 = arith.mulf %1004, %1008 : vector<2x32xf32>
    %1010 = vector.broadcast %990 : vector<1x32xf32> to vector<2x32xf32>
    %1011 = arith.mulf %1009, %1010 : vector<2x32xf32>
    %1012 = vector.broadcast %991 : vector<1x32xf32> to vector<2x32xf32>
    %1013 = arith.addf %1011, %1012 : vector<2x32xf32>
    %c0_641 = arith.constant 0 : index
    %c0_642 = arith.constant 0 : index
    %1014 = vector.load %arg36[%c0_641, %c0_642] : memref<32x32xf32, #tpu.memory_space<vmem>>, vector<32x32xf32>
    %cst_643 = arith.constant dense<0.000000e+00> : vector<2x32xf32>
    %1015 = tpu.matmul %1013, %1014, %cst_643 {dimension_numbers = #tpu.dot_dimension_numbers<[1], [0], [0], [1], [0, 0, 1, 1], [], []>} : vector<2x32xf32>, vector<32x32xf32>, vector<2x32xf32> -> vector<2x32xf32>
    %c0_644 = arith.constant 0 : index
    %c0_645 = arith.constant 0 : index
    %1016 = vector.load %arg37[%c0_644, %c0_645] : memref<32x512xf32, #tpu.memory_space<vmem>>, vector<32x512xf32>
    %cst_646 = arith.constant dense<0.000000e+00> : vector<2x512xf32>
    %1017 = tpu.matmul %490, %1016, %cst_646 {dimension_numbers = #tpu.dot_dimension_numbers<[1], [0], [0], [1], [0, 0, 1, 1], [], []>} : vector<2x32xf32>, vector<32x512xf32>, vector<2x512xf32> -> vector<2x512xf32>
    %c0_647 = arith.constant 0 : index
    %c0_648 = arith.constant 0 : index
    %1018 = vector.load %arg38[%c0_647, %c0_648] : memref<32x512xf32, #tpu.memory_space<vmem>>, vector<32x512xf32>
    %cst_649 = arith.constant dense<0.000000e+00> : vector<2x512xf32>
    %1019 = tpu.matmul %1015, %1018, %cst_649 {dimension_numbers = #tpu.dot_dimension_numbers<[1], [0], [0], [1], [0, 0, 1, 1], [], []>} : vector<2x32xf32>, vector<32x512xf32>, vector<2x512xf32> -> vector<2x512xf32>
    %1020 = arith.addf %1017, %1019 : vector<2x512xf32>
    %c0_650 = arith.constant 0 : index
    %c0_651 = arith.constant 0 : index
    %1021 = vector.load %arg39[%c0_650, %c0_651] : memref<1x512xf32, #tpu.memory_space<vmem>>, vector<1x512xf32>
    %1022 = vector.broadcast %1021 : vector<1x512xf32> to vector<2x512xf32>
    %1023 = arith.addf %1020, %1022 : vector<2x512xf32>
    %cst_652 = arith.constant 0.000000e+00 : f32
    %1024 = vector.broadcast %cst_652 : f32 to vector<2x512xf32>
    %1025 = arith.maximumf %1023, %1024 : vector<2x512xf32>
    %c0_653 = arith.constant 0 : index
    %c0_654 = arith.constant 0 : index
    %1026 = vector.load %arg40[%c0_653, %c0_654] : memref<512x128xf32, #tpu.memory_space<vmem>>, vector<512x128xf32>
    %cst_655 = arith.constant dense<0.000000e+00> : vector<2x128xf32>
    %1027 = tpu.matmul %1025, %1026, %cst_655 {dimension_numbers = #tpu.dot_dimension_numbers<[1], [0], [0], [1], [0, 0, 1, 1], [], []>} : vector<2x512xf32>, vector<512x128xf32>, vector<2x128xf32> -> vector<2x128xf32>
    %c0_656 = arith.constant 0 : index
    %c0_657 = arith.constant 0 : index
    %1028 = vector.load %arg41[%c0_656, %c0_657] : memref<1x128xf32, #tpu.memory_space<vmem>>, vector<1x128xf32>
    %1029 = vector.broadcast %1028 : vector<1x128xf32> to vector<2x128xf32>
    %1030 = arith.addf %1027, %1029 : vector<2x128xf32>
    %cst_658 = arith.constant 0.000000e+00 : f32
    %1031 = vector.broadcast %cst_658 : f32 to vector<2x128xf32>
    %1032 = arith.maximumf %1030, %1031 : vector<2x128xf32>
    %c0_659 = arith.constant 0 : index
    %c0_660 = arith.constant 0 : index
    %1033 = vector.load %arg42[%c0_659, %c0_660] : memref<128x1xf32, #tpu.memory_space<vmem>>, vector<128x1xf32>
    %cst_661 = arith.constant dense<0.000000e+00> : vector<2x1xf32>
    %1034 = tpu.matmul %1032, %1033, %cst_661 {dimension_numbers = #tpu.dot_dimension_numbers<[1], [0], [0], [1], [0, 0, 1, 1], [], []>} : vector<2x128xf32>, vector<128x1xf32>, vector<2x1xf32> -> vector<2x1xf32>
    %c0_662 = arith.constant 0 : index
    %c0_663 = arith.constant 0 : index
    %1035 = vector.load %arg43[%c0_662, %c0_663] : memref<1x1xf32, #tpu.memory_space<vmem>>, vector<1x1xf32>
    %1036 = vector.broadcast %1035 : vector<1x1xf32> to vector<2x1xf32>
    %1037 = arith.addf %1034, %1036 : vector<2x1xf32>
    %c0_664 = arith.constant 0 : index
    %c0_665 = arith.constant 0 : index
    %1038 = vector.load %arg44[%c0_664, %c0_665] : memref<2x1xf32, #tpu.memory_space<vmem>>, vector<2x1xf32>
    tpu.vector_store %arg44[%c0_664, %c0_665], %1037 {strides = array<i32>} : memref<2x1xf32, #tpu.memory_space<vmem>>, vector<2x1xf32>,
    return
  }
}

</mosaic_0001>

<bundles_post_ra>
// kernel: forward.1
= control target key start
LH: loop header
LB: loop body
LE: loop exit
PB: predicated region body
PF: predicated region fallthrough
CT: control target
= control target key end

     0   :  { %vm220_vm0 = vcmask 261120   ;;  %s10304_s6 = smov 4   ;;  %s10305_s10 = smov 2   ;;  %v10307_v34 = vmov 0.0   ;;  %vm351_vm1 = vcmask 785408   ;;  %vm10309_vm2 = vmmov 0   ;;  %s11794_s0 = inlined_call_operand.smem [shape: u32[45], index: -1, kind: input, shape index: {}] }
   0x1   :  { %s1_s5 = sld [smem:[%s11794_s0]]   ;;  %s10306_s14 = smov 3   ;;  %9462 = vmatprep.subr.mxu1 %v10307_v34  ;;  %9464 = vmatprep.mubr.msk.f32.mxu1 %vm10309_vm2, %v10307_v34  ;;  %vm358_vm3 = vcmask 64512   ;;  %v184_v56 = vlaneseq  ;;  %v10317_v59 = vmov -1e+09   ;;  %vm692_vm5 = vcmask 130112  }
   0x2   :  { %s10384_s9 = sld [smem:[%s11794_s0 + %s10304_s6]]   ;;  %s10308_s18 = smov 5   ;;  %vm865_vm6 = vcmask 195712   ;;  %vm1038_vm7 = vcmask 261312   ;;  %vm1964_vm8 = vcmask 523264   ;;  %vm3953_vm9 = vcmask 130048  }
   0x3   :  { %s10393_s13 = sld [smem:[%s11794_s0 + %s10305_s10]]   ;;  %s10310_s22 = smov 88   ;;  %v10489_v57 = vshrl.u32 %v184_v56, 7  ;;  %v10491_v58 = vand.u32 127, %v184_v56  ;;  %vm8048_vm12 = vcmask 254976   ;;  %vm8810_vm13 = vcmask 1024  }
   0x4   :  { %s10398_s17 = sld [smem:[%s11794_s0 + %s10306_s14]]   ;;  %s10311_s23 = smov 96  }
   0x5   :  { %s10409_s21 = sld [smem:[%s11794_s0 + %s10308_s18]]   ;;  %s10312_s24 = smov 120   ;;  %vm188_vm4 = vcmp.le.s32.totalorder %v10491_v58, %v10489_v57  ;;  %vm4259_vm10 = vcmp.lt.s32.totalorder %v10491_v58, 5 }
   0x6   :  { %s10313_s25 = smov 112   ;;  %s10314_s26 = smov 80   ;;  %v10496_v60 = vsel %vm188_vm4, 0.0, %v10317_v59 }
   0x7   :  { %v10369_v0 = vld [vmem:[%s1_s5] sm:$0xff]  ;;  %v10371_v1 = vld [vmem:[%s1_s5 + $0x8] sm:$0xff]  ;;  %s10315_s27 = smov 104   ;;  %s10316_s28 = smov 72  }
   0x8   :  { %v221_v2 = vsel %vm220_vm0, %v10369_v0, 0.0  ;;  %v224_v3 = vsel %vm220_vm0, %v10371_v1, 0.0  ;;  %v197_v14 = vld [vmem:[%s10384_s9 + $0x18] sm:$0xff]  ;;  %v196_v15 = vld [vmem:[%s10384_s9 + $0x10] sm:$0xff]  ;;  %v195_v16 = vld [vmem:[%s10384_s9 + $0x8] sm:$0xff]  ;;  %s10318_s29 = smov 64  }
   0x9   :  { %222 = vadd.xlane.f32.xlu0 %v221_v2  ;;  %9446 = vmatprep.subr.mxu0 %v197_v14  ;;  %v194_v17 = vld [vmem:[%s10384_s9] sm:$0xff]  ;;  %s10319_s30 = smov 48   ;;  %s10320_s1 = smov 40  }
   0xa   :  { %9447 = vmatpush3.msra.mxu0 %v197_v14  ;;  %v8860_v25 = vld [vmem:[%s10393_s13] ss:$0 sm:$0xff]  ;;  %s10321_s2 = smov 56   ;;  %s10322_s3 = smov 8  }
   0xb   :  { %9448 = vmatprep.subr.mxu0 %v196_v15  ;;  %v8861_v27 = vld [vmem:[%s10398_s17] ss:$0 sm:$0xff]  ;;  %s10323_s4 = smov 16   ;;  %s10324_s5 = smov 6  }
   0xc   :  { %9449 = vmatpush3.msra.mxu0 %v196_v15  ;;  %v8862_v35 = vld [vmem:[%s10409_s21] ss:$0 sm:$0xff]  ;;  %s10593_s8 = sld [smem:[%s11794_s0 + %s10324_s5]]   ;;  %s10325_s10 = smov 24  }
   0xd   :  { %225 = vadd.xlane.f32.xlu0 %v224_v3  ;;  %9450 = vmatprep.subr.mxu0 %v195_v16  ;;  %s10326_s11 = smov 7   ;;  %s10327_s16 = smov 10  }
   0xe   :  { %9451 = vmatpush3.msra.mxu0 %v195_v16  ;;  %s10615_s15 = sld [smem:[%s11794_s0 + %s10326_s11]]   ;;  %s10328_s11 = smov 9  }
   0xf   :  { %9452 = vmatprep.subr.mxu0 %v194_v17  ;;  %s10635_s20 = sld [smem:[%s11794_s0 + %s10327_s16]]   ;;  %s10329_s18 = smov 12  }
  0x10   :  { %9453 = vmatpush3.msra.mxu0 %v194_v17  ;;  %s10645_s7 = sld [smem:[%s11794_s0 + %s10322_s3]]   ;;  %s10331_s19 = smov 13  }
  0x11   :  { %9457 = vmatprep.subr.mxu0 %v10307_v34  ;;  %s10650_s16 = sld [smem:[%s11794_s0 + %s10328_s11]]   ;;  %s10330_s11 = smov 11  }
  0x12   :  { %s10659_s6 = sld [smem:[%s11794_s0 + %s10329_s18]]  }
  0x13   :  { %s10673_s18 = sld [smem:[%s11794_s0 + %s10330_s11]]  }
  0x14   :  { %s10683_s12 = sld [smem:[%s11794_s0 + %s10331_s19]]   ;;  %s10345_s19 = smov 30  }
  0x15   :  { %s8831_s11 = sld [smem:[%s11794_s0 + %s10323_s4]]  }
  0x92   :  { %v223_v4 = vpop.xlane.xlu0 %222 }
  0x93   :  { %v228_v5 = vmul.f32 0.03125, %v223_v4 }
  0x95   :  { %v230_v6 = vsub.f32 %v10369_v0, %v228_v5 }
  0x96   :  { %v226_v7 = vpop.xlane.xlu0 %225 }
  0x97   :  { %v229_v8 = vmul.f32 0.03125, %v226_v7  ;;  %v232_v9 = vmul.f32 %v230_v6, %v230_v6 }
  0x99   :  { %v231_v10 = vsub.f32 %v10371_v1, %v229_v8  ;;  %v234_v11 = vsel %vm220_vm0, %v232_v9, 0.0 }
  0x9a   :  { %235 = vadd.xlane.f32.xlu1 %v234_v11 }
  0x9b   :  { %v233_v12 = vmul.f32 %v231_v10, %v231_v10 }
  0x9d   :  { %v237_v13 = vsel %vm220_vm0, %v233_v12, 0.0 }
  0x9e   :  { %238 = vadd.xlane.f32.xlu1 %v237_v13 }
 0x123   :  { %v236_v18 = vpop.xlane.xlu1 %235 }
 0x124   :  { %v240_v19 = vmul.f32 0.03125, %v236_v18 }
 0x126   :  { %v242_v20 = vadd.f32 1e-05, %v240_v19 }
 0x127   :  { %v239_v21 = vpop.xlane.xlu1 %238 }
 0x128   :  { %10102 = vrsqrt.f32 %v242_v20  ;;  %v241_v22 = vmul.f32 0.03125, %v239_v21 }
 0x12a   :  { %v243_v23 = vadd.f32 1e-05, %v241_v22 }
 0x12c   :  { %10104 = vrsqrt.f32 %v243_v23 }
 0x135   :  { %v10103_v24 = vpop.eup %10102 }
 0x136   :  { %v246_v26 = vmul.f32 %v10103_v24, %v230_v6 }
 0x138   :  { %v254_v28 = vmul.f32 %v8860_v25, %v246_v26 }
 0x139   :  { %v10105_v29 = vpop.eup %10104 }
 0x13a   :  { %v247_v30 = vmul.f32 %v10105_v29, %v231_v10  ;;  %v262_v31 = vadd.f32 %v8861_v27, %v254_v28 }
 0x13c   :  { %v255_v32 = vmul.f32 %v8860_v25, %v247_v30  ;;  %9454 = vmatprep.mubr.msk.f32.mxu0 %vm220_vm0, %v262_v31 }
 0x13e   :  { %v263_v33 = vadd.f32 %v8861_v27, %v255_v32 }
 0x140   :  { %9455 = vmatmul.mubr.msk.f32.vlgmr.msra.gmra.mxu0 %vm220_vm0, %v263_v33 }
 0x141   :  { %9459 = vmatprep.mubr.msk.f32.mxu0 %vm10309_vm2, %v10307_v34 }
 0x200   :  { %v9456_v36 = vpop.f32.mrf.mxu0 }
 0x201   :  { %v348_v37 = vadd.f32 %v9456_v36, %v8862_v35 }
 0x202   :  { %v342_v38 = vpop.f32.mrf.mxu0 }
 0x203   :  { %353 = vst.msk [vmem:[#allocation2 + $0x8] sm:$0xff] %vm351_vm1, %v348_v37  ;;  %v343_v39 = vadd.f32 %v8862_v35, %v342_v38 }
 0x205   :  { %352 = vst.msk [vmem:[#allocation2] sm:$0xff] %vm351_vm1, %v343_v39 }
 0x20a   :  { %v10432_v41 = vld [vmem:[#allocation2 + $0x8] sm:$0xff] }
 0x20c   :  { %v10418_v40 = vld [vmem:[#allocation2] sm:$0xff] }
 0x20d   :  { %525 = vrot.lane.b32.xlu1 %v10418_v40, %s10310_s22  ;;  %356 = vrot.lane.b32.xlu0 %v10418_v40, %s10311_s23 }
 0x211   :  { %523 = vrot.lane.b32.xlu1 %v10418_v40, %s10312_s24  ;;  %696 = vrot.lane.b32.xlu0 %v10418_v40, %s10313_s25 }
 0x215   :  { %698 = vrot.lane.b32.xlu1 %v10418_v40, %s10314_s26  ;;  %869 = vrot.lane.b32.xlu0 %v10418_v40, %s10315_s27 }
 0x219   :  { %871 = vrot.lane.b32.xlu1 %v10418_v40, %s10316_s28  ;;  %1210 = vrot.lane.b32.xlu0 %v10432_v41, %s10310_s22 }
 0x21d   :  { %1042 = vrot.lane.b32.xlu1 %v10432_v41, %s10311_s23  ;;  %1382 = vrot.lane.b32.xlu0 %v10432_v41, %s10314_s26 }
 0x221   :  { %1208 = vrot.lane.b32.xlu1 %v10432_v41, %s10312_s24  ;;  %1554 = vrot.lane.b32.xlu0 %v10432_v41, %s10316_s28 }
 0x225   :  { %1380 = vrot.lane.b32.xlu1 %v10432_v41, %s10313_s25 }
 0x229   :  { %1552 = vrot.lane.b32.xlu1 %v10432_v41, %s10315_s27 }
 0x27f   :  { %v526_v42 = vpop.permute.xlu1 %525  ;;  %v357_v43 = vpop.permute.xlu0 %356 }
 0x280   :  { %9458 = vmatpush3.xpose.msk.msra.mxu0 %vm358_vm3, %v357_v43 }
 0x281   :  { %9467 = vmatprep.subr.mxu0 %v10307_v34 }
 0x283   :  { %v524_v44 = vpop.permute.xlu1 %523  ;;  %9460 = vmatmul.mubr.msk.f32.vlgmr.msra.gmra.mxu0 %vm358_vm3, %v10418_v40  ;;  %v697_v45 = vpop.permute.xlu0 %696 }
 0x284   :  { %9468 = vmatpush3.xpose.msk.msra.mxu0 %vm358_vm3, %v526_v42  ;;  %9469 = vmatprep.mubr.msk.f32.mxu0 %vm10309_vm2, %v10307_v34 }
 0x285   :  { %9477 = vmatprep.subr.mxu0 %v10307_v34 }
 0x287   :  { %v699_v46 = vpop.permute.xlu1 %698  ;;  %9470 = vmatmul.mubr.msk.f32.vlgmr.msra.gmra.mxu0 %vm358_vm3, %v524_v44  ;;  %v870_v47 = vpop.permute.xlu0 %869 }
 0x288   :  { %9478 = vmatpush3.xpose.msk.msra.mxu0 %vm358_vm3, %v699_v46  ;;  %9479 = vmatprep.mubr.msk.f32.mxu0 %vm10309_vm2, %v10307_v34 }
 0x289   :  { %9487 = vmatprep.subr.mxu0 %v10307_v34 }
 0x28b   :  { %v872_v48 = vpop.permute.xlu1 %871  ;;  %9480 = vmatmul.mubr.msk.f32.vlgmr.msra.gmra.mxu0 %vm358_vm3, %v697_v45  ;;  %v1211_v49 = vpop.permute.xlu0 %1210 }
 0x28c   :  { %9488 = vmatpush3.xpose.msk.msra.mxu0 %vm358_vm3, %v872_v48  ;;  %9489 = vmatprep.mubr.msk.f32.mxu0 %vm10309_vm2, %v10307_v34 }
 0x28d   :  { %9497 = vmatprep.subr.mxu0 %v10307_v34 }
 0x28f   :  { %v1043_v50 = vpop.permute.xlu1 %1042  ;;  %9490 = vmatmul.mubr.msk.f32.vlgmr.msra.gmra.mxu0 %vm358_vm3, %v870_v47  ;;  %v1383_v52 = vpop.permute.xlu0 %1382 }
 0x290   :  { %9498 = vmatpush3.xpose.msk.msra.mxu0 %vm358_vm3, %v1043_v50  ;;  %9499 = vmatprep.mubr.msk.f32.mxu0 %vm10309_vm2, %v10307_v34 }
 0x291   :  { %9507 = vmatprep.subr.mxu0 %v10307_v34 }
 0x293   :  { %v1209_v51 = vpop.permute.xlu1 %1208  ;;  %9500 = vmatmul.mubr.msk.f32.vlgmr.msra.gmra.mxu0 %vm358_vm3, %v10432_v41  ;;  %v1555_v54 = vpop.permute.xlu0 %1554 }
 0x294   :  { %9508 = vmatpush3.xpose.msk.msra.mxu0 %vm358_vm3, %v1211_v49  ;;  %9509 = vmatprep.mubr.msk.f32.mxu0 %vm10309_vm2, %v10307_v34 }
 0x295   :  { %9517 = vmatprep.subr.mxu0 %v10307_v34 }
 0x297   :  { %9510 = vmatmul.mubr.msk.f32.vlgmr.msra.gmra.mxu0 %vm358_vm3, %v1209_v51  ;;  %v1381_v53 = vpop.permute.xlu1 %1380 }
 0x298   :  { %9518 = vmatpush3.xpose.msk.msra.mxu0 %vm358_vm3, %v1383_v52  ;;  %9519 = vmatprep.mubr.msk.f32.mxu0 %vm10309_vm2, %v10307_v34 }
 0x299   :  { %9527 = vmatprep.subr.mxu0 %v10307_v34 }
 0x29b   :  { %9520 = vmatmul.mubr.msk.f32.vlgmr.msra.gmra.mxu0 %vm358_vm3, %v1381_v53  ;;  %v1553_v55 = vpop.permute.xlu1 %1552 }
 0x29c   :  { %9528 = vmatpush3.xpose.msk.msra.mxu0 %vm358_vm3, %v1555_v54  ;;  %9529 = vmatprep.mubr.msk.f32.mxu0 %vm10309_vm2, %v10307_v34 }
 0x29f   :  { %9530 = vmatmul.mubr.msk.f32.vlgmr.msra.gmra.mxu0 %vm358_vm3, %v1553_v55 }
 0x343   :  { %v429_v61 = vpop.f32.mrf.mxu0 }
 0x344   :  { %v430_v62 = vadd.f32 %v429_v61, %v10496_v60 }
 0x345   :  { %v9461_v63 = vpop.f32.mrf.mxu0 }
 0x346   :  { %v433_v2 = vsel %vm358_vm3, %v430_v62, -inf }
 0x347   :  { %434 = vmax.xlane.f32.xlu0 %v433_v2  ;;  %v597_v3 = vpop.f32.mrf.mxu0 }
 0x348   :  { %v598_v4 = vadd.f32 %v597_v3, %v10496_v60 }
 0x349   :  { %v9471_v5 = vpop.f32.mrf.mxu0 }
 0x34a   :  { %v601_v6 = vsel %vm358_vm3, %v598_v4, -inf }
 0x34b   :  { %602 = vmax.xlane.f32.xlu1 %v601_v6  ;;  %v770_v7 = vpop.f32.mrf.mxu0 }
 0x34c   :  { %v10503_v8 = vadd.f32 %v770_v7, %v10496_v60 }
 0x34d   :  { %v9481_v9 = vpop.f32.mrf.mxu0 }
 0x34e   :  { %v774_v10 = vsel %vm358_vm3, %v10503_v8, -inf }
 0x34f   :  { %775 = vmax.xlane.f32.xlu0 %v774_v10  ;;  %v943_v11 = vpop.f32.mrf.mxu0 }
 0x350   :  { %v944_v12 = vadd.f32 %v943_v11, %v10496_v60 }
 0x351   :  { %v9491_v13 = vpop.f32.mrf.mxu0 }
 0x352   :  { %v947_v14 = vsel %vm358_vm3, %v944_v12, -inf }
 0x353   :  { %948 = vmax.xlane.f32.xlu0 %v947_v14  ;;  %v1114_v15 = vpop.f32.mrf.mxu0 }
 0x354   :  { %v1115_v16 = vadd.f32 %v1114_v15, %v10496_v60 }
 0x355   :  { %v9501_v17 = vpop.f32.mrf.mxu0 }
 0x356   :  { %v1118_v18 = vsel %vm358_vm3, %v1115_v16, -inf }
 0x357   :  { %1119 = vmax.xlane.f32.xlu0 %v1118_v18  ;;  %v1282_v19 = vpop.f32.mrf.mxu0 }
 0x358   :  { %v1283_v20 = vadd.f32 %v1282_v19, %v10496_v60 }
 0x359   :  { %v9511_v21 = vpop.f32.mrf.mxu0 }
 0x35a   :  { %v1286_v22 = vsel %vm358_vm3, %v1283_v20, -inf }
 0x35b   :  { %1287 = vmax.xlane.f32.xlu1 %v1286_v22  ;;  %v1454_v23 = vpop.f32.mrf.mxu0 }
 0x35c   :  { %v1455_v24 = vadd.f32 %v1454_v23, %v10496_v60 }
 0x35d   :  { %v9521_v25 = vpop.f32.mrf.mxu0 }
 0x35e   :  { %v1458_v26 = vsel %vm358_vm3, %v1455_v24, -inf }
 0x35f   :  { %1459 = vmax.xlane.f32.xlu0 %v1458_v26  ;;  %v1626_v27 = vpop.f32.mrf.mxu0 }
 0x360   :  { %v1627_v29 = vadd.f32 %v1626_v27, %v10496_v60 }
 0x361   :  { %v9531_v28 = vpop.f32.mrf.mxu0 }
 0x362   :  { %v1630_v30 = vsel %vm358_vm3, %v1627_v29, -inf }
 0x36c   :  { %444 = vrot.lane.b32.xlu1 %v10418_v40, %s10318_s29 }
 0x390   :  { %1631 = vmax.xlane.f32.xlu1 %v1630_v30 }
 0x3a1   :  { %785 = vrot.lane.b32.xlu1 %v10418_v40, %s10319_s30 }
 0x3a5   :  { %958 = vrot.lane.b32.xlu1 %v10418_v40, %s10320_s1 }
 0x3a9   :  { %1129 = vrot.lane.b32.xlu1 %v10432_v41, %s10318_s29 }
 0x3d0   :  { %v435_v31 = vpop.xlane.xlu0 %434 }
 0x3d1   :  { %v436_v32 = vsub.f32 %v430_v62, %v435_v31 }
 0x3d3   :  { %v437_v33 = vmul.f32 1.442695, %v436_v32 }
 0x3d4   :  { %v603_v35 = vpop.xlane.xlu1 %602 }
 0x3d5   :  { %10106 = vpow2.f32 %v437_v33  ;;  %v604_v36 = vsub.f32 %v598_v4, %v603_v35 }
 0x3d7   :  { %v605_v37 = vmul.f32 1.442695, %v604_v36 }
 0x3d8   :  { %v776_v38 = vpop.xlane.xlu0 %775 }
 0x3d9   :  { %10108 = vpow2.f32 %v605_v37  ;;  %v777_v52 = vsub.f32 %v10503_v8, %v776_v38 }
 0x3db   :  { %v778_v54 = vmul.f32 1.442695, %v777_v52 }
 0x3dc   :  { %v949_v39 = vpop.xlane.xlu0 %948 }
 0x3dd   :  { %v950_v42 = vsub.f32 %v944_v12, %v949_v39 }
 0x3df   :  { %v951_v43 = vmul.f32 1.442695, %v950_v42 }
 0x3e0   :  { %v1120_v53 = vpop.xlane.xlu0 %1119 }
 0x3e1   :  { %10110 = vpow2.f32 %v951_v43  ;;  %v1121_v55 = vsub.f32 %v1115_v16, %v1120_v53 }
 0x3e2   :  { %v10107_v44 = vpop.eup %10106  ;;  %10112 = vpow2.f32 %v778_v54 }
 0x3e3   :  { %v439_v45 = vsel %vm358_vm3, %v10107_v44, 0.0  ;;  %v1122_v61 = vmul.f32 1.442695, %v1121_v55 }
 0x3e4   :  { %v1288_v46 = vpop.xlane.xlu1 %1287  ;;  %440 = vadd.xlane.f32.xlu0 %v439_v45 }
 0x3e5   :  { %10114 = vpow2.f32 %v1122_v61  ;;  %v1289_v63 = vsub.f32 %v1283_v20, %v1288_v46 }
 0x3e6   :  { %v10109_v47 = vpop.eup %10108 }
 0x3e7   :  { %v607_v48 = vsel %vm358_vm3, %v10109_v47, 0.0  ;;  %v1290_v3 = vmul.f32 1.442695, %v1289_v63  ;;  %v201_v63 = vld [vmem:[%s10593_s8 + $0x10] sm:$0xff] }
 0x3e8   :  { %v445_v49 = vpop.permute.xlu1 %444  ;;  %608 = vadd.xlane.f32.xlu1 %v607_v48  ;;  %v1460_v56 = vpop.xlane.xlu0 %1459 }
 0x3e9   :  { %9463 = vmatpush3.msra.mxu1 %v445_v49  ;;  %v1461_v62 = vsub.f32 %v1455_v24, %v1460_v56 }
 0x3ea   :  { %9472 = vmatprep.subr.mxu1 %v10307_v34 }
 0x3eb   :  { %v1462_v2 = vmul.f32 1.442695, %v1461_v62  ;;  %v202_v62 = vld [vmem:[%s10593_s8 + $0x18] sm:$0xff] }
 0x3ec   :  { %9537 = vmatprep.subr.mxu0 %v202_v62 }
 0x3ed   :  { %10116 = vpow2.f32 %v1462_v2  ;;  %9538 = vmatpush3.msra.mxu0 %v202_v62  ;;  %v217_v62 = vld [vmem:[%s10659_s6 + $0x30] sm:$0xff] }
 0x3ee   :  { %v10528_v50 = vpop.eup %10110  ;;  %10118 = vpow2.f32 %v1290_v3  ;;  %v200_v3 = vld [vmem:[%s10593_s8 + $0x8] sm:$0xff]  ;;  %9539 = vmatprep.subr.mxu0 %v201_v63 }
 0x3ef   :  { %v953_v51 = vsel %vm358_vm3, %v10528_v50, 0.0  ;;  %v10113_v4 = vpop.eup %10112  ;;  %9540 = vmatpush3.msra.mxu0 %v201_v63  ;;  %v216_v63 = vld [vmem:[%s10659_s6 + $0x28] sm:$0xff] }
 0x3f0   :  { %954 = vadd.xlane.f32.xlu1 %v953_v51  ;;  %9541 = vmatprep.subr.mxu0 %v200_v3 }
 0x3f1   :  { %9542 = vmatpush3.msra.mxu0 %v200_v3  ;;  %v214_v3 = vld [vmem:[%s10659_s6 + $0x18] sm:$0xff] }
 0x3f2   :  { %v10538_v5 = vpop.eup %10114 }
 0x3f3   :  { %v1124_v9 = vsel %vm358_vm3, %v10538_v5, 0.0 }
 0x3fa   :  { %612 = vrot.lane.b32.xlu0 %v10418_v40, %s10321_s2  ;;  %v780_v40 = vsel %vm358_vm3, %v10113_v4, 0.0  ;;  %v10542_v10 = vpop.eup %10116 }
 0x3fb   :  { %v1464_v11 = vsel %vm358_vm3, %v10542_v10, 0.0  ;;  %v10119_v12 = vpop.eup %10118 }
 0x3fc   :  { %v1292_v13 = vsel %vm358_vm3, %v10119_v12, 0.0 }
 0x401   :  { %1297 = vrot.lane.b32.xlu1 %v10432_v41, %s10321_s2 }
 0x419   :  { %v1632_v6 = vpop.xlane.xlu1 %1631  ;;  %781 = vadd.xlane.f32.xlu0 %v780_v40  ;;  %v199_v40 = vld [vmem:[%s10593_s8] sm:$0xff] }
 0x41a   :  { %v1633_v7 = vsub.f32 %v1627_v29, %v1632_v6  ;;  %9543 = vmatprep.subr.mxu0 %v199_v40 }
 0x41b   :  { %9544 = vmatpush3.msra.mxu0 %v199_v40  ;;  %v212_v40 = vld [vmem:[%s10659_s6 + $0x8] sm:$0xff] }
 0x41c   :  { %v1634_v8 = vmul.f32 1.442695, %v1633_v7 }
 0x41d   :  { %1125 = vadd.xlane.f32.xlu0 %v1124_v9  ;;  %v786_v16 = vpop.permute.xlu1 %785 }
 0x41e   :  { %10120 = vpow2.f32 %v1634_v8 }
 0x421   :  { %1465 = vadd.xlane.f32.xlu0 %v1464_v11  ;;  %v959_v17 = vpop.permute.xlu1 %958 }
 0x425   :  { %1293 = vadd.xlane.f32.xlu1 %v1292_v13  ;;  %v1130_v18 = vpop.permute.xlu1 %1129 }
 0x42b   :  { %v10547_v14 = vpop.eup %10120 }
 0x42c   :  { %v1636_v15 = vsel %vm358_vm3, %v10547_v14, 0.0 }
 0x42d   :  { %1637 = vadd.xlane.f32.xlu0 %v1636_v15 }
 0x436   :  { %1641 = vrot.lane.b32.xlu1 %v10432_v41, %s10320_s1 }
 0x443   :  { %1469 = vrot.lane.b32.xlu0 %v10432_v41, %s10319_s30 }
 0x46d   :  { %v441_v19 = vpop.xlane.xlu0 %440 }
 0x46e   :  { %10122 = vrcp.f32 %v441_v19 }
 0x471   :  { %v609_v20 = vpop.xlane.xlu1 %608  ;;  %v613_v23 = vpop.permute.xlu0 %612 }
 0x472   :  { %10124 = vrcp.f32 %v609_v20 }
 0x479   :  { %v955_v25 = vpop.xlane.xlu1 %954 }
 0x47b   :  { %v10123_v21 = vpop.eup %10122 }
 0x47c   :  { %v443_v22 = vmul.f32 %v10123_v21, %v10107_v44 }
 0x47d   :  { %v1298_v28 = vpop.permute.xlu1 %1297 }
 0x47e   :  { %9465 = vmatmul.mubr.msk.f32.vlgmr.msra.gmra.mxu1 %vm358_vm3, %v443_v22 }
 0x47f   :  { %v10125_v24 = vpop.eup %10124  ;;  %9473 = vmatpush3.msra.mxu1 %v613_v23  ;;  %9474 = vmatprep.mubr.msk.f32.mxu1 %vm10309_vm2, %v10307_v34 }
 0x480   :  { %9482 = vmatprep.subr.mxu1 %v10307_v34  ;;  %v611_v41 = vmul.f32 %v10125_v24, %v10109_v47 }
 0x482   :  { %9475 = vmatmul.mubr.msk.f32.vlgmr.msra.gmra.mxu1 %vm358_vm3, %v611_v41 }
 0x483   :  { %9483 = vmatpush3.msra.mxu1 %v786_v16  ;;  %9484 = vmatprep.mubr.msk.f32.mxu1 %vm10309_vm2, %v10307_v34 }
 0x484   :  { %9492 = vmatprep.subr.mxu1 %v10307_v34 }
 0x4a2   :  { %v782_v26 = vpop.xlane.xlu0 %781 }
 0x4a3   :  { %10126 = vrcp.f32 %v782_v26 }
 0x4a4   :  { %10128 = vrcp.f32 %v955_v25 }
 0x4a6   :  { %v1126_v27 = vpop.xlane.xlu0 %1125 }
 0x4a7   :  { %10130 = vrcp.f32 %v1126_v27 }
 0x4aa   :  { %v1466_v29 = vpop.xlane.xlu0 %1465 }
 0x4ae   :  { %v1294_v30 = vpop.xlane.xlu1 %1293 }
 0x4af   :  { %10132 = vrcp.f32 %v1294_v30 }
 0x4b0   :  { %v10127_v31 = vpop.eup %10126  ;;  %10134 = vrcp.f32 %v1466_v29 }
 0x4b1   :  { %v784_v32 = vmul.f32 %v10127_v31, %v10113_v4  ;;  %v10129_v33 = vpop.eup %10128 }
 0x4b2   :  { %v957_v35 = vmul.f32 %v10129_v33, %v10528_v50  ;;  %v1642_v46 = vpop.permute.xlu1 %1641 }
 0x4b3   :  { %9485 = vmatmul.mubr.msk.f32.vlgmr.msra.gmra.mxu1 %vm358_vm3, %v784_v32 }
 0x4b4   :  { %9493 = vmatpush3.msra.mxu1 %v959_v17  ;;  %9494 = vmatprep.mubr.msk.f32.mxu1 %vm10309_vm2, %v10307_v34  ;;  %v10131_v36 = vpop.eup %10130 }
 0x4b5   :  { %9502 = vmatprep.subr.mxu1 %v10307_v34  ;;  %v1128_v38 = vmul.f32 %v10131_v36, %v10538_v5  ;;  %v208_v36 = vld [vmem:[%s10635_s20 + $0x10] sm:$0xff] }
 0x4b6   :  { %v1638_v37 = vpop.xlane.xlu0 %1637 }
 0x4b7   :  { %10136 = vrcp.f32 %v1638_v37  ;;  %9495 = vmatmul.mubr.msk.f32.vlgmr.msra.gmra.mxu1 %vm358_vm3, %v957_v35  ;;  %v209_v35 = vld [vmem:[%s10635_s20 + $0x18] sm:$0xff]  ;;  %v207_v37 = vld [vmem:[%s10635_s20 + $0x8] sm:$0xff] }
 0x4b8   :  { %9503 = vmatpush3.msra.mxu1 %v1130_v18  ;;  %9504 = vmatprep.mubr.msk.f32.mxu1 %vm10309_vm2, %v10307_v34  ;;  %v8889_v18 = vld [vmem:[%s10615_s15] ss:$0 sm:$0xff] }
 0x4b9   :  { %9512 = vmatprep.subr.mxu1 %v10307_v34  ;;  %9548 = vmatprep.subr.mxu0 %v209_v35 }
 0x4ba   :  { %v1470_v44 = vpop.permute.xlu0 %1469 }
 0x4bb   :  { %9505 = vmatmul.mubr.msk.f32.vlgmr.msra.gmra.mxu1 %vm358_vm3, %v1128_v38  ;;  %v206_v38 = vld [vmem:[%s10635_s20] sm:$0xff] }
 0x4bc   :  { %v10133_v39 = vpop.eup %10132  ;;  %9513 = vmatpush3.msra.mxu1 %v1298_v28  ;;  %9514 = vmatprep.mubr.msk.f32.mxu1 %vm10309_vm2, %v10307_v34 }
 0x4bd   :  { %9522 = vmatprep.subr.mxu1 %v10307_v34  ;;  %v1296_v42 = vmul.f32 %v10133_v39, %v10119_v12  ;;  %v10135_v43 = vpop.eup %10134 }
 0x4be   :  { %v1468_v45 = vmul.f32 %v10135_v43, %v10542_v10 }
 0x4bf   :  { %9515 = vmatmul.mubr.msk.f32.vlgmr.msra.gmra.mxu1 %vm358_vm3, %v1296_v42 }
 0x4c0   :  { %9523 = vmatpush3.msra.mxu1 %v1470_v44  ;;  %9524 = vmatprep.mubr.msk.f32.mxu1 %vm10309_vm2, %v10307_v34 }
 0x4c1   :  { %9532 = vmatprep.subr.mxu1 %v10307_v34 }
 0x4c3   :  { %9525 = vmatmul.mubr.msk.f32.vlgmr.msra.gmra.mxu1 %vm358_vm3, %v1468_v45 }
 0x4c4   :  { %v10137_v47 = vpop.eup %10136  ;;  %9533 = vmatpush3.msra.mxu1 %v1642_v46  ;;  %9534 = vmatprep.mubr.msk.f32.mxu1 %vm10309_vm2, %v10307_v34 }
 0x4c5   :  { %v1640_v48 = vmul.f32 %v10137_v47, %v10547_v14 }
 0x4c7   :  { %9535 = vmatmul.mubr.msk.f32.vlgmr.msra.gmra.mxu1 %vm358_vm3, %v1640_v48  ;;  %v8892_v48 = vld [vmem:[%s10645_s7] ss:$0 sm:$0xff] }
 0x53e   :  { %v516_v49 = vpop.f32.mrf.mxu1 }
 0x53f   :  { %520 = vst.msk [vmem:[#allocation3] sm:$0xff] %vm358_vm3, %v516_v49 }
 0x540   :  { %v9466_v50 = vpop.f32.mrf.mxu1 }
 0x541   :  { %v8893_v50 = vld [vmem:[%s10650_s16] ss:$0 sm:$0xff] }
 0x542   :  { %v684_v51 = vpop.f32.mrf.mxu1 }
 0x543   :  { %689 = vrot.lane.b32.xlu0 %v684_v51, %s10322_s3 }
 0x544   :  { %v9476_v52 = vpop.f32.mrf.mxu1 }
 0x573   :  { %v857_v53 = vpop.f32.mrf.mxu1 }
 0x574   :  { %862 = vrot.lane.b32.xlu1 %v857_v53, %s10323_s4 }
 0x575   :  { %v9486_v54 = vpop.f32.mrf.mxu1 }
 0x577   :  { %v1030_v55 = vpop.f32.mrf.mxu1 }
 0x578   :  { %1035 = vrot.lane.b32.xlu1 %v1030_v55, %s10325_s10 }
 0x579   :  { %v9496_v56 = vpop.f32.mrf.mxu1 }
 0x57b   :  { %v1201_v61 = vpop.f32.mrf.mxu1 }
 0x57c   :  { %1205 = vst.msk [vmem:[#allocation3 + $0x8] sm:$0xff] %vm358_vm3, %v1201_v61  ;;  %v218_v61 = vld [vmem:[%s10659_s6 + $0x38] sm:$0xff] }
 0x57d   :  { %v9506_v2 = vpop.f32.mrf.mxu1 }
 0x57e   :  { %v215_v2 = vld [vmem:[%s10659_s6 + $0x20] sm:$0xff] }
 0x57f   :  { %v1369_v4 = vpop.f32.mrf.mxu1 }
 0x580   :  { %1374 = vrot.lane.b32.xlu0 %v1369_v4, %s10322_s3  ;;  %v213_v4 = vld [vmem:[%s10659_s6 + $0x10] sm:$0xff] }
 0x581   :  { %v9516_v5 = vpop.f32.mrf.mxu1 }
 0x582   :  { %v211_v5 = vld [vmem:[%s10659_s6] sm:$0xff] }
 0x583   :  { %v1541_v6 = vpop.f32.mrf.mxu1 }
 0x584   :  { %1546 = vrot.lane.b32.xlu0 %v1541_v6, %s10323_s4  ;;  %v8894_v6 = vld [vmem:[%s10673_s18] ss:$0 sm:$0xff] }
 0x585   :  { %v9526_v7 = vpop.f32.mrf.mxu1 }
 0x587   :  { %v1713_v8 = vpop.f32.mrf.mxu1 }
 0x588   :  { %1718 = vrot.lane.b32.xlu1 %v1713_v8, %s10325_s10 }
 0x589   :  { %v9536_v9 = vpop.f32.mrf.mxu1 }
 0x5b5   :  { %v690_v10 = vpop.permute.xlu0 %689 }
 0x5b6   :  { %693 = vst.msk [vmem:[#allocation3] sm:$0xff] %vm692_vm5, %v690_v10 }
 0x5e6   :  { %v863_v11 = vpop.permute.xlu1 %862 }
 0x5e7   :  { %866 = vst.msk [vmem:[#allocation3] sm:$0xff] %vm865_vm6, %v863_v11 }
 0x5ea   :  { %v1036_v12 = vpop.permute.xlu1 %1035 }
 0x5eb   :  { %1039 = vst.msk [vmem:[#allocation3] sm:$0xff] %vm1038_vm7, %v1036_v12 }
 0x5f2   :  { %v1375_v13 = vpop.permute.xlu0 %1374  ;;  %v1722_v14 = vld [vmem:[#allocation3] sm:$0xff] }
 0x5f3   :  { %1377 = vst.msk [vmem:[#allocation3 + $0x8] sm:$0xff] %vm692_vm5, %v1375_v13  ;;  %9545 = vmatprep.mubr.msk.f32.mxu0 %vm220_vm0, %v1722_v14 }
 0x5f6   :  { %v1547_v15 = vpop.permute.xlu0 %1546 }
 0x5f7   :  { %1549 = vst.msk [vmem:[#allocation3 + $0x8] sm:$0xff] %vm865_vm6, %v1547_v15 }
 0x5fa   :  { %v1719_v16 = vpop.permute.xlu1 %1718 }
 0x5fb   :  { %1721 = vst.msk [vmem:[#allocation3 + $0x8] sm:$0xff] %vm1038_vm7, %v1719_v16 }
 0x602   :  { %v1723_v17 = vld [vmem:[#allocation3 + $0x8] sm:$0xff] }
 0x603   :  { %9546 = vmatmul.mubr.msk.f32.vlgmr.msra.gmra.mxu0 %vm220_vm0, %v1723_v17 }
 0x604   :  { %9549 = vmatpush3.msra.mxu0 %v209_v35 }
 0x605   :  { %9550 = vmatprep.subr.mxu0 %v208_v36 }
 0x606   :  { %9551 = vmatpush3.msra.mxu0 %v208_v36 }
 0x607   :  { %9552 = vmatprep.subr.mxu0 %v207_v37 }
 0x608   :  { %9553 = vmatpush3.msra.mxu0 %v207_v37 }
 0x609   :  { %9554 = vmatprep.subr.mxu0 %v206_v38 }
 0x60a   :  { %9555 = vmatpush3.msra.mxu0 %v206_v38 }
 0x60b   :  { %9559 = vmatprep.subr.mxu0 %v218_v61 }
 0x6c3   :  { %v9547_v19 = vpop.f32.mrf.mxu0 }
 0x6c4   :  { %v1808_v20 = vadd.f32 %v9547_v19, %v8889_v18 }
 0x6c5   :  { %v1802_v21 = vpop.f32.mrf.mxu0 }
 0x6c6   :  { %v10619_v22 = vadd.f32 %v1808_v20, %v10371_v1  ;;  %v1803_v23 = vadd.f32 %v8889_v18, %v1802_v21 }
 0x6c8   :  { %v10622_v24 = vadd.f32 %v1803_v23, %v10369_v0  ;;  %v1816_v41 = vsel %vm220_vm0, %v10619_v22, 0.0 }
 0x6c9   :  { %1817 = vadd.xlane.f32.xlu1 %v1816_v41  ;;  %v8899_v41 = vld [vmem:[%s10683_s12] ss:$0 sm:$0xff] }
 0x6ca   :  { %v1813_v25 = vsel %vm220_vm0, %v10622_v24, 0.0 }
 0x6cb   :  { %1814 = vadd.xlane.f32.xlu0 %v1813_v25 }
 0x752   :  { %v1818_v26 = vpop.xlane.xlu1 %1817 }
 0x753   :  { %v1820_v27 = vmul.f32 0.03125, %v1818_v26 }
 0x754   :  { %v1815_v28 = vpop.xlane.xlu0 %1814 }
 0x755   :  { %v1819_v29 = vmul.f32 0.03125, %v1815_v28  ;;  %v1822_v30 = vsub.f32 %v10619_v22, %v1820_v27 }
 0x757   :  { %v1821_v1 = vsub.f32 %v10622_v24, %v1819_v29  ;;  %v1824_v32 = vmul.f32 %v1822_v30, %v1822_v30 }
 0x759   :  { %v1823_v31 = vmul.f32 %v1821_v1, %v1821_v1  ;;  %v1828_v33 = vsel %vm220_vm0, %v1824_v32, 0.0 }
 0x75b   :  { %v1825_v0 = vsel %vm220_vm0, %v1823_v31, 0.0 }
 0x75c   :  { %1826 = vadd.xlane.f32.xlu0 %v1825_v0 }
 0x760   :  { %1829 = vadd.xlane.f32.xlu0 %v1828_v33 }
 0x7e5   :  { %v1827_v39 = vpop.xlane.xlu0 %1826 }
 0x7e6   :  { %v1831_v42 = vmul.f32 0.03125, %v1827_v39 }
 0x7e8   :  { %v1833_v43 = vadd.f32 1e-05, %v1831_v42  ;;  %v8907_v42 = vld [vmem:[%s10384_s9 + $0x38] sm:$0xff] }
 0x7e9   :  { %v1830_v44 = vpop.xlane.xlu0 %1829  ;;  %9578 = vmatprep.subr.mxu1 %v8907_v42 }
 0x7ea   :  { %10138 = vrsqrt.f32 %v1833_v43  ;;  %v1832_v45 = vmul.f32 0.03125, %v1830_v44  ;;  %v8906_v43 = vld [vmem:[%s10384_s9 + $0x30] sm:$0xff]  ;;  %9579 = vmatpush3.msra.mxu1 %v8907_v42  ;;  %v8905_v44 = vld [vmem:[%s10384_s9 + $0x28] sm:$0xff] }
 0x7eb   :  { %9580 = vmatprep.subr.mxu1 %v8906_v43 }
 0x7ec   :  { %v1834_v46 = vadd.f32 1e-05, %v1832_v45  ;;  %9581 = vmatpush3.msra.mxu1 %v8906_v43  ;;  %v8904_v45 = vld [vmem:[%s10384_s9 + $0x20] sm:$0xff]  ;;  %s10332_s9 = smov 14  }
 0x7ed   :  { %9582 = vmatprep.subr.mxu1 %v8905_v44 }
 0x7ee   :  { %10140 = vrsqrt.f32 %v1834_v46  ;;  %9583 = vmatpush3.msra.mxu1 %v8905_v44 }
 0x7ef   :  { %9584 = vmatprep.subr.mxu1 %v8904_v45 }
 0x7f0   :  { %9585 = vmatpush3.msra.mxu1 %v8904_v45 }
 0x7f1   :  { %9589 = vmatprep.subr.mxu1 %v10307_v34 }
 0x7f7   :  { %v10139_v47 = vpop.eup %10138 }
 0x7f8   :  { %v1837_v49 = vmul.f32 %v10139_v47, %v1821_v1 }
 0x7fa   :  { %v1845_v51 = vmul.f32 %v8892_v48, %v1837_v49 }
 0x7fb   :  { %v10141_v52 = vpop.eup %10140 }
 0x7fc   :  { %v1838_v53 = vmul.f32 %v10141_v52, %v1822_v30  ;;  %v1853_v54 = vadd.f32 %v8893_v50, %v1845_v51 }
 0x7fe   :  { %v1846_v55 = vmul.f32 %v8892_v48, %v1838_v53  ;;  %9556 = vmatprep.mubr.msk.f32.mxu0 %vm220_vm0, %v1853_v54  ;;  %v8930_v53 = vld [vmem:[%s10393_s13 + $0x1] ss:$0 sm:$0xff] }
 0x800   :  { %v1854_v56 = vadd.f32 %v8893_v50, %v1846_v55 }
 0x802   :  { %9557 = vmatmul.mubr.msk.f32.vlgmr.msra.gmra.mxu0 %vm220_vm0, %v1854_v56 }
 0x803   :  { %9560 = vmatpush3.msra.mxu0 %v218_v61 }
 0x804   :  { %9561 = vmatprep.subr.mxu0 %v217_v62 }
 0x805   :  { %9562 = vmatpush3.msra.mxu0 %v217_v62  ;;  %v8931_v62 = vld [vmem:[%s10398_s17 + $0x1] ss:$0 sm:$0xff] }
 0x806   :  { %9563 = vmatprep.subr.mxu0 %v216_v63 }
 0x807   :  { %9564 = vmatpush3.msra.mxu0 %v216_v63 }
 0x808   :  { %9565 = vmatprep.subr.mxu0 %v215_v2 }
 0x809   :  { %9566 = vmatpush3.msra.mxu0 %v215_v2 }
 0x80a   :  { %9567 = vmatprep.subr.mxu0 %v214_v3 }
 0x80b   :  { %9568 = vmatpush3.msra.mxu0 %v214_v3 }
 0x80c   :  { %9569 = vmatprep.subr.mxu0 %v213_v4 }
 0x80d   :  { %9570 = vmatpush3.msra.mxu0 %v213_v4  ;;  %v8932_v4 = vld [vmem:[%s10409_s21 + $0x1] ss:$0 sm:$0xff]  ;;  %s8829_s21 = sld [smem:[%s11794_s0 + %s10332_s9]]  }
 0x80e   :  { %9571 = vmatprep.subr.mxu0 %v212_v40  ;;  %s11294_s9 = sld [smem:[%s11794_s0 + %s10345_s19]]  }
 0x80f   :  { %9572 = vmatpush3.msra.mxu0 %v212_v40 }
 0x810   :  { %9573 = vmatprep.subr.mxu0 %v211_v5 }
 0x811   :  { %9574 = vmatpush3.msra.mxu0 %v211_v5 }
 0x812   :  { %9599 = vmatprep.subr.mxu0 %v10307_v34 }
 0x8c2   :  { %v9558_v7 = vpop.f32.mrf.mxu0 }
 0x8c3   :  { %v1939_v8 = vadd.f32 %v9558_v7, %v8894_v6 }
 0x8c4   :  { %v1933_v9 = vpop.f32.mrf.mxu0 }
 0x8c5   :  { %v8898_v10 = vmul.f32 -1.702, %v1939_v8  ;;  %v1934_v11 = vadd.f32 %v8894_v6, %v1933_v9 }
 0x8c7   :  { %v1948_v12 = vmul.f32 1.442695, %v8898_v10  ;;  %v8897_v13 = vmul.f32 -1.702, %v1934_v11 }
 0x8c9   :  { %10142 = vpow2.f32 %v1948_v12  ;;  %v1946_v14 = vmul.f32 1.442695, %v8897_v13 }
 0x8cb   :  { %10144 = vpow2.f32 %v1946_v14 }
 0x8d6   :  { %v10143_v15 = vpop.eup %10142 }
 0x8d7   :  { %v1951_v16 = vadd.f32 1.0, %v10143_v15 }
 0x8d8   :  { %v10145_v17 = vpop.eup %10144 }
 0x8d9   :  { %v1950_v18 = vadd.f32 1.0, %v10145_v17  ;;  %10146 = vrcp.f32 %v1951_v16 }
 0x8db   :  { %10148 = vrcp.f32 %v1950_v18 }
 0x8e6   :  { %v10147_v19 = vpop.eup %10146 }
 0x8e7   :  { %v1957_v23 = vmul.f32 %v10147_v19, %v1939_v8 }
 0x8e8   :  { %v10149_v20 = vpop.eup %10148 }
 0x8e9   :  { %v1956_v21 = vmul.f32 %v10149_v20, %v1934_v11 }
 0x8eb   :  { %9575 = vmatprep.mubr.msk.f32.mxu0 %vm1964_vm8, %v1956_v21 }
 0x8ec   :  { %9576 = vmatmul.mubr.msk.f32.vlgmr.msra.gmra.mxu0 %vm1964_vm8, %v1957_v23 }
 0x8ed   :  { %9601 = vmatprep.mubr.msk.f32.mxu0 %vm10309_vm2, %v10307_v34 }
 0x9ac   :  { %v9577_v25 = vpop.f32.mrf.mxu0 }
 0x9ad   :  { %v2043_v26 = vadd.f32 %v9577_v25, %v8899_v41 }
 0x9ae   :  { %v2037_v27 = vpop.f32.mrf.mxu0 }
 0x9af   :  { %v10687_v28 = vadd.f32 %v2043_v26, %v10619_v22  ;;  %v2038_v29 = vadd.f32 %v8899_v41, %v2037_v27 }
 0x9b1   :  { %v10690_v30 = vadd.f32 %v2038_v29, %v10622_v24  ;;  %v2091_v1 = vsel %vm220_vm0, %v10687_v28, 0.0 }
 0x9b2   :  { %2092 = vadd.xlane.f32.xlu1 %v2091_v1 }
 0x9b3   :  { %v2088_v31 = vsel %vm220_vm0, %v10690_v30, 0.0 }
 0x9b4   :  { %2089 = vadd.xlane.f32.xlu0 %v2088_v31 }
 0xa3b   :  { %v2093_v0 = vpop.xlane.xlu1 %2092 }
 0xa3c   :  { %v2095_v32 = vmul.f32 0.03125, %v2093_v0 }
 0xa3d   :  { %v2090_v33 = vpop.xlane.xlu0 %2089 }
 0xa3e   :  { %v2097_v22 = vsub.f32 %v10687_v28, %v2095_v32  ;;  %v2094_v35 = vmul.f32 0.03125, %v2090_v33 }
 0xa40   :  { %v2096_v24 = vsub.f32 %v10690_v30, %v2094_v35  ;;  %v2099_v36 = vmul.f32 %v2097_v22, %v2097_v22 }
 0xa42   :  { %v2103_v37 = vsel %vm220_vm0, %v2099_v36, 0.0  ;;  %v2098_v38 = vmul.f32 %v2096_v24, %v2096_v24 }
 0xa43   :  { %2104 = vadd.xlane.f32.xlu1 %v2103_v37 }
 0xa44   :  { %v2100_v39 = vsel %vm220_vm0, %v2098_v38, 0.0 }
 0xa45   :  { %2101 = vadd.xlane.f32.xlu0 %v2100_v39 }
 0xacc   :  { %v2105_v46 = vpop.xlane.xlu1 %2104 }
 0xacd   :  { %v2107_v47 = vmul.f32 0.03125, %v2105_v46 }
 0xace   :  { %v2102_v48 = vpop.xlane.xlu0 %2101 }
 0xacf   :  { %v2109_v49 = vadd.f32 1e-05, %v2107_v47  ;;  %v2106_v50 = vmul.f32 0.03125, %v2102_v48 }
 0xad1   :  { %10150 = vrsqrt.f32 %v2109_v49  ;;  %v2108_v51 = vadd.f32 1e-05, %v2106_v50 }
 0xad3   :  { %10152 = vrsqrt.f32 %v2108_v51 }
 0xade   :  { %v10151_v52 = vpop.eup %10150 }
 0xadf   :  { %v2113_v54 = vmul.f32 %v10151_v52, %v2097_v22 }
 0xae0   :  { %v10153_v55 = vpop.eup %10152 }
 0xae1   :  { %v2112_v56 = vmul.f32 %v10153_v55, %v2096_v24  ;;  %v2121_v61 = vmul.f32 %v8930_v53, %v2113_v54 }
 0xae3   :  { %v2120_v63 = vmul.f32 %v8930_v53, %v2112_v56  ;;  %v2129_v3 = vadd.f32 %v8931_v62, %v2121_v61 }
 0xae5   :  { %v2128_v2 = vadd.f32 %v8931_v62, %v2120_v63 }
 0xae7   :  { %9586 = vmatprep.mubr.msk.f32.mxu1 %vm220_vm0, %v2128_v2 }
 0xae8   :  { %9587 = vmatmul.mubr.msk.f32.vlgmr.msra.gmra.mxu1 %vm220_vm0, %v2129_v3 }
 0xae9   :  { %9591 = vmatprep.mubr.msk.f32.mxu1 %vm10309_vm2, %v10307_v34 }
 0xba8   :  { %v9588_v40 = vpop.f32.mrf.mxu1 }
 0xba9   :  { %v2214_v5 = vadd.f32 %v9588_v40, %v8932_v4 }
 0xbaa   :  { %v2208_v6 = vpop.f32.mrf.mxu1 }
 0xbab   :  { %2218 = vst.msk [vmem:[#allocation2 + $0x8] sm:$0xff] %vm351_vm1, %v2214_v5  ;;  %v2209_v7 = vadd.f32 %v8932_v4, %v2208_v6 }
 0xbad   :  { %2217 = vst.msk [vmem:[#allocation2] sm:$0xff] %vm351_vm1, %v2209_v7 }
 0xbb2   :  { %v10728_v9 = vld [vmem:[#allocation2 + $0x8] sm:$0xff] }
 0xbb4   :  { %v10714_v8 = vld [vmem:[#allocation2] sm:$0xff] }
 0xbb5   :  { %2389 = vrot.lane.b32.xlu1 %v10714_v8, %s10310_s22  ;;  %2221 = vrot.lane.b32.xlu0 %v10714_v8, %s10311_s23 }
 0xbb9   :  { %2387 = vrot.lane.b32.xlu1 %v10714_v8, %s10312_s24  ;;  %2559 = vrot.lane.b32.xlu0 %v10714_v8, %s10313_s25 }
 0xbbd   :  { %2561 = vrot.lane.b32.xlu1 %v10714_v8, %s10314_s26  ;;  %2731 = vrot.lane.b32.xlu0 %v10714_v8, %s10315_s27 }
 0xbc1   :  { %2733 = vrot.lane.b32.xlu1 %v10714_v8, %s10316_s28  ;;  %3071 = vrot.lane.b32.xlu0 %v10728_v9, %s10310_s22 }
 0xbc5   :  { %2903 = vrot.lane.b32.xlu1 %v10728_v9, %s10311_s23  ;;  %3243 = vrot.lane.b32.xlu0 %v10728_v9, %s10314_s26 }
 0xbc9   :  { %3069 = vrot.lane.b32.xlu1 %v10728_v9, %s10312_s24  ;;  %3415 = vrot.lane.b32.xlu0 %v10728_v9, %s10316_s28 }
 0xbcd   :  { %3241 = vrot.lane.b32.xlu1 %v10728_v9, %s10313_s25 }
 0xbd1   :  { %3413 = vrot.lane.b32.xlu1 %v10728_v9, %s10315_s27 }
 0xc27   :  { %v2390_v10 = vpop.permute.xlu1 %2389  ;;  %v2222_v11 = vpop.permute.xlu0 %2221 }
 0xc28   :  { %9590 = vmatpush3.xpose.msk.msra.mxu1 %vm358_vm3, %v2222_v11  ;;  %9600 = vmatpush3.xpose.msk.msra.mxu0 %vm358_vm3, %v2390_v10 }
 0xc29   :  { %9609 = vmatprep.subr.mxu0 %v10307_v34  ;;  %9594 = vmatprep.subr.mxu1 %v10307_v34 }
 0xc2b   :  { %v2388_v12 = vpop.permute.xlu1 %2387  ;;  %9592 = vmatmul.mubr.msk.f32.vlgmr.msra.gmra.mxu1 %vm358_vm3, %v10714_v8  ;;  %v2560_v13 = vpop.permute.xlu0 %2559 }
 0xc2c   :  { %9602 = vmatmul.mubr.msk.f32.vlgmr.msra.gmra.mxu0 %vm358_vm3, %v2388_v12  ;;  %9596 = vmatprep.mubr.msk.f32.mxu1 %vm10309_vm2, %v10307_v34 }
 0xc2d   :  { %9611 = vmatprep.mubr.msk.f32.mxu0 %vm10309_vm2, %v10307_v34 }
 0xc2f   :  { %v2562_v14 = vpop.permute.xlu1 %2561  ;;  %v2732_v15 = vpop.permute.xlu0 %2731 }
 0xc30   :  { %9610 = vmatpush3.xpose.msk.msra.mxu0 %vm358_vm3, %v2562_v14 }
 0xc31   :  { %9619 = vmatprep.subr.mxu0 %v10307_v34 }
 0xc33   :  { %v2734_v16 = vpop.permute.xlu1 %2733  ;;  %9612 = vmatmul.mubr.msk.f32.vlgmr.msra.gmra.mxu0 %vm358_vm3, %v2560_v13  ;;  %v3072_v17 = vpop.permute.xlu0 %3071 }
 0xc34   :  { %9620 = vmatpush3.xpose.msk.msra.mxu0 %vm358_vm3, %v2734_v16  ;;  %9621 = vmatprep.mubr.msk.f32.mxu0 %vm10309_vm2, %v10307_v34 }
 0xc35   :  { %9629 = vmatprep.subr.mxu0 %v10307_v34 }
 0xc37   :  { %v2904_v18 = vpop.permute.xlu1 %2903  ;;  %9622 = vmatmul.mubr.msk.f32.vlgmr.msra.gmra.mxu0 %vm358_vm3, %v2732_v15  ;;  %v3244_v20 = vpop.permute.xlu0 %3243 }
 0xc38   :  { %9630 = vmatpush3.xpose.msk.msra.mxu0 %vm358_vm3, %v2904_v18  ;;  %9631 = vmatprep.mubr.msk.f32.mxu0 %vm10309_vm2, %v10307_v34 }
 0xc39   :  { %9639 = vmatprep.subr.mxu0 %v10307_v34 }
 0xc3b   :  { %v3070_v19 = vpop.permute.xlu1 %3069  ;;  %9632 = vmatmul.mubr.msk.f32.vlgmr.msra.gmra.mxu0 %vm358_vm3, %v10728_v9  ;;  %v3416_v23 = vpop.permute.xlu0 %3415 }
 0xc3c   :  { %9640 = vmatpush3.xpose.msk.msra.mxu0 %vm358_vm3, %v3072_v17  ;;  %9641 = vmatprep.mubr.msk.f32.mxu0 %vm10309_vm2, %v10307_v34 }
 0xc3d   :  { %9649 = vmatprep.subr.mxu0 %v10307_v34 }
 0xc3f   :  { %9642 = vmatmul.mubr.msk.f32.vlgmr.msra.gmra.mxu0 %vm358_vm3, %v3070_v19  ;;  %v3242_v21 = vpop.permute.xlu1 %3241 }
 0xc40   :  { %9650 = vmatpush3.xpose.msk.msra.mxu0 %vm358_vm3, %v3244_v20  ;;  %9651 = vmatprep.mubr.msk.f32.mxu0 %vm10309_vm2, %v10307_v34 }
 0xc41   :  { %9659 = vmatprep.subr.mxu0 %v10307_v34 }
 0xc43   :  { %9652 = vmatmul.mubr.msk.f32.vlgmr.msra.gmra.mxu0 %vm358_vm3, %v3242_v21  ;;  %v3414_v41 = vpop.permute.xlu1 %3413 }
 0xc44   :  { %9660 = vmatpush3.xpose.msk.msra.mxu0 %vm358_vm3, %v3416_v23  ;;  %9661 = vmatprep.mubr.msk.f32.mxu0 %vm10309_vm2, %v10307_v34 }
 0xc47   :  { %9662 = vmatmul.mubr.msk.f32.vlgmr.msra.gmra.mxu0 %vm358_vm3, %v3414_v41 }
 0xceb   :  { %v2293_v25 = vpop.f32.mrf.mxu1 }
 0xcec   :  { %v2294_v26 = vadd.f32 %v2293_v25, %v10496_v60  ;;  %v2461_v27 = vpop.f32.mrf.mxu0 }
 0xced   :  { %v2462_v29 = vadd.f32 %v2461_v27, %v10496_v60  ;;  %v9593_v1 = vpop.f32.mrf.mxu1 }
 0xcee   :  { %v9603_v31 = vpop.f32.mrf.mxu0  ;;  %v2297_v0 = vsel %vm358_vm3, %v2294_v26, -inf }
 0xcef   :  { %2298 = vmax.xlane.f32.xlu0 %v2297_v0  ;;  %v2465_v32 = vsel %vm358_vm3, %v2462_v29, -inf }
 0xcf0   :  { %2466 = vmax.xlane.f32.xlu1 %v2465_v32 }
 0xcf3   :  { %v2633_v33 = vpop.f32.mrf.mxu0 }
 0xcf4   :  { %v10790_v22 = vadd.f32 %v2633_v33, %v10496_v60 }
 0xcf5   :  { %v9613_v35 = vpop.f32.mrf.mxu0 }
 0xcf6   :  { %v2637_v24 = vsel %vm358_vm3, %v10790_v22, -inf }
 0xcf7   :  { %2638 = vmax.xlane.f32.xlu0 %v2637_v24  ;;  %v2805_v36 = vpop.f32.mrf.mxu0 }
 0xcf8   :  { %v2806_v37 = vadd.f32 %v2805_v36, %v10496_v60 }
 0xcf9   :  { %v9623_v38 = vpop.f32.mrf.mxu0 }
 0xcfa   :  { %v2809_v39 = vsel %vm358_vm3, %v2806_v37, -inf }
 0xcfb   :  { %2810 = vmax.xlane.f32.xlu0 %v2809_v39  ;;  %v2975_v42 = vpop.f32.mrf.mxu0 }
 0xcfc   :  { %v2976_v43 = vadd.f32 %v2975_v42, %v10496_v60 }
 0xcfd   :  { %v9633_v44 = vpop.f32.mrf.mxu0 }
 0xcfe   :  { %v2979_v45 = vsel %vm358_vm3, %v2976_v43, -inf }
 0xcff   :  { %2980 = vmax.xlane.f32.xlu0 %v2979_v45  ;;  %v3143_v46 = vpop.f32.mrf.mxu0 }
 0xd00   :  { %v3144_v47 = vadd.f32 %v3143_v46, %v10496_v60 }
 0xd01   :  { %v9643_v48 = vpop.f32.mrf.mxu0 }
 0xd02   :  { %v3147_v49 = vsel %vm358_vm3, %v3144_v47, -inf }
 0xd03   :  { %3148 = vmax.xlane.f32.xlu1 %v3147_v49  ;;  %v3315_v50 = vpop.f32.mrf.mxu0 }
 0xd04   :  { %v3316_v51 = vadd.f32 %v3315_v50, %v10496_v60 }
 0xd05   :  { %v9653_v52 = vpop.f32.mrf.mxu0 }
 0xd06   :  { %v3319_v53 = vsel %vm358_vm3, %v3316_v51, -inf }
 0xd07   :  { %3320 = vmax.xlane.f32.xlu0 %v3319_v53  ;;  %v3487_v54 = vpop.f32.mrf.mxu0 }
 0xd08   :  { %v3488_v56 = vadd.f32 %v3487_v54, %v10496_v60 }
 0xd09   :  { %v9663_v55 = vpop.f32.mrf.mxu0 }
 0xd0a   :  { %v3491_v61 = vsel %vm358_vm3, %v3488_v56, -inf }
 0xd14   :  { %2308 = vrot.lane.b32.xlu1 %v10714_v8, %s10318_s29 }
 0xd38   :  { %3492 = vmax.xlane.f32.xlu1 %v3491_v61 }
 0xd49   :  { %2648 = vrot.lane.b32.xlu1 %v10714_v8, %s10319_s30 }
 0xd4d   :  { %2820 = vrot.lane.b32.xlu1 %v10714_v8, %s10320_s1 }
 0xd51   :  { %2990 = vrot.lane.b32.xlu1 %v10728_v9, %s10318_s29 }
 0xd78   :  { %v2299_v62 = vpop.xlane.xlu0 %2298 }
 0xd79   :  { %v2300_v63 = vsub.f32 %v2294_v26, %v2299_v62  ;;  %v2467_v2 = vpop.xlane.xlu1 %2466 }
 0xd7a   :  { %v2468_v3 = vsub.f32 %v2462_v29, %v2467_v2 }
 0xd7b   :  { %v2301_v4 = vmul.f32 1.442695, %v2300_v63 }
 0xd7c   :  { %v2469_v40 = vmul.f32 1.442695, %v2468_v3 }
 0xd7d   :  { %10154 = vpow2.f32 %v2301_v4 }
 0xd7e   :  { %10156 = vpow2.f32 %v2469_v40 }
 0xd80   :  { %v2639_v60 = vpop.xlane.xlu0 %2638 }
 0xd81   :  { %v2640_v18 = vsub.f32 %v10790_v22, %v2639_v60 }
 0xd83   :  { %v2641_v20 = vmul.f32 1.442695, %v2640_v18 }
 0xd84   :  { %v2811_v5 = vpop.xlane.xlu0 %2810 }
 0xd85   :  { %v2812_v6 = vsub.f32 %v2806_v37, %v2811_v5 }
 0xd87   :  { %v2813_v7 = vmul.f32 1.442695, %v2812_v6 }
 0xd88   :  { %v2981_v19 = vpop.xlane.xlu0 %2980 }
 0xd89   :  { %10158 = vpow2.f32 %v2813_v7  ;;  %v2982_v21 = vsub.f32 %v2976_v43, %v2981_v19 }
 0xd8a   :  { %v10155_v10 = vpop.eup %10154  ;;  %10160 = vpow2.f32 %v2641_v20 }
 0xd8b   :  { %v10812_v11 = vpop.eup %10156  ;;  %v2303_v12 = vsel %vm358_vm3, %v10155_v10, 0.0  ;;  %v2983_v41 = vmul.f32 1.442695, %v2982_v21 }
 0xd8c   :  { %v3149_v13 = vpop.xlane.xlu1 %3148  ;;  %2304 = vadd.xlane.f32.xlu0 %v2303_v12  ;;  %v2471_v14 = vsel %vm358_vm3, %v10812_v11, 0.0 }
 0xd8d   :  { %2472 = vadd.xlane.f32.xlu1 %v2471_v14  ;;  %10162 = vpow2.f32 %v2983_v41  ;;  %v3150_v26 = vsub.f32 %v3144_v47, %v3149_v13  ;;  %v8912_v41 = vld [vmem:[%s10593_s8 + $0x38] sm:$0xff] }
 0xd8e   :  { %9669 = vmatprep.subr.mxu0 %v8912_v41 }
 0xd8f   :  { %v3151_v29 = vmul.f32 1.442695, %v3150_v26  ;;  %9670 = vmatpush3.msra.mxu0 %v8912_v41  ;;  %v8926_v41 = vld [vmem:[%s10659_s6 + $0x68] sm:$0xff] }
 0xd90   :  { %v2309_v15 = vpop.permute.xlu1 %2308  ;;  %v3321_v23 = vpop.xlane.xlu0 %3320 }
 0xd91   :  { %9595 = vmatpush3.msra.mxu1 %v2309_v15  ;;  %v3322_v25 = vsub.f32 %v3316_v51, %v3321_v23 }
 0xd92   :  { %9604 = vmatprep.subr.mxu1 %v10307_v34 }
 0xd93   :  { %v3323_v27 = vmul.f32 1.442695, %v3322_v25  ;;  %v8911_v25 = vld [vmem:[%s10593_s8 + $0x30] sm:$0xff] }
 0xd94   :  { %9671 = vmatprep.subr.mxu0 %v8911_v25 }
 0xd95   :  { %10164 = vpow2.f32 %v3323_v27  ;;  %v8910_v27 = vld [vmem:[%s10593_s8 + $0x28] sm:$0xff]  ;;  %9672 = vmatpush3.msra.mxu0 %v8911_v25  ;;  %v8925_v25 = vld [vmem:[%s10659_s6 + $0x60] sm:$0xff] }
 0xd96   :  { %v10818_v16 = vpop.eup %10158  ;;  %10166 = vpow2.f32 %v3151_v29  ;;  %9673 = vmatprep.subr.mxu0 %v8910_v27 }
 0xd97   :  { %v2815_v17 = vsel %vm358_vm3, %v10818_v16, 0.0  ;;  %v10161_v1 = vpop.eup %10160  ;;  %9674 = vmatpush3.msra.mxu0 %v8910_v27  ;;  %v8923_v27 = vld [vmem:[%s10659_s6 + $0x50] sm:$0xff] }
 0xd98   :  { %2816 = vadd.xlane.f32.xlu1 %v2815_v17 }
 0xd9a   :  { %v10828_v31 = vpop.eup %10162 }
 0xd9b   :  { %v2985_v22 = vsel %vm358_vm3, %v10828_v31, 0.0 }
 0xda2   :  { %2476 = vrot.lane.b32.xlu0 %v10714_v8, %s10321_s2  ;;  %v2643_v8 = vsel %vm358_vm3, %v10161_v1, 0.0  ;;  %v10832_v35 = vpop.eup %10164 }
 0xda3   :  { %v3325_v24 = vsel %vm358_vm3, %v10832_v35, 0.0  ;;  %v10167_v36 = vpop.eup %10166 }
 0xda4   :  { %v3153_v37 = vsel %vm358_vm3, %v10167_v36, 0.0 }
 0xda9   :  { %3158 = vrot.lane.b32.xlu1 %v10728_v9, %s10321_s2 }
 0xdc1   :  { %v3493_v0 = vpop.xlane.xlu1 %3492  ;;  %2644 = vadd.xlane.f32.xlu0 %v2643_v8 }
 0xdc2   :  { %v3494_v32 = vsub.f32 %v3488_v56, %v3493_v0 }
 0xdc4   :  { %v3495_v33 = vmul.f32 1.442695, %v3494_v32 }
 0xdc5   :  { %2986 = vadd.xlane.f32.xlu0 %v2985_v22  ;;  %v2649_v42 = vpop.permute.xlu1 %2648 }
 0xdc6   :  { %10168 = vpow2.f32 %v3495_v33 }
 0xdc9   :  { %3326 = vadd.xlane.f32.xlu0 %v3325_v24  ;;  %v2821_v43 = vpop.permute.xlu1 %2820 }
 0xdcd   :  { %3154 = vadd.xlane.f32.xlu1 %v3153_v37  ;;  %v2991_v44 = vpop.permute.xlu1 %2990 }
 0xdd3   :  { %v10837_v38 = vpop.eup %10168 }
 0xdd4   :  { %v3497_v39 = vsel %vm358_vm3, %v10837_v38, 0.0 }
 0xdd5   :  { %3498 = vadd.xlane.f32.xlu0 %v3497_v39 }
 0xdde   :  { %3502 = vrot.lane.b32.xlu1 %v10728_v9, %s10320_s1 }
 0xdeb   :  { %3330 = vrot.lane.b32.xlu0 %v10728_v9, %s10319_s30 }
 0xe15   :  { %v2305_v45 = vpop.xlane.xlu0 %2304 }
 0xe16   :  { %10170 = vrcp.f32 %v2305_v45  ;;  %v2473_v46 = vpop.xlane.xlu1 %2472 }
 0xe17   :  { %10172 = vrcp.f32 %v2473_v46 }
 0xe19   :  { %v2477_v50 = vpop.permute.xlu0 %2476 }
 0xe21   :  { %v2817_v51 = vpop.xlane.xlu1 %2816 }
 0xe23   :  { %v10171_v47 = vpop.eup %10170 }
 0xe24   :  { %v2307_v48 = vmul.f32 %v10171_v47, %v10155_v10  ;;  %v10173_v49 = vpop.eup %10172 }
 0xe25   :  { %v2475_v9 = vmul.f32 %v10173_v49, %v10812_v11  ;;  %v3159_v54 = vpop.permute.xlu1 %3158 }
 0xe26   :  { %9597 = vmatmul.mubr.msk.f32.vlgmr.msra.gmra.mxu1 %vm358_vm3, %v2307_v48 }
 0xe27   :  { %9605 = vmatpush3.msra.mxu1 %v2477_v50  ;;  %9606 = vmatprep.mubr.msk.f32.mxu1 %vm10309_vm2, %v10307_v34 }
 0xe28   :  { %9614 = vmatprep.subr.mxu1 %v10307_v34 }
 0xe2a   :  { %9607 = vmatmul.mubr.msk.f32.vlgmr.msra.gmra.mxu1 %vm358_vm3, %v2475_v9 }
 0xe2b   :  { %9615 = vmatpush3.msra.mxu1 %v2649_v42  ;;  %9616 = vmatprep.mubr.msk.f32.mxu1 %vm10309_vm2, %v10307_v34 }
 0xe2c   :  { %9624 = vmatprep.subr.mxu1 %v10307_v34 }
 0xe4a   :  { %v2645_v52 = vpop.xlane.xlu0 %2644 }
 0xe4b   :  { %10174 = vrcp.f32 %v2645_v52 }
 0xe4c   :  { %10176 = vrcp.f32 %v2817_v51 }
 0xe4e   :  { %v2987_v53 = vpop.xlane.xlu0 %2986 }
 0xe4f   :  { %10178 = vrcp.f32 %v2987_v53 }
 0xe52   :  { %v3327_v55 = vpop.xlane.xlu0 %3326 }
 0xe56   :  { %v3155_v56 = vpop.xlane.xlu1 %3154 }
 0xe57   :  { %10180 = vrcp.f32 %v3155_v56 }
 0xe58   :  { %v10175_v61 = vpop.eup %10174  ;;  %10182 = vrcp.f32 %v3327_v55 }
 0xe59   :  { %v2647_v62 = vmul.f32 %v10175_v61, %v10161_v1  ;;  %v10177_v63 = vpop.eup %10176  ;;  %v8909_v1 = vld [vmem:[%s10593_s8 + $0x20] sm:$0xff]  ;;  %s10333_s8 = smov 15  }
 0xe5a   :  { %v2819_v2 = vmul.f32 %v10177_v63, %v10818_v16  ;;  %v3503_v11 = vpop.permute.xlu1 %3502  ;;  %9675 = vmatprep.subr.mxu0 %v8909_v1  ;;  %v8919_v63 = vld [vmem:[%s10635_s20 + $0x38] sm:$0xff] }
 0xe5b   :  { %9617 = vmatmul.mubr.msk.f32.vlgmr.msra.gmra.mxu1 %vm358_vm3, %v2647_v62  ;;  %9676 = vmatpush3.msra.mxu0 %v8909_v1  ;;  %v8921_v1 = vld [vmem:[%s10659_s6 + $0x40] sm:$0xff] }
 0xe5c   :  { %9625 = vmatpush3.msra.mxu1 %v2821_v43  ;;  %9626 = vmatprep.mubr.msk.f32.mxu1 %vm10309_vm2, %v10307_v34  ;;  %v10179_v3 = vpop.eup %10178  ;;  %v8959_v43 = vld [vmem:[%s10615_s15 + $0x1] ss:$0 sm:$0xff]  ;;  %s11062_s15 = sld [smem:[%s11794_s0 + %s10325_s10]]  }
 0xe5d   :  { %9634 = vmatprep.subr.mxu1 %v10307_v34  ;;  %v2989_v40 = vmul.f32 %v10179_v3, %v10828_v31  ;;  %v8917_v3 = vld [vmem:[%s10635_s20 + $0x28] sm:$0xff] }
 0xe5e   :  { %v3499_v4 = vpop.xlane.xlu0 %3498 }
 0xe5f   :  { %10184 = vrcp.f32 %v3499_v4  ;;  %9627 = vmatmul.mubr.msk.f32.vlgmr.msra.gmra.mxu1 %vm358_vm3, %v2819_v2  ;;  %v8918_v2 = vld [vmem:[%s10635_s20 + $0x30] sm:$0xff]  ;;  %v8916_v4 = vld [vmem:[%s10635_s20 + $0x20] sm:$0xff] }
 0xe60   :  { %9635 = vmatpush3.msra.mxu1 %v2991_v44  ;;  %9636 = vmatprep.mubr.msk.f32.mxu1 %vm10309_vm2, %v10307_v34 }
 0xe61   :  { %9644 = vmatprep.subr.mxu1 %v10307_v34 }
 0xe62   :  { %v3331_v7 = vpop.permute.xlu0 %3330 }
 0xe63   :  { %9637 = vmatmul.mubr.msk.f32.vlgmr.msra.gmra.mxu1 %vm358_vm3, %v2989_v40 }
 0xe64   :  { %v10181_v60 = vpop.eup %10180  ;;  %9645 = vmatpush3.msra.mxu1 %v3159_v54  ;;  %9646 = vmatprep.mubr.msk.f32.mxu1 %vm10309_vm2, %v10307_v34 }
 0xe65   :  { %9654 = vmatprep.subr.mxu1 %v10307_v34  ;;  %v3157_v5 = vmul.f32 %v10181_v60, %v10167_v36  ;;  %v10183_v6 = vpop.eup %10182 }
 0xe66   :  { %v3329_v10 = vmul.f32 %v10183_v6, %v10832_v35 }
 0xe67   :  { %9647 = vmatmul.mubr.msk.f32.vlgmr.msra.gmra.mxu1 %vm358_vm3, %v3157_v5 }
 0xe68   :  { %9655 = vmatpush3.msra.mxu1 %v3331_v7  ;;  %9656 = vmatprep.mubr.msk.f32.mxu1 %vm10309_vm2, %v10307_v34 }
 0xe69   :  { %9664 = vmatprep.subr.mxu1 %v10307_v34 }
 0xe6b   :  { %9657 = vmatmul.mubr.msk.f32.vlgmr.msra.gmra.mxu1 %vm358_vm3, %v3329_v10 }
 0xe6c   :  { %v10185_v12 = vpop.eup %10184  ;;  %9665 = vmatpush3.msra.mxu1 %v3503_v11  ;;  %9666 = vmatprep.mubr.msk.f32.mxu1 %vm10309_vm2, %v10307_v34 }
 0xe6d   :  { %v3501_v13 = vmul.f32 %v10185_v12, %v10837_v38  ;;  %9680 = vmatprep.subr.mxu1 %v8919_v63  ;;  %v8962_v12 = vld [vmem:[%s10645_s7 + $0x1] ss:$0 sm:$0xff]  ;;  %s8830_s7 = sld [smem:[%s11794_s0 + %s10333_s8]]  }
 0xe6f   :  { %9667 = vmatmul.mubr.msk.f32.vlgmr.msra.gmra.mxu1 %vm358_vm3, %v3501_v13 }
 0xe70   :  { %9681 = vmatpush3.msra.mxu1 %v8919_v63 }
 0xe71   :  { %9682 = vmatprep.subr.mxu1 %v8918_v2 }
 0xe72   :  { %9683 = vmatpush3.msra.mxu1 %v8918_v2 }
 0xe73   :  { %9684 = vmatprep.subr.mxu1 %v8917_v3 }
 0xe74   :  { %9685 = vmatpush3.msra.mxu1 %v8917_v3 }
 0xe75   :  { %9686 = vmatprep.subr.mxu1 %v8916_v4 }
 0xe76   :  { %9687 = vmatpush3.msra.mxu1 %v8916_v4 }
 0xe77   :  { %9710 = vmatprep.subr.mxu1 %v10307_v34 }
 0xee6   :  { %v2380_v14 = vpop.f32.mrf.mxu1 }
 0xee7   :  { %2384 = vst.msk [vmem:[#allocation3] sm:$0xff] %vm358_vm3, %v2380_v14  ;;  %v8963_v14 = vld [vmem:[%s10650_s16 + $0x1] ss:$0 sm:$0xff]  ;;  %s10334_s16 = smov 1  }
 0xee8   :  { %v9598_v15 = vpop.f32.mrf.mxu1 }
 0xeea   :  { %v2548_v16 = vpop.f32.mrf.mxu1 }
 0xeeb   :  { %2553 = vrot.lane.b32.xlu0 %v2548_v16, %s10322_s3 }
 0xeec   :  { %v9608_v17 = vpop.f32.mrf.mxu1 }
 0xf1b   :  { %v2720_v18 = vpop.f32.mrf.mxu1 }
 0xf1c   :  { %2725 = vrot.lane.b32.xlu1 %v2720_v18, %s10323_s4 }
 0xf1d   :  { %v9618_v19 = vpop.f32.mrf.mxu1 }
 0xf1f   :  { %v2892_v20 = vpop.f32.mrf.mxu1 }
 0xf20   :  { %2897 = vrot.lane.b32.xlu1 %v2892_v20, %s10325_s10 }
 0xf21   :  { %v9628_v21 = vpop.f32.mrf.mxu1 }
 0xf22   :  { %v8928_v21 = vld [vmem:[%s10659_s6 + $0x78] sm:$0xff] }
 0xf23   :  { %v3062_v23 = vpop.f32.mrf.mxu1  ;;  %9691 = vmatprep.subr.mxu0 %v8928_v21 }
 0xf24   :  { %3066 = vst.msk [vmem:[#allocation3 + $0x8] sm:$0xff] %vm358_vm3, %v3062_v23  ;;  %v8927_v23 = vld [vmem:[%s10659_s6 + $0x70] sm:$0xff] }
 0xf25   :  { %v9638_v26 = vpop.f32.mrf.mxu1 }
 0xf26   :  { %v8924_v26 = vld [vmem:[%s10659_s6 + $0x58] sm:$0xff] }
 0xf27   :  { %v3230_v29 = vpop.f32.mrf.mxu1 }
 0xf28   :  { %3235 = vrot.lane.b32.xlu0 %v3230_v29, %s10322_s3  ;;  %v8922_v29 = vld [vmem:[%s10659_s6 + $0x48] sm:$0xff] }
 0xf29   :  { %v9648_v8 = vpop.f32.mrf.mxu1 }
 0xf2a   :  { %v8964_v8 = vld [vmem:[%s10673_s18 + $0x1] ss:$0 sm:$0xff]  ;;  %s8816_s18 = sld [smem:[%s11794_s0 + %s10334_s16]]   ;;  %s10347_s16 = smov 29  }
 0xf2b   :  { %v3402_v31 = vpop.f32.mrf.mxu1 }
 0xf2c   :  { %3407 = vrot.lane.b32.xlu0 %v3402_v31, %s10323_s4 }
 0xf2d   :  { %v9658_v0 = vpop.f32.mrf.mxu1 }
 0xf2f   :  { %v3574_v32 = vpop.f32.mrf.mxu1 }
 0xf30   :  { %3579 = vrot.lane.b32.xlu1 %v3574_v32, %s10325_s10 }
 0xf31   :  { %v9668_v33 = vpop.f32.mrf.mxu1 }
 0xf5d   :  { %v2554_v22 = vpop.permute.xlu0 %2553 }
 0xf5e   :  { %2556 = vst.msk [vmem:[#allocation3] sm:$0xff] %vm692_vm5, %v2554_v22 }
 0xf8e   :  { %v2726_v35 = vpop.permute.xlu1 %2725 }
 0xf8f   :  { %2728 = vst.msk [vmem:[#allocation3] sm:$0xff] %vm865_vm6, %v2726_v35 }
 0xf92   :  { %v2898_v24 = vpop.permute.xlu1 %2897 }
 0xf93   :  { %2900 = vst.msk [vmem:[#allocation3] sm:$0xff] %vm1038_vm7, %v2898_v24 }
 0xf9a   :  { %v3236_v36 = vpop.permute.xlu0 %3235  ;;  %v3583_v37 = vld [vmem:[#allocation3] sm:$0xff] }
 0xf9b   :  { %3238 = vst.msk [vmem:[#allocation3 + $0x8] sm:$0xff] %vm692_vm5, %v3236_v36  ;;  %9677 = vmatprep.mubr.msk.f32.mxu0 %vm220_vm0, %v3583_v37 }
 0xf9e   :  { %v3408_v38 = vpop.permute.xlu0 %3407 }
 0xf9f   :  { %3410 = vst.msk [vmem:[#allocation3 + $0x8] sm:$0xff] %vm865_vm6, %v3408_v38 }
 0xfa2   :  { %v3580_v39 = vpop.permute.xlu1 %3579 }
 0xfa3   :  { %3582 = vst.msk [vmem:[#allocation3 + $0x8] sm:$0xff] %vm1038_vm7, %v3580_v39 }
 0xfaa   :  { %v3584_v42 = vld [vmem:[#allocation3 + $0x8] sm:$0xff] }
 0xfab   :  { %9678 = vmatmul.mubr.msk.f32.vlgmr.msra.gmra.mxu0 %vm220_vm0, %v3584_v42 }
 0xfac   :  { %9692 = vmatpush3.msra.mxu0 %v8928_v21  ;;  %v3952_v21 = vld [vmem:[%s8816_s18] sm:$0x3]  ;;  %s10338_s18 = smov 20  }
 0xfad   :  { %9693 = vmatprep.subr.mxu0 %v8927_v23 }
 0xfae   :  { %9694 = vmatpush3.msra.mxu0 %v8927_v23  ;;  %v4030_v23 = vld [vmem:[%s8831_s11 + $0x18] sm:$0xff] }
 0xfaf   :  { %9695 = vmatprep.subr.mxu0 %v8926_v41 }
 0xfb0   :  { %9696 = vmatpush3.msra.mxu0 %v8926_v41  ;;  %v4029_v41 = vld [vmem:[%s8831_s11 + $0x10] sm:$0xff] }
 0xfb1   :  { %9697 = vmatprep.subr.mxu0 %v8925_v25 }
 0xfb2   :  { %9698 = vmatpush3.msra.mxu0 %v8925_v25  ;;  %v4028_v25 = vld [vmem:[%s8831_s11 + $0x8] sm:$0xff] }
 0xfb3   :  { %9699 = vmatprep.subr.mxu0 %v8924_v26 }
 0xfb4   :  { %9700 = vmatpush3.msra.mxu0 %v8924_v26  ;;  %v4027_v26 = vld [vmem:[%s8831_s11] sm:$0xff]  ;;  %s8835_s11 = sld [smem:[%s11794_s0 + %s10338_s18]]  }
 0xfb5   :  { %9701 = vmatprep.subr.mxu0 %v8923_v27 }
 0xfb6   :  { %9702 = vmatpush3.msra.mxu0 %v8923_v27 }
 0xfb7   :  { %9703 = vmatprep.subr.mxu0 %v8922_v29 }
 0xfb8   :  { %9704 = vmatpush3.msra.mxu0 %v8922_v29 }
 0xfb9   :  { %9705 = vmatprep.subr.mxu0 %v8921_v1 }
 0xfba   :  { %9706 = vmatpush3.msra.mxu0 %v8921_v1 }
0x106b   :  { %v9679_v44 = vpop.f32.mrf.mxu0 }
0x106c   :  { %v3669_v45 = vadd.f32 %v9679_v44, %v8959_v43 }
0x106d   :  { %v3663_v46 = vpop.f32.mrf.mxu0 }
0x106e   :  { %v10900_v47 = vadd.f32 %v3669_v45, %v10687_v28  ;;  %v3664_v48 = vadd.f32 %v8959_v43, %v3663_v46 }
0x1070   :  { %v10903_v49 = vadd.f32 %v3664_v48, %v10690_v30  ;;  %v3677_v50 = vsel %vm220_vm0, %v10900_v47, 0.0  ;;  %v8969_v48 = vld [vmem:[%s10683_s12 + $0x1] ss:$0 sm:$0xff]  ;;  %s10335_s12 = smov 18  }
0x1071   :  { %3678 = vadd.xlane.f32.xlu1 %v3677_v50  ;;  %s10967_s17 = sld [smem:[%s11794_s0 + %s10335_s12]]   ;;  %s10339_s12 = smov 21  }
0x1072   :  { %v3674_v9 = vsel %vm220_vm0, %v10903_v49, 0.0 }
0x1073   :  { %3675 = vadd.xlane.f32.xlu0 %v3674_v9 }
0x1077   :  { %v4123_v27 = vld [vmem:[%s10967_s17 + $0x78] sm:$0xff] }
0x10fa   :  { %v3679_v51 = vpop.xlane.xlu1 %3678 }
0x10fb   :  { %v3681_v52 = vmul.f32 0.03125, %v3679_v51 }
0x10fc   :  { %v3676_v53 = vpop.xlane.xlu0 %3675 }
0x10fd   :  { %v3680_v28 = vmul.f32 0.03125, %v3676_v53  ;;  %v3683_v54 = vsub.f32 %v10900_v47, %v3681_v52 }
0x10ff   :  { %v3682_v30 = vsub.f32 %v10903_v49, %v3680_v28  ;;  %v3685_v61 = vmul.f32 %v3683_v54, %v3683_v54 }
0x1101   :  { %v3684_v55 = vmul.f32 %v3682_v30, %v3682_v30  ;;  %v3689_v62 = vsel %vm220_vm0, %v3685_v61, 0.0 }
0x1103   :  { %v3686_v56 = vsel %vm220_vm0, %v3684_v55, 0.0 }
0x1104   :  { %3687 = vadd.xlane.f32.xlu0 %v3686_v56 }
0x1108   :  { %3690 = vadd.xlane.f32.xlu0 %v3689_v62 }
0x118d   :  { %v3688_v40 = vpop.xlane.xlu0 %3687 }
0x118e   :  { %v3692_v60 = vmul.f32 0.03125, %v3688_v40 }
0x1190   :  { %v3694_v5 = vadd.f32 1e-05, %v3692_v60 }
0x1191   :  { %v3691_v6 = vpop.xlane.xlu0 %3690 }
0x1192   :  { %10186 = vrsqrt.f32 %v3694_v5  ;;  %v3693_v7 = vmul.f32 0.03125, %v3691_v6 }
0x1194   :  { %v3695_v10 = vadd.f32 1e-05, %v3693_v7 }
0x1196   :  { %10188 = vrsqrt.f32 %v3695_v10 }
0x119f   :  { %v10187_v11 = vpop.eup %10186 }
0x11a0   :  { %v3698_v13 = vmul.f32 %v10187_v11, %v3682_v30 }
0x11a2   :  { %v3706_v15 = vmul.f32 %v8962_v12, %v3698_v13 }
0x11a3   :  { %v10189_v16 = vpop.eup %10188 }
0x11a4   :  { %v3699_v17 = vmul.f32 %v10189_v16, %v3683_v54  ;;  %v3714_v18 = vadd.f32 %v8963_v14, %v3706_v15  ;;  %v8973_v15 = vld [vmem:[%s8830_s7] ss:$0 sm:$0xff]  ;;  %s10337_s7 = smov 19  }
0x11a5   :  { %s8834_s14 = sld [smem:[%s11794_s0 + %s10337_s7]]   ;;  %s10344_s7 = smov 27  }
0x11a6   :  { %v3707_v19 = vmul.f32 %v8962_v12, %v3699_v17  ;;  %9688 = vmatprep.mubr.msk.f32.mxu1 %vm220_vm0, %v3714_v18  ;;  %v8972_v12 = vld [vmem:[%s8829_s21] ss:$0 sm:$0xff]  ;;  %s10336_s21 = smov 17   ;;  %s11274_s18 = sld [smem:[%s11794_s0 + %s10344_s7]]  }
0x11a7   :  { %s10972_s20 = sld [smem:[%s11794_s0 + %s10336_s21]]   ;;  %s10357_s21 = smov 42  }
0x11a8   :  { %v3715_v20 = vadd.f32 %v8963_v14, %v3707_v19 }
0x11aa   :  { %9689 = vmatmul.mubr.msk.f32.vlgmr.msra.gmra.mxu1 %vm220_vm0, %v3715_v20 }
0x11ab   :  { %9714 = vmatprep.mubr.msk.f32.mxu1 %vm10309_vm2, %v10307_v34 }
0x11ad   :  { %v4105_v29 = vld [vmem:[%s10972_s20 + $0x8] sm:$0xff] }
0x126a   :  { %v9690_v31 = vpop.f32.mrf.mxu1 }
0x126b   :  { %v3800_v0 = vadd.f32 %v9690_v31, %v8964_v8 }
0x126c   :  { %v3794_v32 = vpop.f32.mrf.mxu1 }
0x126d   :  { %v8968_v33 = vmul.f32 -1.702, %v3800_v0  ;;  %v3795_v22 = vadd.f32 %v8964_v8, %v3794_v32  ;;  %v4122_v8 = vld [vmem:[%s10967_s17 + $0x70] sm:$0xff]  ;;  %v4120_v32 = vld [vmem:[%s10967_s17 + $0x60] sm:$0xff] }
0x126f   :  { %v3809_v35 = vmul.f32 1.442695, %v8968_v33  ;;  %v8967_v24 = vmul.f32 -1.702, %v3795_v22  ;;  %v4119_v33 = vld [vmem:[%s10967_s17 + $0x58] sm:$0xff] }
0x1271   :  { %10190 = vpow2.f32 %v3809_v35  ;;  %v3807_v36 = vmul.f32 1.442695, %v8967_v24  ;;  %v4117_v35 = vld [vmem:[%s10967_s17 + $0x48] sm:$0xff]  ;;  %v4116_v24 = vld [vmem:[%s10967_s17 + $0x40] sm:$0xff] }
0x1273   :  { %10192 = vpow2.f32 %v3807_v36  ;;  %v4115_v36 = vld [vmem:[%s10967_s17 + $0x38] sm:$0xff] }
0x127e   :  { %v10191_v37 = vpop.eup %10190 }
0x127f   :  { %v3812_v38 = vadd.f32 1.0, %v10191_v37  ;;  %v4114_v37 = vld [vmem:[%s10967_s17 + $0x30] sm:$0xff] }
0x1280   :  { %v10193_v39 = vpop.eup %10192 }
0x1281   :  { %v3811_v42 = vadd.f32 1.0, %v10193_v39  ;;  %10194 = vrcp.f32 %v3812_v38  ;;  %v4113_v38 = vld [vmem:[%s10967_s17 + $0x28] sm:$0xff]  ;;  %v4112_v39 = vld [vmem:[%s10967_s17 + $0x20] sm:$0xff] }
0x1283   :  { %10196 = vrcp.f32 %v3811_v42  ;;  %v4111_v42 = vld [vmem:[%s10967_s17 + $0x18] sm:$0xff] }
0x128e   :  { %v10195_v43 = vpop.eup %10194 }
0x128f   :  { %v3818_v46 = vmul.f32 %v10195_v43, %v3800_v0  ;;  %v4121_v0 = vld [vmem:[%s10967_s17 + $0x68] sm:$0xff]  ;;  %v4110_v43 = vld [vmem:[%s10967_s17 + $0x10] sm:$0xff] }
0x1290   :  { %v10197_v44 = vpop.eup %10196 }
0x1291   :  { %v3817_v45 = vmul.f32 %v10197_v44, %v3795_v22  ;;  %v4118_v22 = vld [vmem:[%s10967_s17 + $0x50] sm:$0xff]  ;;  %v4109_v44 = vld [vmem:[%s10967_s17 + $0x8] sm:$0xff] }
0x1293   :  { %9707 = vmatprep.mubr.msk.f32.mxu0 %vm1964_vm8, %v3817_v45  ;;  %v4108_v45 = vld [vmem:[%s10967_s17] sm:$0xff] }
0x1294   :  { %9708 = vmatmul.mubr.msk.f32.vlgmr.msra.gmra.mxu0 %vm1964_vm8, %v3818_v46  ;;  %v4131_v46 = vld [vmem:[%s10967_s17 + $0xb8] sm:$0xff] }
0x1354   :  { %v9709_v50 = vpop.f32.mrf.mxu0 }
0x1355   :  { %v3903_v9 = vadd.f32 %v9709_v50, %v8969_v48  ;;  %v4129_v50 = vld [vmem:[%s10967_s17 + $0xa8] sm:$0xff] }
0x1356   :  { %v3897_v51 = vpop.f32.mrf.mxu0 }
0x1357   :  { %v3907_v52 = vadd.f32 %v3903_v9, %v10900_v47  ;;  %v3898_v53 = vadd.f32 %v8969_v48, %v3897_v51  ;;  %v4130_v48 = vld [vmem:[%s10967_s17 + $0xb0] sm:$0xff]  ;;  %v4128_v9 = vld [vmem:[%s10967_s17 + $0xa0] sm:$0xff]  ;;  %v4127_v51 = vld [vmem:[%s10967_s17 + $0x98] sm:$0xff] }
0x1359   :  { %v3906_v28 = vadd.f32 %v3898_v53, %v10903_v49  ;;  %v3913_v54 = vsel %vm220_vm0, %v3907_v52, 0.0  ;;  %v4125_v53 = vld [vmem:[%s10967_s17 + $0x88] sm:$0xff] }
0x135a   :  { %3914 = vadd.xlane.f32.xlu0 %v3913_v54  ;;  %v4104_v54 = vld [vmem:[%s10972_s20] sm:$0xff] }
0x135b   :  { %v3910_v30 = vsel %vm220_vm0, %v3906_v28, 0.0 }
0x135c   :  { %3911 = vadd.xlane.f32.xlu1 %v3910_v30  ;;  %v4107_v30 = vld [vmem:[%s10972_s20 + $0x18] sm:$0xff] }
0x13e3   :  { %v3915_v55 = vpop.xlane.xlu0 %3914 }
0x13e4   :  { %v3917_v56 = vmul.f32 0.03125, %v3915_v55  ;;  %v4106_v55 = vld [vmem:[%s10972_s20 + $0x10] sm:$0xff]  ;;  %s10340_s20 = smov 22  }
0x13e5   :  { %v3912_v61 = vpop.xlane.xlu1 %3911  ;;  %s11072_s6 = sld [smem:[%s11794_s0 + %s10340_s20]]  }
0x13e6   :  { %v3919_v62 = vsub.f32 %v3907_v52, %v3917_v56  ;;  %v3916_v63 = vmul.f32 0.03125, %v3912_v61  ;;  %v4126_v52 = vld [vmem:[%s10967_s17 + $0x90] sm:$0xff] }
0x13e8   :  { %v3918_v2 = vsub.f32 %v3906_v28, %v3916_v63  ;;  %v3921_v3 = vmul.f32 %v3919_v62, %v3919_v62  ;;  %v4124_v28 = vld [vmem:[%s10967_s17 + $0x80] sm:$0xff]  ;;  %s8836_s17 = sld [smem:[%s11794_s0 + %s10339_s12]]   ;;  %s10348_s12 = smov 32  }
0x13e9   :  { %s11317_s8 = sld [smem:[%s11794_s0 + %s10348_s12]]  }
0x13ea   :  { %v3925_v4 = vsel %vm220_vm0, %v3921_v3, 0.0  ;;  %v3920_v40 = vmul.f32 %v3918_v2, %v3918_v2 }
0x13eb   :  { %3926 = vadd.xlane.f32.xlu0 %v3925_v4  ;;  %v4133_v4 = vld [vmem:[%s8834_s14 + $0x8] sm:$0xff] }
0x13ec   :  { %v3922_v47 = vsel %vm220_vm0, %v3920_v40, 0.0 }
0x13ed   :  { %3923 = vadd.xlane.f32.xlu1 %v3922_v47 }
0x1474   :  { %v3927_v49 = vpop.xlane.xlu0 %3926 }
0x1475   :  { %v3929_v60 = vmul.f32 0.03125, %v3927_v49 }
0x1476   :  { %v3924_v5 = vpop.xlane.xlu1 %3923 }
0x1477   :  { %v3931_v6 = vadd.f32 1e-05, %v3929_v60  ;;  %v3928_v7 = vmul.f32 0.03125, %v3924_v5 }
0x1479   :  { %10198 = vrsqrt.f32 %v3931_v6  ;;  %v3930_v10 = vadd.f32 1e-05, %v3928_v7 }
0x147b   :  { %10200 = vrsqrt.f32 %v3930_v10 }
0x1486   :  { %v10199_v11 = vpop.eup %10198 }
0x1487   :  { %v3935_v13 = vmul.f32 %v10199_v11, %v3919_v62  ;;  %v4132_v62 = vld [vmem:[%s8834_s14] sm:$0xff]  ;;  %s10341_s14 = smov 23  }
0x1488   :  { %v10201_v14 = vpop.eup %10200  ;;  %s11077_s5 = sld [smem:[%s11794_s0 + %s10341_s14]]  }
0x1489   :  { %v3943_v16 = vmul.f32 %v8972_v12, %v3935_v13  ;;  %v3934_v17 = vmul.f32 %v10201_v14, %v3918_v2 }
0x148b   :  { %v3951_v18 = vadd.f32 %v8973_v15, %v3943_v16  ;;  %v3942_v19 = vmul.f32 %v8972_v12, %v3934_v17 }
0x148d   :  { %9711 = vmatpush3.msra.mxu1 %v3951_v18  ;;  %v3950_v20 = vadd.f32 %v8973_v15, %v3942_v19 }
0x148e   :  { %9712 = vmatprep.subr.mxu1 %v10307_v34 }
0x148f   :  { %9713 = vmatpush3.msra.mxu1 %v3950_v20 }
0x1490   :  { %9715 = vmatmul.mubr.msk.f32.vlgmr.msra.gmra.mxu1 %vm3953_vm9, %v3952_v21  ;;  %9717 = vmatprep.subr.mxu1 %v10307_v34 }
0x1491   :  { %9718 = vmatpush3.msra.mxu1 %v4030_v23  ;;  %9725 = vmatprep.mubr.msk.f32.mxu1 %vm10309_vm2, %v10307_v34 }
0x1492   :  { %9719 = vmatprep.subr.mxu1 %v10307_v34 }
0x1493   :  { %9720 = vmatpush3.msra.mxu1 %v4029_v41 }
0x1494   :  { %9721 = vmatprep.subr.mxu1 %v10307_v34 }
0x1495   :  { %9722 = vmatpush3.msra.mxu1 %v4028_v25 }
0x1496   :  { %9723 = vmatprep.subr.mxu1 %v10307_v34 }
0x1497   :  { %9724 = vmatpush3.msra.mxu1 %v4027_v26  ;;  %v8978_v26 = vld [vmem:[%s8835_s11] ss:$0 sm:$0xff]  ;;  %s10342_s11 = smov 25  }
0x1498   :  { %4140 = vmatprep.subr.mxu1 %v10307_v34  ;;  %s11088_s13 = sld [smem:[%s11794_s0 + %s10342_s11]]  }
0x1499   :  { %s11308_s11 = sld [smem:[%s11794_s0 + %s10347_s16]]   ;;  %s10349_s16 = smov 31  }
0x149a   :  { %s11331_s12 = sld [smem:[%s11794_s0 + %s10349_s16]]  }
0x1550   :  { %v4023_v1 = vpop.f32.mrf.mxu1 }
0x1551   :  { %9726 = vmatmul.mubr.msk.f32.vlgmr.msra.gmra.mxu1 %vm220_vm0, %v4023_v1 }
0x1552   :  { %4141 = vmatpush1.msra.mxu1 %v4123_v27  ;;  %v9716_v31 = vpop.f32.mrf.mxu1  ;;  %8976 = vmatprep.mubr.msk.f32.mxu1 %vm1964_vm8, %v4105_v29  ;;  %v8979_v29 = vld [vmem:[%s8836_s17] ss:$0 sm:$0xff]  ;;  %s10343_s17 = smov 26  }
0x1553   :  { %4142 = vmatprep.subr.mxu1 %v10307_v34  ;;  %s11258_s20 = sld [smem:[%s11794_s0 + %s10343_s17]]   ;;  %s10346_s17 = smov 28  }
0x1554   :  { %4143 = vmatpush1.msra.mxu1 %v4122_v8  ;;  %s11303_s7 = sld [smem:[%s11794_s0 + %s10346_s17]]   ;;  %s10350_s17 = smov 33  }
0x1555   :  { %4144 = vmatprep.subr.mxu1 %v10307_v34  ;;  %s11341_s14 = sld [smem:[%s11794_s0 + %s10350_s17]]  }
0x1556   :  { %4145 = vmatpush1.msra.mxu1 %v4121_v0 }
0x1557   :  { %4146 = vmatprep.subr.mxu1 %v10307_v34 }
0x1558   :  { %4147 = vmatpush1.msra.mxu1 %v4120_v32 }
0x1559   :  { %4148 = vmatprep.subr.mxu1 %v10307_v34 }
0x155a   :  { %4149 = vmatpush1.msra.mxu1 %v4119_v33 }
0x155b   :  { %4150 = vmatprep.subr.mxu1 %v10307_v34 }
0x155c   :  { %4151 = vmatpush1.msra.mxu1 %v4118_v22 }
0x155d   :  { %4152 = vmatprep.subr.mxu1 %v10307_v34 }
0x155e   :  { %4153 = vmatpush1.msra.mxu1 %v4117_v35 }
0x155f   :  { %4154 = vmatprep.subr.mxu1 %v10307_v34 }
0x1560   :  { %4155 = vmatpush1.msra.mxu1 %v4116_v24 }
0x1561   :  { %4156 = vmatprep.subr.mxu1 %v10307_v34 }
0x1562   :  { %4157 = vmatpush1.msra.mxu1 %v4115_v36 }
0x1563   :  { %4158 = vmatprep.subr.mxu1 %v10307_v34 }
0x1564   :  { %4159 = vmatpush1.msra.mxu1 %v4114_v37 }
0x1565   :  { %4160 = vmatprep.subr.mxu1 %v10307_v34 }
0x1566   :  { %4161 = vmatpush1.msra.mxu1 %v4113_v38 }
0x1567   :  { %4162 = vmatprep.subr.mxu1 %v10307_v34 }
0x1568   :  { %4163 = vmatpush1.msra.mxu1 %v4112_v39 }
0x1569   :  { %4164 = vmatprep.subr.mxu1 %v10307_v34 }
0x156a   :  { %4165 = vmatpush1.msra.mxu1 %v4111_v42 }
0x156b   :  { %4166 = vmatprep.subr.mxu1 %v10307_v34 }
0x156c   :  { %4167 = vmatpush1.msra.mxu1 %v4110_v43 }
0x156d   :  { %4168 = vmatprep.subr.mxu1 %v10307_v34 }
0x156e   :  { %4169 = vmatpush1.msra.mxu1 %v4109_v44 }
0x156f   :  { %4170 = vmatprep.subr.mxu1 %v10307_v34 }
0x1570   :  { %4171 = vmatpush1.msra.mxu1 %v4108_v45 }
0x1571   :  { %4188 = vmatprep.subr.mxu1 %v10307_v34 }
0x1572   :  { %4189 = vmatpush2.msra.mxu1 %v4131_v46 }
0x1573   :  { %4190 = vmatprep.subr.mxu1 %v10307_v34 }
0x1574   :  { %4191 = vmatpush2.msra.mxu1 %v4130_v48  ;;  %v4266_v48 = vld [vmem:[%s11062_s15 + $0x18] sm:$0xff] }
0x1575   :  { %4192 = vmatprep.subr.mxu1 %v10307_v34  ;;  %9728 = vmatprep.subr.mxu0 %v4266_v48 }
0x1576   :  { %4193 = vmatpush2.msra.mxu1 %v4129_v50  ;;  %v4265_v50 = vld [vmem:[%s11062_s15 + $0x10] sm:$0xff]  ;;  %9729 = vmatpush3.msra.mxu0 %v4266_v48 }
0x1577   :  { %4194 = vmatprep.subr.mxu1 %v10307_v34  ;;  %9730 = vmatprep.subr.mxu0 %v4265_v50 }
0x1578   :  { %4195 = vmatpush2.msra.mxu1 %v4128_v9  ;;  %v4264_v9 = vld [vmem:[%s11062_s15 + $0x8] sm:$0xff]  ;;  %9731 = vmatpush3.msra.mxu0 %v4265_v50 }
0x1579   :  { %4196 = vmatprep.subr.mxu1 %v10307_v34  ;;  %9732 = vmatprep.subr.mxu0 %v4264_v9 }
0x157a   :  { %4197 = vmatpush2.msra.mxu1 %v4127_v51  ;;  %9733 = vmatpush3.msra.mxu0 %v4264_v9  ;;  %v4263_v51 = vld [vmem:[%s11062_s15] sm:$0xff] }
0x157b   :  { %4198 = vmatprep.subr.mxu1 %v10307_v34  ;;  %9734 = vmatprep.subr.mxu0 %v4263_v51 }
0x157c   :  { %4199 = vmatpush2.msra.mxu1 %v4126_v52  ;;  %9735 = vmatpush3.msra.mxu0 %v4263_v51 }
0x157d   :  { %4200 = vmatprep.subr.mxu1 %v10307_v34  ;;  %9739 = vmatprep.subr.mxu0 %v10307_v34 }
0x157e   :  { %4201 = vmatpush2.msra.mxu1 %v4125_v53 }
0x157f   :  { %4202 = vmatprep.subr.mxu1 %v10307_v34 }
0x1580   :  { %4203 = vmatpush2.msra.mxu1 %v4124_v28 }
0x1581   :  { %4205 = vmatmul.mubr.f32.vlgmr.msra.gmra.mxu1 %v4104_v54  ;;  %9794 = vmatprep.subr.mxu1 %v10307_v34 }
0x1582   :  { %8977 = vmatprep.mubr.msk.f32.mxu1 %vm1964_vm8, %v4107_v30 }
0x1585   :  { %4210 = vmatmul.mubr.f32.gmra.mxu1 %v4106_v55 }
0x1586   :  { %9796 = vmatprep.mubr.msk.f32.mxu1 %vm10309_vm2, %v10307_v34 }
0x1611   :  { %v11031_v56 = vpop.f32.mrf.mxu1 }
0x1613   :  { %v9727_v61 = vpop.f32.mrf.mxu1 }
0x1641   :  { %v4206_v63 = vpop.f32.mrf.mxu1 }
0x1642   :  { %v4207_v2 = vadd.f32 %v4206_v63, %v4132_v62  ;;  %v8980_v62 = vld [vmem:[%s11072_s6] ss:$0 sm:$0xff] }
0x1643   :  { %v4208_v3 = vpop.f32.mrf.mxu1 }
0x1644   :  { %v4217_v40 = vsel %vm220_vm0, %v4207_v2, 0.0 }
0x1645   :  { %v4211_v47 = vpop.f32.mrf.mxu1  ;;  %4218 = vadd.xlane.f32.xlu0 %v4217_v40 }
0x1646   :  { %v4212_v49 = vadd.f32 %v4211_v47, %v4133_v4 }
0x1647   :  { %v4213_v60 = vpop.f32.mrf.mxu1 }
0x1648   :  { %v4220_v5 = vsel %vm220_vm0, %v4212_v49, 0.0 }
0x1649   :  { %4221 = vadd.xlane.f32.xlu1 %v4220_v5  ;;  %v8982_v5 = vld [vmem:[%s11088_s13] ss:$0 sm:$0xff] }
0x16ce   :  { %v4219_v6 = vpop.xlane.xlu0 %4218 }
0x16cf   :  { %v4223_v7 = vmul.f32 0.03125, %v4219_v6 }
0x16d1   :  { %v4225_v10 = vsub.f32 %v4207_v2, %v4223_v7  ;;  %v8981_v2 = vld [vmem:[%s11077_s5] ss:$0 sm:$0xff] }
0x16d2   :  { %v4222_v11 = vpop.xlane.xlu1 %4221 }
0x16d3   :  { %v4224_v12 = vmul.f32 0.03125, %v4222_v11  ;;  %v4227_v13 = vmul.f32 %v4225_v10, %v4225_v10 }
0x16d5   :  { %v4226_v14 = vsub.f32 %v4212_v49, %v4224_v12  ;;  %v4229_v15 = vsel %vm220_vm0, %v4227_v13, 0.0 }
0x16d6   :  { %4230 = vadd.xlane.f32.xlu0 %v4229_v15 }
0x16d7   :  { %v4228_v16 = vmul.f32 %v4226_v14, %v4226_v14 }
0x16d9   :  { %v4232_v17 = vsel %vm220_vm0, %v4228_v16, 0.0 }
0x16da   :  { %4233 = vadd.xlane.f32.xlu1 %v4232_v17 }
0x175f   :  { %v4231_v18 = vpop.xlane.xlu0 %4230 }
0x1760   :  { %v4235_v19 = vmul.f32 0.03125, %v4231_v18 }
0x1762   :  { %v4237_v20 = vadd.f32 1e-05, %v4235_v19 }
0x1763   :  { %v4234_v21 = vpop.xlane.xlu1 %4233 }
0x1764   :  { %10202 = vrsqrt.f32 %v4237_v20  ;;  %v4236_v23 = vmul.f32 0.03125, %v4234_v21 }
0x1766   :  { %v4238_v41 = vadd.f32 1e-05, %v4236_v23 }
0x1768   :  { %10204 = vrsqrt.f32 %v4238_v41 }
0x1771   :  { %v10203_v25 = vpop.eup %10202 }
0x1772   :  { %v4241_v27 = vmul.f32 %v10203_v25, %v4225_v10 }
0x1774   :  { %v4249_v1 = vmul.f32 %v8978_v26, %v4241_v27 }
0x1775   :  { %v10205_v8 = vpop.eup %10204 }
0x1776   :  { %v11046_v31 = vadd.f32 %v8979_v29, %v4249_v1  ;;  %v4242_v0 = vmul.f32 %v10205_v8, %v4226_v14  ;;  %v11107_v14 = vsel %vm4259_vm10, 0.0, %v10317_v59 }
0x1778   :  { %v4289_v32 = vsel %vm220_vm0, %v11046_v31, 0.0  ;;  %v4250_v33 = vmul.f32 %v8978_v26, %v4242_v0 }
0x1779   :  { %4290 = vadd.xlane.f32.xlu0 %v4289_v32 }
0x177a   :  { %v11050_v22 = vadd.f32 %v8979_v29, %v4250_v33 }
0x177c   :  { %v4292_v35 = vsel %vm220_vm0, %v11050_v22, 0.0 }
0x177d   :  { %4293 = vadd.xlane.f32.xlu1 %v4292_v35 }
0x1802   :  { %v4291_v24 = vpop.xlane.xlu0 %4290 }
0x1803   :  { %v4295_v36 = vmul.f32 0.03125, %v4291_v24 }
0x1805   :  { %v4297_v37 = vsub.f32 %v11046_v31, %v4295_v36 }
0x1806   :  { %v4294_v38 = vpop.xlane.xlu1 %4293 }
0x1807   :  { %v4296_v39 = vmul.f32 0.03125, %v4294_v38  ;;  %v4299_v42 = vmul.f32 %v4297_v37, %v4297_v37 }
0x1809   :  { %v4298_v43 = vsub.f32 %v11050_v22, %v4296_v39  ;;  %v4301_v44 = vsel %vm220_vm0, %v4299_v42, 0.0 }
0x180a   :  { %4302 = vadd.xlane.f32.xlu0 %v4301_v44 }
0x180b   :  { %v4300_v45 = vmul.f32 %v4298_v43, %v4298_v43 }
0x180d   :  { %v4304_v46 = vsel %vm220_vm0, %v4300_v45, 0.0 }
0x180e   :  { %4305 = vadd.xlane.f32.xlu1 %v4304_v46 }
0x1893   :  { %v4303_v52 = vpop.xlane.xlu0 %4302 }
0x1894   :  { %v4307_v53 = vmul.f32 0.03125, %v4303_v52 }
0x1896   :  { %v4309_v28 = vadd.f32 1e-05, %v4307_v53 }
0x1897   :  { %v4306_v54 = vpop.xlane.xlu1 %4305 }
0x1898   :  { %10206 = vrsqrt.f32 %v4309_v28  ;;  %v4308_v30 = vmul.f32 0.03125, %v4306_v54 }
0x189a   :  { %v4310_v55 = vadd.f32 1e-05, %v4308_v30 }
0x189c   :  { %10208 = vrsqrt.f32 %v4310_v55 }
0x18a5   :  { %v10207_v61 = vpop.eup %10206 }
0x18a6   :  { %v4313_v63 = vmul.f32 %v10207_v61, %v4297_v37 }
0x18a8   :  { %v4321_v3 = vmul.f32 %v8980_v62, %v4313_v63 }
0x18a9   :  { %v10209_v4 = vpop.eup %10208 }
0x18aa   :  { %v4314_v40 = vmul.f32 %v10209_v4, %v4298_v43  ;;  %v4329_v47 = vadd.f32 %v8981_v2, %v4321_v3 }
0x18ac   :  { %v4322_v49 = vmul.f32 %v8980_v62, %v4314_v40  ;;  %9736 = vmatprep.mubr.msk.f32.mxu0 %vm220_vm0, %v4329_v47 }
0x18ae   :  { %v4330_v60 = vadd.f32 %v8981_v2, %v4322_v49 }
0x18b0   :  { %9737 = vmatmul.mubr.msk.f32.vlgmr.msra.gmra.mxu0 %vm220_vm0, %v4330_v60 }
0x18b1   :  { %9741 = vmatprep.mubr.msk.f32.mxu0 %vm10309_vm2, %v10307_v34 }
0x1970   :  { %v9738_v6 = vpop.f32.mrf.mxu0 }
0x1971   :  { %v4415_v7 = vadd.f32 %v9738_v6, %v8982_v5 }
0x1972   :  { %v4409_v10 = vpop.f32.mrf.mxu0 }
0x1973   :  { %4419 = vst.msk [vmem:[#allocation2 + $0x8] sm:$0xff] %vm351_vm1, %v4415_v7  ;;  %v4410_v11 = vadd.f32 %v8982_v5, %v4409_v10 }
0x1975   :  { %4418 = vst.msk [vmem:[#allocation2] sm:$0xff] %vm351_vm1, %v4410_v11 }
0x197c   :  { %v11093_v12 = vld [vmem:[#allocation2] sm:$0xff] }
0x197d   :  { %4422 = vrot.lane.b32.xlu0 %v11093_v12, %s10311_s23 }
0x1981   :  { %4590 = vrot.lane.b32.xlu0 %v11093_v12, %s10310_s22 }
0x19ef   :  { %v4423_v13 = vpop.permute.xlu0 %4422 }
0x19f0   :  { %9740 = vmatpush3.xpose.msk.msra.mxu0 %vm358_vm3, %v4423_v13 }
0x19f1   :  { %9744 = vmatprep.subr.mxu0 %v10307_v34 }
0x19f3   :  { %9742 = vmatmul.mubr.msk.f32.vlgmr.msra.gmra.mxu0 %vm358_vm3, %v11093_v12  ;;  %v4591_v29 = vpop.permute.xlu0 %4590 }
0x19f4   :  { %9746 = vmatprep.mubr.msk.f32.mxu0 %vm10309_vm2, %v10307_v34 }
0x1ab3   :  { %v4494_v15 = vpop.f32.mrf.mxu0 }
0x1ab4   :  { %v4495_v16 = vadd.f32 %v4494_v15, %v11107_v14 }
0x1ab5   :  { %v9743_v17 = vpop.f32.mrf.mxu0 }
0x1ab6   :  { %v4498_v18 = vsel %vm358_vm3, %v4495_v16, -inf }
0x1ab7   :  { %4499 = vmax.xlane.f32.xlu1 %v4498_v18 }
0x1ac8   :  { %4509 = vrot.lane.b32.xlu1 %v11093_v12, %s10318_s29 }
0x1b40   :  { %v4500_v19 = vpop.xlane.xlu1 %4499 }
0x1b41   :  { %v4501_v20 = vsub.f32 %v4495_v16, %v4500_v19 }
0x1b43   :  { %v4502_v21 = vmul.f32 1.442695, %v4501_v20  ;;  %v11172_v20 = vld [vmem:[#allocation2 + $0x8] sm:$0xff] }
0x1b44   :  { %v4510_v23 = vpop.permute.xlu1 %4509 }
0x1b45   :  { %10210 = vpow2.f32 %v4502_v21  ;;  %9745 = vmatpush3.msra.mxu0 %v4510_v23 }
0x1b46   :  { %9749 = vmatprep.subr.mxu0 %v10307_v34 }
0x1b52   :  { %v10211_v59 = vpop.eup %10210 }
0x1b53   :  { %v4504_v41 = vsel %vm358_vm3, %v10211_v59, 0.0 }
0x1b54   :  { %4505 = vadd.xlane.f32.xlu1 %v4504_v41 }
0x1b65   :  { %4588 = vrot.lane.b32.xlu1 %v11093_v12, %s10312_s24 }
0x1bdd   :  { %v4506_v25 = vpop.xlane.xlu1 %4505 }
0x1bde   :  { %10212 = vrcp.f32 %v4506_v25 }
0x1be1   :  { %v4589_v1 = vpop.permute.xlu1 %4588 }
0x1beb   :  { %v10213_v26 = vpop.eup %10212 }
0x1bec   :  { %v4508_v27 = vmul.f32 %v10213_v26, %v10211_v59 }
0x1bee   :  { %9747 = vmatmul.mubr.msk.f32.vlgmr.msra.gmra.mxu0 %vm358_vm3, %v4508_v27 }
0x1bef   :  { %9750 = vmatpush3.xpose.msk.msra.mxu0 %vm358_vm3, %v4591_v29  ;;  %9751 = vmatprep.mubr.msk.f32.mxu0 %vm10309_vm2, %v10307_v34 }
0x1bf0   :  { %9754 = vmatprep.subr.mxu0 %v10307_v34 }
0x1bf2   :  { %9752 = vmatmul.mubr.msk.f32.vlgmr.msra.gmra.mxu0 %vm358_vm3, %v4589_v1 }
0x1bf3   :  { %9756 = vmatprep.mubr.msk.f32.mxu0 %vm10309_vm2, %v10307_v34 }
0x1cae   :  { %v4581_v8 = vpop.f32.mrf.mxu0 }
0x1caf   :  { %4585 = vst.msk [vmem:[#allocation3] sm:$0xff] %vm358_vm3, %v4581_v8 }
0x1cb0   :  { %v9748_v0 = vpop.f32.mrf.mxu0 }
0x1cb2   :  { %v4662_v32 = vpop.f32.mrf.mxu0 }
0x1cb3   :  { %v4663_v33 = vadd.f32 %v4662_v32, %v11107_v14 }
0x1cb4   :  { %v9753_v35 = vpop.f32.mrf.mxu0 }
0x1cb5   :  { %v4666_v24 = vsel %vm358_vm3, %v4663_v33, -inf }
0x1cb6   :  { %4667 = vmax.xlane.f32.xlu0 %v4666_v24 }
0x1ccc   :  { %4677 = vrot.lane.b32.xlu0 %v11093_v12, %s10321_s2 }
0x1cd0   :  { %4760 = vrot.lane.b32.xlu0 %v11093_v12, %s10313_s25 }
0x1d3f   :  { %v4668_v36 = vpop.xlane.xlu0 %4667 }
0x1d40   :  { %v4669_v37 = vsub.f32 %v4663_v33, %v4668_v36 }
0x1d42   :  { %v4670_v38 = vmul.f32 1.442695, %v4669_v37 }
0x1d43   :  { %v4678_v39 = vpop.permute.xlu0 %4677 }
0x1d44   :  { %10214 = vpow2.f32 %v4670_v38  ;;  %9755 = vmatpush3.msra.mxu0 %v4678_v39 }
0x1d45   :  { %9759 = vmatprep.subr.mxu0 %v10307_v34 }
0x1d47   :  { %v4761_v50 = vpop.permute.xlu0 %4760 }
0x1d51   :  { %v10215_v42 = vpop.eup %10214 }
0x1d52   :  { %v4672_v43 = vsel %vm358_vm3, %v10215_v42, 0.0 }
0x1d53   :  { %4673 = vadd.xlane.f32.xlu1 %v4672_v43 }
0x1d64   :  { %4762 = vrot.lane.b32.xlu1 %v11093_v12, %s10314_s26 }
0x1ddc   :  { %v4674_v44 = vpop.xlane.xlu1 %4673 }
0x1ddd   :  { %10216 = vrcp.f32 %v4674_v44 }
0x1de0   :  { %v4763_v48 = vpop.permute.xlu1 %4762 }
0x1dea   :  { %v10217_v45 = vpop.eup %10216 }
0x1deb   :  { %v4676_v46 = vmul.f32 %v10217_v45, %v10215_v42 }
0x1ded   :  { %9757 = vmatmul.mubr.msk.f32.vlgmr.msra.gmra.mxu0 %vm358_vm3, %v4676_v46 }
0x1dee   :  { %9760 = vmatpush3.xpose.msk.msra.mxu0 %vm358_vm3, %v4763_v48  ;;  %9761 = vmatprep.mubr.msk.f32.mxu0 %vm10309_vm2, %v10307_v34 }
0x1def   :  { %9764 = vmatprep.subr.mxu0 %v10307_v34 }
0x1df1   :  { %9762 = vmatmul.mubr.msk.f32.vlgmr.msra.gmra.mxu0 %vm358_vm3, %v4761_v50 }
0x1df2   :  { %9766 = vmatprep.mubr.msk.f32.mxu0 %vm10309_vm2, %v10307_v34 }
0x1ead   :  { %v11144_v9 = vpop.f32.mrf.mxu0 }
0x1eaf   :  { %v9758_v51 = vpop.f32.mrf.mxu0 }
0x1eb1   :  { %v4834_v52 = vpop.f32.mrf.mxu0 }
0x1eb2   :  { %v4835_v53 = vadd.f32 %v4834_v52, %v11107_v14 }
0x1eb3   :  { %v9763_v28 = vpop.f32.mrf.mxu0 }
0x1eb4   :  { %v4838_v54 = vsel %vm358_vm3, %v4835_v53, -inf }
0x1eb5   :  { %4839 = vmax.xlane.f32.xlu1 %v4838_v54 }
0x1ec6   :  { %4934 = vrot.lane.b32.xlu1 %v11093_v12, %s10316_s28 }
0x1eca   :  { %4932 = vrot.lane.b32.xlu1 %v11093_v12, %s10315_s27 }
0x1f3e   :  { %v4840_v30 = vpop.xlane.xlu1 %4839 }
0x1f3f   :  { %v4841_v55 = vsub.f32 %v4835_v53, %v4840_v30 }
0x1f41   :  { %v4842_v61 = vmul.f32 1.442695, %v4841_v55 }
0x1f42   :  { %v4935_v40 = vpop.permute.xlu1 %4934 }
0x1f43   :  { %10218 = vpow2.f32 %v4842_v61 }
0x1f46   :  { %v4933_v49 = vpop.permute.xlu1 %4932 }
0x1f50   :  { %v10219_v62 = vpop.eup %10218 }
0x1f51   :  { %v4844_v63 = vsel %vm358_vm3, %v10219_v62, 0.0 }
0x1f52   :  { %4845 = vadd.xlane.f32.xlu0 %v4844_v63 }
0x1f68   :  { %4849 = vrot.lane.b32.xlu0 %v11093_v12, %s10319_s30 }
0x1fdb   :  { %v4846_v2 = vpop.xlane.xlu0 %4845 }
0x1fdc   :  { %10220 = vrcp.f32 %v4846_v2 }
0x1fdf   :  { %v4850_v3 = vpop.permute.xlu0 %4849 }
0x1fe0   :  { %9765 = vmatpush3.msra.mxu0 %v4850_v3 }
0x1fe1   :  { %9769 = vmatprep.subr.mxu0 %v10307_v34 }
0x1fe9   :  { %v10221_v4 = vpop.eup %10220 }
0x1fea   :  { %v4848_v47 = vmul.f32 %v10221_v4, %v10219_v62 }
0x1fec   :  { %9767 = vmatmul.mubr.msk.f32.vlgmr.msra.gmra.mxu0 %vm358_vm3, %v4848_v47 }
0x1fed   :  { %9770 = vmatpush3.xpose.msk.msra.mxu0 %vm358_vm3, %v4935_v40  ;;  %9771 = vmatprep.mubr.msk.f32.mxu0 %vm10309_vm2, %v10307_v34 }
0x1fee   :  { %9774 = vmatprep.subr.mxu0 %v10307_v34 }
0x1ff0   :  { %9772 = vmatmul.mubr.msk.f32.vlgmr.msra.gmra.mxu0 %vm358_vm3, %v4933_v49 }
0x1ff1   :  { %9776 = vmatprep.mubr.msk.f32.mxu0 %vm10309_vm2, %v10307_v34 }
0x20ac   :  { %v11164_v60 = vpop.f32.mrf.mxu0 }
0x20ae   :  { %v9768_v5 = vpop.f32.mrf.mxu0 }
0x20b0   :  { %v5006_v6 = vpop.f32.mrf.mxu0 }
0x20b1   :  { %v5007_v7 = vadd.f32 %v5006_v6, %v11107_v14 }
0x20b2   :  { %v9773_v10 = vpop.f32.mrf.mxu0 }
0x20b3   :  { %v5010_v11 = vsel %vm358_vm3, %v5007_v7, -inf }
0x20b4   :  { %5011 = vmax.xlane.f32.xlu0 %v5010_v11 }
0x20ca   :  { %5021 = vrot.lane.b32.xlu0 %v11093_v12, %s10320_s1 }
0x213d   :  { %v5012_v13 = vpop.xlane.xlu0 %5011 }
0x213e   :  { %v5013_v15 = vsub.f32 %v5007_v7, %v5012_v13 }
0x2140   :  { %v5014_v16 = vmul.f32 1.442695, %v5013_v15 }
0x2141   :  { %v5022_v17 = vpop.permute.xlu0 %5021 }
0x2142   :  { %10222 = vpow2.f32 %v5014_v16  ;;  %9775 = vmatpush3.msra.mxu0 %v5022_v17 }
0x2143   :  { %9779 = vmatprep.subr.mxu0 %v10307_v34 }
0x214f   :  { %v10223_v18 = vpop.eup %10222 }
0x2150   :  { %v5016_v19 = vsel %vm358_vm3, %v10223_v18, 0.0 }
0x2151   :  { %5017 = vadd.xlane.f32.xlu1 %v5016_v19 }
0x2162   :  { %5104 = vrot.lane.b32.xlu1 %v11172_v20, %s10311_s23 }
0x2166   :  { %5272 = vrot.lane.b32.xlu1 %v11172_v20, %s10310_s22 }
0x21da   :  { %v5018_v12 = vpop.xlane.xlu1 %5017 }
0x21db   :  { %10224 = vrcp.f32 %v5018_v12 }
0x21de   :  { %v5105_v59 = vpop.permute.xlu1 %5104 }
0x21e2   :  { %v5273_v36 = vpop.permute.xlu1 %5272 }
0x21e8   :  { %v10225_v21 = vpop.eup %10224 }
0x21e9   :  { %v5020_v23 = vmul.f32 %v10225_v21, %v10223_v18 }
0x21eb   :  { %9777 = vmatmul.mubr.msk.f32.vlgmr.msra.gmra.mxu0 %vm358_vm3, %v5020_v23 }
0x21ec   :  { %9780 = vmatpush3.xpose.msk.msra.mxu0 %vm358_vm3, %v5105_v59  ;;  %9781 = vmatprep.mubr.msk.f32.mxu0 %vm10309_vm2, %v10307_v34 }
0x21ed   :  { %9784 = vmatprep.subr.mxu0 %v10307_v34 }
0x21ef   :  { %9782 = vmatmul.mubr.msk.f32.vlgmr.msra.gmra.mxu0 %vm358_vm3, %v11172_v20 }
0x21f0   :  { %9786 = vmatprep.mubr.msk.f32.mxu0 %vm10309_vm2, %v10307_v34 }
0x22ab   :  { %v11187_v41 = vpop.f32.mrf.mxu0 }
0x22ad   :  { %v9778_v25 = vpop.f32.mrf.mxu0 }
0x22af   :  { %v5176_v26 = vpop.f32.mrf.mxu0 }
0x22b0   :  { %v5177_v27 = vadd.f32 %v5176_v26, %v11107_v14 }
0x22b1   :  { %v9783_v29 = vpop.f32.mrf.mxu0 }
0x22b2   :  { %v5180_v1 = vsel %vm358_vm3, %v5177_v27, -inf }
0x22b3   :  { %5181 = vmax.xlane.f32.xlu0 %v5180_v1 }
0x22c9   :  { %5191 = vrot.lane.b32.xlu0 %v11172_v20, %s10318_s29 }
0x22cd   :  { %5270 = vrot.lane.b32.xlu0 %v11172_v20, %s10312_s24 }
0x22d1   :  { %5442 = vrot.lane.b32.xlu0 %v11172_v20, %s10313_s25 }
0x22d5   :  { %5614 = vrot.lane.b32.xlu0 %v11172_v20, %s10315_s27 }
0x233c   :  { %v5182_v8 = vpop.xlane.xlu0 %5181 }
0x233d   :  { %v5183_v0 = vsub.f32 %v5177_v27, %v5182_v8 }
0x233f   :  { %v5184_v32 = vmul.f32 1.442695, %v5183_v0 }
0x2340   :  { %v5192_v33 = vpop.permute.xlu0 %5191 }
0x2341   :  { %10226 = vpow2.f32 %v5184_v32  ;;  %9785 = vmatpush3.msra.mxu0 %v5192_v33  ;;  %v4271_v33 = vld [vmem:[%s11258_s20 + $0x18] sm:$0xff] }
0x2342   :  { %9789 = vmatprep.subr.mxu0 %v10307_v34 }
0x2344   :  { %v5271_v42 = vpop.permute.xlu0 %5270 }
0x2348   :  { %v5443_v44 = vpop.permute.xlu0 %5442 }
0x234c   :  { %v5615_v46 = vpop.permute.xlu0 %5614 }
0x234e   :  { %v10227_v35 = vpop.eup %10226 }
0x234f   :  { %v5186_v24 = vsel %vm358_vm3, %v10227_v35, 0.0 }
0x2350   :  { %5187 = vadd.xlane.f32.xlu1 %v5186_v24  ;;  %v4269_v24 = vld [vmem:[%s11258_s20 + $0x8] sm:$0xff] }
0x2361   :  { %5444 = vrot.lane.b32.xlu1 %v11172_v20, %s10314_s26 }
0x2365   :  { %5616 = vrot.lane.b32.xlu1 %v11172_v20, %s10316_s28 }
0x23d9   :  { %v5188_v37 = vpop.xlane.xlu1 %5187 }
0x23da   :  { %10228 = vrcp.f32 %v5188_v37  ;;  %v4268_v37 = vld [vmem:[%s11258_s20] sm:$0xff] }
0x23dd   :  { %v5445_v43 = vpop.permute.xlu1 %5444 }
0x23e1   :  { %v5617_v45 = vpop.permute.xlu1 %5616 }
0x23e7   :  { %v10229_v38 = vpop.eup %10228 }
0x23e8   :  { %v5190_v39 = vmul.f32 %v10229_v38, %v10227_v35  ;;  %v4270_v35 = vld [vmem:[%s11258_s20 + $0x10] sm:$0xff] }
0x23ea   :  { %9787 = vmatmul.mubr.msk.f32.vlgmr.msra.gmra.mxu0 %vm358_vm3, %v5190_v39 }
0x23eb   :  { %9790 = vmatpush3.xpose.msk.msra.mxu0 %vm358_vm3, %v5273_v36  ;;  %9791 = vmatprep.mubr.msk.f32.mxu0 %vm10309_vm2, %v10307_v34 }
0x23ec   :  { %9799 = vmatprep.subr.mxu0 %v10307_v34 }
0x23ee   :  { %9792 = vmatmul.mubr.msk.f32.vlgmr.msra.gmra.mxu0 %vm358_vm3, %v5271_v42 }
0x23ef   :  { %9800 = vmatpush3.xpose.msk.msra.mxu0 %vm358_vm3, %v5445_v43  ;;  %9801 = vmatprep.mubr.msk.f32.mxu0 %vm10309_vm2, %v10307_v34 }
0x23f0   :  { %9809 = vmatprep.subr.mxu0 %v10307_v34 }
0x23f2   :  { %9802 = vmatmul.mubr.msk.f32.vlgmr.msra.gmra.mxu0 %vm358_vm3, %v5443_v44 }
0x23f3   :  { %9810 = vmatpush3.xpose.msk.msra.mxu0 %vm358_vm3, %v5617_v45  ;;  %9811 = vmatprep.mubr.msk.f32.mxu0 %vm10309_vm2, %v10307_v34 }
0x23f4   :  { %9819 = vmatprep.subr.mxu0 %v4271_v33 }
0x23f6   :  { %9812 = vmatmul.mubr.msk.f32.vlgmr.msra.gmra.mxu0 %vm358_vm3, %v5615_v46 }
0x23f7   :  { %9820 = vmatpush3.msra.mxu0 %v4271_v33  ;;  %v4281_v33 = vld [vmem:[%s11317_s8 + $0x8] sm:$0xff] }
0x23f8   :  { %9821 = vmatprep.subr.mxu0 %v4270_v35 }
0x23f9   :  { %9822 = vmatpush3.msra.mxu0 %v4270_v35  ;;  %v4280_v35 = vld [vmem:[%s11317_s8] sm:$0xff] }
0x23fa   :  { %9823 = vmatprep.subr.mxu0 %v4269_v24 }
0x23fb   :  { %9824 = vmatpush3.msra.mxu0 %v4269_v24  ;;  %v9014_v24 = vld [vmem:[%s11331_s12] ss:$0 sm:$0xff] }
0x23fc   :  { %9825 = vmatprep.subr.mxu0 %v4268_v37 }
0x23fd   :  { %9826 = vmatpush3.msra.mxu0 %v4268_v37 }
0x24aa   :  { %v5263_v48 = vpop.f32.mrf.mxu0 }
0x24ab   :  { %5267 = vst.msk [vmem:[#allocation3 + $0x8] sm:$0xff] %vm358_vm3, %v5263_v48 }
0x24ac   :  { %v9788_v50 = vpop.f32.mrf.mxu0 }
0x24ae   :  { %v5344_v51 = vpop.f32.mrf.mxu0 }
0x24af   :  { %v5345_v52 = vadd.f32 %v5344_v51, %v11107_v14  ;;  %v9009_v51 = vld [vmem:[%s11274_s18] ss:$0 sm:$0xff] }
0x24b0   :  { %v9793_v53 = vpop.f32.mrf.mxu0 }
0x24b1   :  { %v5348_v28 = vsel %vm358_vm3, %v5345_v52, -inf }
0x24b2   :  { %5349 = vmax.xlane.f32.xlu1 %v5348_v28  ;;  %v5516_v54 = vpop.f32.mrf.mxu0 }
0x24b3   :  { %v5517_v30 = vadd.f32 %v5516_v54, %v11107_v14 }
0x24b4   :  { %v9803_v55 = vpop.f32.mrf.mxu0 }
0x24b5   :  { %v5520_v61 = vsel %vm358_vm3, %v5517_v30, -inf }
0x24b6   :  { %5521 = vmax.xlane.f32.xlu0 %v5520_v61  ;;  %v5688_v62 = vpop.f32.mrf.mxu0 }
0x24b7   :  { %v5689_v63 = vadd.f32 %v5688_v62, %v11107_v14 }
0x24b8   :  { %v9813_v2 = vpop.f32.mrf.mxu0 }
0x24b9   :  { %v5692_v3 = vsel %vm358_vm3, %v5689_v63, -inf }
0x24ba   :  { %5693 = vmax.xlane.f32.xlu0 %v5692_v3 }
0x24c3   :  { %5359 = vrot.lane.b32.xlu1 %v11172_v20, %s10321_s2 }
0x253b   :  { %v5350_v4 = vpop.xlane.xlu1 %5349 }
0x253c   :  { %v5351_v40 = vsub.f32 %v5345_v52, %v5350_v4 }
0x253e   :  { %v5352_v47 = vmul.f32 1.442695, %v5351_v40 }
0x253f   :  { %v5360_v49 = vpop.permute.xlu1 %5359  ;;  %v5522_v5 = vpop.xlane.xlu0 %5521 }
0x2540   :  { %10230 = vpow2.f32 %v5352_v47  ;;  %v5523_v6 = vsub.f32 %v5517_v30, %v5522_v5  ;;  %9795 = vmatpush3.msra.mxu1 %v5360_v49 }
0x2541   :  { %9804 = vmatprep.subr.mxu1 %v10307_v34 }
0x2542   :  { %v5524_v7 = vmul.f32 1.442695, %v5523_v6  ;;  %v4278_v6 = vld [vmem:[%s11294_s9 + $0x18] sm:$0xff] }
0x2543   :  { %v5694_v10 = vpop.xlane.xlu0 %5693 }
0x2544   :  { %10232 = vpow2.f32 %v5524_v7  ;;  %v5695_v11 = vsub.f32 %v5689_v63, %v5694_v10  ;;  %v4277_v7 = vld [vmem:[%s11294_s9 + $0x10] sm:$0xff]  ;;  %v4276_v10 = vld [vmem:[%s11294_s9 + $0x8] sm:$0xff] }
0x2546   :  { %v5696_v13 = vmul.f32 1.442695, %v5695_v11  ;;  %v4275_v11 = vld [vmem:[%s11294_s9] sm:$0xff] }
0x2548   :  { %10234 = vpow2.f32 %v5696_v13 }
0x254d   :  { %v10231_v15 = vpop.eup %10230 }
0x254e   :  { %v5354_v16 = vsel %vm358_vm3, %v10231_v15, 0.0 }
0x254f   :  { %5355 = vadd.xlane.f32.xlu0 %v5354_v16 }
0x2551   :  { %v10233_v17 = vpop.eup %10232 }
0x2552   :  { %v5526_v18 = vsel %vm358_vm3, %v10233_v17, 0.0 }
0x2553   :  { %5527 = vadd.xlane.f32.xlu1 %v5526_v18 }
0x2555   :  { %v10235_v19 = vpop.eup %10234 }
0x2556   :  { %v5698_v12 = vsel %vm358_vm3, %v10235_v19, 0.0 }
0x2557   :  { %5699 = vadd.xlane.f32.xlu0 %v5698_v12 }
0x2564   :  { %5703 = vrot.lane.b32.xlu1 %v11172_v20, %s10320_s1 }
0x2568   :  { %4754 = vrot.lane.b32.xlu1 %v11144_v9, %s10322_s3 }
0x256c   :  { %4926 = vrot.lane.b32.xlu1 %v11164_v60, %s10323_s4 }
0x256d   :  { %5531 = vrot.lane.b32.xlu0 %v11172_v20, %s10319_s30 }
0x2570   :  { %5098 = vrot.lane.b32.xlu1 %v11187_v41, %s10325_s10 }
0x25d8   :  { %v5356_v21 = vpop.xlane.xlu0 %5355 }
0x25d9   :  { %10236 = vrcp.f32 %v5356_v21  ;;  %v9012_v21 = vld [vmem:[%s11303_s7] ss:$0 sm:$0xff] }
0x25dc   :  { %v5528_v23 = vpop.xlane.xlu1 %5527 }
0x25dd   :  { %10238 = vrcp.f32 %v5528_v23 }
0x25e0   :  { %v5704_v59 = vpop.permute.xlu1 %5703  ;;  %v5700_v25 = vpop.xlane.xlu0 %5699 }
0x25e1   :  { %10240 = vrcp.f32 %v5700_v25 }
0x25e4   :  { %v4755_v26 = vpop.permute.xlu1 %4754  ;;  %v5532_v60 = vpop.permute.xlu0 %5531 }
0x25e5   :  { %4757 = vst.msk [vmem:[#allocation3] sm:$0xff] %vm692_vm5, %v4755_v26 }
0x25e6   :  { %v10237_v9 = vpop.eup %10236 }
0x25e7   :  { %v5358_v27 = vmul.f32 %v10237_v9, %v10231_v15 }
0x25e8   :  { %v4927_v29 = vpop.permute.xlu1 %4926 }
0x25e9   :  { %4929 = vst.msk [vmem:[#allocation3] sm:$0xff] %vm865_vm6, %v4927_v29  ;;  %9797 = vmatmul.mubr.msk.f32.vlgmr.msra.gmra.mxu1 %vm358_vm3, %v5358_v27 }
0x25ea   :  { %v10239_v20 = vpop.eup %10238  ;;  %9805 = vmatpush3.msra.mxu1 %v5532_v60  ;;  %9806 = vmatprep.mubr.msk.f32.mxu1 %vm10309_vm2, %v10307_v34 }
0x25eb   :  { %9814 = vmatprep.subr.mxu1 %v10307_v34  ;;  %v5530_v41 = vmul.f32 %v10239_v20, %v10233_v17  ;;  %v4287_v20 = vld [vmem:[%s11317_s8 + $0x38] sm:$0xff] }
0x25ec   :  { %v5099_v1 = vpop.permute.xlu1 %5098  ;;  %9841 = vmatprep.subr.mxu0 %v4287_v20 }
0x25ed   :  { %5101 = vst.msk [vmem:[#allocation3] sm:$0xff] %vm1038_vm7, %v5099_v1  ;;  %9807 = vmatmul.mubr.msk.f32.vlgmr.msra.gmra.mxu1 %vm358_vm3, %v5530_v41  ;;  %v4286_v41 = vld [vmem:[%s11317_s8 + $0x30] sm:$0xff]  ;;  %v4285_v1 = vld [vmem:[%s11317_s8 + $0x28] sm:$0xff] }
0x25ee   :  { %v10241_v8 = vpop.eup %10240  ;;  %9815 = vmatpush3.msra.mxu1 %v5704_v59  ;;  %9816 = vmatprep.mubr.msk.f32.mxu1 %vm10309_vm2, %v10307_v34  ;;  %v9013_v59 = vld [vmem:[%s11308_s11] ss:$0 sm:$0xff] }
0x25ef   :  { %v5702_v0 = vmul.f32 %v10241_v8, %v10235_v19  ;;  %9830 = vmatprep.subr.mxu1 %v4278_v6  ;;  %v4284_v8 = vld [vmem:[%s11317_s8 + $0x20] sm:$0xff] }
0x25f1   :  { %9817 = vmatmul.mubr.msk.f32.vlgmr.msra.gmra.mxu1 %vm358_vm3, %v5702_v0  ;;  %v4283_v0 = vld [vmem:[%s11317_s8 + $0x18] sm:$0xff] }
0x25f2   :  { %9831 = vmatpush3.msra.mxu1 %v4278_v6 }
0x25f3   :  { %9832 = vmatprep.subr.mxu1 %v4277_v7 }
0x25f4   :  { %v5784_v32 = vld [vmem:[#allocation3] sm:$0xff]  ;;  %9833 = vmatpush3.msra.mxu1 %v4277_v7 }
0x25f5   :  { %9827 = vmatprep.mubr.msk.f32.mxu0 %vm220_vm0, %v5784_v32  ;;  %9834 = vmatprep.subr.mxu1 %v4276_v10  ;;  %v4282_v32 = vld [vmem:[%s11317_s8 + $0x10] sm:$0xff] }
0x25f6   :  { %9835 = vmatpush3.msra.mxu1 %v4276_v10 }
0x25f7   :  { %9836 = vmatprep.subr.mxu1 %v4275_v11 }
0x25f8   :  { %9837 = vmatpush3.msra.mxu1 %v4275_v11 }
0x26a9   :  { %v5431_v36 = vpop.f32.mrf.mxu1 }
0x26aa   :  { %5436 = vrot.lane.b32.xlu0 %v5431_v36, %s10322_s3 }
0x26ab   :  { %v9798_v38 = vpop.f32.mrf.mxu1 }
0x26ad   :  { %v5603_v39 = vpop.f32.mrf.mxu1 }
0x26ae   :  { %5608 = vrot.lane.b32.xlu0 %v5603_v39, %s10323_s4 }
0x26af   :  { %v9808_v42 = vpop.f32.mrf.mxu1 }
0x26b1   :  { %v5775_v43 = vpop.f32.mrf.mxu1 }
0x26b2   :  { %5780 = vrot.lane.b32.xlu1 %v5775_v43, %s10325_s10 }
0x26b3   :  { %v9818_v44 = vpop.f32.mrf.mxu1 }
0x271c   :  { %v5437_v45 = vpop.permute.xlu0 %5436 }
0x271d   :  { %5439 = vst.msk [vmem:[#allocation3 + $0x8] sm:$0xff] %vm692_vm5, %v5437_v45 }
0x2720   :  { %v5609_v46 = vpop.permute.xlu0 %5608 }
0x2721   :  { %5611 = vst.msk [vmem:[#allocation3 + $0x8] sm:$0xff] %vm865_vm6, %v5609_v46 }
0x2724   :  { %v5781_v48 = vpop.permute.xlu1 %5780 }
0x2725   :  { %5783 = vst.msk [vmem:[#allocation3 + $0x8] sm:$0xff] %vm1038_vm7, %v5781_v48 }
0x272c   :  { %v5785_v50 = vld [vmem:[#allocation3 + $0x8] sm:$0xff] }
0x272d   :  { %9828 = vmatmul.mubr.msk.f32.vlgmr.msra.gmra.mxu0 %vm220_vm0, %v5785_v50 }
0x272e   :  { %9842 = vmatpush3.msra.mxu0 %v4287_v20 }
0x272f   :  { %9843 = vmatprep.subr.mxu0 %v4286_v41 }
0x2730   :  { %9844 = vmatpush3.msra.mxu0 %v4286_v41  ;;  %v9051_v41 = vld [vmem:[%s11077_s5 + $0x1] ss:$0 sm:$0xff] }
0x2731   :  { %9845 = vmatprep.subr.mxu0 %v4285_v1 }
0x2732   :  { %9846 = vmatpush3.msra.mxu0 %v4285_v1 }
0x2733   :  { %9847 = vmatprep.subr.mxu0 %v4284_v8 }
0x2734   :  { %9848 = vmatpush3.msra.mxu0 %v4284_v8 }
0x2735   :  { %9849 = vmatprep.subr.mxu0 %v4283_v0 }
0x2736   :  { %9850 = vmatpush3.msra.mxu0 %v4283_v0 }
0x2737   :  { %9851 = vmatprep.subr.mxu0 %v4282_v32 }
0x2738   :  { %9852 = vmatpush3.msra.mxu0 %v4282_v32  ;;  %v9052_v32 = vld [vmem:[%s11088_s13 + $0x1] ss:$0 sm:$0xff]  ;;  %s10355_s13 = smov 37  }
0x2739   :  { %9853 = vmatprep.subr.mxu0 %v4281_v33 }
0x273a   :  { %9854 = vmatpush3.msra.mxu0 %v4281_v33 }
0x273b   :  { %9855 = vmatprep.subr.mxu0 %v4280_v35 }
0x273c   :  { %9856 = vmatpush3.msra.mxu0 %v4280_v35 }
0x273d   :  { %9881 = vmatprep.subr.mxu0 %v10307_v34 }
0x27ed   :  { %v9829_v52 = vpop.f32.mrf.mxu0 }
0x27ee   :  { %v5870_v53 = vadd.f32 %v9829_v52, %v9009_v51 }
0x27ef   :  { %v5864_v28 = vpop.f32.mrf.mxu0 }
0x27f0   :  { %v11278_v54 = vadd.f32 %v5870_v53, %v11050_v22  ;;  %v5865_v30 = vadd.f32 %v9009_v51, %v5864_v28 }
0x27f2   :  { %v11281_v55 = vadd.f32 %v5865_v30, %v11046_v31  ;;  %v5878_v61 = vsel %vm220_vm0, %v11278_v54, 0.0 }
0x27f3   :  { %5879 = vadd.xlane.f32.xlu1 %v5878_v61  ;;  %v9019_v61 = vld [vmem:[%s11341_s14] ss:$0 sm:$0xff] }
0x27f4   :  { %v5875_v62 = vsel %vm220_vm0, %v11281_v55, 0.0 }
0x27f5   :  { %5876 = vadd.xlane.f32.xlu0 %v5875_v62 }
0x287c   :  { %v5880_v63 = vpop.xlane.xlu1 %5879 }
0x287d   :  { %v5882_v2 = vmul.f32 0.03125, %v5880_v63 }
0x287e   :  { %v5877_v3 = vpop.xlane.xlu0 %5876 }
0x287f   :  { %v5881_v4 = vmul.f32 0.03125, %v5877_v3  ;;  %v5884_v40 = vsub.f32 %v11278_v54, %v5882_v2 }
0x2881   :  { %v5883_v22 = vsub.f32 %v11281_v55, %v5881_v4  ;;  %v5886_v49 = vmul.f32 %v5884_v40, %v5884_v40 }
0x2883   :  { %v5885_v47 = vmul.f32 %v5883_v22, %v5883_v22  ;;  %v5890_v5 = vsel %vm220_vm0, %v5886_v49, 0.0 }
0x2885   :  { %v5887_v31 = vsel %vm220_vm0, %v5885_v47, 0.0 }
0x2886   :  { %5888 = vadd.xlane.f32.xlu0 %v5887_v31 }
0x288a   :  { %5891 = vadd.xlane.f32.xlu0 %v5890_v5 }
0x290f   :  { %v5889_v13 = vpop.xlane.xlu0 %5888 }
0x2910   :  { %v5893_v15 = vmul.f32 0.03125, %v5889_v13 }
0x2912   :  { %v5895_v16 = vadd.f32 1e-05, %v5893_v15  ;;  %v9027_v15 = vld [vmem:[%s11062_s15 + $0x38] sm:$0xff] }
0x2913   :  { %v5892_v17 = vpop.xlane.xlu0 %5891  ;;  %9860 = vmatprep.subr.mxu1 %v9027_v15 }
0x2914   :  { %10242 = vrsqrt.f32 %v5895_v16  ;;  %v5894_v18 = vmul.f32 0.03125, %v5892_v17  ;;  %v9026_v16 = vld [vmem:[%s11062_s15 + $0x30] sm:$0xff]  ;;  %v9025_v17 = vld [vmem:[%s11062_s15 + $0x28] sm:$0xff] }
0x2916   :  { %v5896_v19 = vadd.f32 1e-05, %v5894_v18  ;;  %v9024_v18 = vld [vmem:[%s11062_s15 + $0x20] sm:$0xff] }
0x2918   :  { %10244 = vrsqrt.f32 %v5896_v19 }
0x2921   :  { %v10243_v12 = vpop.eup %10242 }
0x2922   :  { %v5899_v23 = vmul.f32 %v10243_v12, %v5883_v22 }
0x2924   :  { %v5907_v25 = vmul.f32 %v9012_v21, %v5899_v23 }
0x2925   :  { %v10245_v26 = vpop.eup %10244 }
0x2926   :  { %v5900_v9 = vmul.f32 %v10245_v26, %v5884_v40  ;;  %v5915_v27 = vadd.f32 %v9013_v59, %v5907_v25 }
0x2928   :  { %v5908_v29 = vmul.f32 %v9012_v21, %v5900_v9  ;;  %9838 = vmatprep.mubr.msk.f32.mxu1 %vm220_vm0, %v5915_v27  ;;  %v9050_v9 = vld [vmem:[%s11072_s6 + $0x1] ss:$0 sm:$0xff] }
0x292a   :  { %v5916_v60 = vadd.f32 %v9013_v59, %v5908_v29 }
0x292c   :  { %9839 = vmatmul.mubr.msk.f32.vlgmr.msra.gmra.mxu1 %vm220_vm0, %v5916_v60 }
0x292d   :  { %9861 = vmatpush3.msra.mxu1 %v9027_v15 }
0x292e   :  { %9862 = vmatprep.subr.mxu1 %v9026_v16 }
0x292f   :  { %9863 = vmatpush3.msra.mxu1 %v9026_v16 }
0x2930   :  { %9864 = vmatprep.subr.mxu1 %v9025_v17 }
0x2931   :  { %9865 = vmatpush3.msra.mxu1 %v9025_v17 }
0x2932   :  { %9866 = vmatprep.subr.mxu1 %v9024_v18 }
0x2933   :  { %9867 = vmatpush3.msra.mxu1 %v9024_v18 }
0x2934   :  { %9871 = vmatprep.subr.mxu1 %v10307_v34 }
0x29ec   :  { %v9840_v36 = vpop.f32.mrf.mxu1 }
0x29ed   :  { %v6001_v37 = vadd.f32 %v9840_v36, %v9014_v24 }
0x29ee   :  { %v5995_v38 = vpop.f32.mrf.mxu1 }
0x29ef   :  { %v9018_v39 = vmul.f32 -1.702, %v6001_v37  ;;  %v5996_v42 = vadd.f32 %v9014_v24, %v5995_v38 }
0x29f1   :  { %v6010_v43 = vmul.f32 1.442695, %v9018_v39  ;;  %v9017_v44 = vmul.f32 -1.702, %v5996_v42 }
0x29f3   :  { %10246 = vpow2.f32 %v6010_v43  ;;  %v6008_v45 = vmul.f32 1.442695, %v9017_v44 }
0x29f5   :  { %10248 = vpow2.f32 %v6008_v45 }
0x2a00   :  { %v10247_v46 = vpop.eup %10246 }
0x2a01   :  { %v6013_v48 = vadd.f32 1.0, %v10247_v46 }
0x2a02   :  { %v10249_v50 = vpop.eup %10248 }
0x2a03   :  { %v6012_v51 = vadd.f32 1.0, %v10249_v50  ;;  %10250 = vrcp.f32 %v6013_v48 }
0x2a05   :  { %10252 = vrcp.f32 %v6012_v51 }
0x2a10   :  { %v10251_v52 = vpop.eup %10250 }
0x2a11   :  { %v6019_v30 = vmul.f32 %v10251_v52, %v6001_v37 }
0x2a12   :  { %v10253_v53 = vpop.eup %10252 }
0x2a13   :  { %v6018_v28 = vmul.f32 %v10253_v53, %v5996_v42 }
0x2a15   :  { %9857 = vmatprep.mubr.msk.f32.mxu0 %vm1964_vm8, %v6018_v28 }
0x2a16   :  { %9858 = vmatmul.mubr.msk.f32.vlgmr.msra.gmra.mxu0 %vm1964_vm8, %v6019_v30 }
0x2a17   :  { %9883 = vmatprep.mubr.msk.f32.mxu0 %vm10309_vm2, %v10307_v34 }
0x2ad6   :  { %v9859_v62 = vpop.f32.mrf.mxu0 }
0x2ad7   :  { %v6104_v63 = vadd.f32 %v9859_v62, %v9019_v61 }
0x2ad8   :  { %v6098_v2 = vpop.f32.mrf.mxu0 }
0x2ad9   :  { %v11345_v3 = vadd.f32 %v6104_v63, %v11278_v54  ;;  %v6099_v4 = vadd.f32 %v9019_v61, %v6098_v2 }
0x2adb   :  { %v11348_v40 = vadd.f32 %v6099_v4, %v11281_v55  ;;  %v6152_v22 = vsel %vm220_vm0, %v11345_v3, 0.0 }
0x2adc   :  { %6153 = vadd.xlane.f32.xlu1 %v6152_v22 }
0x2add   :  { %v6149_v47 = vsel %vm220_vm0, %v11348_v40, 0.0 }
0x2ade   :  { %6150 = vadd.xlane.f32.xlu0 %v6149_v47 }
0x2b65   :  { %v6154_v31 = vpop.xlane.xlu1 %6153 }
0x2b66   :  { %v6156_v49 = vmul.f32 0.03125, %v6154_v31 }
0x2b67   :  { %v6151_v5 = vpop.xlane.xlu0 %6150 }
0x2b68   :  { %v6158_v54 = vsub.f32 %v11345_v3, %v6156_v49  ;;  %v6155_v6 = vmul.f32 0.03125, %v6151_v5 }
0x2b6a   :  { %v6157_v55 = vsub.f32 %v11348_v40, %v6155_v6  ;;  %v6160_v7 = vmul.f32 %v6158_v54, %v6158_v54 }
0x2b6c   :  { %v6164_v10 = vsel %vm220_vm0, %v6160_v7, 0.0  ;;  %v6159_v11 = vmul.f32 %v6157_v55, %v6157_v55 }
0x2b6d   :  { %6165 = vadd.xlane.f32.xlu1 %v6164_v10 }
0x2b6e   :  { %v6161_v13 = vsel %vm220_vm0, %v6159_v11, 0.0 }
0x2b6f   :  { %6162 = vadd.xlane.f32.xlu0 %v6161_v13 }
0x2bf6   :  { %v6166_v19 = vpop.xlane.xlu1 %6165 }
0x2bf7   :  { %v6168_v12 = vmul.f32 0.03125, %v6166_v19 }
0x2bf8   :  { %v6163_v21 = vpop.xlane.xlu0 %6162 }
0x2bf9   :  { %v6170_v23 = vadd.f32 1e-05, %v6168_v12  ;;  %v6167_v59 = vmul.f32 0.03125, %v6163_v21 }
0x2bfb   :  { %10254 = vrsqrt.f32 %v6170_v23  ;;  %v6169_v25 = vadd.f32 1e-05, %v6167_v59 }
0x2bfd   :  { %10256 = vrsqrt.f32 %v6169_v25 }
0x2c08   :  { %v10255_v26 = vpop.eup %10254 }
0x2c09   :  { %v6174_v27 = vmul.f32 %v10255_v26, %v6158_v54 }
0x2c0a   :  { %v10257_v29 = vpop.eup %10256 }
0x2c0b   :  { %v6173_v60 = vmul.f32 %v10257_v29, %v6157_v55  ;;  %v6182_v20 = vmul.f32 %v9050_v9, %v6174_v27 }
0x2c0d   :  { %v6181_v1 = vmul.f32 %v9050_v9, %v6173_v60  ;;  %v6190_v0 = vadd.f32 %v9051_v41, %v6182_v20 }
0x2c0f   :  { %v6189_v8 = vadd.f32 %v9051_v41, %v6181_v1 }
0x2c11   :  { %9868 = vmatprep.mubr.msk.f32.mxu1 %vm220_vm0, %v6189_v8 }
0x2c12   :  { %9869 = vmatmul.mubr.msk.f32.vlgmr.msra.gmra.mxu1 %vm220_vm0, %v6190_v0 }
0x2c13   :  { %9873 = vmatprep.mubr.msk.f32.mxu1 %vm10309_vm2, %v10307_v34 }
0x2cd2   :  { %v9870_v33 = vpop.f32.mrf.mxu1 }
0x2cd3   :  { %v6275_v35 = vadd.f32 %v9870_v33, %v9052_v32 }
0x2cd4   :  { %v6269_v24 = vpop.f32.mrf.mxu1 }
0x2cd5   :  { %6279 = vst.msk [vmem:[#allocation2 + $0x8] sm:$0xff] %vm351_vm1, %v6275_v35  ;;  %v6270_v36 = vadd.f32 %v9052_v32, %v6269_v24 }
0x2cd7   :  { %6278 = vst.msk [vmem:[#allocation2] sm:$0xff] %vm351_vm1, %v6270_v36 }
0x2cdc   :  { %v11386_v38 = vld [vmem:[#allocation2 + $0x8] sm:$0xff] }
0x2cde   :  { %v11372_v37 = vld [vmem:[#allocation2] sm:$0xff] }
0x2cdf   :  { %6450 = vrot.lane.b32.xlu1 %v11372_v37, %s10310_s22  ;;  %6282 = vrot.lane.b32.xlu0 %v11372_v37, %s10311_s23 }
0x2ce3   :  { %6448 = vrot.lane.b32.xlu1 %v11372_v37, %s10312_s24  ;;  %6620 = vrot.lane.b32.xlu0 %v11372_v37, %s10313_s25 }
0x2ce7   :  { %6622 = vrot.lane.b32.xlu1 %v11372_v37, %s10314_s26  ;;  %6792 = vrot.lane.b32.xlu0 %v11372_v37, %s10315_s27 }
0x2ceb   :  { %6794 = vrot.lane.b32.xlu1 %v11372_v37, %s10316_s28  ;;  %7132 = vrot.lane.b32.xlu0 %v11386_v38, %s10310_s22  ;;  %s10351_s22 = smov 36  }
0x2cef   :  { %6964 = vrot.lane.b32.xlu1 %v11386_v38, %s10311_s23  ;;  %7304 = vrot.lane.b32.xlu0 %v11386_v38, %s10314_s26  ;;  %s10352_s26 = smov 38   ;;  %s10358_s23 = smov 43  }
0x2cf3   :  { %7130 = vrot.lane.b32.xlu1 %v11386_v38, %s10312_s24  ;;  %7476 = vrot.lane.b32.xlu0 %v11386_v38, %s10316_s28 }
0x2cf7   :  { %7302 = vrot.lane.b32.xlu1 %v11386_v38, %s10313_s25  ;;  %s8851_s25 = sld [smem:[%s11794_s0 + %s10351_s22]]  }
0x2cf8   :  { %s11750_s22 = sld [smem:[%s11794_s0 + %s10357_s21]]  }
0x2cfb   :  { %7474 = vrot.lane.b32.xlu1 %v11386_v38, %s10315_s27  ;;  %s10359_s27 = smov 41  }
0x2d51   :  { %v6451_v39 = vpop.permute.xlu1 %6450  ;;  %v6283_v42 = vpop.permute.xlu0 %6282 }
0x2d52   :  { %9872 = vmatpush3.xpose.msk.msra.mxu1 %vm358_vm3, %v6283_v42  ;;  %9882 = vmatpush3.xpose.msk.msra.mxu0 %vm358_vm3, %v6451_v39 }
0x2d53   :  { %9891 = vmatprep.subr.mxu0 %v10307_v34  ;;  %9876 = vmatprep.subr.mxu1 %v10307_v34 }
0x2d55   :  { %v6449_v43 = vpop.permute.xlu1 %6448  ;;  %9874 = vmatmul.mubr.msk.f32.vlgmr.msra.gmra.mxu1 %vm358_vm3, %v11372_v37  ;;  %v6621_v44 = vpop.permute.xlu0 %6620 }
0x2d56   :  { %9884 = vmatmul.mubr.msk.f32.vlgmr.msra.gmra.mxu0 %vm358_vm3, %v6449_v43  ;;  %9878 = vmatprep.mubr.msk.f32.mxu1 %vm10309_vm2, %v10307_v34 }
0x2d57   :  { %9893 = vmatprep.mubr.msk.f32.mxu0 %vm10309_vm2, %v10307_v34 }
0x2d59   :  { %v6623_v45 = vpop.permute.xlu1 %6622  ;;  %v6793_v46 = vpop.permute.xlu0 %6792 }
0x2d5a   :  { %9892 = vmatpush3.xpose.msk.msra.mxu0 %vm358_vm3, %v6623_v45 }
0x2d5b   :  { %9901 = vmatprep.subr.mxu0 %v10307_v34 }
0x2d5d   :  { %v6795_v48 = vpop.permute.xlu1 %6794  ;;  %9894 = vmatmul.mubr.msk.f32.vlgmr.msra.gmra.mxu0 %vm358_vm3, %v6621_v44  ;;  %v7133_v50 = vpop.permute.xlu0 %7132 }
0x2d5e   :  { %9902 = vmatpush3.xpose.msk.msra.mxu0 %vm358_vm3, %v6795_v48  ;;  %9903 = vmatprep.mubr.msk.f32.mxu0 %vm10309_vm2, %v10307_v34 }
0x2d5f   :  { %9911 = vmatprep.subr.mxu0 %v10307_v34 }
0x2d61   :  { %v6965_v51 = vpop.permute.xlu1 %6964  ;;  %9904 = vmatmul.mubr.msk.f32.vlgmr.msra.gmra.mxu0 %vm358_vm3, %v6793_v46  ;;  %v7305_v53 = vpop.permute.xlu0 %7304 }
0x2d62   :  { %9912 = vmatpush3.xpose.msk.msra.mxu0 %vm358_vm3, %v6965_v51  ;;  %9913 = vmatprep.mubr.msk.f32.mxu0 %vm10309_vm2, %v10307_v34 }
0x2d63   :  { %9921 = vmatprep.subr.mxu0 %v10307_v34 }
0x2d65   :  { %v7131_v52 = vpop.permute.xlu1 %7130  ;;  %9914 = vmatmul.mubr.msk.f32.vlgmr.msra.gmra.mxu0 %vm358_vm3, %v11386_v38  ;;  %v7477_v30 = vpop.permute.xlu0 %7476 }
0x2d66   :  { %9922 = vmatpush3.xpose.msk.msra.mxu0 %vm358_vm3, %v7133_v50  ;;  %9923 = vmatprep.mubr.msk.f32.mxu0 %vm10309_vm2, %v10307_v34 }
0x2d67   :  { %9931 = vmatprep.subr.mxu0 %v10307_v34 }
0x2d69   :  { %9924 = vmatmul.mubr.msk.f32.vlgmr.msra.gmra.mxu0 %vm358_vm3, %v7131_v52  ;;  %v7303_v28 = vpop.permute.xlu1 %7302 }
0x2d6a   :  { %9932 = vmatpush3.xpose.msk.msra.mxu0 %vm358_vm3, %v7305_v53  ;;  %9933 = vmatprep.mubr.msk.f32.mxu0 %vm10309_vm2, %v10307_v34 }
0x2d6b   :  { %9941 = vmatprep.subr.mxu0 %v10307_v34 }
0x2d6d   :  { %9934 = vmatmul.mubr.msk.f32.vlgmr.msra.gmra.mxu0 %vm358_vm3, %v7303_v28  ;;  %v7475_v61 = vpop.permute.xlu1 %7474 }
0x2d6e   :  { %9942 = vmatpush3.xpose.msk.msra.mxu0 %vm358_vm3, %v7477_v30  ;;  %9943 = vmatprep.mubr.msk.f32.mxu0 %vm10309_vm2, %v10307_v34 }
0x2d71   :  { %9944 = vmatmul.mubr.msk.f32.vlgmr.msra.gmra.mxu0 %vm358_vm3, %v7475_v61 }
0x2e15   :  { %v6354_v62 = vpop.f32.mrf.mxu1 }
0x2e16   :  { %v6355_v63 = vadd.f32 %v6354_v62, %v11107_v14  ;;  %v6522_v2 = vpop.f32.mrf.mxu0 }
0x2e17   :  { %v6523_v4 = vadd.f32 %v6522_v2, %v11107_v14  ;;  %v9875_v22 = vpop.f32.mrf.mxu1 }
0x2e18   :  { %v9885_v47 = vpop.f32.mrf.mxu0  ;;  %v6358_v31 = vsel %vm358_vm3, %v6355_v63, -inf }
0x2e19   :  { %6359 = vmax.xlane.f32.xlu0 %v6358_v31  ;;  %v6526_v49 = vsel %vm358_vm3, %v6523_v4, -inf }
0x2e1a   :  { %6527 = vmax.xlane.f32.xlu1 %v6526_v49 }
0x2e1d   :  { %v6694_v5 = vpop.f32.mrf.mxu0 }
0x2e1e   :  { %v11448_v54 = vadd.f32 %v6694_v5, %v11107_v14 }
0x2e1f   :  { %v9895_v6 = vpop.f32.mrf.mxu0 }
0x2e20   :  { %v6698_v55 = vsel %vm358_vm3, %v11448_v54, -inf }
0x2e21   :  { %6699 = vmax.xlane.f32.xlu0 %v6698_v55  ;;  %v6866_v7 = vpop.f32.mrf.mxu0 }
0x2e22   :  { %v6867_v10 = vadd.f32 %v6866_v7, %v11107_v14 }
0x2e23   :  { %v9905_v11 = vpop.f32.mrf.mxu0 }
0x2e24   :  { %v6870_v13 = vsel %vm358_vm3, %v6867_v10, -inf }
0x2e25   :  { %6871 = vmax.xlane.f32.xlu0 %v6870_v13  ;;  %v7036_v15 = vpop.f32.mrf.mxu0 }
0x2e26   :  { %v7037_v16 = vadd.f32 %v7036_v15, %v11107_v14 }
0x2e27   :  { %v9915_v17 = vpop.f32.mrf.mxu0 }
0x2e28   :  { %v7040_v18 = vsel %vm358_vm3, %v7037_v16, -inf }
0x2e29   :  { %7041 = vmax.xlane.f32.xlu0 %v7040_v18  ;;  %v7204_v19 = vpop.f32.mrf.mxu0 }
0x2e2a   :  { %v7205_v12 = vadd.f32 %v7204_v19, %v11107_v14 }
0x2e2b   :  { %v9925_v21 = vpop.f32.mrf.mxu0 }
0x2e2c   :  { %v7208_v23 = vsel %vm358_vm3, %v7205_v12, -inf }
0x2e2d   :  { %7209 = vmax.xlane.f32.xlu1 %v7208_v23  ;;  %v7376_v59 = vpop.f32.mrf.mxu0 }
0x2e2e   :  { %v7377_v25 = vadd.f32 %v7376_v59, %v11107_v14 }
0x2e2f   :  { %v9935_v26 = vpop.f32.mrf.mxu0 }
0x2e30   :  { %v7380_v9 = vsel %vm358_vm3, %v7377_v25, -inf }
0x2e31   :  { %7381 = vmax.xlane.f32.xlu0 %v7380_v9  ;;  %v7548_v27 = vpop.f32.mrf.mxu0 }
0x2e32   :  { %v7549_v60 = vadd.f32 %v7548_v27, %v11107_v14 }
0x2e33   :  { %v9945_v29 = vpop.f32.mrf.mxu0 }
0x2e34   :  { %v7552_v20 = vsel %vm358_vm3, %v7549_v60, -inf }
0x2e3e   :  { %6369 = vrot.lane.b32.xlu1 %v11372_v37, %s10318_s29 }
0x2e62   :  { %7553 = vmax.xlane.f32.xlu1 %v7552_v20 }
0x2e73   :  { %6709 = vrot.lane.b32.xlu1 %v11372_v37, %s10319_s30 }
0x2e77   :  { %6881 = vrot.lane.b32.xlu1 %v11372_v37, %s10320_s1 }
0x2e7b   :  { %7051 = vrot.lane.b32.xlu1 %v11386_v38, %s10318_s29  ;;  %s11614_s29 = sld [smem:[%s11794_s0 + %s10352_s26]]  }
0x2e7c   :  { %s8858_s26 = sld [smem:[%s11794_s0 + %s10358_s23]]  }
0x2ea2   :  { %v6360_v41 = vpop.xlane.xlu0 %6359 }
0x2ea3   :  { %v6361_v1 = vsub.f32 %v6355_v63, %v6360_v41  ;;  %v6528_v8 = vpop.xlane.xlu1 %6527 }
0x2ea4   :  { %v6529_v0 = vsub.f32 %v6523_v4, %v6528_v8 }
0x2ea5   :  { %v6362_v32 = vmul.f32 1.442695, %v6361_v1 }
0x2ea6   :  { %v6530_v33 = vmul.f32 1.442695, %v6529_v0 }
0x2ea7   :  { %10258 = vpow2.f32 %v6362_v32 }
0x2ea8   :  { %10260 = vpow2.f32 %v6530_v33 }
0x2eaa   :  { %v6700_v14 = vpop.xlane.xlu0 %6699 }
0x2eab   :  { %v6701_v51 = vsub.f32 %v11448_v54, %v6700_v14 }
0x2ead   :  { %v6702_v53 = vmul.f32 1.442695, %v6701_v51 }
0x2eae   :  { %v6872_v35 = vpop.xlane.xlu0 %6871 }
0x2eaf   :  { %v6873_v24 = vsub.f32 %v6867_v10, %v6872_v35 }
0x2eb1   :  { %v6874_v36 = vmul.f32 1.442695, %v6873_v24 }
0x2eb2   :  { %v7042_v52 = vpop.xlane.xlu0 %7041 }
0x2eb3   :  { %10262 = vpow2.f32 %v6874_v36  ;;  %v7043_v28 = vsub.f32 %v7037_v16, %v7042_v52 }
0x2eb4   :  { %v10259_v39 = vpop.eup %10258  ;;  %10264 = vpow2.f32 %v6702_v53 }
0x2eb5   :  { %v11470_v42 = vpop.eup %10260  ;;  %v6364_v43 = vsel %vm358_vm3, %v10259_v39, 0.0  ;;  %v7044_v61 = vmul.f32 1.442695, %v7043_v28 }
0x2eb6   :  { %v7210_v44 = vpop.xlane.xlu1 %7209  ;;  %6365 = vadd.xlane.f32.xlu0 %v6364_v43  ;;  %v6532_v45 = vsel %vm358_vm3, %v11470_v42, 0.0 }
0x2eb7   :  { %6533 = vadd.xlane.f32.xlu1 %v6532_v45  ;;  %10266 = vpow2.f32 %v7044_v61  ;;  %v7211_v63 = vsub.f32 %v7205_v12, %v7210_v44  ;;  %v9032_v61 = vld [vmem:[%s11258_s20 + $0x38] sm:$0xff] }
0x2eb8   :  { %9951 = vmatprep.subr.mxu0 %v9032_v61 }
0x2eb9   :  { %v7212_v4 = vmul.f32 1.442695, %v7211_v63  ;;  %9952 = vmatpush3.msra.mxu0 %v9032_v61  ;;  %v9046_v61 = vld [vmem:[%s11317_s8 + $0x68] sm:$0xff] }
0x2eba   :  { %v6370_v46 = vpop.permute.xlu1 %6369  ;;  %v7382_v30 = vpop.xlane.xlu0 %7381 }
0x2ebb   :  { %9877 = vmatpush3.msra.mxu1 %v6370_v46  ;;  %v7383_v62 = vsub.f32 %v7377_v25, %v7382_v30 }
0x2ebc   :  { %9886 = vmatprep.subr.mxu1 %v10307_v34 }
0x2ebd   :  { %v7384_v2 = vmul.f32 1.442695, %v7383_v62  ;;  %v9031_v62 = vld [vmem:[%s11258_s20 + $0x30] sm:$0xff] }
0x2ebe   :  { %9953 = vmatprep.subr.mxu0 %v9031_v62 }
0x2ebf   :  { %10268 = vpow2.f32 %v7384_v2  ;;  %v9030_v2 = vld [vmem:[%s11258_s20 + $0x28] sm:$0xff]  ;;  %9954 = vmatpush3.msra.mxu0 %v9031_v62  ;;  %v9045_v62 = vld [vmem:[%s11317_s8 + $0x60] sm:$0xff] }
0x2ec0   :  { %v11476_v48 = vpop.eup %10262  ;;  %10270 = vpow2.f32 %v7212_v4  ;;  %9955 = vmatprep.subr.mxu0 %v9030_v2 }
0x2ec1   :  { %v6876_v50 = vsel %vm358_vm3, %v11476_v48, 0.0  ;;  %v10265_v22 = vpop.eup %10264  ;;  %9956 = vmatpush3.msra.mxu0 %v9030_v2  ;;  %v9043_v2 = vld [vmem:[%s11317_s8 + $0x50] sm:$0xff] }
0x2ec2   :  { %6877 = vadd.xlane.f32.xlu1 %v6876_v50 }
0x2ec4   :  { %v11486_v47 = vpop.eup %10266 }
0x2ec5   :  { %v7046_v54 = vsel %vm358_vm3, %v11486_v47, 0.0 }
0x2ecc   :  { %6537 = vrot.lane.b32.xlu0 %v11372_v37, %s10321_s2  ;;  %v6704_v37 = vsel %vm358_vm3, %v10265_v22, 0.0  ;;  %v11490_v6 = vpop.eup %10268 }
0x2ecd   :  { %v7386_v55 = vsel %vm358_vm3, %v11490_v6, 0.0  ;;  %v10271_v7 = vpop.eup %10270 }
0x2ece   :  { %v7214_v10 = vsel %vm358_vm3, %v10271_v7, 0.0 }
0x2ed3   :  { %7219 = vrot.lane.b32.xlu1 %v11386_v38, %s10321_s2  ;;  %s10360_s2 = smov 44  }
0x2eeb   :  { %v7554_v31 = vpop.xlane.xlu1 %7553  ;;  %6705 = vadd.xlane.f32.xlu0 %v6704_v37 }
0x2eec   :  { %v7555_v49 = vsub.f32 %v7549_v60, %v7554_v31 }
0x2eee   :  { %v7556_v5 = vmul.f32 1.442695, %v7555_v49 }
0x2eef   :  { %7047 = vadd.xlane.f32.xlu0 %v7046_v54  ;;  %v6710_v15 = vpop.permute.xlu1 %6709 }
0x2ef0   :  { %10272 = vpow2.f32 %v7556_v5 }
0x2ef3   :  { %7387 = vadd.xlane.f32.xlu0 %v7386_v55  ;;  %v6882_v16 = vpop.permute.xlu1 %6881 }
0x2ef7   :  { %7215 = vadd.xlane.f32.xlu1 %v7214_v10  ;;  %v7052_v17 = vpop.permute.xlu1 %7051 }
0x2efd   :  { %v11495_v11 = vpop.eup %10272 }
0x2efe   :  { %v7558_v13 = vsel %vm358_vm3, %v11495_v11, 0.0 }
0x2eff   :  { %7559 = vadd.xlane.f32.xlu0 %v7558_v13 }
0x2f08   :  { %7563 = vrot.lane.b32.xlu1 %v11386_v38, %s10320_s1 }
0x2f15   :  { %7391 = vrot.lane.b32.xlu0 %v11386_v38, %s10319_s30  ;;  %s10353_s30 = smov 34  }
0x2f3f   :  { %v6366_v18 = vpop.xlane.xlu0 %6365 }
0x2f40   :  { %10274 = vrcp.f32 %v6366_v18  ;;  %v6534_v19 = vpop.xlane.xlu1 %6533 }
0x2f41   :  { %10276 = vrcp.f32 %v6534_v19 }
0x2f43   :  { %v6538_v59 = vpop.permute.xlu0 %6537 }
0x2f4b   :  { %v6878_v25 = vpop.xlane.xlu1 %6877 }
0x2f4d   :  { %v10275_v12 = vpop.eup %10274 }
0x2f4e   :  { %v6368_v21 = vmul.f32 %v10275_v12, %v10259_v39  ;;  %v10277_v23 = vpop.eup %10276 }
0x2f4f   :  { %v6536_v38 = vmul.f32 %v10277_v23, %v11470_v42  ;;  %v7220_v27 = vpop.permute.xlu1 %7219 }
0x2f50   :  { %9879 = vmatmul.mubr.msk.f32.vlgmr.msra.gmra.mxu1 %vm358_vm3, %v6368_v21 }
0x2f51   :  { %9887 = vmatpush3.msra.mxu1 %v6538_v59  ;;  %9888 = vmatprep.mubr.msk.f32.mxu1 %vm10309_vm2, %v10307_v34 }
0x2f52   :  { %9896 = vmatprep.subr.mxu1 %v10307_v34 }
0x2f54   :  { %9889 = vmatmul.mubr.msk.f32.vlgmr.msra.gmra.mxu1 %vm358_vm3, %v6536_v38 }
0x2f55   :  { %9897 = vmatpush3.msra.mxu1 %v6710_v15  ;;  %9898 = vmatprep.mubr.msk.f32.mxu1 %vm10309_vm2, %v10307_v34 }
0x2f56   :  { %9906 = vmatprep.subr.mxu1 %v10307_v34 }
0x2f74   :  { %v6706_v26 = vpop.xlane.xlu0 %6705 }
0x2f75   :  { %10278 = vrcp.f32 %v6706_v26 }
0x2f76   :  { %10280 = vrcp.f32 %v6878_v25 }
0x2f78   :  { %v7048_v9 = vpop.xlane.xlu0 %7047 }
0x2f79   :  { %10282 = vrcp.f32 %v7048_v9 }
0x2f7c   :  { %v7388_v29 = vpop.xlane.xlu0 %7387 }
0x2f80   :  { %v7216_v60 = vpop.xlane.xlu1 %7215 }
0x2f81   :  { %10284 = vrcp.f32 %v7216_v60 }
0x2f82   :  { %v10279_v20 = vpop.eup %10278  ;;  %10286 = vrcp.f32 %v7388_v29 }
0x2f83   :  { %v6708_v41 = vmul.f32 %v10279_v20, %v10265_v22  ;;  %v10281_v1 = vpop.eup %10280  ;;  %v9029_v22 = vld [vmem:[%s11258_s20 + $0x20] sm:$0xff] }
0x2f84   :  { %v6880_v8 = vmul.f32 %v10281_v1, %v11476_v48  ;;  %v7564_v42 = vpop.permute.xlu1 %7563  ;;  %9957 = vmatprep.subr.mxu0 %v9029_v22  ;;  %v9039_v1 = vld [vmem:[%s11294_s9 + $0x38] sm:$0xff] }
0x2f85   :  { %9899 = vmatmul.mubr.msk.f32.vlgmr.msra.gmra.mxu1 %vm358_vm3, %v6708_v41  ;;  %9958 = vmatpush3.msra.mxu0 %v9029_v22  ;;  %v9041_v22 = vld [vmem:[%s11317_s8 + $0x40] sm:$0xff] }
0x2f86   :  { %9907 = vmatpush3.msra.mxu1 %v6882_v16  ;;  %9908 = vmatprep.mubr.msk.f32.mxu1 %vm10309_vm2, %v10307_v34  ;;  %v10283_v0 = vpop.eup %10282  ;;  %v9079_v16 = vld [vmem:[%s11274_s18 + $0x1] ss:$0 sm:$0xff] }
0x2f87   :  { %9916 = vmatprep.subr.mxu1 %v10307_v34  ;;  %v7050_v33 = vmul.f32 %v10283_v0, %v11486_v47  ;;  %v9037_v0 = vld [vmem:[%s11294_s9 + $0x28] sm:$0xff] }
0x2f88   :  { %v7560_v32 = vpop.xlane.xlu0 %7559 }
0x2f89   :  { %10288 = vrcp.f32 %v7560_v32  ;;  %9909 = vmatmul.mubr.msk.f32.vlgmr.msra.gmra.mxu1 %vm358_vm3, %v6880_v8  ;;  %v9038_v8 = vld [vmem:[%s11294_s9 + $0x30] sm:$0xff]  ;;  %v9036_v32 = vld [vmem:[%s11294_s9 + $0x20] sm:$0xff]  ;;  %s11643_s9 = sld [smem:[%s11794_s0 + %s10355_s13]]  }
0x2f8a   :  { %9917 = vmatpush3.msra.mxu1 %v7052_v17  ;;  %9918 = vmatprep.mubr.msk.f32.mxu1 %vm10309_vm2, %v10307_v34 }
0x2f8b   :  { %9926 = vmatprep.subr.mxu1 %v10307_v34 }
0x2f8c   :  { %v7392_v36 = vpop.permute.xlu0 %7391 }
0x2f8d   :  { %9919 = vmatmul.mubr.msk.f32.vlgmr.msra.gmra.mxu1 %vm358_vm3, %v7050_v33 }
0x2f8e   :  { %v10285_v14 = vpop.eup %10284  ;;  %9927 = vmatpush3.msra.mxu1 %v7220_v27  ;;  %9928 = vmatprep.mubr.msk.f32.mxu1 %vm10309_vm2, %v10307_v34 }
0x2f8f   :  { %9936 = vmatprep.subr.mxu1 %v10307_v34  ;;  %v7218_v35 = vmul.f32 %v10285_v14, %v10271_v7  ;;  %v10287_v24 = vpop.eup %10286 }
0x2f90   :  { %v7390_v39 = vmul.f32 %v10287_v24, %v11490_v6 }
0x2f91   :  { %9929 = vmatmul.mubr.msk.f32.vlgmr.msra.gmra.mxu1 %vm358_vm3, %v7218_v35 }
0x2f92   :  { %9937 = vmatpush3.msra.mxu1 %v7392_v36  ;;  %9938 = vmatprep.mubr.msk.f32.mxu1 %vm10309_vm2, %v10307_v34 }
0x2f93   :  { %9946 = vmatprep.subr.mxu1 %v10307_v34 }
0x2f95   :  { %9939 = vmatmul.mubr.msk.f32.vlgmr.msra.gmra.mxu1 %vm358_vm3, %v7390_v39 }
0x2f96   :  { %v10289_v43 = vpop.eup %10288  ;;  %9947 = vmatpush3.msra.mxu1 %v7564_v42  ;;  %9948 = vmatprep.mubr.msk.f32.mxu1 %vm10309_vm2, %v10307_v34 }
0x2f97   :  { %v7562_v44 = vmul.f32 %v10289_v43, %v11495_v11  ;;  %9962 = vmatprep.subr.mxu1 %v9039_v1  ;;  %v9082_v43 = vld [vmem:[%s11303_s7 + $0x1] ss:$0 sm:$0xff] }
0x2f99   :  { %9949 = vmatmul.mubr.msk.f32.vlgmr.msra.gmra.mxu1 %vm358_vm3, %v7562_v44 }
0x2f9a   :  { %9963 = vmatpush3.msra.mxu1 %v9039_v1 }
0x2f9b   :  { %9964 = vmatprep.subr.mxu1 %v9038_v8 }
0x2f9c   :  { %9965 = vmatpush3.msra.mxu1 %v9038_v8  ;;  %v8079_v8 = vld [vmem:[%s8851_s25 + $0x18] sm:$0xff] }
0x2f9d   :  { %9966 = vmatprep.subr.mxu1 %v9037_v0 }
0x2f9e   :  { %9967 = vmatpush3.msra.mxu1 %v9037_v0  ;;  %v8078_v0 = vld [vmem:[%s8851_s25 + $0x10] sm:$0xff] }
0x2f9f   :  { %9968 = vmatprep.subr.mxu1 %v9036_v32 }
0x2fa0   :  { %9969 = vmatpush3.msra.mxu1 %v9036_v32  ;;  %v8077_v32 = vld [vmem:[%s8851_s25 + $0x8] sm:$0xff] }
0x2fa1   :  { %9992 = vmatprep.subr.mxu1 %v10307_v34 }
0x3010   :  { %v6441_v45 = vpop.f32.mrf.mxu1 }
0x3011   :  { %6445 = vst.msk [vmem:[#allocation3] sm:$0xff] %vm358_vm3, %v6441_v45  ;;  %v9083_v45 = vld [vmem:[%s11308_s11 + $0x1] ss:$0 sm:$0xff] }
0x3012   :  { %v9880_v46 = vpop.f32.mrf.mxu1 }
0x3014   :  { %v6609_v48 = vpop.f32.mrf.mxu1 }
0x3015   :  { %6614 = vrot.lane.b32.xlu0 %v6609_v48, %s10322_s3 }
0x3016   :  { %v9890_v50 = vpop.f32.mrf.mxu1 }
0x3045   :  { %v6781_v51 = vpop.f32.mrf.mxu1 }
0x3046   :  { %6786 = vrot.lane.b32.xlu1 %v6781_v51, %s10323_s4 }
0x3047   :  { %v9900_v52 = vpop.f32.mrf.mxu1 }
0x3049   :  { %v6953_v53 = vpop.f32.mrf.mxu1 }
0x304a   :  { %6958 = vrot.lane.b32.xlu1 %v6953_v53, %s10325_s10 }
0x304b   :  { %v9910_v28 = vpop.f32.mrf.mxu1 }
0x304c   :  { %v9048_v28 = vld [vmem:[%s11317_s8 + $0x78] sm:$0xff] }
0x304d   :  { %v7123_v30 = vpop.f32.mrf.mxu1  ;;  %9973 = vmatprep.subr.mxu0 %v9048_v28 }
0x304e   :  { %7127 = vst.msk [vmem:[#allocation3 + $0x8] sm:$0xff] %vm358_vm3, %v7123_v30  ;;  %v9047_v30 = vld [vmem:[%s11317_s8 + $0x70] sm:$0xff] }
0x304f   :  { %v9920_v63 = vpop.f32.mrf.mxu1 }
0x3050   :  { %v9044_v63 = vld [vmem:[%s11317_s8 + $0x58] sm:$0xff] }
0x3051   :  { %v7291_v4 = vpop.f32.mrf.mxu1 }
0x3052   :  { %7296 = vrot.lane.b32.xlu0 %v7291_v4, %s10322_s3  ;;  %v9042_v4 = vld [vmem:[%s11317_s8 + $0x48] sm:$0xff]  ;;  %s11653_s8 = sld [smem:[%s11794_s0 + %s10320_s1]]   ;;  %s10356_s1 = smov 39  }
0x3053   :  { %v9930_v37 = vpop.f32.mrf.mxu1  ;;  %s8854_s17 = sld [smem:[%s11794_s0 + %s10356_s1]]  }
0x3054   :  { %v9084_v37 = vld [vmem:[%s11331_s12 + $0x1] ss:$0 sm:$0xff] }
0x3055   :  { %v7463_v47 = vpop.f32.mrf.mxu1 }
0x3056   :  { %7468 = vrot.lane.b32.xlu0 %v7463_v47, %s10323_s4  ;;  %s8849_s4 = sld [smem:[%s11794_s0 + %s10353_s30]]  }
0x3057   :  { %v9940_v31 = vpop.f32.mrf.mxu1  ;;  %s8856_s30 = sld [smem:[%s11794_s0 + %s10359_s27]]  }
0x3059   :  { %v7635_v49 = vpop.f32.mrf.mxu1 }
0x305a   :  { %7640 = vrot.lane.b32.xlu1 %v7635_v49, %s10325_s10  ;;  %s10354_s10 = smov 35  }
0x305b   :  { %v9950_v5 = vpop.f32.mrf.mxu1  ;;  %s8850_s5 = sld [smem:[%s11794_s0 + %s10354_s10]]  }
0x305c   :  { %s8859_s10 = sld [smem:[%s11794_s0 + %s10360_s2]]  }
0x3087   :  { %v6615_v54 = vpop.permute.xlu0 %6614 }
0x3088   :  { %6617 = vst.msk [vmem:[#allocation3] sm:$0xff] %vm692_vm5, %v6615_v54 }
0x30b8   :  { %v6787_v6 = vpop.permute.xlu1 %6786 }
0x30b9   :  { %6789 = vst.msk [vmem:[#allocation3] sm:$0xff] %vm865_vm6, %v6787_v6 }
0x30bc   :  { %v6959_v55 = vpop.permute.xlu1 %6958 }
0x30bd   :  { %6961 = vst.msk [vmem:[#allocation3] sm:$0xff] %vm1038_vm7, %v6959_v55 }
0x30c4   :  { %v7297_v7 = vpop.permute.xlu0 %7296  ;;  %v7644_v10 = vld [vmem:[#allocation3] sm:$0xff] }
0x30c5   :  { %7299 = vst.msk [vmem:[#allocation3 + $0x8] sm:$0xff] %vm692_vm5, %v7297_v7  ;;  %9959 = vmatprep.mubr.msk.f32.mxu0 %vm220_vm0, %v7644_v10 }
0x30c8   :  { %v7469_v11 = vpop.permute.xlu0 %7468 }
0x30c9   :  { %7471 = vst.msk [vmem:[#allocation3 + $0x8] sm:$0xff] %vm865_vm6, %v7469_v11 }
0x30cc   :  { %v7641_v13 = vpop.permute.xlu1 %7640 }
0x30cd   :  { %7643 = vst.msk [vmem:[#allocation3 + $0x8] sm:$0xff] %vm1038_vm7, %v7641_v13 }
0x30d4   :  { %v7645_v15 = vld [vmem:[#allocation3 + $0x8] sm:$0xff] }
0x30d5   :  { %9960 = vmatmul.mubr.msk.f32.vlgmr.msra.gmra.mxu0 %vm220_vm0, %v7645_v15 }
0x30d6   :  { %9974 = vmatpush3.msra.mxu0 %v9048_v28  ;;  %v9095_v28 = vld [vmem:[%s8850_s5] ss:$0 sm:$0xff] }
0x30d7   :  { %9975 = vmatprep.subr.mxu0 %v9047_v30 }
0x30d8   :  { %9976 = vmatpush3.msra.mxu0 %v9047_v30 }
0x30d9   :  { %9977 = vmatprep.subr.mxu0 %v9046_v61 }
0x30da   :  { %9978 = vmatpush3.msra.mxu0 %v9046_v61 }
0x30db   :  { %9979 = vmatprep.subr.mxu0 %v9045_v62 }
0x30dc   :  { %9980 = vmatpush3.msra.mxu0 %v9045_v62  ;;  %v8181_v62 = vld [vmem:[%s11614_s29 + $0x60] sm:$0xff] }
0x30dd   :  { %9981 = vmatprep.subr.mxu0 %v9044_v63 }
0x30de   :  { %9982 = vmatpush3.msra.mxu0 %v9044_v63  ;;  %v8178_v63 = vld [vmem:[%s11614_s29 + $0x48] sm:$0xff] }
0x30df   :  { %9983 = vmatprep.subr.mxu0 %v9043_v2 }
0x30e0   :  { %9984 = vmatpush3.msra.mxu0 %v9043_v2  ;;  %v8177_v2 = vld [vmem:[%s11614_s29 + $0x40] sm:$0xff] }
0x30e1   :  { %9985 = vmatprep.subr.mxu0 %v9042_v4 }
0x30e2   :  { %9986 = vmatpush3.msra.mxu0 %v9042_v4  ;;  %v8174_v4 = vld [vmem:[%s11614_s29 + $0x28] sm:$0xff] }
0x30e3   :  { %9987 = vmatprep.subr.mxu0 %v9041_v22 }
0x30e4   :  { %9988 = vmatpush3.msra.mxu0 %v9041_v22  ;;  %v8173_v22 = vld [vmem:[%s11614_s29 + $0x20] sm:$0xff] }
0x3195   :  { %v9961_v17 = vpop.f32.mrf.mxu0 }
0x3196   :  { %v7730_v18 = vadd.f32 %v9961_v17, %v9079_v16 }
0x3197   :  { %v7724_v19 = vpop.f32.mrf.mxu0 }
0x3198   :  { %v11558_v12 = vadd.f32 %v7730_v18, %v11345_v3  ;;  %v7725_v21 = vadd.f32 %v9079_v16, %v7724_v19 }
0x319a   :  { %v11561_v23 = vadd.f32 %v7725_v21, %v11348_v40  ;;  %v7738_v59 = vsel %vm220_vm0, %v11558_v12, 0.0  ;;  %v9089_v21 = vld [vmem:[%s11341_s14 + $0x1] ss:$0 sm:$0xff] }
0x319b   :  { %7739 = vadd.xlane.f32.xlu1 %v7738_v59  ;;  %v7969_v59 = vmul.u32 8, %v10489_v57 }
0x319c   :  { %v7735_v38 = vsel %vm220_vm0, %v11561_v23, 0.0 }
0x319d   :  { %7736 = vadd.xlane.f32.xlu0 %v7735_v38  ;;  %vm7970_vm11 = vcmp.eq.s32.totalorder %v10491_v58, %v7969_v59  ;;  %v8153_v59 = vld [vmem:[%s11643_s9] sm:$0xff] }
0x3224   :  { %v7740_v25 = vpop.xlane.xlu1 %7739 }
0x3225   :  { %v7742_v26 = vmul.f32 0.03125, %v7740_v25 }
0x3226   :  { %v7737_v9 = vpop.xlane.xlu0 %7736 }
0x3227   :  { %v7741_v3 = vmul.f32 0.03125, %v7737_v9  ;;  %v7744_v27 = vsub.f32 %v11558_v12, %v7742_v26 }
0x3229   :  { %v7743_v40 = vsub.f32 %v11561_v23, %v7741_v3  ;;  %v7746_v20 = vmul.f32 %v7744_v27, %v7744_v27 }
0x322b   :  { %v7745_v29 = vmul.f32 %v7743_v40, %v7743_v40  ;;  %v7750_v41 = vsel %vm220_vm0, %v7746_v20, 0.0 }
0x322d   :  { %v7747_v60 = vsel %vm220_vm0, %v7745_v29, 0.0 }
0x322e   :  { %7748 = vadd.xlane.f32.xlu0 %v7747_v60 }
0x3232   :  { %7751 = vadd.xlane.f32.xlu0 %v7750_v41 }
0x32b7   :  { %v7749_v33 = vpop.xlane.xlu0 %7748 }
0x32b8   :  { %v7753_v14 = vmul.f32 0.03125, %v7749_v33  ;;  %v8076_v33 = vld [vmem:[%s8851_s25] sm:$0xff] }
0x32ba   :  { %v7755_v35 = vadd.f32 1e-05, %v7753_v14  ;;  %v8182_v14 = vld [vmem:[%s11614_s29 + $0x68] sm:$0xff] }
0x32bb   :  { %v7752_v24 = vpop.xlane.xlu0 %7751 }
0x32bc   :  { %10290 = vrsqrt.f32 %v7755_v35  ;;  %v7754_v36 = vmul.f32 0.03125, %v7752_v24  ;;  %v8184_v35 = vld [vmem:[%s11614_s29 + $0x78] sm:$0xff]  ;;  %v8183_v24 = vld [vmem:[%s11614_s29 + $0x70] sm:$0xff] }
0x32bd   :  { %8283 = vmatprep.subr.mxu0 %v8184_v35  ;;  %v8531_v35 = vld [vmem:[%s11653_s8 + $0xd0] sm:$0xff] }
0x32be   :  { %v7756_v39 = vadd.f32 1e-05, %v7754_v36  ;;  %v8180_v36 = vld [vmem:[%s11614_s29 + $0x58] sm:$0xff] }
0x32c0   :  { %10292 = vrsqrt.f32 %v7756_v39  ;;  %v8179_v39 = vld [vmem:[%s11614_s29 + $0x50] sm:$0xff] }
0x32c9   :  { %v10291_v42 = vpop.eup %10290 }
0x32ca   :  { %v7759_v44 = vmul.f32 %v10291_v42, %v7743_v40  ;;  %v9092_v40 = vsel %vm7970_vm11, 1.0, %v10307_v34  ;;  %v8176_v42 = vld [vmem:[%s11614_s29 + $0x38] sm:$0xff] }
0x32cc   :  { %v7767_v46 = vmul.f32 %v9082_v43, %v7759_v44  ;;  %v8172_v44 = vld [vmem:[%s11614_s29 + $0x18] sm:$0xff] }
0x32cd   :  { %v10293_v48 = vpop.eup %10292 }
0x32ce   :  { %v7760_v50 = vmul.f32 %v10293_v48, %v7744_v27  ;;  %v7775_v51 = vadd.f32 %v9083_v45, %v7767_v46 }
0x32d0   :  { %v7768_v52 = vmul.f32 %v9082_v43, %v7760_v50  ;;  %9970 = vmatprep.mubr.msk.f32.mxu1 %vm220_vm0, %v7775_v51  ;;  %v8175_v43 = vld [vmem:[%s11614_s29 + $0x30] sm:$0xff] }
0x32d2   :  { %v7776_v53 = vadd.f32 %v9083_v45, %v7768_v52  ;;  %v8171_v45 = vld [vmem:[%s11614_s29 + $0x10] sm:$0xff]  ;;  %v9094_v52 = vld [vmem:[%s8849_s4] ss:$0 sm:$0xff] }
0x32d4   :  { %9971 = vmatmul.mubr.msk.f32.vlgmr.msra.gmra.mxu1 %vm220_vm0, %v7776_v53 }
0x32d5   :  { %9996 = vmatprep.mubr.msk.f32.mxu1 %vm10309_vm2, %v10307_v34 }
0x3394   :  { %v9972_v47 = vpop.f32.mrf.mxu1 }
0x3395   :  { %v7861_v31 = vadd.f32 %v9972_v47, %v9084_v37  ;;  %v8169_v47 = vld [vmem:[%s11614_s29] sm:$0xff] }
0x3396   :  { %v7855_v49 = vpop.f32.mrf.mxu1 }
0x3397   :  { %v9088_v5 = vmul.f32 -1.702, %v7861_v31  ;;  %v7856_v54 = vadd.f32 %v9084_v37, %v7855_v49  ;;  %v8170_v37 = vld [vmem:[%s11614_s29 + $0x8] sm:$0xff]  ;;  %v8168_v49 = vld [vmem:[%s11643_s9 + $0x78] sm:$0xff] }
0x3399   :  { %v7870_v6 = vmul.f32 1.442695, %v9088_v5  ;;  %v9087_v55 = vmul.f32 -1.702, %v7856_v54  ;;  %v8165_v5 = vld [vmem:[%s11643_s9 + $0x60] sm:$0xff] }
0x339b   :  { %10294 = vpow2.f32 %v7870_v6  ;;  %v7868_v7 = vmul.f32 1.442695, %v9087_v55  ;;  %v8162_v55 = vld [vmem:[%s11643_s9 + $0x48] sm:$0xff] }
0x339d   :  { %10296 = vpow2.f32 %v7868_v7  ;;  %v8164_v7 = vld [vmem:[%s11643_s9 + $0x58] sm:$0xff] }
0x33a8   :  { %v10295_v10 = vpop.eup %10294 }
0x33a9   :  { %v7873_v11 = vadd.f32 1.0, %v10295_v10  ;;  %v8161_v10 = vld [vmem:[%s11643_s9 + $0x40] sm:$0xff] }
0x33aa   :  { %v10297_v13 = vpop.eup %10296 }
0x33ab   :  { %v7872_v15 = vadd.f32 1.0, %v10297_v13  ;;  %10298 = vrcp.f32 %v7873_v11  ;;  %v8163_v11 = vld [vmem:[%s11643_s9 + $0x50] sm:$0xff] }
0x33ad   :  { %10300 = vrcp.f32 %v7872_v15  ;;  %v8158_v15 = vld [vmem:[%s11643_s9 + $0x28] sm:$0xff] }
0x33b8   :  { %v10299_v16 = vpop.eup %10298 }
0x33b9   :  { %v7879_v19 = vmul.f32 %v10299_v16, %v7861_v31  ;;  %v8166_v31 = vld [vmem:[%s11643_s9 + $0x68] sm:$0xff]  ;;  %v8160_v16 = vld [vmem:[%s11643_s9 + $0x38] sm:$0xff] }
0x33ba   :  { %v10301_v17 = vpop.eup %10300 }
0x33bb   :  { %v7878_v18 = vmul.f32 %v10301_v17, %v7856_v54  ;;  %v8167_v54 = vld [vmem:[%s11643_s9 + $0x70] sm:$0xff]  ;;  %v8157_v17 = vld [vmem:[%s11643_s9 + $0x20] sm:$0xff] }
0x33bd   :  { %9989 = vmatprep.mubr.msk.f32.mxu0 %vm1964_vm8, %v7878_v18  ;;  %v8159_v18 = vld [vmem:[%s11643_s9 + $0x30] sm:$0xff] }
0x33be   :  { %9990 = vmatmul.mubr.msk.f32.vlgmr.msra.gmra.mxu0 %vm1964_vm8, %v7879_v19  ;;  %v8154_v19 = vld [vmem:[%s11643_s9 + $0x8] sm:$0xff] }
0x33bf   :  { %8323 = vmatprep.mubr.f32.mxu0 %v10307_v34  ;;  %8284 = vmatpush1.msra.mxu0 %v8183_v24  ;;  %v8563_v24 = vld [vmem:[%s11653_s8 + $0x1d0] sm:$0xff] }
0x33c0   :  { %8285 = vmatprep.subr.mxu0 %v8180_v36  ;;  %v8515_v36 = vld [vmem:[%s11653_s8 + $0x50] sm:$0xff] }
0x33c1   :  { %8286 = vmatpush1.msra.mxu0 %v8179_v39  ;;  %v8547_v39 = vld [vmem:[%s11653_s8 + $0x150] sm:$0xff] }
0x33c2   :  { %8287 = vmatprep.subr.mxu0 %v8176_v42  ;;  %v8530_v42 = vld [vmem:[%s11653_s8 + $0xc8] sm:$0xff] }
0x33c3   :  { %8288 = vmatpush1.msra.mxu0 %v8175_v43  ;;  %v8562_v43 = vld [vmem:[%s11653_s8 + $0x1c8] sm:$0xff] }
0x33c4   :  { %8289 = vmatprep.subr.mxu0 %v8172_v44  ;;  %v8514_v44 = vld [vmem:[%s11653_s8 + $0x48] sm:$0xff] }
0x33c5   :  { %8290 = vmatpush1.msra.mxu0 %v8171_v45  ;;  %v8546_v45 = vld [vmem:[%s11653_s8 + $0x148] sm:$0xff] }
0x33c6   :  { %8428 = vmatprep.subr.mxu0 %v8168_v49  ;;  %v8557_v49 = vld [vmem:[%s11653_s8 + $0x1a0] sm:$0xff] }
0x347e   :  { %v9991_v38 = vpop.f32.mrf.mxu0 }
0x347f   :  { %v7964_v25 = vadd.f32 %v9991_v38, %v9089_v21  ;;  %v8155_v38 = vld [vmem:[%s11643_s9 + $0x10] sm:$0xff] }
0x3480   :  { %v7958_v26 = vpop.f32.mrf.mxu0 }
0x3481   :  { %v7968_v9 = vadd.f32 %v7964_v25, %v11558_v12  ;;  %v7959_v3 = vadd.f32 %v9089_v21, %v7958_v26  ;;  %v8156_v21 = vld [vmem:[%s11643_s9 + $0x18] sm:$0xff] }
0x3482   :  { %v8536_v25 = vld [vmem:[%s11653_s8 + $0xf8] sm:$0xff] }
0x3483   :  { %v7967_v27 = vadd.f32 %v7959_v3, %v11561_v23  ;;  %9993 = vmatpush3.msra.mxu1 %v7968_v9  ;;  %v8568_v26 = vld [vmem:[%s11653_s8 + $0x1f8] sm:$0xff] }
0x3484   :  { %9994 = vmatprep.subr.mxu1 %v10307_v34  ;;  %v8520_v9 = vld [vmem:[%s11653_s8 + $0x78] sm:$0xff] }
0x3485   :  { %9995 = vmatpush3.msra.mxu1 %v7967_v27  ;;  %v8552_v3 = vld [vmem:[%s11653_s8 + $0x178] sm:$0xff]  ;;  %v8535_v27 = vld [vmem:[%s11653_s8 + $0xf0] sm:$0xff] }
0x3486   :  { %9997 = vmatmul.mubr.msk.f32.vlgmr.msra.gmra.mxu1 %vm3953_vm9, %v9092_v40  ;;  %9999 = vmatprep.subr.mxu1 %v10307_v34  ;;  %v8567_v40 = vld [vmem:[%s11653_s8 + $0x1f0] sm:$0xff] }
0x3487   :  { %10007 = vmatprep.mubr.msk.f32.mxu1 %vm10309_vm2, %v10307_v34  ;;  %10000 = vmatpush3.msra.mxu1 %v8079_v8  ;;  %v8549_v8 = vld [vmem:[%s11653_s8 + $0x160] sm:$0xff] }
0x3488   :  { %10001 = vmatprep.subr.mxu1 %v10307_v34 }
0x3489   :  { %10002 = vmatpush3.msra.mxu1 %v8078_v0  ;;  %v8532_v0 = vld [vmem:[%s11653_s8 + $0xd8] sm:$0xff] }
0x348a   :  { %10003 = vmatprep.subr.mxu1 %v10307_v34 }
0x348b   :  { %10004 = vmatpush3.msra.mxu1 %v8077_v32  ;;  %v8564_v32 = vld [vmem:[%s11653_s8 + $0x1d8] sm:$0xff] }
0x348c   :  { %10005 = vmatprep.subr.mxu1 %v10307_v34 }
0x348d   :  { %10006 = vmatpush3.msra.mxu1 %v8076_v33  ;;  %v8516_v33 = vld [vmem:[%s11653_s8 + $0x58] sm:$0xff] }
0x348e   :  { %8212 = vmatprep.subr.mxu1 %v8182_v14  ;;  %v8548_v14 = vld [vmem:[%s11653_s8 + $0x158] sm:$0xff] }
0x3546   :  { %v8042_v58 = vpop.f32.mrf.mxu1 }
0x3547   :  { %v8049_v29 = vsel %vm8048_vm12, %v8042_v58, 0.0 }
0x3548   :  { %8050 = vadd.xlane.f32.xlu0 %v8049_v29  ;;  %v9998_v12 = vpop.f32.mrf.mxu1  ;;  %v8551_v29 = vld [vmem:[%s11653_s8 + $0x170] sm:$0xff] }
0x3549   :  { %v8534_v12 = vld [vmem:[%s11653_s8 + $0xe8] sm:$0xff] }
0x35d1   :  { %v8051_v60 = vpop.xlane.xlu0 %8050 }
0x35d2   :  { %v8052_v23 = vmul.f32 0.03125, %v8051_v60  ;;  %v8566_v60 = vld [vmem:[%s11653_s8 + $0x1e8] sm:$0xff] }
0x35d4   :  { %v8053_v20 = vsub.f32 %v8042_v58, %v8052_v23  ;;  %v8519_v58 = vld [vmem:[%s11653_s8 + $0x70] sm:$0xff]  ;;  %v8518_v23 = vld [vmem:[%s11653_s8 + $0x68] sm:$0xff] }
0x35d6   :  { %v8054_v41 = vmul.f32 %v8053_v20, %v8053_v20 }
0x35d8   :  { %v8055_v1 = vsel %vm8048_vm12, %v8054_v41, 0.0  ;;  %v8565_v41 = vld [vmem:[%s11653_s8 + $0x1e0] sm:$0xff] }
0x35d9   :  { %8056 = vadd.xlane.f32.xlu1 %v8055_v1  ;;  %v8517_v1 = vld [vmem:[%s11653_s8 + $0x60] sm:$0xff] }
0x3662   :  { %v8057_v46 = vpop.xlane.xlu1 %8056 }
0x3663   :  { %v8058_v48 = vmul.f32 0.03125, %v8057_v46  ;;  %v8529_v46 = vld [vmem:[%s11653_s8 + $0xc0] sm:$0xff] }
0x3665   :  { %v8059_v50 = vadd.f32 1e-05, %v8058_v48  ;;  %v8561_v48 = vld [vmem:[%s11653_s8 + $0x1c0] sm:$0xff] }
0x3667   :  { %10302 = vrsqrt.f32 %v8059_v50  ;;  %v8513_v50 = vld [vmem:[%s11653_s8 + $0x40] sm:$0xff] }
0x3674   :  { %v10303_v51 = vpop.eup %10302 }
0x3675   :  { %v8061_v53 = vmul.f32 %v10303_v51, %v8053_v20  ;;  %v8533_v20 = vld [vmem:[%s11653_s8 + $0xe0] sm:$0xff] }
0x3676   :  { %v8545_v51 = vld [vmem:[%s11653_s8 + $0x140] sm:$0xff] }
0x3677   :  { %v8068_v30 = vmul.f32 %v9094_v52, %v8061_v53  ;;  %v8528_v52 = vld [vmem:[%s11653_s8 + $0xb8] sm:$0xff] }
0x3678   :  { %v8560_v53 = vld [vmem:[%s11653_s8 + $0x1b8] sm:$0xff] }
0x3679   :  { %v8075_v61 = vadd.f32 %v9095_v28, %v8068_v30  ;;  %v8512_v28 = vld [vmem:[%s11653_s8 + $0x38] sm:$0xff] }
0x367a   :  { %v8544_v30 = vld [vmem:[%s11653_s8 + $0x138] sm:$0xff] }
0x367b   :  { %10008 = vmatmul.mubr.msk.f32.vlgmr.msra.gmra.mxu1 %vm220_vm0, %v8075_v61  ;;  %v8527_v61 = vld [vmem:[%s11653_s8 + $0xb0] sm:$0xff] }
0x367c   :  { %8213 = vmatpush1.msra.mxu1 %v8181_v62  ;;  %8252 = vmatprep.mubr.f32.mxu1 %v10307_v34  ;;  %v8559_v62 = vld [vmem:[%s11653_s8 + $0x1b0] sm:$0xff] }
0x367d   :  { %8214 = vmatprep.subr.mxu1 %v8178_v63  ;;  %v8511_v63 = vld [vmem:[%s11653_s8 + $0x30] sm:$0xff] }
0x367e   :  { %8215 = vmatpush1.msra.mxu1 %v8177_v2  ;;  %v8543_v2 = vld [vmem:[%s11653_s8 + $0x130] sm:$0xff] }
0x367f   :  { %8216 = vmatprep.subr.mxu1 %v8174_v4  ;;  %v8526_v4 = vld [vmem:[%s11653_s8 + $0xa8] sm:$0xff] }
0x3680   :  { %8217 = vmatpush1.msra.mxu1 %v8173_v22  ;;  %v8558_v22 = vld [vmem:[%s11653_s8 + $0x1a8] sm:$0xff] }
0x3681   :  { %8218 = vmatprep.subr.mxu1 %v8170_v37  ;;  %v8510_v37 = vld [vmem:[%s11653_s8 + $0x28] sm:$0xff] }
0x3682   :  { %8219 = vmatpush1.msra.mxu1 %v8169_v47  ;;  %v8542_v47 = vld [vmem:[%s11653_s8 + $0x128] sm:$0xff] }
0x3683   :  { %8357 = vmatprep.subr.mxu1 %v8166_v31  ;;  %v8525_v31 = vld [vmem:[%s11653_s8 + $0xa0] sm:$0xff] }
0x373b   :  { %v8149_v6 = vpop.f32.mrf.mxu1 }
0x373c   :  { %9097 = vmatmul.mubr.msk.f32.vlgmr.msra.gmra.mxu1 %vm220_vm0, %v8149_v6  ;;  %9098 = vmatmul.mubr.msk.f32.vlgmr.msra.gmra.mxu0 %vm220_vm0, %v8149_v6  ;;  %v8524_v6 = vld [vmem:[%s11653_s8 + $0x98] sm:$0xff] }
0x373d   :  { %8358 = vmatpush1.msra.mxu1 %v8165_v5  ;;  %8429 = vmatpush1.msra.mxu0 %v8167_v54  ;;  %v10009_v13 = vpop.f32.mrf.mxu1  ;;  %v8509_v5 = vld [vmem:[%s11653_s8 + $0x20] sm:$0xff] }
0x373e   :  { %8359 = vmatprep.subr.mxu1 %v8162_v55  ;;  %8430 = vmatprep.subr.mxu0 %v8164_v7  ;;  %v8541_v54 = vld [vmem:[%s11653_s8 + $0x120] sm:$0xff]  ;;  %v8556_v55 = vld [vmem:[%s11653_s8 + $0x198] sm:$0xff]  ;;  %v8555_v13 = vld [vmem:[%s11653_s8 + $0x190] sm:$0xff] }
0x373f   :  { %8360 = vmatpush1.msra.mxu1 %v8161_v10  ;;  %8431 = vmatpush1.msra.mxu0 %v8163_v11  ;;  %v8508_v7 = vld [vmem:[%s11653_s8 + $0x18] sm:$0xff]  ;;  %v8523_v11 = vld [vmem:[%s11653_s8 + $0x90] sm:$0xff] }
0x3740   :  { %8361 = vmatprep.subr.mxu1 %v8158_v15  ;;  %8432 = vmatprep.subr.mxu0 %v8160_v16  ;;  %v8540_v10 = vld [vmem:[%s11653_s8 + $0x118] sm:$0xff]  ;;  %v8507_v15 = vld [vmem:[%s11653_s8 + $0x10] sm:$0xff] }
0x3741   :  { %8362 = vmatpush1.msra.mxu1 %v8157_v17  ;;  %8433 = vmatpush1.msra.mxu0 %v8159_v18  ;;  %v8539_v16 = vld [vmem:[%s11653_s8 + $0x110] sm:$0xff]  ;;  %v8522_v17 = vld [vmem:[%s11653_s8 + $0x88] sm:$0xff] }
0x3742   :  { %8363 = vmatprep.subr.mxu1 %v8154_v19  ;;  %8434 = vmatprep.subr.mxu0 %v8156_v21  ;;  %v8554_v18 = vld [vmem:[%s11653_s8 + $0x188] sm:$0xff] }
0x3743   :  { %8364 = vmatpush1.msra.mxu1 %v8153_v59  ;;  %8397 = vmatprep.mubr.f32.mxu1 %v10307_v34  ;;  %v8506_v19 = vld [vmem:[%s11653_s8 + $0x8] sm:$0xff]  ;;  %v8521_v59 = vld [vmem:[%s11653_s8 + $0x80] sm:$0xff] }
0x3744   :  { %8435 = vmatpush1.msra.mxu0 %v8155_v38  ;;  %8468 = vmatprep.mubr.f32.mxu0 %v10307_v34  ;;  %v8538_v21 = vld [vmem:[%s11653_s8 + $0x108] sm:$0xff]  ;;  %v8553_v38 = vld [vmem:[%s11653_s8 + $0x180] sm:$0xff] }
0x3745   :  { %9099 = vmatmul.mubr.msk.f32.vlgmr.msra.gmra.mxu1 %vm220_vm0, %v11031_v56  ;;  %9100 = vmatmul.mubr.msk.f32.vlgmr.msra.gmra.mxu0 %vm220_vm0, %v11031_v56  ;;  %v8550_v56 = vld [vmem:[%s11653_s8 + $0x168] sm:$0xff] }
0x3746   :  { %9359 = vmatprep.subr.mxu1 %v8536_v25  ;;  %9394 = vmatprep.subr.mxu0 %v8568_v26  ;;  %v8505_v25 = vld [vmem:[%s11653_s8] sm:$0xff] }
0x3747   :  { %9360 = vmatpush3.msra.mxu1 %v8520_v9  ;;  %9395 = vmatpush3.msra.mxu0 %v8552_v3  ;;  %v8537_v26 = vld [vmem:[%s11653_s8 + $0x100] sm:$0xff] }
0x3748   :  { %9361 = vmatprep.subr.mxu1 %v8535_v27  ;;  %9396 = vmatprep.subr.mxu0 %v8567_v40  ;;  %v8479_v27 = vsub.s32 0, %v10489_v57  ;;  %v8487_v40 = vsub.s32 2, %v10489_v57 }
0x3749   :  { %9362 = vmatpush3.msra.mxu1 %v8519_v58  ;;  %9397 = vmatpush3.msra.mxu0 %v8551_v29  ;;  %v8475_v58 = vld [vmem:[%s8854_s17] sm:$0xf]  ;;  %v8483_v29 = vsub.s32 1, %v10489_v57 }
0x374a   :  { %9363 = vmatprep.subr.mxu1 %v8534_v12  ;;  %9398 = vmatprep.subr.mxu0 %v8566_v60  ;;  %v8491_v12 = vsub.s32 3, %v10489_v57 }
0x374b   :  { %9364 = vmatpush3.msra.mxu1 %v8518_v23  ;;  %9399 = vmatpush3.msra.mxu0 %v8550_v56 }
0x374c   :  { %9365 = vmatprep.subr.mxu1 %v8533_v20  ;;  %9400 = vmatprep.subr.mxu0 %v8565_v41  ;;  %v8480_v20 = vrot.slane %v8475_v58, %v8479_v27 }
0x374d   :  { %9366 = vmatpush3.msra.mxu1 %v8517_v1  ;;  %9401 = vmatpush3.msra.mxu0 %v8549_v8  ;;  %v8488_v1 = vrot.slane %v8475_v58, %v8487_v40 }
0x374e   :  { %9367 = vmatprep.subr.mxu1 %v8532_v0  ;;  %9402 = vmatprep.subr.mxu0 %v8564_v32  ;;  %v8484_v32 = vrot.slane %v8475_v58, %v8483_v29 }
0x374f   :  { %9368 = vmatpush3.msra.mxu1 %v8516_v33  ;;  %9403 = vmatpush3.msra.mxu0 %v8548_v14  ;;  %v8492_v33 = vrot.slane %v8475_v58, %v8491_v12 }
0x3750   :  { %9369 = vmatprep.subr.mxu1 %v8531_v35  ;;  %9404 = vmatprep.subr.mxu0 %v8563_v24 }
0x3751   :  { %9370 = vmatpush3.msra.mxu1 %v8515_v36  ;;  %9405 = vmatpush3.msra.mxu0 %v8547_v39 }
0x3752   :  { %9371 = vmatprep.subr.mxu1 %v8530_v42  ;;  %9406 = vmatprep.subr.mxu0 %v8562_v43 }
0x3753   :  { %9372 = vmatpush3.msra.mxu1 %v8514_v44  ;;  %9407 = vmatpush3.msra.mxu0 %v8546_v45 }
0x3754   :  { %9373 = vmatprep.subr.mxu1 %v8529_v46  ;;  %9408 = vmatprep.subr.mxu0 %v8561_v48 }
0x3755   :  { %9374 = vmatpush3.msra.mxu1 %v8513_v50  ;;  %9409 = vmatpush3.msra.mxu0 %v8545_v51  ;;  %v8732_v50 = vld [vmem:[%s11750_s22 + $0x78] sm:$0xff]  ;;  %v8731_v51 = vld [vmem:[%s11750_s22 + $0x70] sm:$0xff] }
0x3756   :  { %9375 = vmatprep.subr.mxu1 %v8528_v52  ;;  %9410 = vmatprep.subr.mxu0 %v8560_v53  ;;  %v8730_v52 = vld [vmem:[%s11750_s22 + $0x68] sm:$0xff]  ;;  %v8729_v53 = vld [vmem:[%s11750_s22 + $0x60] sm:$0xff] }
0x3757   :  { %9376 = vmatpush3.msra.mxu1 %v8512_v28  ;;  %9411 = vmatpush3.msra.mxu0 %v8544_v30  ;;  %v8728_v28 = vld [vmem:[%s11750_s22 + $0x58] sm:$0xff]  ;;  %v8727_v30 = vld [vmem:[%s11750_s22 + $0x50] sm:$0xff] }
0x3758   :  { %9377 = vmatprep.subr.mxu1 %v8527_v61  ;;  %9412 = vmatprep.subr.mxu0 %v8559_v62  ;;  %v8726_v61 = vld [vmem:[%s11750_s22 + $0x48] sm:$0xff]  ;;  %v8725_v62 = vld [vmem:[%s11750_s22 + $0x40] sm:$0xff] }
0x3759   :  { %9378 = vmatpush3.msra.mxu1 %v8511_v63  ;;  %9413 = vmatpush3.msra.mxu0 %v8543_v2  ;;  %v8724_v63 = vld [vmem:[%s11750_s22 + $0x38] sm:$0xff]  ;;  %v8723_v2 = vld [vmem:[%s11750_s22 + $0x30] sm:$0xff] }
0x375a   :  { %9379 = vmatprep.subr.mxu1 %v8526_v4  ;;  %9414 = vmatprep.subr.mxu0 %v8558_v22  ;;  %v8722_v4 = vld [vmem:[%s11750_s22 + $0x28] sm:$0xff]  ;;  %v8721_v22 = vld [vmem:[%s11750_s22 + $0x20] sm:$0xff] }
0x375b   :  { %9380 = vmatpush3.msra.mxu1 %v8510_v37  ;;  %9415 = vmatpush3.msra.mxu0 %v8542_v47  ;;  %v8720_v37 = vld [vmem:[%s11750_s22 + $0x18] sm:$0xff]  ;;  %v8719_v47 = vld [vmem:[%s11750_s22 + $0x10] sm:$0xff] }
0x375c   :  { %9381 = vmatprep.subr.mxu1 %v8525_v31  ;;  %9416 = vmatprep.subr.mxu0 %v8557_v49  ;;  %v8718_v31 = vld [vmem:[%s11750_s22 + $0x8] sm:$0xff]  ;;  %v8717_v49 = vld [vmem:[%s11750_s22] sm:$0xff] }
0x375d   :  { %9382 = vmatpush3.msra.mxu1 %v8509_v5  ;;  %9417 = vmatpush3.msra.mxu0 %v8541_v54  ;;  %v94_v5 = vstv %s8858_s26 }
0x375e   :  { %9383 = vmatprep.subr.mxu1 %v8524_v6  ;;  %9418 = vmatprep.subr.mxu0 %v8556_v55  ;;  %95 = vst [vmem:[#allocation4] sm:$0x1] %v94_v5  ;;  %v9101_v55 = vld [vmem:[%s8856_s30] ss:$0 sm:$0xff] }
0x375f   :  { %9384 = vmatpush3.msra.mxu1 %v8508_v7  ;;  %9419 = vmatpush3.msra.mxu0 %v8540_v10 }
0x3760   :  { %9385 = vmatprep.subr.mxu1 %v8523_v11  ;;  %9420 = vmatprep.subr.mxu0 %v8555_v13 }
0x3761   :  { %9386 = vmatpush3.msra.mxu1 %v8507_v15  ;;  %9421 = vmatpush3.msra.mxu0 %v8539_v16 }
0x3762   :  { %9387 = vmatprep.subr.mxu1 %v8522_v17  ;;  %9422 = vmatprep.subr.mxu0 %v8554_v18 }
0x3763   :  { %9388 = vmatpush3.msra.mxu1 %v8506_v19  ;;  %9423 = vmatpush3.msra.mxu0 %v8538_v21 }
0x3764   :  { %9389 = vmatprep.subr.mxu1 %v8521_v59  ;;  %9424 = vmatprep.subr.mxu0 %v8553_v38 }
0x3765   :  { %9390 = vmatpush3.msra.mxu1 %v8505_v25  ;;  %9425 = vmatpush3.msra.mxu0 %v8537_v26  ;;  %v9102_v17 = vld [vmem:[#allocation4] ss:$0 sm:$0xff] }
0x3766   :  { %10010 = vmatprep.subr.mxu1 %v10307_v34 }
0x37fc   :  { %v8254_v9 = vpop.f32.mrf.mxu1  ;;  %v8325_v3 = vpop.f32.mrf.mxu0 }
0x37fe   :  { %v8256_v60 = vpop.f32.mrf.mxu1  ;;  %v8327_v23 = vpop.f32.mrf.mxu0 }
0x3805   :  { %v8399_v56 = vpop.f32.mrf.mxu1  ;;  %v8470_v41 = vpop.f32.mrf.mxu0 }
0x3806   :  { %v8400_v8 = vadd.f32 %v8399_v56, %v8254_v9  ;;  %v8471_v0 = vadd.f32 %v8470_v41, %v8325_v3 }
0x3807   :  { %v8401_v14 = vpop.f32.mrf.mxu1  ;;  %v8472_v35 = vpop.f32.mrf.mxu0 }
0x3808   :  { %v8402_v57 = vadd.f32 %v8401_v14, %v8256_v60  ;;  %v8473_v24 = vadd.f32 %v8472_v35, %v8327_v23  ;;  %v8497_v36 = vadd.f32 %v8480_v20, %v8400_v8  ;;  %v8499_v39 = vadd.f32 %v8488_v1, %v8471_v0 }
0x380a   :  { %v8498_v42 = vadd.f32 %v8484_v32, %v8402_v57  ;;  %v8500_v43 = vadd.f32 %v8492_v33, %v8473_v24  ;;  %v8501_v46 = vmax.f32 %v8497_v36, 0.0  ;;  %v8503_v48 = vmax.f32 %v8499_v39, 0.0 }
0x380c   :  { %v8502_v44 = vmax.f32 %v8498_v42, 0.0  ;;  %v8504_v45 = vmax.f32 %v8500_v43, 0.0 }
0x380e   :  { %8640 = vmatprep.mubr.f32.mxu1 %v8502_v44  ;;  %8710 = vmatprep.mubr.f32.mxu0 %v8504_v45 }
0x380f   :  { %8641 = vmatmul.mubr.f32.vlgmr.msra.gmra.mxu1 %v8501_v46  ;;  %8711 = vmatmul.mubr.f32.vlgmr.msra.gmra.mxu0 %v8503_v48 }
0x3810   :  { %10011 = vmatpush3.msra.mxu1 %v8732_v50  ;;  %10042 = vmatprep.mubr.msk.f32.mxu1 %vm10309_vm2, %v10307_v34 }
0x3811   :  { %10012 = vmatprep.subr.mxu1 %v10307_v34 }
0x3812   :  { %10013 = vmatpush3.msra.mxu1 %v8731_v51 }
0x3813   :  { %10014 = vmatprep.subr.mxu1 %v10307_v34 }
0x3814   :  { %10015 = vmatpush3.msra.mxu1 %v8730_v52 }
0x3815   :  { %10016 = vmatprep.subr.mxu1 %v10307_v34 }
0x3816   :  { %10017 = vmatpush3.msra.mxu1 %v8729_v53 }
0x3817   :  { %10018 = vmatprep.subr.mxu1 %v10307_v34 }
0x3818   :  { %10019 = vmatpush3.msra.mxu1 %v8728_v28 }
0x3819   :  { %10020 = vmatprep.subr.mxu1 %v10307_v34 }
0x381a   :  { %10021 = vmatpush3.msra.mxu1 %v8727_v30 }
0x381b   :  { %10022 = vmatprep.subr.mxu1 %v10307_v34 }
0x381c   :  { %10023 = vmatpush3.msra.mxu1 %v8726_v61 }
0x381d   :  { %10024 = vmatprep.subr.mxu1 %v10307_v34 }
0x381e   :  { %10025 = vmatpush3.msra.mxu1 %v8725_v62 }
0x381f   :  { %10026 = vmatprep.subr.mxu1 %v10307_v34 }
0x3820   :  { %10027 = vmatpush3.msra.mxu1 %v8724_v63 }
0x3821   :  { %10028 = vmatprep.subr.mxu1 %v10307_v34 }
0x3822   :  { %10029 = vmatpush3.msra.mxu1 %v8723_v2 }
0x3823   :  { %10030 = vmatprep.subr.mxu1 %v10307_v34 }
0x3824   :  { %10031 = vmatpush3.msra.mxu1 %v8722_v4 }
0x3825   :  { %10032 = vmatprep.subr.mxu1 %v10307_v34 }
0x3826   :  { %10033 = vmatpush3.msra.mxu1 %v8721_v22 }
0x3827   :  { %10034 = vmatprep.subr.mxu1 %v10307_v34 }
0x3828   :  { %10035 = vmatpush3.msra.mxu1 %v8720_v37 }
0x3829   :  { %10036 = vmatprep.subr.mxu1 %v10307_v34 }
0x382a   :  { %10037 = vmatpush3.msra.mxu1 %v8719_v47 }
0x382b   :  { %10038 = vmatprep.subr.mxu1 %v10307_v34 }
0x382c   :  { %10039 = vmatpush3.msra.mxu1 %v8718_v31 }
0x382d   :  { %10040 = vmatprep.subr.mxu1 %v10307_v34 }
0x382e   :  { %10041 = vmatpush3.msra.mxu1 %v8717_v49 }
0x38cf   :  { %v9391_v54 = vpop.f32.mrf.mxu1  ;;  %v9426_v6 = vpop.f32.mrf.mxu0 }
0x38d1   :  { %v9392_v7 = vpop.f32.mrf.mxu1  ;;  %v9427_v10 = vpop.f32.mrf.mxu0 }
0x38d2   :  { %v9393_v34 = vadd.f32 %v9392_v7, %v9391_v54  ;;  %v9428_v13 = vadd.f32 %v9427_v10, %v9426_v6 }
0x38d4   :  { %v8643_v11 = vadd.f32 %v9393_v34, %v9101_v55 }
0x38d6   :  { %v8713_v15 = vadd.f32 %v9428_v13, %v8643_v11 }
0x38d8   :  { %v8716_v16 = vmax.f32 %v8713_v15, 0.0 }
0x38da   :  { %10043 = vmatmul.mubr.f32.vlgmr.msra.gmra.mxu1 %v8716_v16 }
0x399a   :  { %v8806_v18 = vpop.f32.mrf.mxu1 }
0x399b   :  { %v8807_v19 = vadd.f32 %v9102_v17, %v8806_v18 }
0x399c   :  { %v10044_v21 = vpop.f32.mrf.mxu1 }
0x399d   :  { %8811 = vst.msk [vmem:[%s8859_s10] sm:$0x3] %vm8810_vm13, %v8807_v19 }

</bundles_post_ra>
